<compile_context>
chip_gen: v5e
topology: v5e:2x2
jax: 0.10.0
libtpu: 0.0.40
codegen_flags: <defaults>
</compile_context>

<pallas_src>
import jax
import jax.numpy as jnp
from jax import lax
from jax.experimental import pallas as pl
from jax.experimental.pallas import tpu as pltpu

nc = 3        # input channels (DCGAN default)
ndf = 8       # small feature width for the synthetic example
BN_EPS = 1e-5
LRELU_SLOPE = 0.2

_VMEM_SPEC = pl.BlockSpec(memory_space=pltpu.MemorySpace.VMEM)


# ---------------------------------------------------------------- kernel ----
def _lrelu(x):
    return jnp.where(x >= 0, x, LRELU_SLOPE * x)


def _disc_kernel(x_ref,
                 sh1_ref, m1_ref,
                 sh2_ref, m2_ref, g2_ref, gt2_ref, gb2_ref,
                 sh3_ref, m3_ref, g3_ref, gt3_ref, gb3_ref,
                 sh4_ref, m4_ref, g4_ref, gt4_ref, gb4_ref,
                 w5_ref, gn_ref,
                 o_ref):
    """Whole Discriminator forward.  Activations live as [N*H, C*W] f32 values."""

    def conv(a, sh_ref, m_ref):
        # y[n*OH+oh, co*OW+ow] = sum_kh (Sh_kh @ a) @ M_kh   (4x4, stride 2, pad 1)
        y = None
        for kh in range(4):
            rows = jnp.dot(sh_ref[kh], a, preferred_element_type=jnp.float32)
            t = jnp.dot(rows, m_ref[kh], preferred_element_type=jnp.float32)
            y = t if y is None else y + t
        return y

    def bn_lrelu(y, g_ref, gt_ref, gb_ref):
        # Training-mode BN (biased batch variance), single-pass stats.
        c = g_ref.shape[1]
        count = y.shape[0] * (y.shape[1] // c)          # N*OH*OW (static)
        inv = 1.0 / float(count)
        s1 = jnp.sum(y, axis=0, keepdims=True)          # [1, C*OW]
        s2 = jnp.sum(y * y, axis=0, keepdims=True)      # [1, C*OW]
        mean = jnp.dot(s1, g_ref[...], preferred_element_type=jnp.float32) * inv
        ex2 = jnp.dot(s2, g_ref[...], preferred_element_type=jnp.float32) * inv
        var = ex2 - mean * mean                         # [1, C]
        gamma = gb_ref[0:1, :]
        beta = gb_ref[1:2, :]
        scale = gamma * lax.rsqrt(var + BN_EPS)         # [1, C]
        shift = beta - mean * scale                     # [1, C]
        scale_l = jnp.dot(scale, gt_ref[...], preferred_element_type=jnp.float32)
        shift_l = jnp.dot(shift, gt_ref[...], preferred_element_type=jnp.float32)
        return _lrelu(y * scale_l + shift_l)

    a = x_ref[...]                                       # [N*64, 3*64]
    a = _lrelu(conv(a, sh1_ref, m1_ref))                 # [N*32, 8*32]
    a = bn_lrelu(conv(a, sh2_ref, m2_ref), g2_ref, gt2_ref, gb2_ref)   # [N*16, 16*16]
    a = bn_lrelu(conv(a, sh3_ref, m3_ref), g3_ref, gt3_ref, gb3_ref)   # [N*8, 32*8]
    a = bn_lrelu(conv(a, sh4_ref, m4_ref), g4_ref, gt4_ref, gb4_ref)   # [N*4, 64*4]

    # Head: 4x4 conv (valid) + sigmoid, folded in.
    zz = a * w5_ref[...]                                                # [N*4, 64*4]
    grouped = jnp.dot(gn_ref[...], zz, preferred_element_type=jnp.float32)  # [N, 64*4]
    z = jnp.sum(grouped, axis=1, keepdims=True)                         # [N, 1]
    o_ref[...] = 1.0 / (1.0 + jnp.exp(-z))


# -------------------------------------------------- weight preprocessing ----
def _build_row_select(hin, n):
    """Sh[kh] : [n*OH, n*Hin] 0/1, selecting input row h = 2*oh + kh - 1 (0 if OOB)."""
    oh = hin // 2
    o_idx = jnp.arange(oh)[:, None]
    h_idx = jnp.arange(hin)[None, :]
    eye_n = jnp.eye(n, dtype=jnp.float32)
    shs = []
    for kh in range(4):
        sel = (h_idx == 2 * o_idx + kh - 1).astype(jnp.float32)   # [OH, Hin]
        shs.append(jnp.kron(eye_n, sel))                          # block-diag over batch
    return jnp.stack(shs, axis=0)                                 # [4, n*OH, n*Hin]


def _build_tap_weights(w_oihw, win):
    """M[kh] : [Cin*Win, Cout*OW] with M[kh][ci*Win+w, co*OW+ow] = W[co,ci,kh,w+1-2ow]."""
    w_oihw = w_oihw.astype(jnp.float32)
    cout, cin = w_oihw.shape[0], w_oihw.shape[1]
    ow = win // 2
    w_idx = jnp.arange(win)[:, None]
    o_idx = jnp.arange(ow)[None, :]
    kwi = w_idx + 1 - 2 * o_idx                      # [Win, OW]
    valid = (kwi >= 0) & (kwi <= 3)
    kwi_c = jnp.clip(kwi, 0, 3)
    ms = []
    for kh in range(4):
        wk = w_oihw[:, :, kh, :]                     # [Cout, Cin, 4]
        sel = jnp.where(valid[None, None], wk[:, :, kwi_c], 0.0)  # [Cout, Cin, Win, OW]
        m = jnp.transpose(sel, (1, 2, 0, 3)).reshape(cin * win, cout * ow)
        ms.append(m)
    return jnp.stack(ms, axis=0)                     # [4, Cin*Win, Cout*OW]


def _build_bn_groupers(c, ow):
    """G [C*OW, C] sums the OW lanes of each channel; G^T broadcasts back."""
    g = jnp.repeat(jnp.eye(c, dtype=jnp.float32), ow, axis=0)
    return g, g.T


# ----------------------------------------------------------------- forward --
def discriminator_forward(x_nchw, params):
    n, cin, h0, w0 = x_nchw.shape
    assert cin == nc

    # Input relayout [N,C,H,W] -> stacked rows [N*H, C*W] (one tiny XLA op).
    x_rows = jnp.transpose(x_nchw.astype(jnp.float32), (0, 2, 1, 3)).reshape(n * h0, cin * w0)

    h1, w1_ = h0 // 2, w0 // 2
    h2, w2_ = h1 // 2, w1_ // 2
    h3, w3_ = h2 // 2, w2_ // 2
    h4, w4_ = h3 // 2, w3_ // 2
    assert h4 == 4 and w4_ == 4, "DCGAN discriminator expects 64x64 input"

    sh1 = _build_row_select(h0, n)
    m1 = _build_tap_weights(params["w1"], w0)

    sh2 = _build_row_select(h1, n)
    m2 = _build_tap_weights(params["w2"], w1_)
    g2, gt2 = _build_bn_groupers(2 * ndf, w2_)
    gb2 = jnp.stack([params["g2"], params["b2"]], axis=0).astype(jnp.float32)

    sh3 = _build_row_select(h2, n)
    m3 = _build_tap_weights(params["w3"], w2_)
    g3, gt3 = _build_bn_groupers(4 * ndf, w3_)
    gb3 = jnp.stack([params["g3"], params["b3"]], axis=0).astype(jnp.float32)

    sh4 = _build_row_select(h3, n)
    m4 = _build_tap_weights(params["w4"], w3_)
    g4, gt4 = _build_bn_groupers(8 * ndf, w4_)
    gb4 = jnp.stack([params["g4"], params["b4"]], axis=0).astype(jnp.float32)

    c4 = 8 * ndf
    w5m = jnp.transpose(params["w5"].astype(jnp.float32)[0], (1, 0, 2)).reshape(h4, c4 * w4_)
    w5t = jnp.tile(w5m, (n, 1))                                      # [N*4, C4*4]
    gn = jnp.kron(jnp.eye(n, dtype=jnp.float32),
                  jnp.ones((1, h4), jnp.float32))                    # [N, N*4]

    out = pl.pallas_call(
        _disc_kernel,
        out_shape=jax.ShapeDtypeStruct((n, 1), jnp.float32),
        in_specs=[_VMEM_SPEC] * 20,
        out_specs=_VMEM_SPEC,
    )(x_rows, sh1, m1,
      sh2, m2, g2, gt2, gb2,
      sh3, m3, g3, gt3, gb3,
      sh4, m4, g4, gt4, gb4,
      w5t, gn)

    return out.reshape(n, 1, 1, 1)


# --------------------------------------------------------------- reference --
def _reference_forward(x, params):
    def conv(x, w, stride, pad):
        return lax.conv_general_dilated(
            x, w, window_strides=(stride, stride),
            padding=((pad, pad), (pad, pad)),
            dimension_numbers=("NCHW", "OIHW", "NCHW"))

    def bn(x, g, b):
        mean = jnp.mean(x, axis=(0, 2, 3), keepdims=True)
        var = jnp.mean((x - mean) ** 2, axis=(0, 2, 3), keepdims=True)
        return (x - mean) * lax.rsqrt(var + BN_EPS) * g.reshape(1, -1, 1, 1) \
            + b.reshape(1, -1, 1, 1)

    y = _lrelu(conv(x, params["w1"], 2, 1))
    y = _lrelu(bn(conv(y, params["w2"], 2, 1), params["g2"], params["b2"]))
    y = _lrelu(bn(conv(y, params["w3"], 2, 1), params["g3"], params["b3"]))
    y = _lrelu(bn(conv(y, params["w4"], 2, 1), params["g4"], params["b4"]))
    y = conv(y, params["w5"], 1, 0)
    return jax.nn.sigmoid(y)


# ------------------------------------------------------------------ main ----
def init_params(key):
    ks = jax.random.split(key, 5)

    def conv_w(k, o, i):
        return (0.02 * jax.random.normal(k, (o, i, 4, 4))).astype(jnp.float32)

    return {
        "w1": conv_w(ks[0], ndf,     nc),
        "w2": conv_w(ks[1], ndf * 2, ndf),
        "g2": jnp.ones((ndf * 2,), jnp.float32),
        "b2": jnp.zeros((ndf * 2,), jnp.float32),
        "w3": conv_w(ks[2], ndf * 4, ndf * 2),
        "g3": jnp.ones((ndf * 4,), jnp.float32),
        "b3": jnp.zeros((ndf * 4,), jnp.float32),
        "w4": conv_w(ks[3], ndf * 8, ndf * 4),
        "g4": jnp.ones((ndf * 8,), jnp.float32),
        "b4": jnp.zeros((ndf * 8,), jnp.float32),
        "w5": conv_w(ks[4], 1,       ndf * 8),
    }


if __name__ == "__main__":
    key = jax.random.PRNGKey(0)
    k_x, k_p = jax.random.split(key)
    # DCGAN discriminator requires 64x64 spatial input (4x stride-2 + final 4x4).
    x = jax.random.normal(k_x, (2, nc, 64, 64), dtype=jnp.float32)
    params = init_params(k_p)

    out = jax.jit(discriminator_forward)(x, params)
    out = jax.block_until_ready(out)

    assert out.shape == (2, 1, 1, 1), out.shape
    assert bool(jnp.all(jnp.isfinite(out)))
    assert bool(jnp.all((out >= 0.0) & (out <= 1.0)))       # sigmoid range

    ref = _reference_forward(x, params)
    max_diff = float(jnp.max(jnp.abs(out - ref)))
    assert max_diff < 5e-2, f"mismatch vs reference: {max_diff}"

    print("KERNEL_OK")
</pallas_src>

<mosaic_0001>
module attributes {stable_mosaic.version = 11 : i64} {
  func.func @_disc_kernel(%arg0: memref<128x192xf32, #tpu.memory_space<vmem>>, %arg1: memref<4x64x128xf32, #tpu.memory_space<vmem>>, %arg2: memref<4x192x256xf32, #tpu.memory_space<vmem>>, %arg3: memref<4x32x64xf32, #tpu.memory_space<vmem>>, %arg4: memref<4x256x256xf32, #tpu.memory_space<vmem>>, %arg5: memref<256x16xf32, #tpu.memory_space<vmem>>, %arg6: memref<16x256xf32, #tpu.memory_space<vmem>>, %arg7: memref<2x16xf32, #tpu.memory_space<vmem>>, %arg8: memref<4x16x32xf32, #tpu.memory_space<vmem>>, %arg9: memref<4x256x256xf32, #tpu.memory_space<vmem>>, %arg10: memref<256x32xf32, #tpu.memory_space<vmem>>, %arg11: memref<32x256xf32, #tpu.memory_space<vmem>>, %arg12: memref<2x32xf32, #tpu.memory_space<vmem>>, %arg13: memref<4x8x16xf32, #tpu.memory_space<vmem>>, %arg14: memref<4x256x256xf32, #tpu.memory_space<vmem>>, %arg15: memref<256x64xf32, #tpu.memory_space<vmem>>, %arg16: memref<64x256xf32, #tpu.memory_space<vmem>>, %arg17: memref<2x64xf32, #tpu.memory_space<vmem>>, %arg18: memref<8x256xf32, #tpu.memory_space<vmem>>, %arg19: memref<2x8xf32, #tpu.memory_space<vmem>>, %arg20: memref<2x1xf32, #tpu.memory_space<vmem>>) attributes {dimension_semantics = [], scalar_prefetch = 0 : i64, scratch_operands = 0 : i64, tpu.core_type = #tpu.core_type<tc>} {
    %c0 = arith.constant 0 : index
    %c0_0 = arith.constant 0 : index
    %0 = vector.load %arg0[%c0, %c0_0] : memref<128x192xf32, #tpu.memory_space<vmem>>, vector<128x192xf32>
    %c0_1 = arith.constant 0 : index
    %c0_2 = arith.constant 0 : index
    %c0_3 = arith.constant 0 : index
    %1 = vector.load %arg1[%c0_1, %c0_2, %c0_3] : memref<4x64x128xf32, #tpu.memory_space<vmem>>, vector<1x64x128xf32>
    %2 = vector.shape_cast %1 : vector<1x64x128xf32> to vector<64x128xf32>
    %cst = arith.constant dense<0.000000e+00> : vector<64x192xf32>
    %3 = tpu.matmul %2, %0, %cst {dimension_numbers = #tpu.dot_dimension_numbers<[1], [0], [0], [1], [0, 0, 1, 1], [], []>} : vector<64x128xf32>, vector<128x192xf32>, vector<64x192xf32> -> vector<64x192xf32>
    %c0_4 = arith.constant 0 : index
    %c0_5 = arith.constant 0 : index
    %c0_6 = arith.constant 0 : index
    %4 = vector.load %arg2[%c0_4, %c0_5, %c0_6] : memref<4x192x256xf32, #tpu.memory_space<vmem>>, vector<1x192x256xf32>
    %5 = vector.shape_cast %4 : vector<1x192x256xf32> to vector<192x256xf32>
    %cst_7 = arith.constant dense<0.000000e+00> : vector<64x256xf32>
    %6 = tpu.matmul %3, %5, %cst_7 {dimension_numbers = #tpu.dot_dimension_numbers<[1], [0], [0], [1], [0, 0, 1, 1], [], []>} : vector<64x192xf32>, vector<192x256xf32>, vector<64x256xf32> -> vector<64x256xf32>
    %c1 = arith.constant 1 : index
    %c0_8 = arith.constant 0 : index
    %c0_9 = arith.constant 0 : index
    %7 = vector.load %arg1[%c1, %c0_8, %c0_9] : memref<4x64x128xf32, #tpu.memory_space<vmem>>, vector<1x64x128xf32>
    %8 = vector.shape_cast %7 : vector<1x64x128xf32> to vector<64x128xf32>
    %cst_10 = arith.constant dense<0.000000e+00> : vector<64x192xf32>
    %9 = tpu.matmul %8, %0, %cst_10 {dimension_numbers = #tpu.dot_dimension_numbers<[1], [0], [0], [1], [0, 0, 1, 1], [], []>} : vector<64x128xf32>, vector<128x192xf32>, vector<64x192xf32> -> vector<64x192xf32>
    %c1_11 = arith.constant 1 : index
    %c0_12 = arith.constant 0 : index
    %c0_13 = arith.constant 0 : index
    %10 = vector.load %arg2[%c1_11, %c0_12, %c0_13] : memref<4x192x256xf32, #tpu.memory_space<vmem>>, vector<1x192x256xf32>
    %11 = vector.shape_cast %10 : vector<1x192x256xf32> to vector<192x256xf32>
    %cst_14 = arith.constant dense<0.000000e+00> : vector<64x256xf32>
    %12 = tpu.matmul %9, %11, %cst_14 {dimension_numbers = #tpu.dot_dimension_numbers<[1], [0], [0], [1], [0, 0, 1, 1], [], []>} : vector<64x192xf32>, vector<192x256xf32>, vector<64x256xf32> -> vector<64x256xf32>
    %13 = arith.addf %6, %12 : vector<64x256xf32>
    %c2 = arith.constant 2 : index
    %c0_15 = arith.constant 0 : index
    %c0_16 = arith.constant 0 : index
    %14 = vector.load %arg1[%c2, %c0_15, %c0_16] : memref<4x64x128xf32, #tpu.memory_space<vmem>>, vector<1x64x128xf32>
    %15 = vector.shape_cast %14 : vector<1x64x128xf32> to vector<64x128xf32>
    %cst_17 = arith.constant dense<0.000000e+00> : vector<64x192xf32>
    %16 = tpu.matmul %15, %0, %cst_17 {dimension_numbers = #tpu.dot_dimension_numbers<[1], [0], [0], [1], [0, 0, 1, 1], [], []>} : vector<64x128xf32>, vector<128x192xf32>, vector<64x192xf32> -> vector<64x192xf32>
    %c2_18 = arith.constant 2 : index
    %c0_19 = arith.constant 0 : index
    %c0_20 = arith.constant 0 : index
    %17 = vector.load %arg2[%c2_18, %c0_19, %c0_20] : memref<4x192x256xf32, #tpu.memory_space<vmem>>, vector<1x192x256xf32>
    %18 = vector.shape_cast %17 : vector<1x192x256xf32> to vector<192x256xf32>
    %cst_21 = arith.constant dense<0.000000e+00> : vector<64x256xf32>
    %19 = tpu.matmul %16, %18, %cst_21 {dimension_numbers = #tpu.dot_dimension_numbers<[1], [0], [0], [1], [0, 0, 1, 1], [], []>} : vector<64x192xf32>, vector<192x256xf32>, vector<64x256xf32> -> vector<64x256xf32>
    %20 = arith.addf %13, %19 : vector<64x256xf32>
    %c3 = arith.constant 3 : index
    %c0_22 = arith.constant 0 : index
    %c0_23 = arith.constant 0 : index
    %21 = vector.load %arg1[%c3, %c0_22, %c0_23] : memref<4x64x128xf32, #tpu.memory_space<vmem>>, vector<1x64x128xf32>
    %22 = vector.shape_cast %21 : vector<1x64x128xf32> to vector<64x128xf32>
    %cst_24 = arith.constant dense<0.000000e+00> : vector<64x192xf32>
    %23 = tpu.matmul %22, %0, %cst_24 {dimension_numbers = #tpu.dot_dimension_numbers<[1], [0], [0], [1], [0, 0, 1, 1], [], []>} : vector<64x128xf32>, vector<128x192xf32>, vector<64x192xf32> -> vector<64x192xf32>
    %c3_25 = arith.constant 3 : index
    %c0_26 = arith.constant 0 : index
    %c0_27 = arith.constant 0 : index
    %24 = vector.load %arg2[%c3_25, %c0_26, %c0_27] : memref<4x192x256xf32, #tpu.memory_space<vmem>>, vector<1x192x256xf32>
    %25 = vector.shape_cast %24 : vector<1x192x256xf32> to vector<192x256xf32>
    %cst_28 = arith.constant dense<0.000000e+00> : vector<64x256xf32>
    %26 = tpu.matmul %23, %25, %cst_28 {dimension_numbers = #tpu.dot_dimension_numbers<[1], [0], [0], [1], [0, 0, 1, 1], [], []>} : vector<64x192xf32>, vector<192x256xf32>, vector<64x256xf32> -> vector<64x256xf32>
    %27 = arith.addf %20, %26 : vector<64x256xf32>
    %cst_29 = arith.constant 0.000000e+00 : f32
    %28 = vector.broadcast %cst_29 : f32 to vector<64x256xf32>
    %29 = arith.cmpf oge, %27, %28 : vector<64x256xf32>
    %cst_30 = arith.constant 2.000000e-01 : f32
    %30 = vector.broadcast %cst_30 : f32 to vector<64x256xf32>
    %31 = arith.mulf %30, %27 : vector<64x256xf32>
    %32 = arith.select %29, %27, %31 : vector<64x256xi1>, vector<64x256xf32>
    %c0_31 = arith.constant 0 : index
    %c0_32 = arith.constant 0 : index
    %c0_33 = arith.constant 0 : index
    %33 = vector.load %arg3[%c0_31, %c0_32, %c0_33] : memref<4x32x64xf32, #tpu.memory_space<vmem>>, vector<1x32x64xf32>
    %34 = vector.shape_cast %33 : vector<1x32x64xf32> to vector<32x64xf32>
    %cst_34 = arith.constant dense<0.000000e+00> : vector<32x256xf32>
    %35 = tpu.matmul %34, %32, %cst_34 {dimension_numbers = #tpu.dot_dimension_numbers<[1], [0], [0], [1], [0, 0, 1, 1], [], []>} : vector<32x64xf32>, vector<64x256xf32>, vector<32x256xf32> -> vector<32x256xf32>
    %c0_35 = arith.constant 0 : index
    %c0_36 = arith.constant 0 : index
    %c0_37 = arith.constant 0 : index
    %36 = vector.load %arg4[%c0_35, %c0_36, %c0_37] : memref<4x256x256xf32, #tpu.memory_space<vmem>>, vector<1x256x256xf32>
    %37 = vector.shape_cast %36 : vector<1x256x256xf32> to vector<256x256xf32>
    %cst_38 = arith.constant dense<0.000000e+00> : vector<32x256xf32>
    %38 = tpu.matmul %35, %37, %cst_38 {dimension_numbers = #tpu.dot_dimension_numbers<[1], [0], [0], [1], [0, 0, 1, 1], [], []>} : vector<32x256xf32>, vector<256x256xf32>, vector<32x256xf32> -> vector<32x256xf32>
    %c1_39 = arith.constant 1 : index
    %c0_40 = arith.constant 0 : index
    %c0_41 = arith.constant 0 : index
    %39 = vector.load %arg3[%c1_39, %c0_40, %c0_41] : memref<4x32x64xf32, #tpu.memory_space<vmem>>, vector<1x32x64xf32>
    %40 = vector.shape_cast %39 : vector<1x32x64xf32> to vector<32x64xf32>
    %cst_42 = arith.constant dense<0.000000e+00> : vector<32x256xf32>
    %41 = tpu.matmul %40, %32, %cst_42 {dimension_numbers = #tpu.dot_dimension_numbers<[1], [0], [0], [1], [0, 0, 1, 1], [], []>} : vector<32x64xf32>, vector<64x256xf32>, vector<32x256xf32> -> vector<32x256xf32>
    %c1_43 = arith.constant 1 : index
    %c0_44 = arith.constant 0 : index
    %c0_45 = arith.constant 0 : index
    %42 = vector.load %arg4[%c1_43, %c0_44, %c0_45] : memref<4x256x256xf32, #tpu.memory_space<vmem>>, vector<1x256x256xf32>
    %43 = vector.shape_cast %42 : vector<1x256x256xf32> to vector<256x256xf32>
    %cst_46 = arith.constant dense<0.000000e+00> : vector<32x256xf32>
    %44 = tpu.matmul %41, %43, %cst_46 {dimension_numbers = #tpu.dot_dimension_numbers<[1], [0], [0], [1], [0, 0, 1, 1], [], []>} : vector<32x256xf32>, vector<256x256xf32>, vector<32x256xf32> -> vector<32x256xf32>
    %45 = arith.addf %38, %44 : vector<32x256xf32>
    %c2_47 = arith.constant 2 : index
    %c0_48 = arith.constant 0 : index
    %c0_49 = arith.constant 0 : index
    %46 = vector.load %arg3[%c2_47, %c0_48, %c0_49] : memref<4x32x64xf32, #tpu.memory_space<vmem>>, vector<1x32x64xf32>
    %47 = vector.shape_cast %46 : vector<1x32x64xf32> to vector<32x64xf32>
    %cst_50 = arith.constant dense<0.000000e+00> : vector<32x256xf32>
    %48 = tpu.matmul %47, %32, %cst_50 {dimension_numbers = #tpu.dot_dimension_numbers<[1], [0], [0], [1], [0, 0, 1, 1], [], []>} : vector<32x64xf32>, vector<64x256xf32>, vector<32x256xf32> -> vector<32x256xf32>
    %c2_51 = arith.constant 2 : index
    %c0_52 = arith.constant 0 : index
    %c0_53 = arith.constant 0 : index
    %49 = vector.load %arg4[%c2_51, %c0_52, %c0_53] : memref<4x256x256xf32, #tpu.memory_space<vmem>>, vector<1x256x256xf32>
    %50 = vector.shape_cast %49 : vector<1x256x256xf32> to vector<256x256xf32>
    %cst_54 = arith.constant dense<0.000000e+00> : vector<32x256xf32>
    %51 = tpu.matmul %48, %50, %cst_54 {dimension_numbers = #tpu.dot_dimension_numbers<[1], [0], [0], [1], [0, 0, 1, 1], [], []>} : vector<32x256xf32>, vector<256x256xf32>, vector<32x256xf32> -> vector<32x256xf32>
    %52 = arith.addf %45, %51 : vector<32x256xf32>
    %c3_55 = arith.constant 3 : index
    %c0_56 = arith.constant 0 : index
    %c0_57 = arith.constant 0 : index
    %53 = vector.load %arg3[%c3_55, %c0_56, %c0_57] : memref<4x32x64xf32, #tpu.memory_space<vmem>>, vector<1x32x64xf32>
    %54 = vector.shape_cast %53 : vector<1x32x64xf32> to vector<32x64xf32>
    %cst_58 = arith.constant dense<0.000000e+00> : vector<32x256xf32>
    %55 = tpu.matmul %54, %32, %cst_58 {dimension_numbers = #tpu.dot_dimension_numbers<[1], [0], [0], [1], [0, 0, 1, 1], [], []>} : vector<32x64xf32>, vector<64x256xf32>, vector<32x256xf32> -> vector<32x256xf32>
    %c3_59 = arith.constant 3 : index
    %c0_60 = arith.constant 0 : index
    %c0_61 = arith.constant 0 : index
    %56 = vector.load %arg4[%c3_59, %c0_60, %c0_61] : memref<4x256x256xf32, #tpu.memory_space<vmem>>, vector<1x256x256xf32>
    %57 = vector.shape_cast %56 : vector<1x256x256xf32> to vector<256x256xf32>
    %cst_62 = arith.constant dense<0.000000e+00> : vector<32x256xf32>
    %58 = tpu.matmul %55, %57, %cst_62 {dimension_numbers = #tpu.dot_dimension_numbers<[1], [0], [0], [1], [0, 0, 1, 1], [], []>} : vector<32x256xf32>, vector<256x256xf32>, vector<32x256xf32> -> vector<32x256xf32>
    %59 = arith.addf %52, %58 : vector<32x256xf32>
    %cst_63 = arith.constant dense<0.000000e+00> : vector<256xf32>
    %60 = vector.multi_reduction <add>, %59, %cst_63 [0] : vector<32x256xf32> to vector<256xf32>
    %61 = vector.shape_cast %60 : vector<256xf32> to vector<1x256xf32>
    %62 = arith.mulf %59, %59 : vector<32x256xf32>
    %cst_64 = arith.constant dense<0.000000e+00> : vector<256xf32>
    %63 = vector.multi_reduction <add>, %62, %cst_64 [0] : vector<32x256xf32> to vector<256xf32>
    %64 = vector.shape_cast %63 : vector<256xf32> to vector<1x256xf32>
    %c0_65 = arith.constant 0 : index
    %c0_66 = arith.constant 0 : index
    %65 = vector.load %arg5[%c0_65, %c0_66] : memref<256x16xf32, #tpu.memory_space<vmem>>, vector<256x16xf32>
    %cst_67 = arith.constant dense<0.000000e+00> : vector<1x16xf32>
    %66 = tpu.matmul %61, %65, %cst_67 {dimension_numbers = #tpu.dot_dimension_numbers<[1], [0], [0], [1], [0, 0, 1, 1], [], []>} : vector<1x256xf32>, vector<256x16xf32>, vector<1x16xf32> -> vector<1x16xf32>
    %cst_68 = arith.constant 0.001953125 : f32
    %67 = vector.broadcast %cst_68 : f32 to vector<1x16xf32>
    %68 = arith.mulf %66, %67 : vector<1x16xf32>
    %c0_69 = arith.constant 0 : index
    %c0_70 = arith.constant 0 : index
    %69 = vector.load %arg5[%c0_69, %c0_70] : memref<256x16xf32, #tpu.memory_space<vmem>>, vector<256x16xf32>
    %cst_71 = arith.constant dense<0.000000e+00> : vector<1x16xf32>
    %70 = tpu.matmul %64, %69, %cst_71 {dimension_numbers = #tpu.dot_dimension_numbers<[1], [0], [0], [1], [0, 0, 1, 1], [], []>} : vector<1x256xf32>, vector<256x16xf32>, vector<1x16xf32> -> vector<1x16xf32>
    %cst_72 = arith.constant 0.001953125 : f32
    %71 = vector.broadcast %cst_72 : f32 to vector<1x16xf32>
    %72 = arith.mulf %70, %71 : vector<1x16xf32>
    %73 = arith.mulf %68, %68 : vector<1x16xf32>
    %74 = arith.subf %72, %73 : vector<1x16xf32>
    %c0_73 = arith.constant 0 : index
    %c0_74 = arith.constant 0 : index
    %75 = vector.load %arg7[%c0_73, %c0_74] : memref<2x16xf32, #tpu.memory_space<vmem>>, vector<1x16xf32>
    %c1_75 = arith.constant 1 : index
    %c0_76 = arith.constant 0 : index
    %76 = vector.load %arg7[%c1_75, %c0_76] : memref<2x16xf32, #tpu.memory_space<vmem>>, vector<1x16xf32>
    %cst_77 = arith.constant 9.99999974E-6 : f32
    %77 = vector.broadcast %cst_77 : f32 to vector<1x16xf32>
    %78 = arith.addf %74, %77 : vector<1x16xf32>
    %79 = math.rsqrt %78 : vector<1x16xf32>
    %80 = arith.mulf %75, %79 : vector<1x16xf32>
    %81 = arith.mulf %68, %80 : vector<1x16xf32>
    %82 = arith.subf %76, %81 : vector<1x16xf32>
    %c0_78 = arith.constant 0 : index
    %c0_79 = arith.constant 0 : index
    %83 = vector.load %arg6[%c0_78, %c0_79] : memref<16x256xf32, #tpu.memory_space<vmem>>, vector<16x256xf32>
    %cst_80 = arith.constant dense<0.000000e+00> : vector<1x256xf32>
    %84 = tpu.matmul %80, %83, %cst_80 {dimension_numbers = #tpu.dot_dimension_numbers<[1], [0], [0], [1], [0, 0, 1, 1], [], []>} : vector<1x16xf32>, vector<16x256xf32>, vector<1x256xf32> -> vector<1x256xf32>
    %c0_81 = arith.constant 0 : index
    %c0_82 = arith.constant 0 : index
    %85 = vector.load %arg6[%c0_81, %c0_82] : memref<16x256xf32, #tpu.memory_space<vmem>>, vector<16x256xf32>
    %cst_83 = arith.constant dense<0.000000e+00> : vector<1x256xf32>
    %86 = tpu.matmul %82, %85, %cst_83 {dimension_numbers = #tpu.dot_dimension_numbers<[1], [0], [0], [1], [0, 0, 1, 1], [], []>} : vector<1x16xf32>, vector<16x256xf32>, vector<1x256xf32> -> vector<1x256xf32>
    %87 = vector.broadcast %84 : vector<1x256xf32> to vector<32x256xf32>
    %88 = arith.mulf %59, %87 : vector<32x256xf32>
    %89 = vector.broadcast %86 : vector<1x256xf32> to vector<32x256xf32>
    %90 = arith.addf %88, %89 : vector<32x256xf32>
    %cst_84 = arith.constant 0.000000e+00 : f32
    %91 = vector.broadcast %cst_84 : f32 to vector<32x256xf32>
    %92 = arith.cmpf oge, %90, %91 : vector<32x256xf32>
    %cst_85 = arith.constant 2.000000e-01 : f32
    %93 = vector.broadcast %cst_85 : f32 to vector<32x256xf32>
    %94 = arith.mulf %93, %90 : vector<32x256xf32>
    %95 = arith.select %92, %90, %94 : vector<32x256xi1>, vector<32x256xf32>
    %c0_86 = arith.constant 0 : index
    %c0_87 = arith.constant 0 : index
    %c0_88 = arith.constant 0 : index
    %96 = vector.load %arg8[%c0_86, %c0_87, %c0_88] : memref<4x16x32xf32, #tpu.memory_space<vmem>>, vector<1x16x32xf32>
    %97 = vector.shape_cast %96 : vector<1x16x32xf32> to vector<16x32xf32>
    %cst_89 = arith.constant dense<0.000000e+00> : vector<16x256xf32>
    %98 = tpu.matmul %97, %95, %cst_89 {dimension_numbers = #tpu.dot_dimension_numbers<[1], [0], [0], [1], [0, 0, 1, 1], [], []>} : vector<16x32xf32>, vector<32x256xf32>, vector<16x256xf32> -> vector<16x256xf32>
    %c0_90 = arith.constant 0 : index
    %c0_91 = arith.constant 0 : index
    %c0_92 = arith.constant 0 : index
    %99 = vector.load %arg9[%c0_90, %c0_91, %c0_92] : memref<4x256x256xf32, #tpu.memory_space<vmem>>, vector<1x256x256xf32>
    %100 = vector.shape_cast %99 : vector<1x256x256xf32> to vector<256x256xf32>
    %cst_93 = arith.constant dense<0.000000e+00> : vector<16x256xf32>
    %101 = tpu.matmul %98, %100, %cst_93 {dimension_numbers = #tpu.dot_dimension_numbers<[1], [0], [0], [1], [0, 0, 1, 1], [], []>} : vector<16x256xf32>, vector<256x256xf32>, vector<16x256xf32> -> vector<16x256xf32>
    %c1_94 = arith.constant 1 : index
    %c0_95 = arith.constant 0 : index
    %c0_96 = arith.constant 0 : index
    %102 = vector.load %arg8[%c1_94, %c0_95, %c0_96] : memref<4x16x32xf32, #tpu.memory_space<vmem>>, vector<1x16x32xf32>
    %103 = vector.shape_cast %102 : vector<1x16x32xf32> to vector<16x32xf32>
    %cst_97 = arith.constant dense<0.000000e+00> : vector<16x256xf32>
    %104 = tpu.matmul %103, %95, %cst_97 {dimension_numbers = #tpu.dot_dimension_numbers<[1], [0], [0], [1], [0, 0, 1, 1], [], []>} : vector<16x32xf32>, vector<32x256xf32>, vector<16x256xf32> -> vector<16x256xf32>
    %c1_98 = arith.constant 1 : index
    %c0_99 = arith.constant 0 : index
    %c0_100 = arith.constant 0 : index
    %105 = vector.load %arg9[%c1_98, %c0_99, %c0_100] : memref<4x256x256xf32, #tpu.memory_space<vmem>>, vector<1x256x256xf32>
    %106 = vector.shape_cast %105 : vector<1x256x256xf32> to vector<256x256xf32>
    %cst_101 = arith.constant dense<0.000000e+00> : vector<16x256xf32>
    %107 = tpu.matmul %104, %106, %cst_101 {dimension_numbers = #tpu.dot_dimension_numbers<[1], [0], [0], [1], [0, 0, 1, 1], [], []>} : vector<16x256xf32>, vector<256x256xf32>, vector<16x256xf32> -> vector<16x256xf32>
    %108 = arith.addf %101, %107 : vector<16x256xf32>
    %c2_102 = arith.constant 2 : index
    %c0_103 = arith.constant 0 : index
    %c0_104 = arith.constant 0 : index
    %109 = vector.load %arg8[%c2_102, %c0_103, %c0_104] : memref<4x16x32xf32, #tpu.memory_space<vmem>>, vector<1x16x32xf32>
    %110 = vector.shape_cast %109 : vector<1x16x32xf32> to vector<16x32xf32>
    %cst_105 = arith.constant dense<0.000000e+00> : vector<16x256xf32>
    %111 = tpu.matmul %110, %95, %cst_105 {dimension_numbers = #tpu.dot_dimension_numbers<[1], [0], [0], [1], [0, 0, 1, 1], [], []>} : vector<16x32xf32>, vector<32x256xf32>, vector<16x256xf32> -> vector<16x256xf32>
    %c2_106 = arith.constant 2 : index
    %c0_107 = arith.constant 0 : index
    %c0_108 = arith.constant 0 : index
    %112 = vector.load %arg9[%c2_106, %c0_107, %c0_108] : memref<4x256x256xf32, #tpu.memory_space<vmem>>, vector<1x256x256xf32>
    %113 = vector.shape_cast %112 : vector<1x256x256xf32> to vector<256x256xf32>
    %cst_109 = arith.constant dense<0.000000e+00> : vector<16x256xf32>
    %114 = tpu.matmul %111, %113, %cst_109 {dimension_numbers = #tpu.dot_dimension_numbers<[1], [0], [0], [1], [0, 0, 1, 1], [], []>} : vector<16x256xf32>, vector<256x256xf32>, vector<16x256xf32> -> vector<16x256xf32>
    %115 = arith.addf %108, %114 : vector<16x256xf32>
    %c3_110 = arith.constant 3 : index
    %c0_111 = arith.constant 0 : index
    %c0_112 = arith.constant 0 : index
    %116 = vector.load %arg8[%c3_110, %c0_111, %c0_112] : memref<4x16x32xf32, #tpu.memory_space<vmem>>, vector<1x16x32xf32>
    %117 = vector.shape_cast %116 : vector<1x16x32xf32> to vector<16x32xf32>
    %cst_113 = arith.constant dense<0.000000e+00> : vector<16x256xf32>
    %118 = tpu.matmul %117, %95, %cst_113 {dimension_numbers = #tpu.dot_dimension_numbers<[1], [0], [0], [1], [0, 0, 1, 1], [], []>} : vector<16x32xf32>, vector<32x256xf32>, vector<16x256xf32> -> vector<16x256xf32>
    %c3_114 = arith.constant 3 : index
    %c0_115 = arith.constant 0 : index
    %c0_116 = arith.constant 0 : index
    %119 = vector.load %arg9[%c3_114, %c0_115, %c0_116] : memref<4x256x256xf32, #tpu.memory_space<vmem>>, vector<1x256x256xf32>
    %120 = vector.shape_cast %119 : vector<1x256x256xf32> to vector<256x256xf32>
    %cst_117 = arith.constant dense<0.000000e+00> : vector<16x256xf32>
    %121 = tpu.matmul %118, %120, %cst_117 {dimension_numbers = #tpu.dot_dimension_numbers<[1], [0], [0], [1], [0, 0, 1, 1], [], []>} : vector<16x256xf32>, vector<256x256xf32>, vector<16x256xf32> -> vector<16x256xf32>
    %122 = arith.addf %115, %121 : vector<16x256xf32>
    %cst_118 = arith.constant dense<0.000000e+00> : vector<256xf32>
    %123 = vector.multi_reduction <add>, %122, %cst_118 [0] : vector<16x256xf32> to vector<256xf32>
    %124 = vector.shape_cast %123 : vector<256xf32> to vector<1x256xf32>
    %125 = arith.mulf %122, %122 : vector<16x256xf32>
    %cst_119 = arith.constant dense<0.000000e+00> : vector<256xf32>
    %126 = vector.multi_reduction <add>, %125, %cst_119 [0] : vector<16x256xf32> to vector<256xf32>
    %127 = vector.shape_cast %126 : vector<256xf32> to vector<1x256xf32>
    %c0_120 = arith.constant 0 : index
    %c0_121 = arith.constant 0 : index
    %128 = vector.load %arg10[%c0_120, %c0_121] : memref<256x32xf32, #tpu.memory_space<vmem>>, vector<256x32xf32>
    %cst_122 = arith.constant dense<0.000000e+00> : vector<1x32xf32>
    %129 = tpu.matmul %124, %128, %cst_122 {dimension_numbers = #tpu.dot_dimension_numbers<[1], [0], [0], [1], [0, 0, 1, 1], [], []>} : vector<1x256xf32>, vector<256x32xf32>, vector<1x32xf32> -> vector<1x32xf32>
    %cst_123 = arith.constant 7.812500e-03 : f32
    %130 = vector.broadcast %cst_123 : f32 to vector<1x32xf32>
    %131 = arith.mulf %129, %130 : vector<1x32xf32>
    %c0_124 = arith.constant 0 : index
    %c0_125 = arith.constant 0 : index
    %132 = vector.load %arg10[%c0_124, %c0_125] : memref<256x32xf32, #tpu.memory_space<vmem>>, vector<256x32xf32>
    %cst_126 = arith.constant dense<0.000000e+00> : vector<1x32xf32>
    %133 = tpu.matmul %127, %132, %cst_126 {dimension_numbers = #tpu.dot_dimension_numbers<[1], [0], [0], [1], [0, 0, 1, 1], [], []>} : vector<1x256xf32>, vector<256x32xf32>, vector<1x32xf32> -> vector<1x32xf32>
    %cst_127 = arith.constant 7.812500e-03 : f32
    %134 = vector.broadcast %cst_127 : f32 to vector<1x32xf32>
    %135 = arith.mulf %133, %134 : vector<1x32xf32>
    %136 = arith.mulf %131, %131 : vector<1x32xf32>
    %137 = arith.subf %135, %136 : vector<1x32xf32>
    %c0_128 = arith.constant 0 : index
    %c0_129 = arith.constant 0 : index
    %138 = vector.load %arg12[%c0_128, %c0_129] : memref<2x32xf32, #tpu.memory_space<vmem>>, vector<1x32xf32>
    %c1_130 = arith.constant 1 : index
    %c0_131 = arith.constant 0 : index
    %139 = vector.load %arg12[%c1_130, %c0_131] : memref<2x32xf32, #tpu.memory_space<vmem>>, vector<1x32xf32>
    %cst_132 = arith.constant 9.99999974E-6 : f32
    %140 = vector.broadcast %cst_132 : f32 to vector<1x32xf32>
    %141 = arith.addf %137, %140 : vector<1x32xf32>
    %142 = math.rsqrt %141 : vector<1x32xf32>
    %143 = arith.mulf %138, %142 : vector<1x32xf32>
    %144 = arith.mulf %131, %143 : vector<1x32xf32>
    %145 = arith.subf %139, %144 : vector<1x32xf32>
    %c0_133 = arith.constant 0 : index
    %c0_134 = arith.constant 0 : index
    %146 = vector.load %arg11[%c0_133, %c0_134] : memref<32x256xf32, #tpu.memory_space<vmem>>, vector<32x256xf32>
    %cst_135 = arith.constant dense<0.000000e+00> : vector<1x256xf32>
    %147 = tpu.matmul %143, %146, %cst_135 {dimension_numbers = #tpu.dot_dimension_numbers<[1], [0], [0], [1], [0, 0, 1, 1], [], []>} : vector<1x32xf32>, vector<32x256xf32>, vector<1x256xf32> -> vector<1x256xf32>
    %c0_136 = arith.constant 0 : index
    %c0_137 = arith.constant 0 : index
    %148 = vector.load %arg11[%c0_136, %c0_137] : memref<32x256xf32, #tpu.memory_space<vmem>>, vector<32x256xf32>
    %cst_138 = arith.constant dense<0.000000e+00> : vector<1x256xf32>
    %149 = tpu.matmul %145, %148, %cst_138 {dimension_numbers = #tpu.dot_dimension_numbers<[1], [0], [0], [1], [0, 0, 1, 1], [], []>} : vector<1x32xf32>, vector<32x256xf32>, vector<1x256xf32> -> vector<1x256xf32>
    %150 = vector.broadcast %147 : vector<1x256xf32> to vector<16x256xf32>
    %151 = arith.mulf %122, %150 : vector<16x256xf32>
    %152 = vector.broadcast %149 : vector<1x256xf32> to vector<16x256xf32>
    %153 = arith.addf %151, %152 : vector<16x256xf32>
    %cst_139 = arith.constant 0.000000e+00 : f32
    %154 = vector.broadcast %cst_139 : f32 to vector<16x256xf32>
    %155 = arith.cmpf oge, %153, %154 : vector<16x256xf32>
    %cst_140 = arith.constant 2.000000e-01 : f32
    %156 = vector.broadcast %cst_140 : f32 to vector<16x256xf32>
    %157 = arith.mulf %156, %153 : vector<16x256xf32>
    %158 = arith.select %155, %153, %157 : vector<16x256xi1>, vector<16x256xf32>
    %c0_141 = arith.constant 0 : index
    %c0_142 = arith.constant 0 : index
    %c0_143 = arith.constant 0 : index
    %159 = vector.load %arg13[%c0_141, %c0_142, %c0_143] : memref<4x8x16xf32, #tpu.memory_space<vmem>>, vector<1x8x16xf32>
    %160 = vector.shape_cast %159 : vector<1x8x16xf32> to vector<8x16xf32>
    %cst_144 = arith.constant dense<0.000000e+00> : vector<8x256xf32>
    %161 = tpu.matmul %160, %158, %cst_144 {dimension_numbers = #tpu.dot_dimension_numbers<[1], [0], [0], [1], [0, 0, 1, 1], [], []>} : vector<8x16xf32>, vector<16x256xf32>, vector<8x256xf32> -> vector<8x256xf32>
    %c0_145 = arith.constant 0 : index
    %c0_146 = arith.constant 0 : index
    %c0_147 = arith.constant 0 : index
    %162 = vector.load %arg14[%c0_145, %c0_146, %c0_147] : memref<4x256x256xf32, #tpu.memory_space<vmem>>, vector<1x256x256xf32>
    %163 = vector.shape_cast %162 : vector<1x256x256xf32> to vector<256x256xf32>
    %cst_148 = arith.constant dense<0.000000e+00> : vector<8x256xf32>
    %164 = tpu.matmul %161, %163, %cst_148 {dimension_numbers = #tpu.dot_dimension_numbers<[1], [0], [0], [1], [0, 0, 1, 1], [], []>} : vector<8x256xf32>, vector<256x256xf32>, vector<8x256xf32> -> vector<8x256xf32>
    %c1_149 = arith.constant 1 : index
    %c0_150 = arith.constant 0 : index
    %c0_151 = arith.constant 0 : index
    %165 = vector.load %arg13[%c1_149, %c0_150, %c0_151] : memref<4x8x16xf32, #tpu.memory_space<vmem>>, vector<1x8x16xf32>
    %166 = vector.shape_cast %165 : vector<1x8x16xf32> to vector<8x16xf32>
    %cst_152 = arith.constant dense<0.000000e+00> : vector<8x256xf32>
    %167 = tpu.matmul %166, %158, %cst_152 {dimension_numbers = #tpu.dot_dimension_numbers<[1], [0], [0], [1], [0, 0, 1, 1], [], []>} : vector<8x16xf32>, vector<16x256xf32>, vector<8x256xf32> -> vector<8x256xf32>
    %c1_153 = arith.constant 1 : index
    %c0_154 = arith.constant 0 : index
    %c0_155 = arith.constant 0 : index
    %168 = vector.load %arg14[%c1_153, %c0_154, %c0_155] : memref<4x256x256xf32, #tpu.memory_space<vmem>>, vector<1x256x256xf32>
    %169 = vector.shape_cast %168 : vector<1x256x256xf32> to vector<256x256xf32>
    %cst_156 = arith.constant dense<0.000000e+00> : vector<8x256xf32>
    %170 = tpu.matmul %167, %169, %cst_156 {dimension_numbers = #tpu.dot_dimension_numbers<[1], [0], [0], [1], [0, 0, 1, 1], [], []>} : vector<8x256xf32>, vector<256x256xf32>, vector<8x256xf32> -> vector<8x256xf32>
    %171 = arith.addf %164, %170 : vector<8x256xf32>
    %c2_157 = arith.constant 2 : index
    %c0_158 = arith.constant 0 : index
    %c0_159 = arith.constant 0 : index
    %172 = vector.load %arg13[%c2_157, %c0_158, %c0_159] : memref<4x8x16xf32, #tpu.memory_space<vmem>>, vector<1x8x16xf32>
    %173 = vector.shape_cast %172 : vector<1x8x16xf32> to vector<8x16xf32>
    %cst_160 = arith.constant dense<0.000000e+00> : vector<8x256xf32>
    %174 = tpu.matmul %173, %158, %cst_160 {dimension_numbers = #tpu.dot_dimension_numbers<[1], [0], [0], [1], [0, 0, 1, 1], [], []>} : vector<8x16xf32>, vector<16x256xf32>, vector<8x256xf32> -> vector<8x256xf32>
    %c2_161 = arith.constant 2 : index
    %c0_162 = arith.constant 0 : index
    %c0_163 = arith.constant 0 : index
    %175 = vector.load %arg14[%c2_161, %c0_162, %c0_163] : memref<4x256x256xf32, #tpu.memory_space<vmem>>, vector<1x256x256xf32>
    %176 = vector.shape_cast %175 : vector<1x256x256xf32> to vector<256x256xf32>
    %cst_164 = arith.constant dense<0.000000e+00> : vector<8x256xf32>
    %177 = tpu.matmul %174, %176, %cst_164 {dimension_numbers = #tpu.dot_dimension_numbers<[1], [0], [0], [1], [0, 0, 1, 1], [], []>} : vector<8x256xf32>, vector<256x256xf32>, vector<8x256xf32> -> vector<8x256xf32>
    %178 = arith.addf %171, %177 : vector<8x256xf32>
    %c3_165 = arith.constant 3 : index
    %c0_166 = arith.constant 0 : index
    %c0_167 = arith.constant 0 : index
    %179 = vector.load %arg13[%c3_165, %c0_166, %c0_167] : memref<4x8x16xf32, #tpu.memory_space<vmem>>, vector<1x8x16xf32>
    %180 = vector.shape_cast %179 : vector<1x8x16xf32> to vector<8x16xf32>
    %cst_168 = arith.constant dense<0.000000e+00> : vector<8x256xf32>
    %181 = tpu.matmul %180, %158, %cst_168 {dimension_numbers = #tpu.dot_dimension_numbers<[1], [0], [0], [1], [0, 0, 1, 1], [], []>} : vector<8x16xf32>, vector<16x256xf32>, vector<8x256xf32> -> vector<8x256xf32>
    %c3_169 = arith.constant 3 : index
    %c0_170 = arith.constant 0 : index
    %c0_171 = arith.constant 0 : index
    %182 = vector.load %arg14[%c3_169, %c0_170, %c0_171] : memref<4x256x256xf32, #tpu.memory_space<vmem>>, vector<1x256x256xf32>
    %183 = vector.shape_cast %182 : vector<1x256x256xf32> to vector<256x256xf32>
    %cst_172 = arith.constant dense<0.000000e+00> : vector<8x256xf32>
    %184 = tpu.matmul %181, %183, %cst_172 {dimension_numbers = #tpu.dot_dimension_numbers<[1], [0], [0], [1], [0, 0, 1, 1], [], []>} : vector<8x256xf32>, vector<256x256xf32>, vector<8x256xf32> -> vector<8x256xf32>
    %185 = arith.addf %178, %184 : vector<8x256xf32>
    %cst_173 = arith.constant dense<0.000000e+00> : vector<256xf32>
    %186 = vector.multi_reduction <add>, %185, %cst_173 [0] : vector<8x256xf32> to vector<256xf32>
    %187 = vector.shape_cast %186 : vector<256xf32> to vector<1x256xf32>
    %188 = arith.mulf %185, %185 : vector<8x256xf32>
    %cst_174 = arith.constant dense<0.000000e+00> : vector<256xf32>
    %189 = vector.multi_reduction <add>, %188, %cst_174 [0] : vector<8x256xf32> to vector<256xf32>
    %190 = vector.shape_cast %189 : vector<256xf32> to vector<1x256xf32>
    %c0_175 = arith.constant 0 : index
    %c0_176 = arith.constant 0 : index
    %191 = vector.load %arg15[%c0_175, %c0_176] : memref<256x64xf32, #tpu.memory_space<vmem>>, vector<256x64xf32>
    %cst_177 = arith.constant dense<0.000000e+00> : vector<1x64xf32>
    %192 = tpu.matmul %187, %191, %cst_177 {dimension_numbers = #tpu.dot_dimension_numbers<[1], [0], [0], [1], [0, 0, 1, 1], [], []>} : vector<1x256xf32>, vector<256x64xf32>, vector<1x64xf32> -> vector<1x64xf32>
    %cst_178 = arith.constant 3.125000e-02 : f32
    %193 = vector.broadcast %cst_178 : f32 to vector<1x64xf32>
    %194 = arith.mulf %192, %193 : vector<1x64xf32>
    %c0_179 = arith.constant 0 : index
    %c0_180 = arith.constant 0 : index
    %195 = vector.load %arg15[%c0_179, %c0_180] : memref<256x64xf32, #tpu.memory_space<vmem>>, vector<256x64xf32>
    %cst_181 = arith.constant dense<0.000000e+00> : vector<1x64xf32>
    %196 = tpu.matmul %190, %195, %cst_181 {dimension_numbers = #tpu.dot_dimension_numbers<[1], [0], [0], [1], [0, 0, 1, 1], [], []>} : vector<1x256xf32>, vector<256x64xf32>, vector<1x64xf32> -> vector<1x64xf32>
    %cst_182 = arith.constant 3.125000e-02 : f32
    %197 = vector.broadcast %cst_182 : f32 to vector<1x64xf32>
    %198 = arith.mulf %196, %197 : vector<1x64xf32>
    %199 = arith.mulf %194, %194 : vector<1x64xf32>
    %200 = arith.subf %198, %199 : vector<1x64xf32>
    %c0_183 = arith.constant 0 : index
    %c0_184 = arith.constant 0 : index
    %201 = vector.load %arg17[%c0_183, %c0_184] : memref<2x64xf32, #tpu.memory_space<vmem>>, vector<1x64xf32>
    %c1_185 = arith.constant 1 : index
    %c0_186 = arith.constant 0 : index
    %202 = vector.load %arg17[%c1_185, %c0_186] : memref<2x64xf32, #tpu.memory_space<vmem>>, vector<1x64xf32>
    %cst_187 = arith.constant 9.99999974E-6 : f32
    %203 = vector.broadcast %cst_187 : f32 to vector<1x64xf32>
    %204 = arith.addf %200, %203 : vector<1x64xf32>
    %205 = math.rsqrt %204 : vector<1x64xf32>
    %206 = arith.mulf %201, %205 : vector<1x64xf32>
    %207 = arith.mulf %194, %206 : vector<1x64xf32>
    %208 = arith.subf %202, %207 : vector<1x64xf32>
    %c0_188 = arith.constant 0 : index
    %c0_189 = arith.constant 0 : index
    %209 = vector.load %arg16[%c0_188, %c0_189] : memref<64x256xf32, #tpu.memory_space<vmem>>, vector<64x256xf32>
    %cst_190 = arith.constant dense<0.000000e+00> : vector<1x256xf32>
    %210 = tpu.matmul %206, %209, %cst_190 {dimension_numbers = #tpu.dot_dimension_numbers<[1], [0], [0], [1], [0, 0, 1, 1], [], []>} : vector<1x64xf32>, vector<64x256xf32>, vector<1x256xf32> -> vector<1x256xf32>
    %c0_191 = arith.constant 0 : index
    %c0_192 = arith.constant 0 : index
    %211 = vector.load %arg16[%c0_191, %c0_192] : memref<64x256xf32, #tpu.memory_space<vmem>>, vector<64x256xf32>
    %cst_193 = arith.constant dense<0.000000e+00> : vector<1x256xf32>
    %212 = tpu.matmul %208, %211, %cst_193 {dimension_numbers = #tpu.dot_dimension_numbers<[1], [0], [0], [1], [0, 0, 1, 1], [], []>} : vector<1x64xf32>, vector<64x256xf32>, vector<1x256xf32> -> vector<1x256xf32>
    %213 = vector.broadcast %210 : vector<1x256xf32> to vector<8x256xf32>
    %214 = arith.mulf %185, %213 : vector<8x256xf32>
    %215 = vector.broadcast %212 : vector<1x256xf32> to vector<8x256xf32>
    %216 = arith.addf %214, %215 : vector<8x256xf32>
    %cst_194 = arith.constant 0.000000e+00 : f32
    %217 = vector.broadcast %cst_194 : f32 to vector<8x256xf32>
    %218 = arith.cmpf oge, %216, %217 : vector<8x256xf32>
    %cst_195 = arith.constant 2.000000e-01 : f32
    %219 = vector.broadcast %cst_195 : f32 to vector<8x256xf32>
    %220 = arith.mulf %219, %216 : vector<8x256xf32>
    %221 = arith.select %218, %216, %220 : vector<8x256xi1>, vector<8x256xf32>
    %c0_196 = arith.constant 0 : index
    %c0_197 = arith.constant 0 : index
    %222 = vector.load %arg18[%c0_196, %c0_197] : memref<8x256xf32, #tpu.memory_space<vmem>>, vector<8x256xf32>
    %223 = arith.mulf %221, %222 : vector<8x256xf32>
    %c0_198 = arith.constant 0 : index
    %c0_199 = arith.constant 0 : index
    %224 = vector.load %arg19[%c0_198, %c0_199] : memref<2x8xf32, #tpu.memory_space<vmem>>, vector<2x8xf32>
    %cst_200 = arith.constant dense<0.000000e+00> : vector<2x256xf32>
    %225 = tpu.matmul %224, %223, %cst_200 {dimension_numbers = #tpu.dot_dimension_numbers<[1], [0], [0], [1], [0, 0, 1, 1], [], []>} : vector<2x8xf32>, vector<8x256xf32>, vector<2x256xf32> -> vector<2x256xf32>
    %cst_201 = arith.constant dense<0.000000e+00> : vector<2xf32>
    %226 = vector.multi_reduction <add>, %225, %cst_201 [1] : vector<2x256xf32> to vector<2xf32>
    %227 = vector.shape_cast %226 : vector<2xf32> to vector<2x1xf32>
    %cst_202 = arith.constant 0.000000e+00 : f32
    %228 = vector.broadcast %cst_202 : f32 to vector<2x1xf32>
    %229 = arith.subf %228, %227 : vector<2x1xf32>
    %230 = math.exp %229 : vector<2x1xf32>
    %cst_203 = arith.constant 1.000000e+00 : f32
    %231 = vector.broadcast %cst_203 : f32 to vector<2x1xf32>
    %232 = arith.addf %231, %230 : vector<2x1xf32>
    %cst_204 = arith.constant 1.000000e+00 : f32
    %233 = vector.broadcast %cst_204 : f32 to vector<2x1xf32>
    %234 = arith.divf %233, %232 : vector<2x1xf32>
    %c0_205 = arith.constant 0 : index
    %c0_206 = arith.constant 0 : index
    %235 = vector.load %arg20[%c0_205, %c0_206] : memref<2x1xf32, #tpu.memory_space<vmem>>, vector<2x1xf32>
    tpu.vector_store %arg20[%c0_205, %c0_206], %234 {strides = array<i32>} : memref<2x1xf32, #tpu.memory_space<vmem>>, vector<2x1xf32>,
    return
  }
}

</mosaic_0001>

<bundles_post_ra>
// kernel: tile.7
= control target key start
LH: loop header
LB: loop body
LE: loop exit
PB: predicated region body
PF: predicated region fallthrough
CT: control target
= control target key end

     0   :  { %s72_s0 = inlined_call_operand.vmem [shape: f32[2,4,256], index: 0, kind: input, shape index: {}]   ;;  %s73_s1 = inlined_call_operand.vmem [shape: f32[8,256], index: 1, kind: output, shape index: {}]  }
   0x1   :  { %v32_v0 = vld [vmem:[%s72_s0 + $0xc] sm:$0xf]  ;;  %v33_v1 = vld [vmem:[%s72_s0 + $0x8] sm:$0xf]  ;;  %v34_v2 = vld [vmem:[%s72_s0 + $0x4] sm:$0xf] }
   0x2   :  { %7 = vst [vmem:[#allocation0 + $0x8] sm:$0xf] %v32_v0  ;;  %v16_v3 = vld [vmem:[%s72_s0] sm:$0xf] }
   0x3   :  { %11 = vst [vmem:[#allocation0 + $0x18] sm:$0xf] %v33_v1 }
   0x4   :  { %15 = vst [vmem:[#allocation0] sm:$0xf] %v34_v2 }
   0x5   :  { %17 = vst [vmem:[#allocation0 + $0x10] sm:$0xf] %v16_v3 }
   0x9   :  { %v29_v4 = vld [vmem:[#allocation0 + $0x8] sm:$0xf]  }
   0xa   :  { %v25_v5 = vld [vmem:[#allocation0 + $0x18] sm:$0xf]   ;;  %37 = vst [vmem:[%s73_s1 + $0xc] sm:$0xf] %v29_v4  }
   0xb   :  { %v21_v6 = vld [vmem:[#allocation0] sm:$0xf]   ;;  %36 = vst [vmem:[%s73_s1 + $0x4] sm:$0xf] %v25_v5  }
   0xc   :  { %v18_v7 = vld [vmem:[#allocation0 + $0x10] sm:$0xf]   ;;  %35 = vst [vmem:[%s73_s1 + $0x8] sm:$0xf] %v21_v6  }
   0xd   :  { %19 = vst [vmem:[%s73_s1] sm:$0xf] %v18_v7  }

// kernel: discriminator_forward.1
= control target key start
LH: loop header
LB: loop body
LE: loop exit
PB: predicated region body
PF: predicated region fallthrough
CT: control target
= control target key end

     0   :  { %vm375_vm0 = vcmask 523264   ;;  %s10924_s0 = inlined_call_operand.vmem [shape: f32[128,192], index: 0, kind: input, shape index: {}]   ;;  %s10925_s1 = inlined_call_operand.vmem [shape: f32[4,64,128], index: 1, kind: input, shape index: {}]   ;;  %s10926_s2 = inlined_call_operand.vmem [shape: f32[4,192,256], index: 2, kind: input, shape index: {}]   ;;  %s10927_s3 = inlined_call_operand.vmem [shape: f32[4,32,64], index: 3, kind: input, shape index: {}]   ;;  %s10928_s4 = inlined_call_operand.vmem [shape: f32[4,256,256], index: 4, kind: input, shape index: {}]   ;;  %s10929_s5 = inlined_call_operand.vmem [shape: f32[256,16], index: 5, kind: input, shape index: {}]   ;;  %s10930_s6 = inlined_call_operand.vmem [shape: f32[16,256], index: 6, kind: input, shape index: {}]   ;;  %s10931_s7 = inlined_call_operand.vmem [shape: f32[2,16], index: 7, kind: input, shape index: {}]   ;;  %s10932_s8 = inlined_call_operand.vmem [shape: f32[4,16,32], index: 8, kind: input, shape index: {}]   ;;  %s10933_s9 = inlined_call_operand.vmem [shape: f32[4,256,256], index: 9, kind: input, shape index: {}]   ;;  %s10934_s10 = inlined_call_operand.vmem [shape: f32[256,32], index: 10, kind: input, shape index: {}]   ;;  %s10935_s11 = inlined_call_operand.vmem [shape: f32[32,256], index: 11, kind: input, shape index: {}]   ;;  %s10936_s12 = inlined_call_operand.vmem [shape: f32[2,32], index: 12, kind: input, shape index: {}]   ;;  %s10937_s13 = inlined_call_operand.vmem [shape: f32[4,8,16], index: 13, kind: input, shape index: {}]   ;;  %s10938_s14 = inlined_call_operand.vmem [shape: f32[4,256,256], index: 14, kind: input, shape index: {}]   ;;  %s10939_s15 = inlined_call_operand.vmem [shape: f32[256,64], index: 15, kind: input, shape index: {}]   ;;  %s10940_s16 = inlined_call_operand.vmem [shape: f32[64,256], index: 16, kind: input, shape index: {}]   ;;  %s10941_s17 = inlined_call_operand.vmem [shape: f32[2,64], index: 17, kind: input, shape index: {}]   ;;  %s10942_s18 = inlined_call_operand.vmem [shape: f32[8,256], index: 18, kind: input, shape index: {}]   ;;  %s10943_s19 = inlined_call_operand.vmem [shape: f32[2,8], index: 19, kind: input, shape index: {}]   ;;  %s10944_s20 = inlined_call_operand.vmem [shape: f32[2,1], index: 20, kind: output, shape index: {}]  }
   0x1   :  { %10950 = sst [smem:[#allocation60_spill]] %s10924_s0 }
   0x2   :  { %10951 = sst [smem:[#allocation61_spill]] %s10925_s1 }
   0x3   :  { %10952 = sst [smem:[#allocation62_spill]] %s10926_s2 }
   0x4   :  { %10953 = sst [smem:[#allocation63_spill]] %s10927_s3 }
   0x5   :  { %10954 = sst [smem:[#allocation64_spill]] %s10928_s4 }
   0x6   :  { %s10955_s23 = sld [smem:[#allocation60_spill]] }
   0x7   :  { %s10956_s29 = sld [smem:[#allocation61_spill]] }
   0x8   :  { %s10957_s27 = sld [smem:[#allocation62_spill]] }
   0x9   :  { %s11074_s1 = sld [smem:[#allocation63_spill]] }
   0xc   :  { %v6139_v0 = vld [vmem:[%s10955_s23 + $0xf0] sm:$0xff]  ;;  %v6144_v1 = vld [vmem:[%s10955_s23 + $0xf8] sm:$0xff]  ;;  %v6149_v2 = vld [vmem:[%s10955_s23 + $0xe0] sm:$0xff] }
   0xd   :  { %244 = vmatpush.msra.mxu2 %v6139_v0  ;;  %285 = vmatpush.msra.mxu3 %v6144_v1  ;;  %v6156_v3 = vld [vmem:[%s10955_s23 + $0xe8] sm:$0xff]  ;;  %v6161_v4 = vld [vmem:[%s10955_s23 + $0xd0] sm:$0xff]  ;;  %v6166_v5 = vld [vmem:[%s10955_s23 + $0xd8] sm:$0xff] }
   0xe   :  { %105 = vmatpush.msra.mxu0 %v6139_v0  ;;  %146 = vmatpush.msra.mxu1 %v6144_v1  ;;  %v6175_v6 = vld [vmem:[%s10955_s23 + $0xc0] sm:$0xff]  ;;  %v6180_v7 = vld [vmem:[%s10955_s23 + $0xc8] sm:$0xff]  ;;  %v6189_v8 = vld [vmem:[%s10955_s23 + $0xb0] sm:$0xff] }
   0xf   :  { %245 = vmatpush.msra.mxu2 %v6149_v2  ;;  %286 = vmatpush.msra.mxu3 %v6156_v3  ;;  %v6194_v9 = vld [vmem:[%s10955_s23 + $0xb8] sm:$0xff]  ;;  %v6203_v10 = vld [vmem:[%s10955_s23 + $0xa0] sm:$0xff]  ;;  %v6208_v11 = vld [vmem:[%s10955_s23 + $0xa8] sm:$0xff] }
  0x10   :  { %106 = vmatpush.msra.mxu0 %v6149_v2  ;;  %147 = vmatpush.msra.mxu1 %v6156_v3  ;;  %v6217_v12 = vld [vmem:[%s10955_s23 + $0x90] sm:$0xff]  ;;  %v6222_v13 = vld [vmem:[%s10955_s23 + $0x98] sm:$0xff]  ;;  %v6231_v14 = vld [vmem:[%s10955_s23 + $0x80] sm:$0xff] }
  0x11   :  { %246 = vmatpush.msra.mxu2 %v6161_v4  ;;  %287 = vmatpush.msra.mxu3 %v6166_v5  ;;  %v6236_v15 = vld [vmem:[%s10955_s23 + $0x88] sm:$0xff]  ;;  %v6245_v16 = vld [vmem:[%s10955_s23 + $0x70] sm:$0xff]  ;;  %v6250_v17 = vld [vmem:[%s10955_s23 + $0x78] sm:$0xff] }
  0x12   :  { %107 = vmatpush.msra.mxu0 %v6161_v4  ;;  %148 = vmatpush.msra.mxu1 %v6166_v5  ;;  %v6259_v18 = vld [vmem:[%s10955_s23 + $0x60] sm:$0xff]  ;;  %v6264_v19 = vld [vmem:[%s10955_s23 + $0x68] sm:$0xff]  ;;  %v6273_v20 = vld [vmem:[%s10955_s23 + $0x50] sm:$0xff] }
  0x13   :  { %247 = vmatpush.msra.mxu2 %v6175_v6  ;;  %288 = vmatpush.msra.mxu3 %v6180_v7  ;;  %v6278_v21 = vld [vmem:[%s10955_s23 + $0x58] sm:$0xff]  ;;  %v6287_v22 = vld [vmem:[%s10955_s23 + $0x40] sm:$0xff]  ;;  %v6292_v23 = vld [vmem:[%s10955_s23 + $0x48] sm:$0xff] }
  0x14   :  { %108 = vmatpush.msra.mxu0 %v6175_v6  ;;  %149 = vmatpush.msra.mxu1 %v6180_v7  ;;  %v6301_v24 = vld [vmem:[%s10955_s23 + $0x30] sm:$0xff]  ;;  %v6306_v25 = vld [vmem:[%s10955_s23 + $0x38] sm:$0xff]  ;;  %v6315_v26 = vld [vmem:[%s10955_s23 + $0x20] sm:$0xff] }
  0x15   :  { %248 = vmatpush.msra.mxu2 %v6189_v8  ;;  %289 = vmatpush.msra.mxu3 %v6194_v9  ;;  %v6320_v27 = vld [vmem:[%s10955_s23 + $0x28] sm:$0xff]  ;;  %v6329_v28 = vld [vmem:[%s10955_s23 + $0x10] sm:$0xff]  ;;  %v6334_v29 = vld [vmem:[%s10955_s23 + $0x18] sm:$0xff] }
  0x16   :  { %109 = vmatpush.msra.mxu0 %v6189_v8  ;;  %150 = vmatpush.msra.mxu1 %v6194_v9  ;;  %v6343_v30 = vld [vmem:[%s10955_s23] sm:$0xff]  ;;  %v6348_v31 = vld [vmem:[%s10955_s23 + $0x8] sm:$0xff]  ;;  %v5092_v34 = vld [vmem:[%s10956_s29 + $0x50] sm:$0xff] }
  0x17   :  { %249 = vmatpush.msra.mxu2 %v6203_v10  ;;  %290 = vmatpush.msra.mxu3 %v6208_v11  ;;  %v5090_v32 = vld [vmem:[%s10956_s29 + $0x40] sm:$0xff]  ;;  %v5091_v33 = vld [vmem:[%s10956_s29 + $0x48] sm:$0xff]  ;;  %v5093_v35 = vld [vmem:[%s10956_s29 + $0x58] sm:$0xff] }
  0x18   :  { %110 = vmatpush.msra.mxu0 %v6203_v10  ;;  %151 = vmatpush.msra.mxu1 %v6208_v11  ;;  %v97_v36 = vld [vmem:[%s10956_s29] sm:$0xff]  ;;  %v5128_v37 = vld [vmem:[%s10957_s27 + $0x270] sm:$0xff]  ;;  %v5129_v38 = vld [vmem:[%s10957_s27 + $0x278] sm:$0xff] }
  0x19   :  { %250 = vmatpush.msra.mxu2 %v6217_v12  ;;  %291 = vmatpush.msra.mxu3 %v6222_v13  ;;  %v5126_v39 = vld [vmem:[%s10957_s27 + $0x260] sm:$0xff]  ;;  %v5127_v40 = vld [vmem:[%s10957_s27 + $0x268] sm:$0xff]  ;;  %v5124_v41 = vld [vmem:[%s10957_s27 + $0x250] sm:$0xff] }
  0x1a   :  { %111 = vmatpush.msra.mxu0 %v6217_v12  ;;  %152 = vmatpush.msra.mxu1 %v6222_v13  ;;  %v5125_v42 = vld [vmem:[%s10957_s27 + $0x258] sm:$0xff]  ;;  %v5094_v43 = vld [vmem:[%s10956_s29 + $0x60] sm:$0xff]  ;;  %v98_v44 = vld [vmem:[%s10956_s29 + $0x8] sm:$0xff] }
  0x1b   :  { %251 = vmatpush.msra.mxu2 %v6231_v14  ;;  %292 = vmatpush.msra.mxu3 %v6236_v15  ;;  %v5122_v45 = vld [vmem:[%s10957_s27 + $0x240] sm:$0xff]  ;;  %v5123_v46 = vld [vmem:[%s10957_s27 + $0x248] sm:$0xff]  ;;  %v5120_v47 = vld [vmem:[%s10957_s27 + $0x230] sm:$0xff] }
  0x1c   :  { %112 = vmatpush.msra.mxu0 %v6231_v14  ;;  %153 = vmatpush.msra.mxu1 %v6236_v15  ;;  %v5121_v48 = vld [vmem:[%s10957_s27 + $0x238] sm:$0xff]  ;;  %v5118_v49 = vld [vmem:[%s10957_s27 + $0x220] sm:$0xff]  ;;  %v5119_v50 = vld [vmem:[%s10957_s27 + $0x228] sm:$0xff] }
  0x1d   :  { %252 = vmatpush.msra.mxu2 %v6245_v16  ;;  %293 = vmatpush.msra.mxu3 %v6250_v17  ;;  %v5095_v51 = vld [vmem:[%s10956_s29 + $0x68] sm:$0xff]  ;;  %v99_v52 = vld [vmem:[%s10956_s29 + $0x10] sm:$0xff]  ;;  %v5117_v54 = vld [vmem:[%s10957_s27 + $0x218] sm:$0xff] }
  0x1e   :  { %113 = vmatpush.msra.mxu0 %v6245_v16  ;;  %154 = vmatpush.msra.mxu1 %v6250_v17  ;;  %v5116_v53 = vld [vmem:[%s10957_s27 + $0x210] sm:$0xff]  ;;  %v5114_v55 = vld [vmem:[%s10957_s27 + $0x200] sm:$0xff]  ;;  %v5115_v56 = vld [vmem:[%s10957_s27 + $0x208] sm:$0xff] }
  0x1f   :  { %253 = vmatpush.msra.mxu2 %v6259_v18  ;;  %294 = vmatpush.msra.mxu3 %v6264_v19  ;;  %v5144_v57 = vld [vmem:[%s10957_s27 + $0x2f0] sm:$0xff]  ;;  %v5145_v58 = vld [vmem:[%s10957_s27 + $0x2f8] sm:$0xff]  ;;  %v5142_v59 = vld [vmem:[%s10957_s27 + $0x2e0] sm:$0xff] }
  0x20   :  { %114 = vmatpush.msra.mxu0 %v6259_v18  ;;  %155 = vmatpush.msra.mxu1 %v6264_v19  ;;  %v5112_v60 = vld [vmem:[%s10957_s27 + $0x1f0] sm:$0xff]  ;;  %v5113_v61 = vld [vmem:[%s10957_s27 + $0x1f8] sm:$0xff]  ;;  %v5143_v62 = vld [vmem:[%s10957_s27 + $0x2e8] sm:$0xff] }
  0x21   :  { %254 = vmatpush.msra.mxu2 %v6273_v20  ;;  %295 = vmatpush.msra.mxu3 %v6278_v21  ;;  %v5140_v63 = vld [vmem:[%s10957_s27 + $0x2d0] sm:$0xff] }
  0x22   :  { %115 = vmatpush.msra.mxu0 %v6273_v20  ;;  %156 = vmatpush.msra.mxu1 %v6278_v21 }
  0x23   :  { %255 = vmatpush.msra.mxu2 %v6287_v22  ;;  %296 = vmatpush.msra.mxu3 %v6292_v23 }
  0x24   :  { %116 = vmatpush.msra.mxu0 %v6287_v22  ;;  %157 = vmatpush.msra.mxu1 %v6292_v23 }
  0x25   :  { %256 = vmatpush.msra.mxu2 %v6301_v24  ;;  %297 = vmatpush.msra.mxu3 %v6306_v25 }
  0x26   :  { %117 = vmatpush.msra.mxu0 %v6301_v24  ;;  %158 = vmatpush.msra.mxu1 %v6306_v25 }
  0x27   :  { %257 = vmatpush.msra.mxu2 %v6315_v26  ;;  %298 = vmatpush.msra.mxu3 %v6320_v27 }
  0x28   :  { %118 = vmatpush.msra.mxu0 %v6315_v26  ;;  %159 = vmatpush.msra.mxu1 %v6320_v27 }
  0x29   :  { %258 = vmatpush.msra.mxu2 %v6329_v28  ;;  %299 = vmatpush.msra.mxu3 %v6334_v29 }
  0x2a   :  { %119 = vmatpush.msra.mxu0 %v6329_v28  ;;  %160 = vmatpush.msra.mxu1 %v6334_v29 }
  0x2b   :  { %259 = vmatpush.msra.mxu2 %v6343_v30  ;;  %300 = vmatpush.msra.mxu3 %v6348_v31 }
  0x2c   :  { %260 = vmatmul.f32.vlgmr.msra.gmra.mxu2 %v5090_v32  ;;  %301 = vmatmul.f32.vlgmr.msra.gmra.mxu3 %v5090_v32  ;;  %v5141_v32 = vld [vmem:[%s10957_s27 + $0x2d8] sm:$0xff] }
  0x2d   :  { %120 = vmatpush.msra.mxu0 %v6343_v30  ;;  %161 = vmatpush.msra.mxu1 %v6348_v31 }
  0x2e   :  { %121 = vmatmul.f32.vlgmr.msra.gmra.mxu0 %v97_v36  ;;  %162 = vmatmul.f32.vlgmr.msra.gmra.mxu1 %v97_v36  ;;  %v5111_v36 = vld [vmem:[%s10957_s27 + $0x1e8] sm:$0xff] }
  0x2f   :  { %400 = vmatpush.msrb.mxu0 %v5128_v37  ;;  %482 = vmatpush.msrb.mxu2 %v5129_v38  ;;  %v5138_v37 = vld [vmem:[%s10957_s27 + $0x2c0] sm:$0xff]  ;;  %v5139_v38 = vld [vmem:[%s10957_s27 + $0x2c8] sm:$0xff] }
  0x30   :  { %449 = vmatpush.msrb.mxu1 %v5144_v57  ;;  %531 = vmatpush.msrb.mxu3 %v5145_v58  ;;  %v102_v57 = vld [vmem:[%s10956_s29 + $0x28] sm:$0xff]  ;;  %v103_v58 = vld [vmem:[%s10956_s29 + $0x30] sm:$0xff] }
  0x31   :  { %401 = vmatpush.msrb.mxu0 %v5126_v39  ;;  %483 = vmatpush.msrb.mxu2 %v5127_v40  ;;  %v5108_v39 = vld [vmem:[%s10957_s27 + $0x1d0] sm:$0xff]  ;;  %v5109_v40 = vld [vmem:[%s10957_s27 + $0x1d8] sm:$0xff] }
  0x32   :  { %450 = vmatpush.msrb.mxu1 %v5142_v59  ;;  %532 = vmatpush.msrb.mxu3 %v5143_v62  ;;  %v104_v59 = vld [vmem:[%s10956_s29 + $0x38] sm:$0xff]  ;;  %v5099_v62 = vld [vmem:[%s10957_s27 + $0x188] sm:$0xff] }
  0x33   :  { %402 = vmatpush.msrb.mxu0 %v5124_v41  ;;  %484 = vmatpush.msrb.mxu2 %v5125_v42  ;;  %v5136_v41 = vld [vmem:[%s10957_s27 + $0x2b0] sm:$0xff]  ;;  %v5137_v42 = vld [vmem:[%s10957_s27 + $0x2b8] sm:$0xff] }
  0x34   :  { %263 = vmatmul.f32.gmra.mxu2 %v5091_v33  ;;  %304 = vmatmul.f32.gmra.mxu3 %v5091_v33  ;;  %v5096_v33 = vld [vmem:[%s10956_s29 + $0x70] sm:$0xff] }
  0x35   :  { %403 = vmatpush.msrb.mxu0 %v5122_v45  ;;  %485 = vmatpush.msrb.mxu2 %v5123_v46  ;;  %v5134_v45 = vld [vmem:[%s10957_s27 + $0x2a0] sm:$0xff]  ;;  %v5135_v46 = vld [vmem:[%s10957_s27 + $0x2a8] sm:$0xff] }
  0x36   :  { %124 = vmatmul.f32.gmra.mxu0 %v98_v44  ;;  %165 = vmatmul.f32.gmra.mxu1 %v98_v44  ;;  %v5107_v44 = vld [vmem:[%s10957_s27 + $0x1c8] sm:$0xff] }
  0x37   :  { %404 = vmatpush.msrb.mxu0 %v5120_v47  ;;  %486 = vmatpush.msrb.mxu2 %v5121_v48  ;;  %v5097_v47 = vld [vmem:[%s10956_s29 + $0x78] sm:$0xff]  ;;  %v101_v48 = vld [vmem:[%s10956_s29 + $0x20] sm:$0xff] }
  0x38   :  { %451 = vmatpush.msrb.mxu1 %v5140_v63  ;;  %533 = vmatpush.msrb.mxu3 %v5141_v32  ;;  %v5131_v63 = vld [vmem:[%s10957_s27 + $0x288] sm:$0xff] }
  0x39   :  { %405 = vmatpush.msrb.mxu0 %v5118_v49  ;;  %487 = vmatpush.msrb.mxu2 %v5119_v50  ;;  %v5104_v49 = vld [vmem:[%s10957_s27 + $0x1b0] sm:$0xff]  ;;  %v5105_v50 = vld [vmem:[%s10957_s27 + $0x1b8] sm:$0xff] }
  0x3a   :  { %452 = vmatpush.msrb.mxu1 %v5138_v37  ;;  %534 = vmatpush.msrb.mxu3 %v5139_v38  ;;  %v216_v37 = vld [vmem:[%s10957_s27 + $0xe8] sm:$0xff]  ;;  %v213_v38 = vld [vmem:[%s10957_s27 + $0xd0] sm:$0xff] }
  0x3b   :  { %406 = vmatpush.msrb.mxu0 %v5116_v53  ;;  %488 = vmatpush.msrb.mxu2 %v5117_v54  ;;  %v5102_v53 = vld [vmem:[%s10957_s27 + $0x1a0] sm:$0xff]  ;;  %v5103_v54 = vld [vmem:[%s10957_s27 + $0x1a8] sm:$0xff] }
  0x3c   :  { %266 = vmatmul.f32.gmra.mxu2 %v5092_v34  ;;  %307 = vmatmul.f32.gmra.mxu3 %v5092_v34  ;;  %v100_v34 = vld [vmem:[%s10956_s29 + $0x18] sm:$0xff] }
  0x3d   :  { %407 = vmatpush.msrb.mxu0 %v5114_v55  ;;  %489 = vmatpush.msrb.mxu2 %v5115_v56  ;;  %v5100_v55 = vld [vmem:[%s10957_s27 + $0x190] sm:$0xff]  ;;  %v5101_v56 = vld [vmem:[%s10957_s27 + $0x198] sm:$0xff] }
  0x3e   :  { %127 = vmatmul.f32.gmra.mxu0 %v99_v52  ;;  %168 = vmatmul.f32.gmra.mxu1 %v99_v52  ;;  %v5133_v52 = vld [vmem:[%s10957_s27 + $0x298] sm:$0xff] }
  0x3f   :  { %408 = vmatpush.msrb.mxu0 %v5112_v60  ;;  %490 = vmatpush.msrb.mxu2 %v5113_v61  ;;  %v5098_v60 = vld [vmem:[%s10957_s27 + $0x180] sm:$0xff] }
  0x40   :  { %453 = vmatpush.msrb.mxu1 %v5136_v41  ;;  %535 = vmatpush.msrb.mxu3 %v5137_v42  ;;  %v5130_v61 = vld [vmem:[%s10957_s27 + $0x280] sm:$0xff] }
  0x41   :  { %491 = vmatpush.msrb.mxu2 %v5111_v36  ;;  %v215_v36 = vld [vmem:[%s10957_s27 + $0xe0] sm:$0xff] }
  0x42   :  { %454 = vmatpush.msrb.mxu1 %v5134_v45  ;;  %536 = vmatpush.msrb.mxu3 %v5135_v46  ;;  %v211_v42 = vld [vmem:[%s10957_s27 + $0xc0] sm:$0xff]  ;;  %v210_v45 = vld [vmem:[%s10957_s27 + $0xb8] sm:$0xff] }
  0x43   :  { %492 = vmatpush.msrb.mxu2 %v5109_v40  ;;  %v207_v46 = vld [vmem:[%s10957_s27 + $0xa0] sm:$0xff] }
  0x44   :  { %269 = vmatmul.f32.gmra.mxu2 %v5093_v35  ;;  %310 = vmatmul.f32.gmra.mxu3 %v5093_v35  ;;  %v5110_v35 = vld [vmem:[%s10957_s27 + $0x1e0] sm:$0xff] }
  0x45   :  { %409 = vmatpush.msrb.mxu0 %v5110_v35  ;;  %493 = vmatpush.msrb.mxu2 %v5107_v44  ;;  %v218_v35 = vld [vmem:[%s10957_s27 + $0xf8] sm:$0xff]  ;;  %v209_v44 = vld [vmem:[%s10957_s27 + $0xb0] sm:$0xff] }
  0x46   :  { %130 = vmatmul.f32.gmra.mxu0 %v100_v34  ;;  %171 = vmatmul.f32.gmra.mxu1 %v100_v34  ;;  %v217_v34 = vld [vmem:[%s10957_s27 + $0xf0] sm:$0xff] }
  0x47   :  { %410 = vmatpush.msrb.mxu0 %v5108_v39  ;;  %494 = vmatpush.msrb.mxu2 %v5105_v50  ;;  %v214_v39 = vld [vmem:[%s10957_s27 + $0xd8] sm:$0xff]  ;;  %v205_v50 = vld [vmem:[%s10957_s27 + $0x90] sm:$0xff] }
  0x48   :  { %537 = vmatpush.msrb.mxu3 %v5133_v52  ;;  %v203_v52 = vld [vmem:[%s10957_s27 + $0x80] sm:$0xff] }
  0x49   :  { %495 = vmatpush.msrb.mxu2 %v5103_v54  ;;  %v233_v54 = vld [vmem:[%s10957_s27 + $0x170] sm:$0xff] }
  0x4a   :  { %538 = vmatpush.msrb.mxu3 %v5131_v63 }
  0x4b   :  { %496 = vmatpush.msrb.mxu2 %v5101_v56  ;;  %v231_v56 = vld [vmem:[%s10957_s27 + $0x160] sm:$0xff] }
  0x4c   :  { %272 = vmatmul.f32.gmra.mxu2 %v5094_v43  ;;  %313 = vmatmul.f32.gmra.mxu3 %v5094_v43  ;;  %v5106_v43 = vld [vmem:[%s10957_s27 + $0x1c0] sm:$0xff] }
  0x4d   :  { %411 = vmatpush.msrb.mxu0 %v5106_v43  ;;  %497 = vmatpush.msrb.mxu2 %v5099_v62  ;;  %v212_v43 = vld [vmem:[%s10957_s27 + $0xc8] sm:$0xff] }
  0x4e   :  { %133 = vmatmul.f32.gmra.mxu0 %v101_v48  ;;  %174 = vmatmul.f32.gmra.mxu1 %v101_v48 }
  0x4f   :  { %412 = vmatpush.msrb.mxu0 %v5104_v49  ;;  %670 = vmatpush.msra.mxu2 %v218_v35  ;;  %v228_v35 = vld [vmem:[%s10957_s27 + $0x148] sm:$0xff] }
  0x51   :  { %413 = vmatpush.msrb.mxu0 %v5102_v53  ;;  %671 = vmatpush.msra.mxu2 %v216_v37  ;;  %v204_v53 = vld [vmem:[%s10957_s27 + $0x88] sm:$0xff]  ;;  %v198_v37 = vld [vmem:[%s10957_s27 + $0x58] sm:$0xff] }
  0x53   :  { %414 = vmatpush.msrb.mxu0 %v5100_v55  ;;  %672 = vmatpush.msra.mxu2 %v214_v39  ;;  %v234_v55 = vld [vmem:[%s10957_s27 + $0x178] sm:$0xff] }
  0x54   :  { %275 = vmatmul.f32.gmra.mxu2 %v5095_v51  ;;  %316 = vmatmul.f32.gmra.mxu3 %v5095_v51  ;;  %v5132_v51 = vld [vmem:[%s10957_s27 + $0x290] sm:$0xff]  ;;  %v226_v39 = vld [vmem:[%s10957_s27 + $0x138] sm:$0xff] }
  0x55   :  { %455 = vmatpush.msrb.mxu1 %v5132_v51  ;;  %415 = vmatpush.msrb.mxu0 %v5098_v60  ;;  %v206_v51 = vld [vmem:[%s10957_s27 + $0x98] sm:$0xff]  ;;  %v229_v60 = vld [vmem:[%s10957_s27 + $0x150] sm:$0xff] }
  0x56   :  { %136 = vmatmul.f32.gmra.mxu0 %v102_v57  ;;  %177 = vmatmul.f32.gmra.mxu1 %v102_v57  ;;  %v201_v57 = vld [vmem:[%s10957_s27 + $0x70] sm:$0xff] }
  0x57   :  { %456 = vmatpush.msrb.mxu1 %v5130_v61  ;;  %588 = vmatpush.msra.mxu0 %v217_v34  ;;  %v230_v61 = vld [vmem:[%s10957_s27 + $0x158] sm:$0xff]  ;;  %v227_v34 = vld [vmem:[%s10957_s27 + $0x140] sm:$0xff] }
  0x58   :  { %673 = vmatpush.msra.mxu2 %v212_v43  ;;  %719 = vmatpush.msra.mxu3 %v234_v55  ;;  %v224_v43 = vld [vmem:[%s10957_s27 + $0x128] sm:$0xff]  ;;  %v190_v55 = vld [vmem:[%s10957_s27 + $0x18] sm:$0xff] }
  0x59   :  { %589 = vmatpush.msra.mxu0 %v215_v36  ;;  %637 = vmatpush.msra.mxu1 %v233_v54  ;;  %v197_v36 = vld [vmem:[%s10957_s27 + $0x50] sm:$0xff] }
  0x5a   :  { %674 = vmatpush.msra.mxu2 %v210_v45  ;;  %v189_v54 = vld [vmem:[%s10957_s27 + $0x10] sm:$0xff] }
  0x5b   :  { %590 = vmatpush.msra.mxu0 %v213_v38  ;;  %638 = vmatpush.msra.mxu1 %v231_v56  ;;  %v225_v38 = vld [vmem:[%s10957_s27 + $0x130] sm:$0xff] }
  0x5c   :  { %278 = vmatmul.f32.gmra.mxu2 %v5096_v33  ;;  %319 = vmatmul.f32.gmra.mxu3 %v5096_v33 }
  0x5d   :  { %591 = vmatpush.msra.mxu0 %v211_v42  ;;  %639 = vmatpush.msra.mxu1 %v229_v60  ;;  %v223_v42 = vld [vmem:[%s10957_s27 + $0x120] sm:$0xff] }
  0x5e   :  { %139 = vmatmul.f32.gmra.mxu0 %v103_v58  ;;  %180 = vmatmul.f32.gmra.mxu1 %v103_v58  ;;  %v202_v58 = vld [vmem:[%s10957_s27 + $0x78] sm:$0xff] }
  0x5f   :  { %592 = vmatpush.msra.mxu0 %v209_v44  ;;  %640 = vmatpush.msra.mxu1 %v227_v34 }
  0x61   :  { %593 = vmatpush.msra.mxu0 %v207_v46  ;;  %641 = vmatpush.msra.mxu1 %v225_v38  ;;  %v193_v46 = vld [vmem:[%s10957_s27 + $0x30] sm:$0xff] }
  0x63   :  { %594 = vmatpush.msra.mxu0 %v205_v50  ;;  %642 = vmatpush.msra.mxu1 %v223_v42  ;;  %v191_v50 = vld [vmem:[%s10957_s27 + $0x20] sm:$0xff]  ;;  %v5216_v42 = vld [vmem:[%s10957_s27 + $0x3f0] sm:$0xff] }
  0x64   :  { %281 = vmatmul.f32.gmra.mxu2 %v5097_v47  ;;  %322 = vmatmul.f32.gmra.mxu3 %v5097_v47  ;;  %v208_v47 = vld [vmem:[%s10957_s27 + $0xa8] sm:$0xff] }
  0x65   :  { %675 = vmatpush.msra.mxu2 %v208_v47  ;;  %595 = vmatpush.msra.mxu0 %v203_v52  ;;  %v194_v47 = vld [vmem:[%s10957_s27 + $0x38] sm:$0xff]  ;;  %v219_v52 = vld [vmem:[%s10957_s27 + $0x100] sm:$0xff] }
  0x66   :  { %142 = vmatmul.f32.gmra.mxu0 %v104_v59  ;;  %183 = vmatmul.f32.gmra.mxu1 %v104_v59  ;;  %v232_v59 = vld [vmem:[%s10957_s27 + $0x168] sm:$0xff] }
  0x67   :  { %676 = vmatpush.msra.mxu2 %v206_v51  ;;  %720 = vmatpush.msra.mxu3 %v232_v59  ;;  %v192_v51 = vld [vmem:[%s10957_s27 + $0x28] sm:$0xff] }
  0x68   :  { %596 = vmatpush.msra.mxu0 %v201_v57  ;;  %v188_v59 = vld [vmem:[%s10957_s27 + $0x8] sm:$0xff] }
  0x69   :  { %677 = vmatpush.msra.mxu2 %v204_v53  ;;  %721 = vmatpush.msra.mxu3 %v230_v61  ;;  %v220_v53 = vld [vmem:[%s10957_s27 + $0x108] sm:$0xff] }
  0x6b   :  { %678 = vmatpush.msra.mxu2 %v202_v58  ;;  %722 = vmatpush.msra.mxu3 %v228_v35  ;;  %v187_v58 = vld [vmem:[%s10957_s27] sm:$0xff] }
  0x6d   :  { %723 = vmatpush.msra.mxu3 %v226_v39  ;;  %v5185_v39 = vld [vmem:[%s10956_s29 + $0xb8] sm:$0xff] }
  0x6f   :  { %724 = vmatpush.msra.mxu3 %v224_v43  ;;  %v5217_v43 = vld [vmem:[%s10957_s27 + $0x3f8] sm:$0xff] }
  0xab   :  { %v122_v60 = vpop.f32.mrf.mxu0  ;;  %v163_v61 = vpop.f32.mrf.mxu1 }
  0xaf   :  { %v261_v32 = vpop.f32.mrf.mxu2  ;;  %v302_v33 = vpop.f32.mrf.mxu3 }
  0xb0   :  { %416 = vmatmul.f32.vlgmr.msrb.gmra.mxu0 %v261_v32  ;;  %5146 = vmatmul.msk.f32.vlgmr.msrb.gmra.mxu1 %vm375_vm0, %v302_v33 }
  0xb1   :  { %498 = vmatmul.f32.vlgmr.msrb.gmra.mxu2 %v261_v32  ;;  %5154 = vmatmul.msk.f32.vlgmr.msrb.gmra.mxu3 %vm375_vm0, %v302_v33  ;;  %v199_v32 = vld [vmem:[%s10957_s27 + $0x60] sm:$0xff]  ;;  %v200_v33 = vld [vmem:[%s10957_s27 + $0x68] sm:$0xff] }
  0xb2   :  { %597 = vmatpush.msra.mxu0 %v199_v32  ;;  %679 = vmatpush.msra.mxu2 %v200_v33  ;;  %v5183_v33 = vld [vmem:[%s10956_s29 + $0xa8] sm:$0xff] }
  0xb4   :  { %598 = vmatpush.msra.mxu0 %v197_v36  ;;  %680 = vmatpush.msra.mxu2 %v198_v37  ;;  %v5184_v36 = vld [vmem:[%s10956_s29 + $0xb0] sm:$0xff] }
  0xb7   :  { %v264_v40 = vpop.f32.mrf.mxu2  ;;  %v305_v41 = vpop.f32.mrf.mxu3 }
  0xb8   :  { %419 = vmatmul.f32.gmra.mxu0 %v264_v40  ;;  %5147 = vmatmul.msk.f32.gmra.mxu1 %vm375_vm0, %v305_v41 }
  0xb9   :  { %501 = vmatmul.f32.gmra.mxu2 %v264_v40  ;;  %5155 = vmatmul.msk.f32.gmra.mxu3 %vm375_vm0, %v305_v41  ;;  %v195_v40 = vld [vmem:[%s10957_s27 + $0x40] sm:$0xff]  ;;  %v196_v41 = vld [vmem:[%s10957_s27 + $0x48] sm:$0xff] }
  0xba   :  { %599 = vmatpush.msra.mxu0 %v195_v40  ;;  %681 = vmatpush.msra.mxu2 %v196_v41 }
  0xbc   :  { %600 = vmatpush.msra.mxu0 %v193_v46  ;;  %682 = vmatpush.msra.mxu2 %v194_v47  ;;  %v5212_v46 = vld [vmem:[%s10957_s27 + $0x3d0] sm:$0xff]  ;;  %v5213_v47 = vld [vmem:[%s10957_s27 + $0x3d8] sm:$0xff] }
  0xbe   :  { %601 = vmatpush.msra.mxu0 %v191_v50  ;;  %683 = vmatpush.msra.mxu2 %v192_v51  ;;  %v5210_v50 = vld [vmem:[%s10957_s27 + $0x3c0] sm:$0xff]  ;;  %v5211_v51 = vld [vmem:[%s10957_s27 + $0x3c8] sm:$0xff] }
  0xbf   :  { %v267_v48 = vpop.f32.mrf.mxu2  ;;  %v308_v49 = vpop.f32.mrf.mxu3 }
  0xc0   :  { %422 = vmatmul.f32.gmra.mxu0 %v267_v48  ;;  %5148 = vmatmul.msk.f32.gmra.mxu1 %vm375_vm0, %v308_v49 }
  0xc1   :  { %504 = vmatmul.f32.gmra.mxu2 %v267_v48  ;;  %5156 = vmatmul.msk.f32.gmra.mxu3 %vm375_vm0, %v308_v49  ;;  %v221_v48 = vld [vmem:[%s10957_s27 + $0x110] sm:$0xff]  ;;  %v222_v49 = vld [vmem:[%s10957_s27 + $0x118] sm:$0xff] }
  0xc2   :  { %643 = vmatpush.msra.mxu1 %v221_v48  ;;  %725 = vmatpush.msra.mxu3 %v222_v49 }
  0xc3   :  { %602 = vmatpush.msra.mxu0 %v189_v54  ;;  %684 = vmatpush.msra.mxu2 %v190_v55  ;;  %v5206_v54 = vld [vmem:[%s10957_s27 + $0x3a0] sm:$0xff]  ;;  %v5207_v55 = vld [vmem:[%s10957_s27 + $0x3a8] sm:$0xff] }
  0xc4   :  { %644 = vmatpush.msra.mxu1 %v219_v52  ;;  %726 = vmatpush.msra.mxu3 %v220_v53  ;;  %v5208_v52 = vld [vmem:[%s10957_s27 + $0x3b0] sm:$0xff]  ;;  %v5209_v53 = vld [vmem:[%s10957_s27 + $0x3b8] sm:$0xff] }
  0xc5   :  { %603 = vmatpush.msra.mxu0 %v187_v58  ;;  %685 = vmatpush.msra.mxu2 %v188_v59 }
  0xc6   :  { %802 = vmatpush.msrb.mxu1 %v6144_v1 }
  0xc7   :  { %v270_v62 = vpop.f32.mrf.mxu2  ;;  %v311_v63 = vpop.f32.mrf.mxu3  ;;  %761 = vmatpush.msrb.mxu0 %v6139_v0  ;;  %916 = vmatpush.msrb.mxu2 %v5216_v42  ;;  %v5188_v42 = vld [vmem:[%s10957_s27 + $0x310] sm:$0xff] }
  0xc8   :  { %425 = vmatmul.f32.gmra.mxu0 %v270_v62  ;;  %5149 = vmatmul.msk.f32.gmra.mxu1 %vm375_vm0, %v311_v63  ;;  %v125_v0 = vpop.f32.mrf.mxu0 }
  0xc9   :  { %507 = vmatmul.f32.gmra.mxu2 %v270_v62  ;;  %5157 = vmatmul.msk.f32.gmra.mxu3 %vm375_vm0, %v311_v63 }
  0xca   :  { %803 = vmatpush.msrb.mxu1 %v6156_v3  ;;  %762 = vmatpush.msrb.mxu0 %v6149_v2  ;;  %v166_v2 = vpop.f32.mrf.mxu1 }
  0xcc   :  { %804 = vmatpush.msrb.mxu1 %v6166_v5  ;;  %763 = vmatpush.msrb.mxu0 %v6161_v4 }
  0xce   :  { %805 = vmatpush.msrb.mxu1 %v6180_v7  ;;  %764 = vmatpush.msrb.mxu0 %v6175_v6 }
  0xcf   :  { %v273_v44 = vpop.f32.mrf.mxu2  ;;  %v314_v45 = vpop.f32.mrf.mxu3 }
  0xd0   :  { %428 = vmatmul.f32.gmra.mxu0 %v273_v44  ;;  %5150 = vmatmul.msk.f32.gmra.mxu1 %vm375_vm0, %v314_v45  ;;  %v128_v5 = vpop.f32.mrf.mxu0 }
  0xd1   :  { %510 = vmatmul.f32.gmra.mxu2 %v273_v44  ;;  %5158 = vmatmul.msk.f32.gmra.mxu3 %vm375_vm0, %v314_v45  ;;  %v5214_v44 = vld [vmem:[%s10957_s27 + $0x3e0] sm:$0xff]  ;;  %v5215_v45 = vld [vmem:[%s10957_s27 + $0x3e8] sm:$0xff] }
  0xd2   :  { %806 = vmatpush.msrb.mxu1 %v6194_v9  ;;  %765 = vmatpush.msrb.mxu0 %v6189_v8  ;;  %v169_v6 = vpop.f32.mrf.mxu1 }
  0xd3   :  { %917 = vmatpush.msrb.mxu2 %v5214_v44  ;;  %v5189_v44 = vld [vmem:[%s10957_s27 + $0x318] sm:$0xff] }
  0xd4   :  { %807 = vmatpush.msrb.mxu1 %v6208_v11  ;;  %766 = vmatpush.msrb.mxu0 %v6203_v10 }
  0xd5   :  { %918 = vmatpush.msrb.mxu2 %v5212_v46 }
  0xd6   :  { %808 = vmatpush.msrb.mxu1 %v6222_v13  ;;  %767 = vmatpush.msrb.mxu0 %v6217_v12 }
  0xd7   :  { %v276_v56 = vpop.f32.mrf.mxu2  ;;  %v317_v57 = vpop.f32.mrf.mxu3  ;;  %919 = vmatpush.msrb.mxu2 %v5210_v50  ;;  %v5186_v50 = vld [vmem:[%s10957_s27 + $0x300] sm:$0xff] }
  0xd8   :  { %431 = vmatmul.f32.gmra.mxu0 %v276_v56  ;;  %5151 = vmatmul.msk.f32.gmra.mxu1 %vm375_vm0, %v317_v57  ;;  %v131_v7 = vpop.f32.mrf.mxu0 }
  0xd9   :  { %513 = vmatmul.f32.gmra.mxu2 %v276_v56  ;;  %5159 = vmatmul.msk.f32.gmra.mxu3 %vm375_vm0, %v317_v57  ;;  %v5204_v56 = vld [vmem:[%s10957_s27 + $0x390] sm:$0xff]  ;;  %v5205_v57 = vld [vmem:[%s10957_s27 + $0x398] sm:$0xff] }
  0xda   :  { %809 = vmatpush.msrb.mxu1 %v6236_v15  ;;  %768 = vmatpush.msrb.mxu0 %v6231_v14  ;;  %v172_v8 = vpop.f32.mrf.mxu1 }
  0xdb   :  { %920 = vmatpush.msrb.mxu2 %v5208_v52  ;;  %v5187_v52 = vld [vmem:[%s10957_s27 + $0x308] sm:$0xff] }
  0xdc   :  { %810 = vmatpush.msrb.mxu1 %v6250_v17  ;;  %769 = vmatpush.msrb.mxu0 %v6245_v16 }
  0xdd   :  { %921 = vmatpush.msrb.mxu2 %v5206_v54  ;;  %v5999_v54 = vld [vmem:[%s10955_s23 + $0xf0] sm:$0xff] }
  0xde   :  { %811 = vmatpush.msrb.mxu1 %v6264_v19  ;;  %770 = vmatpush.msrb.mxu0 %v6259_v18  ;;  %v5178_v19 = vld [vmem:[%s10956_s29 + $0x80] sm:$0xff] }
  0xdf   :  { %v279_v62 = vpop.f32.mrf.mxu2  ;;  %v320_v1 = vpop.f32.mrf.mxu3  ;;  %922 = vmatpush.msrb.mxu2 %v5204_v56 }
  0xe0   :  { %434 = vmatmul.f32.gmra.mxu0 %v279_v62  ;;  %5152 = vmatmul.msk.f32.gmra.mxu1 %vm375_vm0, %v320_v1  ;;  %v134_v9 = vpop.f32.mrf.mxu0 }
  0xe1   :  { %516 = vmatmul.f32.gmra.mxu2 %v279_v62  ;;  %5160 = vmatmul.msk.f32.gmra.mxu3 %vm375_vm0, %v320_v1  ;;  %v5200_v62 = vld [vmem:[%s10957_s27 + $0x370] sm:$0xff] }
  0xe2   :  { %812 = vmatpush.msrb.mxu1 %v6278_v21  ;;  %771 = vmatpush.msrb.mxu0 %v6273_v20  ;;  %v175_v10 = vpop.f32.mrf.mxu1  ;;  %v5232_v1 = vld [vmem:[%s10957_s27 + $0x470] sm:$0xff] }
  0xe3   :  { %965 = vmatpush.msrb.mxu3 %v5232_v1  ;;  %v6004_v1 = vld [vmem:[%s10955_s23 + $0xd8] sm:$0xff] }
  0xe4   :  { %813 = vmatpush.msrb.mxu1 %v6292_v23  ;;  %772 = vmatpush.msrb.mxu0 %v6287_v22  ;;  %v5179_v22 = vld [vmem:[%s10956_s29 + $0x88] sm:$0xff] }
  0xe6   :  { %814 = vmatpush.msrb.mxu1 %v6306_v25  ;;  %773 = vmatpush.msrb.mxu0 %v6301_v24  ;;  %v5180_v25 = vld [vmem:[%s10956_s29 + $0x90] sm:$0xff] }
  0xe7   :  { %v282_v3 = vpop.f32.mrf.mxu2  ;;  %v323_v4 = vpop.f32.mrf.mxu3 }
  0xe8   :  { %437 = vmatmul.f32.gmra.mxu0 %v282_v3  ;;  %5153 = vmatmul.msk.f32.gmra.mxu1 %vm375_vm0, %v323_v4  ;;  %v137_v11 = vpop.f32.mrf.mxu0 }
  0xe9   :  { %519 = vmatmul.f32.gmra.mxu2 %v282_v3  ;;  %5161 = vmatmul.msk.f32.gmra.mxu3 %vm375_vm0, %v323_v4  ;;  %v5198_v3 = vld [vmem:[%s10957_s27 + $0x360] sm:$0xff] }
  0xea   :  { %815 = vmatpush.msrb.mxu1 %v6320_v27  ;;  %774 = vmatpush.msrb.mxu0 %v6315_v26  ;;  %v178_v12 = vpop.f32.mrf.mxu1  ;;  %v5230_v4 = vld [vmem:[%s10957_s27 + $0x460] sm:$0xff] }
  0xeb   :  { %966 = vmatpush.msrb.mxu3 %v5230_v4  ;;  %v6006_v4 = vld [vmem:[%s10955_s23 + $0xc8] sm:$0xff] }
  0xec   :  { %816 = vmatpush.msrb.mxu1 %v6334_v29  ;;  %775 = vmatpush.msrb.mxu0 %v6329_v28  ;;  %v5181_v28 = vld [vmem:[%s10956_s29 + $0x98] sm:$0xff] }
  0xee   :  { %817 = vmatpush.msrb.mxu1 %v6348_v31  ;;  %776 = vmatpush.msrb.mxu0 %v6343_v30  ;;  %v5182_v31 = vld [vmem:[%s10956_s29 + $0xa0] sm:$0xff] }
  0xf0   :  { %604 = vmatmul.f32.vlgmr.msra.gmra.mxu0 %v122_v60  ;;  %5162 = vmatmul.msk.f32.vlgmr.msra.gmra.mxu1 %vm375_vm0, %v163_v61  ;;  %v140_v13 = vpop.f32.mrf.mxu0 }
  0xf1   :  { %686 = vmatmul.f32.vlgmr.msra.gmra.mxu2 %v122_v60  ;;  %5170 = vmatmul.msk.f32.vlgmr.msra.gmra.mxu3 %vm375_vm0, %v163_v61  ;;  %v5202_v60 = vld [vmem:[%s10957_s27 + $0x380] sm:$0xff]  ;;  %v5203_v61 = vld [vmem:[%s10957_s27 + $0x388] sm:$0xff] }
  0xf2   :  { %v181_v14 = vpop.f32.mrf.mxu1  ;;  %998 = vmatpush.msra.mxu0 %v5217_v43  ;;  %923 = vmatpush.msrb.mxu2 %v5202_v60  ;;  %v5220_v43 = vld [vmem:[%s10957_s27 + $0x410] sm:$0xff]  ;;  %v6001_v60 = vld [vmem:[%s10955_s23 + $0xe0] sm:$0xff] }
  0xf4   :  { %999 = vmatpush.msra.mxu0 %v5215_v45  ;;  %924 = vmatpush.msrb.mxu2 %v5200_v62  ;;  %v5221_v45 = vld [vmem:[%s10957_s27 + $0x418] sm:$0xff]  ;;  %v6003_v62 = vld [vmem:[%s10955_s23 + $0xd0] sm:$0xff] }
  0xf6   :  { %1000 = vmatpush.msra.mxu0 %v5213_v47  ;;  %925 = vmatpush.msrb.mxu2 %v5198_v3  ;;  %v6005_v3 = vld [vmem:[%s10955_s23 + $0xc0] sm:$0xff] }
  0xf8   :  { %607 = vmatmul.f32.gmra.mxu0 %v125_v0  ;;  %5163 = vmatmul.msk.f32.gmra.mxu1 %vm375_vm0, %v166_v2  ;;  %v143_v15 = vpop.f32.mrf.mxu0 }
  0xf9   :  { %689 = vmatmul.f32.gmra.mxu2 %v125_v0  ;;  %5171 = vmatmul.msk.f32.gmra.mxu3 %vm375_vm0, %v166_v2  ;;  %v5201_v0 = vld [vmem:[%s10957_s27 + $0x378] sm:$0xff] }
  0xfa   :  { %v184_v16 = vpop.f32.mrf.mxu1  ;;  %1001 = vmatpush.msra.mxu0 %v5211_v51  ;;  %v5233_v2 = vld [vmem:[%s10957_s27 + $0x478] sm:$0xff]  ;;  %v5218_v51 = vld [vmem:[%s10957_s27 + $0x400] sm:$0xff] }
  0xfb   :  { %1047 = vmatpush.msra.mxu1 %v5233_v2 }
  0xfc   :  { %1002 = vmatpush.msra.mxu0 %v5209_v53  ;;  %v5219_v53 = vld [vmem:[%s10957_s27 + $0x408] sm:$0xff] }
  0xfe   :  { %1003 = vmatpush.msra.mxu0 %v5207_v55  ;;  %v6000_v55 = vld [vmem:[%s10955_s23 + $0xf8] sm:$0xff] }
 0x100   :  { %610 = vmatmul.f32.gmra.mxu0 %v128_v5  ;;  %5164 = vmatmul.msk.f32.gmra.mxu1 %vm375_vm0, %v169_v6 }
 0x101   :  { %692 = vmatmul.f32.gmra.mxu2 %v128_v5  ;;  %5172 = vmatmul.msk.f32.gmra.mxu3 %vm375_vm0, %v169_v6  ;;  %v5199_v5 = vld [vmem:[%s10957_s27 + $0x368] sm:$0xff] }
 0x102   :  { %1004 = vmatpush.msra.mxu0 %v5205_v57  ;;  %v5231_v6 = vld [vmem:[%s10957_s27 + $0x468] sm:$0xff] }
 0x103   :  { %1048 = vmatpush.msra.mxu1 %v5231_v6  ;;  %v6008_v6 = vld [vmem:[%s10955_s23 + $0xb8] sm:$0xff] }
 0x104   :  { %1005 = vmatpush.msra.mxu0 %v5203_v61  ;;  %v6002_v61 = vld [vmem:[%s10955_s23 + $0xe8] sm:$0xff] }
 0x106   :  { %1006 = vmatpush.msra.mxu0 %v5201_v0 }
 0x108   :  { %613 = vmatmul.f32.gmra.mxu0 %v131_v7  ;;  %5165 = vmatmul.msk.f32.gmra.mxu1 %vm375_vm0, %v172_v8 }
 0x109   :  { %695 = vmatmul.f32.gmra.mxu2 %v131_v7  ;;  %5173 = vmatmul.msk.f32.gmra.mxu3 %vm375_vm0, %v172_v8  ;;  %v5196_v7 = vld [vmem:[%s10957_s27 + $0x350] sm:$0xff] }
 0x10a   :  { %1007 = vmatpush.msra.mxu0 %v5199_v5  ;;  %v5228_v8 = vld [vmem:[%s10957_s27 + $0x450] sm:$0xff]  ;;  %926 = vmatpush.msrb.mxu2 %v5196_v7  ;;  %v6009_v7 = vld [vmem:[%s10955_s23 + $0xa0] sm:$0xff] }
 0x10b   :  { %967 = vmatpush.msrb.mxu3 %v5228_v8  ;;  %v6007_v5 = vld [vmem:[%s10955_s23 + $0xb0] sm:$0xff]  ;;  %v6010_v8 = vld [vmem:[%s10955_s23 + $0xa8] sm:$0xff] }
 0x110   :  { %616 = vmatmul.f32.gmra.mxu0 %v134_v9  ;;  %5166 = vmatmul.msk.f32.gmra.mxu1 %vm375_vm0, %v175_v10 }
 0x111   :  { %698 = vmatmul.f32.gmra.mxu2 %v134_v9  ;;  %5174 = vmatmul.msk.f32.gmra.mxu3 %vm375_vm0, %v175_v10  ;;  %v5197_v9 = vld [vmem:[%s10957_s27 + $0x358] sm:$0xff] }
 0x112   :  { %v5229_v10 = vld [vmem:[%s10957_s27 + $0x458] sm:$0xff]  ;;  %1008 = vmatpush.msra.mxu0 %v5197_v9 }
 0x113   :  { %1049 = vmatpush.msra.mxu1 %v5229_v10 }
 0x118   :  { %619 = vmatmul.f32.gmra.mxu0 %v137_v11  ;;  %5167 = vmatmul.msk.f32.gmra.mxu1 %vm375_vm0, %v178_v12 }
 0x119   :  { %701 = vmatmul.f32.gmra.mxu2 %v137_v11  ;;  %5175 = vmatmul.msk.f32.gmra.mxu3 %vm375_vm0, %v178_v12 }
 0x120   :  { %622 = vmatmul.f32.gmra.mxu0 %v140_v13  ;;  %5168 = vmatmul.msk.f32.gmra.mxu1 %vm375_vm0, %v181_v14 }
 0x121   :  { %704 = vmatmul.f32.gmra.mxu2 %v140_v13  ;;  %5176 = vmatmul.msk.f32.gmra.mxu3 %vm375_vm0, %v181_v14  ;;  %v5194_v13 = vld [vmem:[%s10957_s27 + $0x340] sm:$0xff] }
 0x122   :  { %v5226_v14 = vld [vmem:[%s10957_s27 + $0x440] sm:$0xff]  ;;  %927 = vmatpush.msrb.mxu2 %v5194_v13  ;;  %v6011_v13 = vld [vmem:[%s10955_s23 + $0x90] sm:$0xff] }
 0x123   :  { %968 = vmatpush.msrb.mxu3 %v5226_v14  ;;  %v6012_v14 = vld [vmem:[%s10955_s23 + $0x98] sm:$0xff] }
 0x128   :  { %625 = vmatmul.f32.gmra.mxu0 %v143_v15  ;;  %5169 = vmatmul.msk.f32.gmra.mxu1 %vm375_vm0, %v184_v16 }
 0x129   :  { %707 = vmatmul.f32.gmra.mxu2 %v143_v15  ;;  %5177 = vmatmul.msk.f32.gmra.mxu3 %vm375_vm0, %v184_v16  ;;  %v5195_v15 = vld [vmem:[%s10957_s27 + $0x348] sm:$0xff] }
 0x12a   :  { %v5227_v16 = vld [vmem:[%s10957_s27 + $0x448] sm:$0xff]  ;;  %1009 = vmatpush.msra.mxu0 %v5195_v15 }
 0x12b   :  { %1050 = vmatpush.msra.mxu1 %v5227_v16 }
 0x12d   :  { %v6760_v17 = vpop.f32.mrf.mxu0  ;;  %v6762_v18 = vpop.f32.mrf.mxu1 }
 0x130   :  { %777 = vmatmul.f32.vlgmr.msrb.gmra.mxu0 %v5178_v19  ;;  %818 = vmatmul.f32.vlgmr.msrb.gmra.mxu1 %v5178_v19  ;;  %v5192_v19 = vld [vmem:[%s10957_s27 + $0x330] sm:$0xff] }
 0x131   :  { %928 = vmatpush.msrb.mxu2 %v5192_v19  ;;  %v6013_v19 = vld [vmem:[%s10955_s23 + $0x80] sm:$0xff] }
 0x134   :  { %v6986_v56 = vpop.f32.mrf.mxu2  ;;  %v6988_v57 = vpop.f32.mrf.mxu3 }
 0x135   :  { %v6767_v20 = vpop.f32.mrf.mxu0  ;;  %v6769_v21 = vpop.f32.mrf.mxu1 }
 0x138   :  { %780 = vmatmul.f32.gmra.mxu0 %v5179_v22  ;;  %821 = vmatmul.f32.gmra.mxu1 %v5179_v22  ;;  %v5224_v22 = vld [vmem:[%s10957_s27 + $0x430] sm:$0xff] }
 0x139   :  { %969 = vmatpush.msrb.mxu3 %v5224_v22  ;;  %v6014_v22 = vld [vmem:[%s10955_s23 + $0x88] sm:$0xff] }
 0x13c   :  { %v7024_v9 = vpop.f32.mrf.mxu2  ;;  %v7026_v10 = vpop.f32.mrf.mxu3 }
 0x13d   :  { %v6774_v23 = vpop.f32.mrf.mxu0  ;;  %v6776_v24 = vpop.f32.mrf.mxu1 }
 0x140   :  { %783 = vmatmul.f32.gmra.mxu0 %v5180_v25  ;;  %824 = vmatmul.f32.gmra.mxu1 %v5180_v25  ;;  %v5193_v25 = vld [vmem:[%s10957_s27 + $0x338] sm:$0xff] }
 0x141   :  { %1010 = vmatpush.msra.mxu0 %v5193_v25  ;;  %v6015_v25 = vld [vmem:[%s10955_s23 + $0x70] sm:$0xff] }
 0x145   :  { %v6781_v26 = vpop.f32.mrf.mxu0  ;;  %v6783_v27 = vpop.f32.mrf.mxu1 }
 0x148   :  { %786 = vmatmul.f32.gmra.mxu0 %v5181_v28  ;;  %827 = vmatmul.f32.gmra.mxu1 %v5181_v28  ;;  %v5225_v28 = vld [vmem:[%s10957_s27 + $0x438] sm:$0xff] }
 0x149   :  { %1051 = vmatpush.msra.mxu1 %v5225_v28  ;;  %v6016_v28 = vld [vmem:[%s10955_s23 + $0x78] sm:$0xff] }
 0x14d   :  { %v6788_v29 = vpop.f32.mrf.mxu0  ;;  %v6790_v30 = vpop.f32.mrf.mxu1 }
 0x150   :  { %789 = vmatmul.f32.gmra.mxu0 %v5182_v31  ;;  %830 = vmatmul.f32.gmra.mxu1 %v5182_v31  ;;  %v5190_v31 = vld [vmem:[%s10957_s27 + $0x320] sm:$0xff] }
 0x151   :  { %929 = vmatpush.msrb.mxu2 %v5190_v31  ;;  %v6017_v31 = vld [vmem:[%s10955_s23 + $0x60] sm:$0xff] }
 0x153   :  { %930 = vmatpush.msrb.mxu2 %v5188_v42 }
 0x155   :  { %v6795_v63 = vpop.f32.mrf.mxu0  ;;  %v6797_v32 = vpop.f32.mrf.mxu1  ;;  %931 = vmatpush.msrb.mxu2 %v5186_v50  ;;  %v6021_v50 = vld [vmem:[%s10955_s23 + $0x40] sm:$0xff] }
 0x157   :  { %1105 = vmatpush.msra.mxu2 %v5999_v54  ;;  %v6025_v54 = vld [vmem:[%s10955_s23 + $0x20] sm:$0xff] }
 0x158   :  { %792 = vmatmul.f32.gmra.mxu0 %v5183_v33  ;;  %833 = vmatmul.f32.gmra.mxu1 %v5183_v33  ;;  %v5222_v33 = vld [vmem:[%s10957_s27 + $0x420] sm:$0xff] }
 0x159   :  { %970 = vmatpush.msrb.mxu3 %v5222_v33  ;;  %1106 = vmatpush.msra.mxu2 %v6001_v60  ;;  %v6018_v33 = vld [vmem:[%s10955_s23 + $0x68] sm:$0xff]  ;;  %v6027_v60 = vld [vmem:[%s10955_s23 + $0x10] sm:$0xff] }
 0x15b   :  { %971 = vmatpush.msrb.mxu3 %v5220_v43  ;;  %1107 = vmatpush.msra.mxu2 %v6003_v62 }
 0x15d   :  { %v6802_v34 = vpop.f32.mrf.mxu0  ;;  %v6804_v35 = vpop.f32.mrf.mxu1  ;;  %972 = vmatpush.msrb.mxu3 %v5218_v51  ;;  %1108 = vmatpush.msra.mxu2 %v6005_v3  ;;  %v6022_v51 = vld [vmem:[%s10955_s23 + $0x48] sm:$0xff] }
 0x15f   :  { %1146 = vmatpush.msra.mxu3 %v6000_v55  ;;  %1109 = vmatpush.msra.mxu2 %v6007_v5  ;;  %v6026_v55 = vld [vmem:[%s10955_s23 + $0x28] sm:$0xff]  ;;  %v6029_v5 = vld [vmem:[%s10955_s23] sm:$0xff] }
 0x160   :  { %795 = vmatmul.f32.gmra.mxu0 %v5184_v36  ;;  %836 = vmatmul.f32.gmra.mxu1 %v5184_v36  ;;  %v5191_v36 = vld [vmem:[%s10957_s27 + $0x328] sm:$0xff] }
 0x161   :  { %1011 = vmatpush.msra.mxu0 %v5191_v36  ;;  %1147 = vmatpush.msra.mxu3 %v6002_v61  ;;  %v6019_v36 = vld [vmem:[%s10955_s23 + $0x50] sm:$0xff]  ;;  %v6028_v61 = vld [vmem:[%s10955_s23 + $0x18] sm:$0xff] }
 0x162   :  { %1110 = vmatpush.msra.mxu2 %v6009_v7 }
 0x163   :  { %1012 = vmatpush.msra.mxu0 %v5189_v44  ;;  %1148 = vmatpush.msra.mxu3 %v6004_v1  ;;  %v7066_v44 = vpop.f32.mrf.mxu2 }
 0x164   :  { %1111 = vmatpush.msra.mxu2 %v6011_v13 }
 0x165   :  { %v6809_v37 = vpop.f32.mrf.mxu0  ;;  %v6811_v38 = vpop.f32.mrf.mxu1  ;;  %1013 = vmatpush.msra.mxu0 %v5187_v52  ;;  %1149 = vmatpush.msra.mxu3 %v6006_v4  ;;  %v6023_v52 = vld [vmem:[%s10955_s23 + $0x30] sm:$0xff] }
 0x166   :  { %1112 = vmatpush.msra.mxu2 %v6013_v19 }
 0x167   :  { %1150 = vmatpush.msra.mxu3 %v6008_v6  ;;  %v6030_v6 = vld [vmem:[%s10955_s23 + $0x8] sm:$0xff] }
 0x168   :  { %798 = vmatmul.f32.gmra.mxu0 %v5185_v39  ;;  %839 = vmatmul.f32.gmra.mxu1 %v5185_v39  ;;  %v5223_v39 = vld [vmem:[%s10957_s27 + $0x428] sm:$0xff] }
 0x169   :  { %1052 = vmatpush.msra.mxu1 %v5223_v39  ;;  %1151 = vmatpush.msra.mxu3 %v6010_v8  ;;  %v6020_v39 = vld [vmem:[%s10955_s23 + $0x58] sm:$0xff] }
 0x16a   :  { %1113 = vmatpush.msra.mxu2 %v6015_v25 }
 0x16b   :  { %1053 = vmatpush.msra.mxu1 %v5221_v45  ;;  %1152 = vmatpush.msra.mxu3 %v6012_v14  ;;  %v7068_v45 = vpop.f32.mrf.mxu3  ;;  %v7096_v3 = vpop.f32.mrf.mxu2 }
 0x16c   :  { %1114 = vmatpush.msra.mxu2 %v6017_v31 }
 0x16d   :  { %v6816_v40 = vpop.f32.mrf.mxu0  ;;  %v6818_v41 = vpop.f32.mrf.mxu1  ;;  %1054 = vmatpush.msra.mxu1 %v5219_v53  ;;  %1153 = vmatpush.msra.mxu3 %v6014_v22  ;;  %v6024_v53 = vld [vmem:[%s10955_s23 + $0x38] sm:$0xff] }
 0x16e   :  { %1115 = vmatpush.msra.mxu2 %v6019_v36 }
 0x16f   :  { %1154 = vmatpush.msra.mxu3 %v6016_v28 }
 0x170   :  { %1116 = vmatpush.msra.mxu2 %v6021_v50 }
 0x171   :  { %1155 = vmatpush.msra.mxu3 %v6018_v33 }
 0x172   :  { %1117 = vmatpush.msra.mxu2 %v6023_v52 }
 0x173   :  { %1156 = vmatpush.msra.mxu3 %v6020_v39  ;;  %v7098_v4 = vpop.f32.mrf.mxu3  ;;  %v7108_v13 = vpop.f32.mrf.mxu2 }
 0x174   :  { %1118 = vmatpush.msra.mxu2 %v6025_v54 }
 0x175   :  { %v6838_v48 = vpop.f32.mrf.mxu0  ;;  %v6840_v49 = vpop.f32.mrf.mxu1  ;;  %1157 = vmatpush.msra.mxu3 %v6022_v51 }
 0x176   :  { %1119 = vmatpush.msra.mxu2 %v6027_v60 }
 0x177   :  { %1158 = vmatpush.msra.mxu3 %v6024_v53 }
 0x178   :  { %1120 = vmatpush.msra.mxu2 %v6029_v5 }
 0x179   :  { %1159 = vmatpush.msra.mxu3 %v6026_v55 }
 0x17b   :  { %1160 = vmatpush.msra.mxu3 %v6028_v61  ;;  %v7110_v14 = vpop.f32.mrf.mxu3  ;;  %v7114_v25 = vpop.f32.mrf.mxu2 }
 0x17d   :  { %v6866_v58 = vpop.f32.mrf.mxu0  ;;  %v6868_v59 = vpop.f32.mrf.mxu1  ;;  %1161 = vmatpush.msra.mxu3 %v6030_v6 }
 0x183   :  { %v7116_v28 = vpop.f32.mrf.mxu3  ;;  %v7121_v50 = vpop.f32.mrf.mxu2 }
 0x185   :  { %v6912_v11 = vpop.f32.mrf.mxu0  ;;  %v6914_v12 = vpop.f32.mrf.mxu1 }
 0x186   :  { %10958 = vst [vmem:[#allocation2_spill] sm:$0xff] %v6914_v12 }
 0x18b   :  { %v7123_v51 = vpop.f32.mrf.mxu3  ;;  %v7128_v54 = vpop.f32.mrf.mxu2 }
 0x18d   :  { %v6964_v46 = vpop.f32.mrf.mxu0  ;;  %v6966_v47 = vpop.f32.mrf.mxu1 }
 0x18e   :  { %10959 = vst [vmem:[#allocation3_spill] sm:$0xff] %v6966_v47 }
 0x193   :  { %v7130_v55 = vpop.f32.mrf.mxu3 }
 0x195   :  { %v7002_v0 = vpop.f32.mrf.mxu0  ;;  %v7004_v2 = vpop.f32.mrf.mxu1 }
 0x196   :  { %10960 = vst [vmem:[#allocation4_spill] sm:$0xff] %v7004_v2 }
 0x19d   :  { %v7034_v15 = vpop.f32.mrf.mxu0  ;;  %v7036_v16 = vpop.f32.mrf.mxu1 }
 0x19e   :  { %10961 = vst [vmem:[#allocation5_spill] sm:$0xff] %v7036_v16 }
 0x1a5   :  { %v7062_v42 = vpop.f32.mrf.mxu0  ;;  %v7064_v43 = vpop.f32.mrf.mxu1 }
 0x1a6   :  { %10962 = vst [vmem:[#allocation6_spill] sm:$0xff] %v7064_v43 }
 0x1ad   :  { %v778_v62 = vpop.f32.mrf.mxu0  ;;  %v819_v1 = vpop.f32.mrf.mxu1 }
 0x1ae   :  { %932 = vmatmul.f32.vlgmr.msrb.gmra.mxu2 %v778_v62  ;;  %5234 = vmatmul.msk.f32.vlgmr.msrb.gmra.mxu3 %vm375_vm0, %v819_v1 }
 0x1af   :  { %1014 = vmatmul.f32.vlgmr.msra.gmra.mxu0 %v778_v62  ;;  %5242 = vmatmul.msk.f32.vlgmr.msra.gmra.mxu1 %vm375_vm0, %v819_v1  ;;  %v7134_v62 = vpop.f32.mrf.mxu2  ;;  %v7136_v1 = vpop.f32.mrf.mxu3 }
 0x1b5   :  { %v781_v7 = vpop.f32.mrf.mxu0  ;;  %v822_v8 = vpop.f32.mrf.mxu1 }
 0x1b6   :  { %935 = vmatmul.f32.gmra.mxu2 %v781_v7  ;;  %5235 = vmatmul.msk.f32.gmra.mxu3 %vm375_vm0, %v822_v8 }
 0x1b7   :  { %1017 = vmatmul.f32.gmra.mxu0 %v781_v7  ;;  %5243 = vmatmul.msk.f32.gmra.mxu1 %vm375_vm0, %v822_v8  ;;  %v5250_v7 = vld [vmem:[%s10956_s29 + $0xc0] sm:$0xff]  ;;  %v7143_v8 = vpop.f32.mrf.mxu2 }
 0x1bd   :  { %v784_v19 = vpop.f32.mrf.mxu0  ;;  %v825_v22 = vpop.f32.mrf.mxu1 }
 0x1be   :  { %938 = vmatmul.f32.gmra.mxu2 %v784_v19  ;;  %5236 = vmatmul.msk.f32.gmra.mxu3 %vm375_vm0, %v825_v22 }
 0x1bf   :  { %1020 = vmatmul.f32.gmra.mxu0 %v784_v19  ;;  %5244 = vmatmul.msk.f32.gmra.mxu1 %vm375_vm0, %v825_v22  ;;  %v7145_v19 = vpop.f32.mrf.mxu3  ;;  %v5251_v22 = vld [vmem:[%s10956_s29 + $0xc8] sm:$0xff] }
 0x1c5   :  { %v787_v31 = vpop.f32.mrf.mxu0  ;;  %v828_v33 = vpop.f32.mrf.mxu1 }
 0x1c6   :  { %941 = vmatmul.f32.gmra.mxu2 %v787_v31  ;;  %5237 = vmatmul.msk.f32.gmra.mxu3 %vm375_vm0, %v828_v33 }
 0x1c7   :  { %1023 = vmatmul.f32.gmra.mxu0 %v787_v31  ;;  %5245 = vmatmul.msk.f32.gmra.mxu1 %vm375_vm0, %v828_v33  ;;  %v7150_v31 = vpop.f32.mrf.mxu2  ;;  %v7152_v33 = vpop.f32.mrf.mxu3 }
 0x1cd   :  { %v790_v36 = vpop.f32.mrf.mxu0  ;;  %v831_v39 = vpop.f32.mrf.mxu1 }
 0x1ce   :  { %944 = vmatmul.f32.gmra.mxu2 %v790_v36  ;;  %5238 = vmatmul.msk.f32.gmra.mxu3 %vm375_vm0, %v831_v39 }
 0x1cf   :  { %1026 = vmatmul.f32.gmra.mxu0 %v790_v36  ;;  %5246 = vmatmul.msk.f32.gmra.mxu1 %vm375_vm0, %v831_v39  ;;  %v5252_v36 = vld [vmem:[%s10956_s29 + $0xd0] sm:$0xff]  ;;  %v7157_v39 = vpop.f32.mrf.mxu2 }
 0x1d5   :  { %v793_v52 = vpop.f32.mrf.mxu0  ;;  %v834_v53 = vpop.f32.mrf.mxu1 }
 0x1d6   :  { %947 = vmatmul.f32.gmra.mxu2 %v793_v52  ;;  %5239 = vmatmul.msk.f32.gmra.mxu3 %vm375_vm0, %v834_v53 }
 0x1d7   :  { %1029 = vmatmul.f32.gmra.mxu0 %v793_v52  ;;  %5247 = vmatmul.msk.f32.gmra.mxu1 %vm375_vm0, %v834_v53  ;;  %v7159_v52 = vpop.f32.mrf.mxu3  ;;  %v5253_v53 = vld [vmem:[%s10956_s29 + $0xd8] sm:$0xff] }
 0x1d8   :  { %10963 = vst [vmem:[#allocation7_spill] sm:$0xff] %v7159_v52  ;;  %v5290_v52 = vld [vmem:[%s10957_s27 + $0x580] sm:$0xff] }
 0x1dd   :  { %v796_v60 = vpop.f32.mrf.mxu0  ;;  %v837_v61 = vpop.f32.mrf.mxu1 }
 0x1de   :  { %950 = vmatmul.f32.gmra.mxu2 %v796_v60  ;;  %5240 = vmatmul.msk.f32.gmra.mxu3 %vm375_vm0, %v837_v61 }
 0x1df   :  { %1032 = vmatmul.f32.gmra.mxu0 %v796_v60  ;;  %5248 = vmatmul.msk.f32.gmra.mxu1 %vm375_vm0, %v837_v61  ;;  %v7164_v60 = vpop.f32.mrf.mxu2  ;;  %v7166_v61 = vpop.f32.mrf.mxu3 }
 0x1e0   :  { %10964 = vst [vmem:[#allocation8_spill] sm:$0xff] %v7166_v61  ;;  %v5282_v61 = vld [vmem:[%s10957_s27 + $0x540] sm:$0xff] }
 0x1e5   :  { %v799_v5 = vpop.f32.mrf.mxu0  ;;  %v840_v6 = vpop.f32.mrf.mxu1 }
 0x1e6   :  { %953 = vmatmul.f32.gmra.mxu2 %v799_v5  ;;  %5241 = vmatmul.msk.f32.gmra.mxu3 %vm375_vm0, %v840_v6 }
 0x1e7   :  { %1035 = vmatmul.f32.gmra.mxu0 %v799_v5  ;;  %5249 = vmatmul.msk.f32.gmra.mxu1 %vm375_vm0, %v840_v6  ;;  %v5254_v5 = vld [vmem:[%s10956_s29 + $0xe0] sm:$0xff]  ;;  %v5255_v6 = vld [vmem:[%s10956_s29 + $0xe8] sm:$0xff] }
 0x1ee   :  { %1121 = vmatmul.f32.vlgmr.msra.gmra.mxu2 %v5250_v7  ;;  %1162 = vmatmul.f32.vlgmr.msra.gmra.mxu3 %v5250_v7  ;;  %v7174_v7 = vpop.f32.mrf.mxu2 }
 0x1f6   :  { %1124 = vmatmul.f32.gmra.mxu2 %v5251_v22  ;;  %1165 = vmatmul.f32.gmra.mxu3 %v5251_v22  ;;  %v7176_v22 = vpop.f32.mrf.mxu3 }
 0x1f7   :  { %10965 = vst [vmem:[#allocation9_spill] sm:$0xff] %v7176_v22 }
 0x1fe   :  { %1127 = vmatmul.f32.gmra.mxu2 %v5252_v36  ;;  %1168 = vmatmul.f32.gmra.mxu3 %v5252_v36  ;;  %v5256_v36 = vld [vmem:[%s10956_s29 + $0xf0] sm:$0xff]  ;;  %v7183_v43 = vpop.f32.mrf.mxu3 }
 0x1ff   :  { %10966 = vst [vmem:[#allocation10_spill] sm:$0xff] %v7183_v43  ;;  %v5289_v43 = vld [vmem:[%s10957_s27 + $0x578] sm:$0xff] }
 0x200   :  { %1342 = vmatpush.msrb.mxu2 %v5289_v43 }
 0x206   :  { %1130 = vmatmul.f32.gmra.mxu2 %v5253_v53  ;;  %1171 = vmatmul.f32.gmra.mxu3 %v5253_v53  ;;  %v7181_v53 = vpop.f32.mrf.mxu2  ;;  %v7190_v22 = vpop.f32.mrf.mxu3 }
 0x207   :  { %10968 = vst [vmem:[#allocation12_spill] sm:$0xff] %v7190_v22  ;;  %v5287_v22 = vld [vmem:[%s10957_s27 + $0x568] sm:$0xff] }
 0x208   :  { %1343 = vmatpush.msrb.mxu2 %v5287_v22  ;;  %v5283_v22 = vld [vmem:[%s10957_s27 + $0x548] sm:$0xff] }
 0x20e   :  { %1133 = vmatmul.f32.gmra.mxu2 %v5254_v5  ;;  %1174 = vmatmul.f32.gmra.mxu3 %v5254_v5  ;;  %v5257_v5 = vld [vmem:[%s10956_s29 + $0xf8] sm:$0xff]  ;;  %v7188_v16 = vpop.f32.mrf.mxu2  ;;  %s11075_s29 = sld [smem:[#allocation64_spill]] }
 0x20f   :  { %10967 = vst [vmem:[#allocation11_spill] sm:$0xff] %v7188_v16  ;;  %v5298_v16 = vld [vmem:[%s10957_s27 + $0x5c0] sm:$0xff] }
 0x216   :  { %1136 = vmatmul.f32.gmra.mxu2 %v5255_v6  ;;  %1177 = vmatmul.f32.gmra.mxu3 %v5255_v6 }
 0x21e   :  { %1139 = vmatmul.f32.gmra.mxu2 %v5256_v36  ;;  %1180 = vmatmul.f32.gmra.mxu3 %v5256_v36  ;;  %v5288_v36 = vld [vmem:[%s10957_s27 + $0x570] sm:$0xff] }
 0x21f   :  { %1260 = vmatpush.msrb.mxu0 %v5288_v36 }
 0x226   :  { %1142 = vmatmul.f32.gmra.mxu2 %v5257_v5  ;;  %1183 = vmatmul.f32.gmra.mxu3 %v5257_v5  ;;  %v5286_v5 = vld [vmem:[%s10957_s27 + $0x560] sm:$0xff] }
 0x227   :  { %1261 = vmatpush.msrb.mxu0 %v5286_v5  ;;  %v5280_v5 = vld [vmem:[%s10957_s27 + $0x530] sm:$0xff] }
 0x231   :  { %v7192_v6 = vpop.f32.mrf.mxu2  ;;  %v7194_v2 = vpop.f32.mrf.mxu3 }
 0x232   :  { %10969 = vst [vmem:[#allocation13_spill] sm:$0xff] %v7192_v6  ;;  %v5285_v6 = vld [vmem:[%s10957_s27 + $0x558] sm:$0xff] }
 0x233   :  { %10970 = vst [vmem:[#allocation14_spill] sm:$0xff] %v7194_v2  ;;  %v5284_v2 = vld [vmem:[%s10957_s27 + $0x550] sm:$0xff]  ;;  %1344 = vmatpush.msrb.mxu2 %v5285_v6  ;;  %v5278_v6 = vld [vmem:[%s10957_s27 + $0x520] sm:$0xff] }
 0x234   :  { %1262 = vmatpush.msrb.mxu0 %v5284_v2  ;;  %v5281_v2 = vld [vmem:[%s10957_s27 + $0x538] sm:$0xff] }
 0x235   :  { %1345 = vmatpush.msrb.mxu2 %v5283_v22  ;;  %v5277_v22 = vld [vmem:[%s10957_s27 + $0x518] sm:$0xff] }
 0x236   :  { %1263 = vmatpush.msrb.mxu0 %v5282_v61  ;;  %v5276_v61 = vld [vmem:[%s10957_s27 + $0x510] sm:$0xff] }
 0x237   :  { %1346 = vmatpush.msrb.mxu2 %v5281_v2 }
 0x238   :  { %1264 = vmatpush.msrb.mxu0 %v5280_v5 }
 0x239   :  { %v7214_v43 = vpop.f32.mrf.mxu2  ;;  %v7216_v36 = vpop.f32.mrf.mxu3 }
 0x23a   :  { %10971 = vst [vmem:[#allocation15_spill] sm:$0xff] %v7214_v43  ;;  %1265 = vmatpush.msrb.mxu0 %v5278_v6  ;;  %v5274_v43 = vld [vmem:[%s10957_s27 + $0x500] sm:$0xff]  ;;  %v5272_v6 = vld [vmem:[%s10957_s27 + $0x4f0] sm:$0xff] }
 0x23b   :  { %10972 = vst [vmem:[#allocation16_spill] sm:$0xff] %v7216_v36  ;;  %v5279_v36 = vld [vmem:[%s10957_s27 + $0x528] sm:$0xff] }
 0x23c   :  { %1347 = vmatpush.msrb.mxu2 %v5279_v36  ;;  %1266 = vmatpush.msrb.mxu0 %v5276_v61  ;;  %v5275_v36 = vld [vmem:[%s10957_s27 + $0x508] sm:$0xff]  ;;  %v5304_v61 = vld [vmem:[%s10957_s27 + $0x5f0] sm:$0xff] }
 0x23d   :  { %1309 = vmatpush.msrb.mxu1 %v5304_v61  ;;  %v5300_v61 = vld [vmem:[%s10957_s27 + $0x5d0] sm:$0xff] }
 0x23e   :  { %1348 = vmatpush.msrb.mxu2 %v5277_v22  ;;  %1267 = vmatpush.msrb.mxu0 %v5274_v43  ;;  %v5273_v22 = vld [vmem:[%s10957_s27 + $0x4f8] sm:$0xff]  ;;  %v5270_v43 = vld [vmem:[%s10957_s27 + $0x4e0] sm:$0xff] }
 0x240   :  { %1349 = vmatpush.msrb.mxu2 %v5275_v36  ;;  %1268 = vmatpush.msrb.mxu0 %v5272_v6  ;;  %v5302_v36 = vld [vmem:[%s10957_s27 + $0x5e0] sm:$0xff]  ;;  %v5303_v6 = vld [vmem:[%s10957_s27 + $0x5e8] sm:$0xff] }
 0x241   :  { %v7242_v5 = vpop.f32.mrf.mxu2  ;;  %v7244_v2 = vpop.f32.mrf.mxu3  ;;  %1310 = vmatpush.msrb.mxu1 %v5302_v36 }
 0x242   :  { %10973 = vst [vmem:[#allocation17_spill] sm:$0xff] %v7242_v5  ;;  %1350 = vmatpush.msrb.mxu2 %v5273_v22  ;;  %v5271_v5 = vld [vmem:[%s10957_s27 + $0x4e8] sm:$0xff]  ;;  %1269 = vmatpush.msrb.mxu0 %v5270_v43  ;;  %v5269_v22 = vld [vmem:[%s10957_s27 + $0x4d8] sm:$0xff] }
 0x243   :  { %10974 = vst [vmem:[#allocation18_spill] sm:$0xff] %v7244_v2  ;;  %v5305_v2 = vld [vmem:[%s10957_s27 + $0x5f8] sm:$0xff]  ;;  %1311 = vmatpush.msrb.mxu1 %v5300_v61  ;;  %v5299_v61 = vld [vmem:[%s10957_s27 + $0x5c8] sm:$0xff] }
 0x244   :  { %1391 = vmatpush.msrb.mxu3 %v5305_v2  ;;  %1351 = vmatpush.msrb.mxu2 %v5271_v5  ;;  %v5268_v2 = vld [vmem:[%s10957_s27 + $0x4d0] sm:$0xff]  ;;  %v5301_v43 = vld [vmem:[%s10957_s27 + $0x5d8] sm:$0xff] }
 0x245   :  { %1270 = vmatpush.msrb.mxu0 %v5268_v2  ;;  %v5267_v2 = vld [vmem:[%s10957_s27 + $0x4c8] sm:$0xff]  ;;  %1312 = vmatpush.msrb.mxu1 %v5298_v16  ;;  %v5297_v16 = vld [vmem:[%s10957_s27 + $0x5b8] sm:$0xff] }
 0x246   :  { %1392 = vmatpush.msrb.mxu3 %v5303_v6  ;;  %1352 = vmatpush.msrb.mxu2 %v5269_v22  ;;  %v5266_v6 = vld [vmem:[%s10957_s27 + $0x4c0] sm:$0xff]  ;;  %v5264_v22 = vld [vmem:[%s10957_s27 + $0x4b0] sm:$0xff] }
 0x247   :  { %1271 = vmatpush.msrb.mxu0 %v5266_v6  ;;  %v5262_v6 = vld [vmem:[%s10957_s27 + $0x4a0] sm:$0xff] }
 0x248   :  { %1393 = vmatpush.msrb.mxu3 %v5301_v43  ;;  %1353 = vmatpush.msrb.mxu2 %v5267_v2  ;;  %v5296_v43 = vld [vmem:[%s10957_s27 + $0x5b0] sm:$0xff]  ;;  %v5294_v2 = vld [vmem:[%s10957_s27 + $0x5a0] sm:$0xff] }
 0x249   :  { %v7288_v5 = vpop.f32.mrf.mxu2  ;;  %v7290_v36 = vpop.f32.mrf.mxu3  ;;  %1272 = vmatpush.msrb.mxu0 %v5264_v22  ;;  %1313 = vmatpush.msrb.mxu1 %v5296_v43  ;;  %v5295_v22 = vld [vmem:[%s10957_s27 + $0x5a8] sm:$0xff]  ;;  %v5260_v43 = vld [vmem:[%s10957_s27 + $0x490] sm:$0xff] }
 0x24a   :  { %10975 = vst [vmem:[#allocation19_spill] sm:$0xff] %v7288_v5  ;;  %1394 = vmatpush.msrb.mxu3 %v5299_v61  ;;  %v5263_v61 = vld [vmem:[%s10957_s27 + $0x4a8] sm:$0xff]  ;;  %v5292_v5 = vld [vmem:[%s10957_s27 + $0x590] sm:$0xff] }
 0x24b   :  { %10976 = vst [vmem:[#allocation20_spill] sm:$0xff] %v7290_v36  ;;  %v5265_v36 = vld [vmem:[%s10957_s27 + $0x4b8] sm:$0xff]  ;;  %1273 = vmatpush.msrb.mxu0 %v5262_v6  ;;  %1314 = vmatpush.msrb.mxu1 %v5294_v2  ;;  %v5258_v2 = vld [vmem:[%s10957_s27 + $0x480] sm:$0xff] }
 0x24c   :  { %1354 = vmatpush.msrb.mxu2 %v5265_v36  ;;  %1395 = vmatpush.msrb.mxu3 %v5297_v16  ;;  %v5261_v36 = vld [vmem:[%s10957_s27 + $0x498] sm:$0xff] }
 0x24d   :  { %v5293_v16 = vld [vmem:[%s10957_s27 + $0x598] sm:$0xff]  ;;  %1274 = vmatpush.msrb.mxu0 %v5260_v43  ;;  %1315 = vmatpush.msrb.mxu1 %v5292_v5  ;;  %v5291_v5 = vld [vmem:[%s10957_s27 + $0x588] sm:$0xff] }
 0x24e   :  { %1355 = vmatpush.msrb.mxu2 %v5263_v61  ;;  %1396 = vmatpush.msrb.mxu3 %v5295_v22  ;;  %v5259_v61 = vld [vmem:[%s10957_s27 + $0x488] sm:$0xff] }
 0x24f   :  { %1275 = vmatpush.msrb.mxu0 %v5258_v2  ;;  %1316 = vmatpush.msrb.mxu1 %v5290_v52 }
 0x250   :  { %1356 = vmatpush.msrb.mxu2 %v5261_v36  ;;  %1397 = vmatpush.msrb.mxu3 %v5293_v16 }
 0x251   :  { %v7340_v47 = vpop.f32.mrf.mxu2  ;;  %v7342_v6 = vpop.f32.mrf.mxu3 }
 0x252   :  { %10977 = vst [vmem:[#allocation21_spill] sm:$0xff] %v7340_v47  ;;  %1357 = vmatpush.msrb.mxu2 %v5259_v61  ;;  %1398 = vmatpush.msrb.mxu3 %v5291_v5 }
 0x253   :  { %10978 = vst [vmem:[#allocation22_spill] sm:$0xff] %v7342_v6 }
 0x259   :  { %v7356_v22 = vpop.f32.mrf.mxu2  ;;  %v7358_v43 = vpop.f32.mrf.mxu3 }
 0x25a   :  { %10979 = vst [vmem:[#allocation23_spill] sm:$0xff] %v7356_v22 }
 0x25b   :  { %10980 = vst [vmem:[#allocation24_spill] sm:$0xff] %v7358_v43 }
 0x261   :  { %v7360_v36 = vpop.f32.mrf.mxu2  ;;  %v7362_v16 = vpop.f32.mrf.mxu3 }
 0x262   :  { %10981 = vst [vmem:[#allocation25_spill] sm:$0xff] %v7360_v36 }
 0x263   :  { %10982 = vst [vmem:[#allocation26_spill] sm:$0xff] %v7362_v16 }
 0x269   :  { %v7364_v6 = vpop.f32.mrf.mxu2  ;;  %v7366_v47 = vpop.f32.mrf.mxu3 }
 0x26a   :  { %10983 = vst [vmem:[#allocation27_spill] sm:$0xff] %v7364_v6 }
 0x26b   :  { %10984 = vst [vmem:[#allocation28_spill] sm:$0xff] %v7366_v47 }
 0x271   :  { %v1122_v2 = vpop.f32.mrf.mxu2  ;;  %v1163_v52 = vpop.f32.mrf.mxu3 }
 0x272   :  { %1276 = vmatmul.f32.vlgmr.msrb.gmra.mxu0 %v1122_v2  ;;  %5306 = vmatmul.msk.f32.vlgmr.msrb.gmra.mxu1 %vm375_vm0, %v1163_v52 }
 0x273   :  { %1358 = vmatmul.f32.vlgmr.msrb.gmra.mxu2 %v1122_v2  ;;  %5314 = vmatmul.msk.f32.vlgmr.msrb.gmra.mxu3 %vm375_vm0, %v1163_v52 }
 0x279   :  { %v1125_v61 = vpop.f32.mrf.mxu2  ;;  %v1166_v5 = vpop.f32.mrf.mxu3 }
 0x27a   :  { %1279 = vmatmul.f32.gmra.mxu0 %v1125_v61  ;;  %5307 = vmatmul.msk.f32.gmra.mxu1 %vm375_vm0, %v1166_v5 }
 0x27b   :  { %1361 = vmatmul.f32.gmra.mxu2 %v1125_v61  ;;  %5315 = vmatmul.msk.f32.gmra.mxu3 %vm375_vm0, %v1166_v5 }
 0x281   :  { %v1128_v43 = vpop.f32.mrf.mxu2  ;;  %v1169_v6 = vpop.f32.mrf.mxu3 }
 0x282   :  { %1282 = vmatmul.f32.gmra.mxu0 %v1128_v43  ;;  %5308 = vmatmul.msk.f32.gmra.mxu1 %vm375_vm0, %v1169_v6 }
 0x283   :  { %1364 = vmatmul.f32.gmra.mxu2 %v1128_v43  ;;  %5316 = vmatmul.msk.f32.gmra.mxu3 %vm375_vm0, %v1169_v6  ;;  %v7380_v6 = vpop.f32.mrf.mxu0 }
 0x284   :  { %10985 = vst [vmem:[#allocation29_spill] sm:$0xff] %v7380_v6 }
 0x289   :  { %v1131_v47 = vpop.f32.mrf.mxu2  ;;  %v1172_v2 = vpop.f32.mrf.mxu3 }
 0x28a   :  { %1285 = vmatmul.f32.gmra.mxu0 %v1131_v47  ;;  %5309 = vmatmul.msk.f32.gmra.mxu1 %vm375_vm0, %v1172_v2 }
 0x28b   :  { %1367 = vmatmul.f32.gmra.mxu2 %v1131_v47  ;;  %5317 = vmatmul.msk.f32.gmra.mxu3 %vm375_vm0, %v1172_v2  ;;  %v7382_v47 = vpop.f32.mrf.mxu1 }
 0x28c   :  { %10986 = vst [vmem:[#allocation30_spill] sm:$0xff] %v7382_v47 }
 0x291   :  { %v1134_v52 = vpop.f32.mrf.mxu2  ;;  %v1175_v61 = vpop.f32.mrf.mxu3 }
 0x292   :  { %1288 = vmatmul.f32.gmra.mxu0 %v1134_v52  ;;  %5310 = vmatmul.msk.f32.gmra.mxu1 %vm375_vm0, %v1175_v61 }
 0x293   :  { %1370 = vmatmul.f32.gmra.mxu2 %v1134_v52  ;;  %5318 = vmatmul.msk.f32.gmra.mxu3 %vm375_vm0, %v1175_v61 }
 0x299   :  { %v1137_v5 = vpop.f32.mrf.mxu2  ;;  %v1178_v43 = vpop.f32.mrf.mxu3 }
 0x29a   :  { %1291 = vmatmul.f32.gmra.mxu0 %v1137_v5  ;;  %5311 = vmatmul.msk.f32.gmra.mxu1 %vm375_vm0, %v1178_v43 }
 0x29b   :  { %1373 = vmatmul.f32.gmra.mxu2 %v1137_v5  ;;  %5319 = vmatmul.msk.f32.gmra.mxu3 %vm375_vm0, %v1178_v43  ;;  %v7387_v5 = vpop.f32.mrf.mxu0  ;;  %v7389_v43 = vpop.f32.mrf.mxu1 }
 0x29c   :  { %10987 = vst [vmem:[#allocation31_spill] sm:$0xff] %v7387_v5 }
 0x29d   :  { %10988 = vst [vmem:[#allocation32_spill] sm:$0xff] %v7389_v43 }
 0x2a1   :  { %v1140_v2 = vpop.f32.mrf.mxu2  ;;  %v1181_v22 = vpop.f32.mrf.mxu3 }
 0x2a2   :  { %1294 = vmatmul.f32.gmra.mxu0 %v1140_v2  ;;  %5312 = vmatmul.msk.f32.gmra.mxu1 %vm375_vm0, %v1181_v22 }
 0x2a3   :  { %1376 = vmatmul.f32.gmra.mxu2 %v1140_v2  ;;  %5320 = vmatmul.msk.f32.gmra.mxu3 %vm375_vm0, %v1181_v22  ;;  %v7392_v47 = vpop.f32.mrf.mxu0  ;;  %v7394_v6 = vpop.f32.mrf.mxu1 }
 0x2a4   :  { %10989 = vst [vmem:[#allocation33_spill] sm:$0xff] %v7392_v47 }
 0x2a5   :  { %10990 = vst [vmem:[#allocation34_spill] sm:$0xff] %v7394_v6 }
 0x2a9   :  { %v1143_v52 = vpop.f32.mrf.mxu2  ;;  %v1184_v61 = vpop.f32.mrf.mxu3 }
 0x2aa   :  { %1297 = vmatmul.f32.gmra.mxu0 %v1143_v52  ;;  %5313 = vmatmul.msk.f32.gmra.mxu1 %vm375_vm0, %v1184_v61 }
 0x2ab   :  { %1379 = vmatmul.f32.gmra.mxu2 %v1143_v52  ;;  %5321 = vmatmul.msk.f32.gmra.mxu3 %vm375_vm0, %v1184_v61  ;;  %v7396_v16 = vpop.f32.mrf.mxu0  ;;  %v7398_v2 = vpop.f32.mrf.mxu1 }
 0x2ac   :  { %10991 = vst [vmem:[#allocation35_spill] sm:$0xff] %v7396_v16 }
 0x2ad   :  { %10992 = vst [vmem:[#allocation36_spill] sm:$0xff] %v7398_v2 }
 0x2b3   :  { %v7400_v22 = vpop.f32.mrf.mxu0  ;;  %v7402_v36 = vpop.f32.mrf.mxu1 }
 0x2b4   :  { %10993 = vst [vmem:[#allocation37_spill] sm:$0xff] %v7400_v22 }
 0x2b5   :  { %10994 = vst [vmem:[#allocation38_spill] sm:$0xff] %v7402_v36 }
 0x2bb   :  { %v7404_v12 = vpop.f32.mrf.mxu0  ;;  %v7406_v5 = vpop.f32.mrf.mxu1 }
 0x2bc   :  { %10995 = vst [vmem:[#allocation39_spill] sm:$0xff] %v7404_v12 }
 0x2bd   :  { %10996 = vst [vmem:[#allocation40_spill] sm:$0xff] %v7406_v5 }
 0x2c3   :  { %v7408_v43 = vpop.f32.mrf.mxu0  ;;  %v7410_v52 = vpop.f32.mrf.mxu1 }
 0x2c4   :  { %10997 = vst [vmem:[#allocation41_spill] sm:$0xff] %v7408_v43 }
 0x2c5   :  { %10998 = vst [vmem:[#allocation42_spill] sm:$0xff] %v7410_v52 }
 0x2cb   :  { %v7412_v61 = vpop.f32.mrf.mxu0  ;;  %v7414_v47 = vpop.f32.mrf.mxu1 }
 0x2cc   :  { %10999 = vst [vmem:[#allocation43_spill] sm:$0xff] %v7412_v61 }
 0x2cd   :  { %11000 = vst [vmem:[#allocation44_spill] sm:$0xff] %v7414_v47 }
 0x2ef   :  { %v7416_v6 = vpop.f32.mrf.mxu0  ;;  %v7418_v16 = vpop.f32.mrf.mxu1 }
 0x2f0   :  { %11001 = vst [vmem:[#allocation45_spill] sm:$0xff] %v7416_v6 }
 0x2f1   :  { %11002 = vst [vmem:[#allocation46_spill] sm:$0xff] %v7418_v16 }
 0x2f6   :  { %v7420_v2 = vpop.f32.mrf.mxu2  ;;  %v7422_v22 = vpop.f32.mrf.mxu3 }
 0x2f7   :  { %11003 = vst [vmem:[#allocation47_spill] sm:$0xff] %v7420_v2  ;;  %v7424_v36 = vpop.f32.mrf.mxu0  ;;  %v7426_v12 = vpop.f32.mrf.mxu1 }
 0x2f8   :  { %11004 = vst [vmem:[#allocation48_spill] sm:$0xff] %v7422_v22 }
 0x2f9   :  { %11005 = vst [vmem:[#allocation49_spill] sm:$0xff] %v7424_v36 }
 0x2fa   :  { %11006 = vst [vmem:[#allocation50_spill] sm:$0xff] %v7426_v12 }
 0x2fe   :  { %v7428_v5 = vpop.f32.mrf.mxu2  ;;  %v7430_v43 = vpop.f32.mrf.mxu3 }
 0x2ff   :  { %11007 = vst [vmem:[#allocation51_spill] sm:$0xff] %v7428_v5  ;;  %v7432_v52 = vpop.f32.mrf.mxu0  ;;  %v7434_v61 = vpop.f32.mrf.mxu1 }
 0x300   :  { %11008 = vst [vmem:[#allocation52_spill] sm:$0xff] %v7430_v43  ;;  %v459_v43 = vadd.f32 %v6762_v18, %v6760_v17  ;;  %v468_v17 = vadd.f32 %v6783_v27, %v6781_v26  ;;  %v550_v18 = vadd.f32 %v7098_v4, %v7096_v3  ;;  %v477_v27 = vadd.f32 %v6804_v35, %v6802_v34 }
 0x301   :  { %11009 = vst [vmem:[#allocation53_spill] sm:$0xff] %v7432_v52 }
 0x302   :  { %11010 = vst [vmem:[#allocation54_spill] sm:$0xff] %v7434_v61  ;;  %v544_v61 = vadd.f32 %v7026_v10, %v7024_v9  ;;  %v606_v26 = vadd.f32 %v6816_v40, %v459_v43  ;;  %v480_v10 = vadd.f32 %v6811_v38, %v6809_v37  ;;  %v562_v40 = vadd.f32 %v7130_v55, %v7128_v54  ;;  %v11017_v54 = vld [vmem:[#allocation7_spill] sm:$0xff] }
 0x303   :  { %v615_v34 = vadd.f32 %v6912_v11, %v468_v17  ;;  %v697_v35 = vadd.f32 %v7157_v39, %v550_v18  ;;  %v11018_v55 = vld [vmem:[#allocation3_spill] sm:$0xff]  ;;  %v11021_v39 = vld [vmem:[#allocation4_spill] sm:$0xff] }
 0x304   :  { %v11028_v17 = vld [vmem:[#allocation32_spill] sm:$0xff] }
 0x306   :  { %v7436_v47 = vpop.f32.mrf.mxu2  ;;  %v7438_v6 = vpop.f32.mrf.mxu3 }
 0x307   :  { %11011 = vst [vmem:[#allocation55_spill] sm:$0xff] %v7436_v47  ;;  %v7440_v16 = vpop.f32.mrf.mxu0  ;;  %v7442_v2 = vpop.f32.mrf.mxu1  ;;  %v541_v47 = vadd.f32 %v6988_v57, %v6986_v56  ;;  %v556_v57 = vadd.f32 %v7116_v28, %v7114_v25  ;;  %v627_v25 = vadd.f32 %v7062_v42, %v480_v10  ;;  %v11035_v10 = vld [vmem:[#allocation18_spill] sm:$0xff] }
 0x308   :  { %11012 = vst [vmem:[#allocation56_spill] sm:$0xff] %v7438_v6  ;;  %v462_v6 = vadd.f32 %v6769_v21, %v6767_v20  ;;  %v471_v20 = vadd.f32 %v6790_v30, %v6788_v29  ;;  %v559_v29 = vadd.f32 %v7123_v51, %v7121_v50  ;;  %v11016_v50 = vld [vmem:[#allocation2_spill] sm:$0xff] }
 0x309   :  { %11013 = vst [vmem:[#allocation57_spill] sm:$0xff] %v7442_v2  ;;  %v547_v2 = vadd.f32 %v7068_v45, %v7066_v44  ;;  %v688_v30 = vadd.f32 %v7134_v62, %v541_v47  ;;  %v703_v38 = vadd.f32 %v7174_v7, %v556_v57  ;;  %v656_v51 = vadd.f32 %v11016_v50, %v615_v34  ;;  %v11019_v62 = vld [vmem:[#allocation11_spill] sm:$0xff]  ;;  %v11023_v7 = vld [vmem:[#allocation13_spill] sm:$0xff]  ;;  %v11031_v57 = vld [vmem:[#allocation6_spill] sm:$0xff] }
 0x30a   :  { %v609_v9 = vadd.f32 %v6838_v48, %v462_v6  ;;  %v618_v45 = vadd.f32 %v6964_v46, %v471_v20  ;;  %v647_v48 = vadd.f32 %v6818_v41, %v606_v26  ;;  %v706_v11 = vadd.f32 %v7181_v53, %v559_v29  ;;  %v11024_v53 = vld [vmem:[#allocation14_spill] sm:$0xff]  ;;  %v11025_v47 = vld [vmem:[#allocation5_spill] sm:$0xff]  ;;  %v11029_v20 = vld [vmem:[#allocation15_spill] sm:$0xff] }
 0x30b   :  { %v694_v44 = vadd.f32 %v7150_v31, %v547_v2  ;;  %v11020_v31 = vld [vmem:[#allocation8_spill] sm:$0xff]  ;;  %v975_v6 = vadd.f32 %v11024_v53, %v11023_v7  ;;  %v11026_v2 = vld [vmem:[#allocation10_spill] sm:$0xff]  ;;  %v668_v26 = vadd.f32 %v11031_v57, %v627_v25  ;;  %v11043_v50 = vld [vmem:[#allocation23_spill] sm:$0xff] }
 0x30c   :  { %v650_v4 = vadd.f32 %v6840_v49, %v609_v9  ;;  %v738_v49 = vadd.f32 %v11017_v54, %v697_v35  ;;  %v11033_v29 = vld [vmem:[#allocation34_spill] sm:$0xff]  ;;  %v11034_v9 = vld [vmem:[#allocation17_spill] sm:$0xff]  ;;  %v11038_v34 = vld [vmem:[#allocation12_spill] sm:$0xff] }
 0x30d   :  { %v735_v41 = vadd.f32 %v7152_v33, %v694_v44  ;;  %v11037_v44 = vld [vmem:[#allocation26_spill] sm:$0xff]  ;;  %v11044_v54 = vld [vmem:[#allocation24_spill] sm:$0xff] }
 0x30e   :  { %v7444_v22 = vpop.f32.mrf.mxu2  ;;  %v7446_v36 = vpop.f32.mrf.mxu3  ;;  %v990_v25 = vadd.f32 %v11044_v54, %v11043_v50  ;;  %v11048_v7 = vld [vmem:[#allocation28_spill] sm:$0xff]  ;;  %v11052_v57 = vld [vmem:[#allocation22_spill] sm:$0xff] }
 0x30f   :  { %11014 = vst [vmem:[#allocation58_spill] sm:$0xff] %v7444_v22  ;;  %v7448_v12 = vpop.f32.mrf.mxu0  ;;  %v7450_v5 = vpop.f32.mrf.mxu1  ;;  %v465_v22 = vadd.f32 %v6776_v24, %v6774_v23  ;;  %v553_v23 = vadd.f32 %v7110_v14, %v7108_v13  ;;  %v474_v24 = vadd.f32 %v6797_v32, %v6795_v63  ;;  %v691_v63 = vadd.f32 %v7143_v8, %v544_v61  ;;  %v11027_v61 = vld [vmem:[#allocation31_spill] sm:$0xff] }
 0x310   :  { %11015 = vst [vmem:[#allocation59_spill] sm:$0xff] %v7446_v36  ;;  %v624_v13 = vadd.f32 %v7034_v15, %v477_v27  ;;  %v659_v15 = vadd.f32 %v11018_v55, %v618_v45  ;;  %v1060_v18 = vadd.f32 %v11028_v17, %v11027_v61  ;;  %v11032_v27 = vld [vmem:[#allocation33_spill] sm:$0xff]  ;;  %v11039_v45 = vld [vmem:[#allocation35_spill] sm:$0xff]  ;;  %v11050_v17 = vld [vmem:[#allocation38_spill] sm:$0xff] }
 0x311   :  { %v612_v32 = vadd.f32 %v6866_v58, %v465_v22  ;;  %v700_v3 = vadd.f32 %v7164_v60, %v553_v23  ;;  %v621_v37 = vadd.f32 %v7002_v0, %v474_v24  ;;  %v7506_v58 = vadd.f32 %v7136_v1, %v688_v30  ;;  %v11022_v60 = vld [vmem:[#allocation9_spill] sm:$0xff]  ;;  %v11030_v23 = vld [vmem:[#allocation16_spill] sm:$0xff] }
 0x312   :  { %v732_v14 = vadd.f32 %v7145_v19, %v691_v63  ;;  %v709_v1 = vadd.f32 %v11019_v62, %v562_v40  ;;  %v744_v42 = vadd.f32 %v11022_v60, %v703_v38  ;;  %v665_v43 = vadd.f32 %v11025_v47, %v624_v13  ;;  %v11041_v38 = vld [vmem:[#allocation19_spill] sm:$0xff]  ;;  %v11042_v13 = vld [vmem:[#allocation20_spill] sm:$0xff]  ;;  %v11045_v55 = vld [vmem:[#allocation29_spill] sm:$0xff] }
 0x313   :  { %v653_v46 = vadd.f32 %v6868_v59, %v612_v32  ;;  %v741_v59 = vadd.f32 %v11020_v31, %v700_v3  ;;  %v662_v33 = vadd.f32 %v11021_v39, %v621_v37  ;;  %v747_v22 = vadd.f32 %v11026_v2, %v706_v11  ;;  %v11036_v32 = vld [vmem:[#allocation25_spill] sm:$0xff]  ;;  %v11040_v3 = vld [vmem:[#allocation36_spill] sm:$0xff]  ;;  %v11046_v62 = vld [vmem:[#allocation30_spill] sm:$0xff] }
 0x314   :  { %v978_v24 = vadd.f32 %v11030_v23, %v11029_v20  ;;  %v1063_v30 = vadd.f32 %v11033_v29, %v11032_v27  ;;  %v981_v63 = vadd.f32 %v11035_v10, %v11034_v9  ;;  %v993_v40 = vadd.f32 %v11037_v44, %v11036_v32  ;;  %v11047_v60 = vld [vmem:[#allocation27_spill] sm:$0xff]  ;;  %v11049_v61 = vld [vmem:[#allocation37_spill] sm:$0xff] }
 0x315   :  { %v750_v35 = vadd.f32 %v11038_v34, %v709_v1  ;;  %v1066_v37 = vadd.f32 %v11040_v3, %v11039_v45  ;;  %v984_v11 = vadd.f32 %v11042_v13, %v11041_v38  ;;  %v7550_v31 = vadd.f32 %v11046_v62, %v11045_v55  ;;  %v11051_v23 = vld [vmem:[#allocation21_spill] sm:$0xff]  ;;  %v11058_v3 = vld [vmem:[#allocation44_spill] sm:$0xff]  ;;  %v11060_v38 = vld [vmem:[#allocation46_spill] sm:$0xff] }
 0x316   :  { %v7462_v36 = vpop.f32.mrf.mxu2  ;;  %v7464_v52 = vpop.f32.mrf.mxu3  ;;  %v1080_v39 = vadd.f32 %v975_v6, %v647_v48  ;;  %v996_v53 = vadd.f32 %v11048_v7, %v11047_v60  ;;  %v7554_v2 = vadd.f32 %v1060_v18, %v732_v14  ;;  %v1082_v1 = vadd.f32 %v978_v24, %v650_v4  ;;  %v11054_v4 = vld [vmem:[#allocation40_spill] sm:$0xff] }
 0x317   :  { %v7474_v21 = vpop.f32.mrf.mxu0  ;;  %v7476_v56 = vpop.f32.mrf.mxu1  ;;  %v1069_v20 = vadd.f32 %v11050_v17, %v11049_v61  ;;  %v987_v27 = vadd.f32 %v11052_v57, %v11051_v23  ;;  %v7560_v29 = vadd.f32 %v1063_v30, %v735_v41  ;;  %v1084_v9 = vadd.f32 %v981_v63, %v653_v46 }
 0x318   :  { %v1092_v10 = vadd.f32 %v993_v40, %v665_v43  ;;  %v1334_v48 = vadd.f32 %v7476_v56, %v7474_v21  ;;  %v7564_v44 = vadd.f32 %v1066_v37, %v738_v49  ;;  %v1086_v14 = vadd.f32 %v984_v11, %v656_v51  ;;  %v11055_v21 = vld [vmem:[#allocation41_spill] sm:$0xff]  ;;  %v11056_v56 = vld [vmem:[#allocation42_spill] sm:$0xff]  ;;  %v11057_v49 = vld [vmem:[#allocation43_spill] sm:$0xff] }
 0x319   :  { %v1090_v18 = vadd.f32 %v990_v25, %v662_v33  ;;  %v1094_v45 = vadd.f32 %v996_v53, %v668_v26  ;;  %v1331_v41 = vadd.f32 %v7450_v5, %v7448_v12  ;;  %v1089_v30 = vadd.f32 %v1069_v20, %v741_v59  ;;  %v11059_v37 = vld [vmem:[#allocation45_spill] sm:$0xff]  ;;  %v11063_v5 = vld [vmem:[#allocation50_spill] sm:$0xff] }
 0x31a   :  { %v1088_v63 = vadd.f32 %v987_v27, %v659_v15  ;;  %v1075_v40 = vadd.f32 %v11056_v56, %v11055_v21  ;;  %v1078_v51 = vadd.f32 %v11058_v3, %v11057_v49  ;;  %v1319_v13 = vadd.f32 %v11060_v38, %v11059_v37  ;;  %v11061_v33 = vld [vmem:[#allocation57_spill] sm:$0xff]  ;;  %v11065_v15 = vld [vmem:[#allocation54_spill] sm:$0xff]  ;;  %v11073_v49 = vld [vmem:[#allocation48_spill] sm:$0xff] }
 0x31b   :  { %v1328_v11 = vadd.f32 %v11061_v33, %v7440_v16  ;;  %v1434_v26 = vadd.f32 %v1334_v48, %v1090_v18  ;;  %v11062_v12 = vld [vmem:[#allocation49_spill] sm:$0xff]  ;;  %v1081_v33 = vadd.f32 %v7550_v31, %v7506_v58 }
 0x31c   :  { %v1322_v25 = vadd.f32 %v11063_v5, %v11062_v12  ;;  %v11064_v59 = vld [vmem:[#allocation53_spill] sm:$0xff]  ;;  %v1432_v60 = vadd.f32 %v1331_v41, %v1088_v63  ;;  %v1095_v61 = vadd.f32 %v1078_v51, %v750_v35  ;;  %v7584_v16 = vadd.f32 %v1319_v13, %v1080_v39  ;;  %v11066_v39 = vld [vmem:[#allocation58_spill] sm:$0xff]  ;;  %v11071_v41 = vld [vmem:[#allocation52_spill] sm:$0xff] }
 0x31d   :  { %v1325_v55 = vadd.f32 %v11065_v15, %v11064_v59  ;;  %v1466_v27 = vmul.f32 0.2, %v1434_v26  ;;  %vm1450_vm3 = vcmp.ge.f32.partialorder %v1434_v26, 0.0 }
 0x31e   :  { %v7515_v0 = vpop.f32.mrf.mxu2  ;;  %v7517_v28 = vpop.f32.mrf.mxu3  ;;  %v1464_v35 = vmul.f32 0.2, %v1432_v60  ;;  %vm1448_vm4 = vcmp.ge.f32.partialorder %v1432_v60, 0.0  ;;  %vm1440_vm12 = vcmp.ge.f32.partialorder %v7584_v16, 0.0 }
 0x31f   :  { %v1295_v8 = vpop.f32.mrf.mxu0  ;;  %v1336_v19 = vpop.f32.mrf.mxu1  ;;  %v1416_v17 = vadd.f32 %v7517_v28, %v7515_v0  ;;  %v1426_v0 = vadd.f32 %v1322_v25, %v1082_v1  ;;  %v1428_v28 = vadd.f32 %v1325_v55, %v1084_v9  ;;  %v7600_v18 = vsel %vm1450_vm3, %v1434_v26, %v1466_v27  ;;  %v5330_v25 = vld [vmem:[%s11074_s1 + $0x20] sm:$0xff]  ;;  %v1489_v27 = vld [vmem:[%s11074_s1 + $0x8] sm:$0xff] }
 0x320   :  { %v1337_v47 = vadd.f32 %v1336_v19, %v1295_v8  ;;  %v11053_v8 = vld [vmem:[#allocation39_spill] sm:$0xff]  ;;  %v1488_v55 = vld [vmem:[%s11074_s1] sm:$0xff] }
 0x321   :  { %v1072_v19 = vadd.f32 %v11054_v4, %v11053_v8  ;;  %v1460_v63 = vmul.f32 0.2, %v1428_v28  ;;  %vm1444_vm8 = vcmp.ge.f32.partialorder %v1428_v28, 0.0  ;;  %vm1442_vm10 = vcmp.ge.f32.partialorder %v1426_v0, 0.0 }
 0x322   :  { %v1436_v46 = vadd.f32 %v1337_v47, %v1092_v10  ;;  %v1093_v47 = vadd.f32 %v1075_v40, %v747_v22  ;;  %v1413_v10 = vadd.f32 %v7464_v52, %v7462_v36  ;;  %v11068_v36 = vld [vmem:[#allocation55_spill] sm:$0xff]  ;;  %v11069_v52 = vld [vmem:[#allocation56_spill] sm:$0xff] }
 0x323   :  { %v1091_v54 = vadd.f32 %v1072_v19, %v744_v42  ;;  %v1430_v42 = vadd.f32 %v1328_v11, %v1086_v14  ;;  %v1407_v19 = vadd.f32 %v11069_v52, %v11068_v36  ;;  %v11072_v40 = vld [vmem:[#allocation47_spill] sm:$0xff]  ;;  %v7631_v11 = vsel %vm1444_vm8, %v1428_v28, %v1460_v63  ;;  %v5364_v28 = vld [vmem:[%s11075_s29 + $0x2b0] sm:$0xff]  ;;  %v5401_v36 = vld [vmem:[%s11075_s29 + $0x3d8] sm:$0xff] }
 0x324   :  { %v1468_v53 = vmul.f32 0.2, %v1436_v46  ;;  %vm1452_vm2 = vcmp.ge.f32.partialorder %v1436_v46, 0.0  ;;  %v1433_v9 = vadd.f32 %v1413_v10, %v1089_v30  ;;  %v1401_v3 = vadd.f32 %v11073_v49, %v11072_v40  ;;  %v5366_v10 = vld [vmem:[%s11075_s29 + $0x2c0] sm:$0xff]  ;;  %v5332_v52 = vld [vmem:[%s11074_s1 + $0x30] sm:$0xff]  ;;  %v5397_v63 = vld [vmem:[%s11075_s29 + $0x3b8] sm:$0xff] }
 0x325   :  { %v1435_v8 = vadd.f32 %v1416_v17, %v1091_v54  ;;  %vm1446_vm5 = vcmp.ge.f32.partialorder %v1430_v42, 0.0  ;;  %v1462_v1 = vmul.f32 0.2, %v1430_v42  ;;  %v1429_v37 = vadd.f32 %v1407_v19, %v7560_v29  ;;  %v1490_v19 = vld [vmem:[%s11074_s1 + $0x10] sm:$0xff]  ;;  %v5357_v40 = vld [vmem:[%s11075_s29 + $0x278] sm:$0xff]  ;;  %v5395_v49 = vld [vmem:[%s11075_s29 + $0x3a8] sm:$0xff] }
 0x326   :  { %v1377_v6 = vpop.f32.mrf.mxu2  ;;  %v1418_v32 = vpop.f32.mrf.mxu3  ;;  %v7592_v22 = vsel %vm1452_vm2, %v1436_v46, %v1468_v53  ;;  %v1465_v13 = vmul.f32 0.2, %v1433_v9  ;;  %vm1449_vm11 = vcmp.ge.f32.partialorder %v1433_v9, 0.0  ;;  %v1456_v29 = vmul.f32 0.2, %v7584_v16 }
 0x327   :  { %v1298_v24 = vpop.f32.mrf.mxu0  ;;  %v1339_v34 = vpop.f32.mrf.mxu1  ;;  %v1419_v62 = vadd.f32 %v1418_v32, %v1377_v6  ;;  %v11067_v32 = vld [vmem:[#allocation59_spill] sm:$0xff]  ;;  %v1467_v30 = vmul.f32 0.2, %v1435_v8  ;;  %v7618_v51 = vsel %vm1446_vm5, %v1430_v42, %v1462_v1  ;;  %vm1451_vm9 = vcmp.ge.f32.partialorder %v1435_v8, 0.0  ;;  %v5368_v42 = vld [vmem:[%s11075_s29 + $0x2d0] sm:$0xff] }
 0x328   :  { %v1340_v43 = vadd.f32 %v1339_v34, %v1298_v24  ;;  %v1410_v14 = vadd.f32 %v11067_v32, %v11066_v39  ;;  %v1425_v54 = vadd.f32 %v1401_v3, %v1081_v33  ;;  %v1461_v12 = vmul.f32 0.2, %v1429_v37  ;;  %v5365_v39 = vld [vmem:[%s11075_s29 + $0x2b8] sm:$0xff]  ;;  %v5403_v32 = vld [vmem:[%s11075_s29 + $0x3e8] sm:$0xff]  ;;  %v5360_v1 = vld [vmem:[%s11075_s29 + $0x290] sm:$0xff] }
 0x329   :  { %v1437_v48 = vadd.f32 %v1419_v62, %v1093_v47  ;;  %v7653_v5 = vsel %vm1440_vm12, %v7584_v16, %v1456_v29  ;;  %vm1445_vm14 = vcmp.ge.f32.partialorder %v1429_v37, 0.0  ;;  %v5372_v62 = vld [vmem:[%s11075_s29 + $0x2f0] sm:$0xff]  ;;  %v5370_v47 = vld [vmem:[%s11075_s29 + $0x2e0] sm:$0xff]  ;;  %v5333_v3 = vld [vmem:[%s11074_s1 + $0x38] sm:$0xff]  ;;  %vm2706_vm5 = vcmask 130048  }
 0x32a   :  { %v1438_v50 = vadd.f32 %v1340_v43, %v1094_v45  ;;  %v11070_v45 = vld [vmem:[#allocation51_spill] sm:$0xff]  ;;  %v7606_v43 = vsel %vm1448_vm4, %v1432_v60, %v1464_v35  ;;  %v1431_v21 = vadd.f32 %v1410_v14, %v7564_v44  ;;  %v1458_v44 = vmul.f32 0.2, %v1426_v0  ;;  %v5373_v60 = vld [vmem:[%s11075_s29 + $0x2f8] sm:$0xff]  ;;  %v5402_v35 = vld [vmem:[%s11075_s29 + $0x3e0] sm:$0xff] }
 0x32b   :  { %v1469_v34 = vmul.f32 0.2, %v1437_v48  ;;  %v1404_v46 = vadd.f32 %v11071_v41, %v11070_v45  ;;  %vm1453_vm7 = vcmp.ge.f32.partialorder %v1437_v48, 0.0  ;;  %v1457_v53 = vmul.f32 0.2, %v1425_v54  ;;  %v5362_v14 = vld [vmem:[%s11075_s29 + $0x2a0] sm:$0xff] }
 0x32c   :  { %vm1454_vm1 = vcmp.ge.f32.partialorder %v1438_v50, 0.0  ;;  %v1470_v7 = vmul.f32 0.2, %v1438_v50  ;;  %v1463_v58 = vmul.f32 0.2, %v1431_v21  ;;  %v7644_v31 = vsel %vm1442_vm10, %v1426_v0, %v1458_v44  ;;  %v5405_v0 = vld [vmem:[%s11075_s29 + $0x3f8] sm:$0xff] }
 0x32d   :  { %v7623_v38 = vsel %vm1453_vm7, %v1437_v48, %v1469_v34  ;;  %v1427_v26 = vadd.f32 %v1404_v46, %v7554_v2  ;;  %vm1447_vm13 = vcmp.ge.f32.partialorder %v1431_v21, 0.0  ;;  %v7647_v2 = vsel %vm1449_vm11, %v1433_v9, %v1465_v13  ;;  %v5404_v48 = vld [vmem:[%s11075_s29 + $0x3f0] sm:$0xff]  ;;  %v5398_v9 = vld [vmem:[%s11075_s29 + $0x3c0] sm:$0xff]  ;;  %v5399_v34 = vld [vmem:[%s11075_s29 + $0x3c8] sm:$0xff] }
 0x32e   :  { %v1380_v20 = vpop.f32.mrf.mxu2  ;;  %v1421_v23 = vpop.f32.mrf.mxu3  ;;  %v7586_v57 = vsel %vm1454_vm1, %v1438_v50, %v1470_v7  ;;  %v7637_v50 = vsel %vm1451_vm9, %v1435_v8, %v1467_v30  ;;  %v7659_v59 = vsel %vm1447_vm13, %v1431_v21, %v1463_v58  ;;  %v7674_v7 = vsel %vm1445_vm14, %v1429_v37, %v1461_v12  ;;  %v5400_v8 = vld [vmem:[%s11075_s29 + $0x3d0] sm:$0xff]  ;;  %v5358_v45 = vld [vmem:[%s11075_s29 + $0x280] sm:$0xff]  ;;  %v5359_v46 = vld [vmem:[%s11075_s29 + $0x288] sm:$0xff] }
 0x32f   :  { %v1422_v6 = vadd.f32 %v1421_v23, %v1380_v20  ;;  %1512 = vmatpush.msra.mxu0 %v7586_v57  ;;  %1651 = vmatpush.msra.mxu2 %v7586_v57  ;;  %v1459_v15 = vmul.f32 0.2, %v1427_v26  ;;  %vm1443_vm15 = vcmp.ge.f32.partialorder %v1427_v26, 0.0  ;;  %vm1441_vm1 = vcmp.ge.f32.partialorder %v1425_v54, 0.0  ;;  %v5369_v20 = vld [vmem:[%s11075_s29 + $0x2d8] sm:$0xff]  ;;  %v5331_v23 = vld [vmem:[%s11074_s1 + $0x28] sm:$0xff] }
 0x330   :  { %v7689_v16 = vsel %vm1441_vm1, %v1425_v54, %v1457_v53  ;;  %v5396_v41 = vld [vmem:[%s11075_s29 + $0x3b0] sm:$0xff]  ;;  %v5394_v30 = vld [vmem:[%s11075_s29 + $0x3a0] sm:$0xff]  ;;  %v1491_v44 = vld [vmem:[%s11074_s1 + $0x18] sm:$0xff]  ;;  %vm2839_vm14 = vcmask 261120  }
 0x331   :  { %v1439_v4 = vadd.f32 %v1422_v6, %v1095_v61  ;;  %1513 = vmatpush.msra.mxu0 %v7592_v22  ;;  %1652 = vmatpush.msra.mxu2 %v7592_v22  ;;  %v5371_v61 = vld [vmem:[%s11075_s29 + $0x2e8] sm:$0xff]  ;;  %v7685_v17 = vsel %vm1443_vm15, %v1427_v26, %v1459_v15  ;;  %v5356_v21 = vld [vmem:[%s11075_s29 + $0x270] sm:$0xff]  ;;  %v5354_v37 = vld [vmem:[%s11075_s29 + $0x260] sm:$0xff] }
 0x332   :  { %v5367_v6 = vld [vmem:[%s11075_s29 + $0x2c8] sm:$0xff]  ;;  %v5392_v13 = vld [vmem:[%s11075_s29 + $0x390] sm:$0xff]  ;;  %v5393_v29 = vld [vmem:[%s11075_s29 + $0x398] sm:$0xff] }
 0x333   :  { %1514 = vmatpush.msra.mxu0 %v7600_v18  ;;  %1653 = vmatpush.msra.mxu2 %v7600_v18  ;;  %vm1455_vm6 = vcmp.ge.f32.partialorder %v1439_v4, 0.0  ;;  %v1471_v24 = vmul.f32 0.2, %v1439_v4  ;;  %v5355_v33 = vld [vmem:[%s11075_s29 + $0x268] sm:$0xff]  ;;  %v5352_v26 = vld [vmem:[%s11075_s29 + $0x250] sm:$0xff]  ;;  %v5390_v58 = vld [vmem:[%s11075_s29 + $0x380] sm:$0xff] }
 0x334   :  { %v5353_v54 = vld [vmem:[%s11075_s29 + $0x258] sm:$0xff]  ;;  %v5391_v12 = vld [vmem:[%s11075_s29 + $0x388] sm:$0xff]  ;;  %v5388_v15 = vld [vmem:[%s11075_s29 + $0x370] sm:$0xff] }
 0x335   :  { %1515 = vmatpush.msra.mxu0 %v7606_v43  ;;  %v7610_v56 = vsel %vm1455_vm6, %v1439_v4, %v1471_v24  ;;  %1654 = vmatpush.msra.mxu2 %v7606_v43  ;;  %v5363_v4 = vld [vmem:[%s11075_s29 + $0x2a8] sm:$0xff]  ;;  %v5361_v24 = vld [vmem:[%s11075_s29 + $0x298] sm:$0xff]  ;;  %v5386_v53 = vld [vmem:[%s11075_s29 + $0x360] sm:$0xff] }
 0x336   :  { %1541 = vmatpush.msra.mxu1 %v7610_v56  ;;  %1680 = vmatpush.msra.mxu3 %v7610_v56 }
 0x337   :  { %1516 = vmatpush.msra.mxu0 %v7618_v51  ;;  %1655 = vmatpush.msra.mxu2 %v7618_v51 }
 0x338   :  { %1542 = vmatpush.msra.mxu1 %v7623_v38  ;;  %1681 = vmatpush.msra.mxu3 %v7623_v38 }
 0x339   :  { %1517 = vmatpush.msra.mxu0 %v7631_v11  ;;  %1656 = vmatpush.msra.mxu2 %v7631_v11 }
 0x33a   :  { %1543 = vmatpush.msra.mxu1 %v7637_v50  ;;  %1682 = vmatpush.msra.mxu3 %v7637_v50 }
 0x33b   :  { %1518 = vmatpush.msra.mxu0 %v7644_v31  ;;  %1657 = vmatpush.msra.mxu2 %v7644_v31 }
 0x33c   :  { %1544 = vmatpush.msra.mxu1 %v7647_v2  ;;  %1683 = vmatpush.msra.mxu3 %v7647_v2 }
 0x33d   :  { %1519 = vmatpush.msra.mxu0 %v7653_v5  ;;  %1658 = vmatpush.msra.mxu2 %v7653_v5 }
 0x33e   :  { %1545 = vmatpush.msra.mxu1 %v7659_v59  ;;  %1684 = vmatpush.msra.mxu3 %v7659_v59 }
 0x33f   :  { %5334 = vmatmul.msk.f32.vlgmr.msra.gmra.mxu2 %vm375_vm0, %v5330_v25  ;;  %5322 = vmatmul.msk.f32.vlgmr.msra.gmra.mxu0 %vm375_vm0, %v1488_v55 }
 0x340   :  { %1546 = vmatpush.msra.mxu1 %v7674_v7  ;;  %1685 = vmatpush.msra.mxu3 %v7674_v7 }
 0x341   :  { %1766 = vmatpush.msrb.mxu0 %v5372_v62  ;;  %1824 = vmatpush.msrb.mxu2 %v5373_v60  ;;  %v5389_v62 = vld [vmem:[%s11075_s29 + $0x378] sm:$0xff]  ;;  %v5348_v60 = vld [vmem:[%s11075_s29 + $0x230] sm:$0xff] }
 0x342   :  { %1547 = vmatpush.msra.mxu1 %v7685_v17  ;;  %1686 = vmatpush.msra.mxu3 %v7685_v17 }
 0x343   :  { %1767 = vmatpush.msrb.mxu0 %v5370_v47  ;;  %1825 = vmatpush.msrb.mxu2 %v5371_v61  ;;  %v5349_v47 = vld [vmem:[%s11075_s29 + $0x238] sm:$0xff]  ;;  %v5387_v61 = vld [vmem:[%s11075_s29 + $0x368] sm:$0xff] }
 0x344   :  { %1548 = vmatpush.msra.mxu1 %v7689_v16  ;;  %1687 = vmatpush.msra.mxu3 %v7689_v16 }
 0x345   :  { %5338 = vmatmul.msk.f32.vlgmr.msra.gmra.mxu3 %vm375_vm0, %v5330_v25  ;;  %5326 = vmatmul.msk.f32.vlgmr.msra.gmra.mxu1 %vm375_vm0, %v1488_v55  ;;  %v5350_v25 = vld [vmem:[%s11075_s29 + $0x240] sm:$0xff]  ;;  %v5351_v55 = vld [vmem:[%s11075_s29 + $0x248] sm:$0xff] }
 0x346   :  { %1768 = vmatpush.msrb.mxu0 %v5368_v42  ;;  %1826 = vmatpush.msrb.mxu2 %v5369_v20  ;;  %v5346_v42 = vld [vmem:[%s11075_s29 + $0x220] sm:$0xff]  ;;  %v5384_v20 = vld [vmem:[%s11075_s29 + $0x350] sm:$0xff] }
 0x347   :  { %5335 = vmatmul.msk.f32.gmra.mxu2 %vm375_vm0, %v5331_v23  ;;  %5323 = vmatmul.msk.f32.gmra.mxu0 %vm375_vm0, %v1489_v27 }
 0x348   :  { %1769 = vmatpush.msrb.mxu0 %v5366_v10  ;;  %1795 = vmatpush.msrb.mxu1 %v5404_v48  ;;  %v5344_v10 = vld [vmem:[%s11075_s29 + $0x210] sm:$0xff]  ;;  %v5382_v48 = vld [vmem:[%s11075_s29 + $0x340] sm:$0xff] }
 0x349   :  { %1827 = vmatpush.msrb.mxu2 %v5367_v6  ;;  %1853 = vmatpush.msrb.mxu3 %v5405_v0  ;;  %v5345_v6 = vld [vmem:[%s11075_s29 + $0x218] sm:$0xff]  ;;  %v5383_v0 = vld [vmem:[%s11075_s29 + $0x348] sm:$0xff] }
 0x34a   :  { %1770 = vmatpush.msrb.mxu0 %v5364_v28  ;;  %1796 = vmatpush.msrb.mxu1 %v5402_v35  ;;  %v5342_v28 = vld [vmem:[%s11075_s29 + $0x200] sm:$0xff]  ;;  %v5380_v35 = vld [vmem:[%s11075_s29 + $0x330] sm:$0xff] }
 0x34b   :  { %1828 = vmatpush.msrb.mxu2 %v5365_v39  ;;  %1854 = vmatpush.msrb.mxu3 %v5403_v32  ;;  %v5343_v39 = vld [vmem:[%s11075_s29 + $0x208] sm:$0xff]  ;;  %v5381_v32 = vld [vmem:[%s11075_s29 + $0x338] sm:$0xff] }
 0x34c   :  { %1771 = vmatpush.msrb.mxu0 %v5362_v14  ;;  %1797 = vmatpush.msrb.mxu1 %v5400_v8  ;;  %v1592_v14 = vld [vmem:[%s11075_s29 + $0xf0] sm:$0xff]  ;;  %v5378_v8 = vld [vmem:[%s11075_s29 + $0x320] sm:$0xff] }
 0x34d   :  { %5339 = vmatmul.msk.f32.gmra.mxu3 %vm375_vm0, %v5331_v23  ;;  %5327 = vmatmul.msk.f32.gmra.mxu1 %vm375_vm0, %v1489_v27  ;;  %v5347_v23 = vld [vmem:[%s11075_s29 + $0x228] sm:$0xff]  ;;  %v5385_v27 = vld [vmem:[%s11075_s29 + $0x358] sm:$0xff] }
 0x34e   :  { %1829 = vmatpush.msrb.mxu2 %v5363_v4  ;;  %1855 = vmatpush.msrb.mxu3 %v5401_v36  ;;  %v1593_v4 = vld [vmem:[%s11075_s29 + $0xf8] sm:$0xff]  ;;  %v5379_v36 = vld [vmem:[%s11075_s29 + $0x328] sm:$0xff] }
 0x34f   :  { %5336 = vmatmul.msk.f32.gmra.mxu2 %vm375_vm0, %v5332_v52  ;;  %5324 = vmatmul.msk.f32.gmra.mxu0 %vm375_vm0, %v1490_v19 }
 0x350   :  { %1772 = vmatpush.msrb.mxu0 %v5360_v1  ;;  %1798 = vmatpush.msrb.mxu1 %v5398_v9  ;;  %v1591_v1 = vld [vmem:[%s11075_s29 + $0xe8] sm:$0xff]  ;;  %v5377_v9 = vld [vmem:[%s11075_s29 + $0x318] sm:$0xff] }
 0x351   :  { %1830 = vmatpush.msrb.mxu2 %v5361_v24  ;;  %1856 = vmatpush.msrb.mxu3 %v5399_v34  ;;  %v1588_v24 = vld [vmem:[%s11075_s29 + $0xd0] sm:$0xff]  ;;  %v5374_v34 = vld [vmem:[%s11075_s29 + $0x300] sm:$0xff] }
 0x352   :  { %1773 = vmatpush.msrb.mxu0 %v5358_v45  ;;  %1799 = vmatpush.msrb.mxu1 %v5396_v41  ;;  %v1589_v45 = vld [vmem:[%s11075_s29 + $0xd8] sm:$0xff]  ;;  %v5375_v41 = vld [vmem:[%s11075_s29 + $0x308] sm:$0xff] }
 0x353   :  { %1831 = vmatpush.msrb.mxu2 %v5359_v46  ;;  %1857 = vmatpush.msrb.mxu3 %v5397_v63  ;;  %v1586_v46 = vld [vmem:[%s11075_s29 + $0xc0] sm:$0xff]  ;;  %v1624_v63 = vld [vmem:[%s11075_s29 + $0x1f0] sm:$0xff] }
 0x354   :  { %1774 = vmatpush.msrb.mxu0 %v5356_v21  ;;  %1800 = vmatpush.msrb.mxu1 %v5394_v30  ;;  %v1587_v21 = vld [vmem:[%s11075_s29 + $0xc8] sm:$0xff]  ;;  %v1625_v30 = vld [vmem:[%s11075_s29 + $0x1f8] sm:$0xff] }
 0x355   :  { %5340 = vmatmul.msk.f32.gmra.mxu3 %vm375_vm0, %v5332_v52  ;;  %5328 = vmatmul.msk.f32.gmra.mxu1 %vm375_vm0, %v1490_v19  ;;  %v1590_v52 = vld [vmem:[%s11075_s29 + $0xe0] sm:$0xff]  ;;  %v5376_v19 = vld [vmem:[%s11075_s29 + $0x310] sm:$0xff] }
 0x356   :  { %1832 = vmatpush.msrb.mxu2 %v5357_v40  ;;  %1858 = vmatpush.msrb.mxu3 %v5395_v49  ;;  %v1584_v40 = vld [vmem:[%s11075_s29 + $0xb0] sm:$0xff]  ;;  %v1622_v49 = vld [vmem:[%s11075_s29 + $0x1e0] sm:$0xff] }
 0x357   :  { %5337 = vmatmul.msk.f32.gmra.mxu2 %vm375_vm0, %v5333_v3  ;;  %5325 = vmatmul.msk.f32.gmra.mxu0 %vm375_vm0, %v1491_v44 }
 0x358   :  { %1775 = vmatpush.msrb.mxu0 %v5354_v37  ;;  %1801 = vmatpush.msrb.mxu1 %v5392_v13  ;;  %v1582_v37 = vld [vmem:[%s11075_s29 + $0xa0] sm:$0xff]  ;;  %v1620_v13 = vld [vmem:[%s11075_s29 + $0x1d0] sm:$0xff] }
 0x359   :  { %1833 = vmatpush.msrb.mxu2 %v5355_v33  ;;  %1859 = vmatpush.msrb.mxu3 %v5393_v29  ;;  %v1583_v33 = vld [vmem:[%s11075_s29 + $0xa8] sm:$0xff]  ;;  %v1621_v29 = vld [vmem:[%s11075_s29 + $0x1d8] sm:$0xff] }
 0x35a   :  { %1776 = vmatpush.msrb.mxu0 %v5352_v26  ;;  %1802 = vmatpush.msrb.mxu1 %v5390_v58  ;;  %v1580_v26 = vld [vmem:[%s11075_s29 + $0x90] sm:$0xff]  ;;  %v1618_v58 = vld [vmem:[%s11075_s29 + $0x1c0] sm:$0xff] }
 0x35b   :  { %1834 = vmatpush.msrb.mxu2 %v5353_v54  ;;  %1860 = vmatpush.msrb.mxu3 %v5391_v12  ;;  %v1581_v54 = vld [vmem:[%s11075_s29 + $0x98] sm:$0xff]  ;;  %v1619_v12 = vld [vmem:[%s11075_s29 + $0x1c8] sm:$0xff] }
 0x35c   :  { %1777 = vmatpush.msrb.mxu0 %v5350_v25  ;;  %1803 = vmatpush.msrb.mxu1 %v5388_v15  ;;  %v1578_v25 = vld [vmem:[%s11075_s29 + $0x80] sm:$0xff]  ;;  %v1616_v15 = vld [vmem:[%s11075_s29 + $0x1b0] sm:$0xff] }
 0x35d   :  { %5341 = vmatmul.msk.f32.gmra.mxu3 %vm375_vm0, %v5333_v3  ;;  %5329 = vmatmul.msk.f32.gmra.mxu1 %vm375_vm0, %v1491_v44  ;;  %v1585_v3 = vld [vmem:[%s11075_s29 + $0xb8] sm:$0xff]  ;;  %v1623_v44 = vld [vmem:[%s11075_s29 + $0x1e8] sm:$0xff] }
 0x35e   :  { %1835 = vmatpush.msrb.mxu2 %v5351_v55  ;;  %1861 = vmatpush.msrb.mxu3 %v5389_v62  ;;  %v1579_v55 = vld [vmem:[%s11075_s29 + $0x88] sm:$0xff]  ;;  %v1617_v62 = vld [vmem:[%s11075_s29 + $0x1b8] sm:$0xff] }
 0x35f   :  { %1778 = vmatpush.msrb.mxu0 %v5348_v60  ;;  %1804 = vmatpush.msrb.mxu1 %v5386_v53  ;;  %v1576_v60 = vld [vmem:[%s11075_s29 + $0x70] sm:$0xff]  ;;  %v1614_v53 = vld [vmem:[%s11075_s29 + $0x1a0] sm:$0xff] }
 0x360   :  { %1836 = vmatpush.msrb.mxu2 %v5349_v47  ;;  %1862 = vmatpush.msrb.mxu3 %v5387_v61  ;;  %v1577_v47 = vld [vmem:[%s11075_s29 + $0x78] sm:$0xff]  ;;  %v1615_v61 = vld [vmem:[%s11075_s29 + $0x1a8] sm:$0xff] }
 0x361   :  { %1779 = vmatpush.msrb.mxu0 %v5346_v42  ;;  %1805 = vmatpush.msrb.mxu1 %v5384_v20  ;;  %v1574_v42 = vld [vmem:[%s11075_s29 + $0x60] sm:$0xff]  ;;  %v1612_v20 = vld [vmem:[%s11075_s29 + $0x190] sm:$0xff] }
 0x362   :  { %1837 = vmatpush.msrb.mxu2 %v5347_v23  ;;  %1863 = vmatpush.msrb.mxu3 %v5385_v27  ;;  %v1575_v23 = vld [vmem:[%s11075_s29 + $0x68] sm:$0xff]  ;;  %v1613_v27 = vld [vmem:[%s11075_s29 + $0x198] sm:$0xff] }
 0x363   :  { %1780 = vmatpush.msrb.mxu0 %v5344_v10  ;;  %1806 = vmatpush.msrb.mxu1 %v5382_v48  ;;  %v1572_v10 = vld [vmem:[%s11075_s29 + $0x50] sm:$0xff]  ;;  %v1610_v48 = vld [vmem:[%s11075_s29 + $0x180] sm:$0xff] }
 0x364   :  { %1838 = vmatpush.msrb.mxu2 %v5345_v6  ;;  %1864 = vmatpush.msrb.mxu3 %v5383_v0  ;;  %v1573_v6 = vld [vmem:[%s11075_s29 + $0x58] sm:$0xff]  ;;  %v1611_v0 = vld [vmem:[%s11075_s29 + $0x188] sm:$0xff] }
 0x365   :  { %1781 = vmatpush.msrb.mxu0 %v5342_v28  ;;  %1807 = vmatpush.msrb.mxu1 %v5380_v35  ;;  %v1570_v28 = vld [vmem:[%s11075_s29 + $0x40] sm:$0xff]  ;;  %v1608_v35 = vld [vmem:[%s11075_s29 + $0x170] sm:$0xff] }
 0x366   :  { %1839 = vmatpush.msrb.mxu2 %v5343_v39  ;;  %1865 = vmatpush.msrb.mxu3 %v5381_v32  ;;  %v1571_v39 = vld [vmem:[%s11075_s29 + $0x48] sm:$0xff]  ;;  %v1609_v32 = vld [vmem:[%s11075_s29 + $0x178] sm:$0xff] }
 0x367   :  { %1882 = vmatpush.msra.mxu0 %v1592_v14  ;;  %1808 = vmatpush.msrb.mxu1 %v5378_v8  ;;  %v1568_v14 = vld [vmem:[%s11075_s29 + $0x30] sm:$0xff]  ;;  %v1606_v8 = vld [vmem:[%s11075_s29 + $0x160] sm:$0xff] }
 0x368   :  { %1940 = vmatpush.msra.mxu2 %v1593_v4  ;;  %1866 = vmatpush.msrb.mxu3 %v5379_v36  ;;  %v1569_v4 = vld [vmem:[%s11075_s29 + $0x38] sm:$0xff]  ;;  %v1607_v36 = vld [vmem:[%s11075_s29 + $0x168] sm:$0xff] }
 0x369   :  { %1883 = vmatpush.msra.mxu0 %v1590_v52  ;;  %1809 = vmatpush.msrb.mxu1 %v5376_v19  ;;  %v1566_v52 = vld [vmem:[%s11075_s29 + $0x20] sm:$0xff]  ;;  %v1604_v19 = vld [vmem:[%s11075_s29 + $0x150] sm:$0xff] }
 0x36a   :  { %1941 = vmatpush.msra.mxu2 %v1591_v1  ;;  %1867 = vmatpush.msrb.mxu3 %v5377_v9  ;;  %v1567_v1 = vld [vmem:[%s11075_s29 + $0x28] sm:$0xff]  ;;  %v1605_v9 = vld [vmem:[%s11075_s29 + $0x158] sm:$0xff] }
 0x36b   :  { %1884 = vmatpush.msra.mxu0 %v1588_v24  ;;  %1810 = vmatpush.msrb.mxu1 %v5374_v34  ;;  %v1564_v24 = vld [vmem:[%s11075_s29 + $0x10] sm:$0xff]  ;;  %v1602_v34 = vld [vmem:[%s11075_s29 + $0x140] sm:$0xff] }
 0x36c   :  { %1942 = vmatpush.msra.mxu2 %v1589_v45  ;;  %1868 = vmatpush.msrb.mxu3 %v5375_v41  ;;  %v1565_v45 = vld [vmem:[%s11075_s29 + $0x18] sm:$0xff]  ;;  %v1603_v41 = vld [vmem:[%s11075_s29 + $0x148] sm:$0xff] }
 0x36d   :  { %1885 = vmatpush.msra.mxu0 %v1586_v46  ;;  %1911 = vmatpush.msra.mxu1 %v1624_v63  ;;  %v1562_v46 = vld [vmem:[%s11075_s29] sm:$0xff]  ;;  %v1600_v63 = vld [vmem:[%s11075_s29 + $0x130] sm:$0xff] }
 0x36e   :  { %1943 = vmatpush.msra.mxu2 %v1587_v21  ;;  %1969 = vmatpush.msra.mxu3 %v1625_v30  ;;  %v1563_v21 = vld [vmem:[%s11075_s29 + $0x8] sm:$0xff]  ;;  %v1601_v30 = vld [vmem:[%s11075_s29 + $0x138] sm:$0xff] }
 0x36f   :  { %1886 = vmatpush.msra.mxu0 %v1584_v40  ;;  %1912 = vmatpush.msra.mxu1 %v1622_v49  ;;  %v1598_v40 = vld [vmem:[%s11075_s29 + $0x120] sm:$0xff]  ;;  %v1599_v49 = vld [vmem:[%s11075_s29 + $0x128] sm:$0xff] }
 0x370   :  { %1944 = vmatpush.msra.mxu2 %v1585_v3  ;;  %1970 = vmatpush.msra.mxu3 %v1623_v44  ;;  %v1596_v3 = vld [vmem:[%s11075_s29 + $0x110] sm:$0xff]  ;;  %v1597_v44 = vld [vmem:[%s11075_s29 + $0x118] sm:$0xff] }
 0x371   :  { %1887 = vmatpush.msra.mxu0 %v1582_v37  ;;  %1913 = vmatpush.msra.mxu1 %v1620_v13  ;;  %v1594_v37 = vld [vmem:[%s11075_s29 + $0x100] sm:$0xff]  ;;  %v1595_v13 = vld [vmem:[%s11075_s29 + $0x108] sm:$0xff] }
 0x372   :  { %1945 = vmatpush.msra.mxu2 %v1583_v33  ;;  %1971 = vmatpush.msra.mxu3 %v1621_v29  ;;  %v5448_v33 = vld [vmem:[%s11075_s29 + $0x4f0] sm:$0xff] }
 0x373   :  { %1888 = vmatpush.msra.mxu0 %v1580_v26  ;;  %1914 = vmatpush.msra.mxu1 %v1618_v58  ;;  %v5446_v26 = vld [vmem:[%s11075_s29 + $0x4e0] sm:$0xff]  ;;  %v5444_v58 = vld [vmem:[%s11075_s29 + $0x4d0] sm:$0xff] }
 0x374   :  { %1946 = vmatpush.msra.mxu2 %v1581_v54  ;;  %1972 = vmatpush.msra.mxu3 %v1619_v12  ;;  %v5442_v12 = vld [vmem:[%s11075_s29 + $0x4c0] sm:$0xff] }
 0x375   :  { %1889 = vmatpush.msra.mxu0 %v1578_v25  ;;  %1915 = vmatpush.msra.mxu1 %v1616_v15  ;;  %v5480_v25 = vld [vmem:[%s11075_s29 + $0x5f0] sm:$0xff] }
 0x376   :  { %1947 = vmatpush.msra.mxu2 %v1579_v55  ;;  %1973 = vmatpush.msra.mxu3 %v1617_v62  ;;  %v5440_v55 = vld [vmem:[%s11075_s29 + $0x4b0] sm:$0xff]  ;;  %v5478_v62 = vld [vmem:[%s11075_s29 + $0x5e0] sm:$0xff] }
 0x377   :  { %1890 = vmatpush.msra.mxu0 %v1576_v60  ;;  %1916 = vmatpush.msra.mxu1 %v1614_v53  ;;  %v5438_v60 = vld [vmem:[%s11075_s29 + $0x4a0] sm:$0xff]  ;;  %v5476_v53 = vld [vmem:[%s11075_s29 + $0x5d0] sm:$0xff] }
 0x378   :  { %1948 = vmatpush.msra.mxu2 %v1577_v47  ;;  %1974 = vmatpush.msra.mxu3 %v1615_v61  ;;  %v5436_v47 = vld [vmem:[%s11075_s29 + $0x490] sm:$0xff]  ;;  %v5474_v61 = vld [vmem:[%s11075_s29 + $0x5c0] sm:$0xff] }
 0x379   :  { %1891 = vmatpush.msra.mxu0 %v1574_v42  ;;  %1917 = vmatpush.msra.mxu1 %v1612_v20 }
 0x37a   :  { %1949 = vmatpush.msra.mxu2 %v1575_v23  ;;  %1975 = vmatpush.msra.mxu3 %v1613_v27  ;;  %v5434_v23 = vld [vmem:[%s11075_s29 + $0x480] sm:$0xff]  ;;  %v5472_v27 = vld [vmem:[%s11075_s29 + $0x5b0] sm:$0xff] }
 0x37b   :  { %1892 = vmatpush.msra.mxu0 %v1572_v10  ;;  %1918 = vmatpush.msra.mxu1 %v1610_v48  ;;  %v5432_v10 = vld [vmem:[%s11075_s29 + $0x470] sm:$0xff]  ;;  %v5470_v48 = vld [vmem:[%s11075_s29 + $0x5a0] sm:$0xff] }
 0x37c   :  { %1950 = vmatpush.msra.mxu2 %v1573_v6  ;;  %1976 = vmatpush.msra.mxu3 %v1611_v0  ;;  %v5430_v6 = vld [vmem:[%s11075_s29 + $0x460] sm:$0xff]  ;;  %v5468_v0 = vld [vmem:[%s11075_s29 + $0x590] sm:$0xff] }
 0x37d   :  { %1893 = vmatpush.msra.mxu0 %v1570_v28  ;;  %1919 = vmatpush.msra.mxu1 %v1608_v35  ;;  %v5428_v35 = vld [vmem:[%s11075_s29 + $0x450] sm:$0xff] }
 0x37e   :  { %1951 = vmatpush.msra.mxu2 %v1571_v39  ;;  %1977 = vmatpush.msra.mxu3 %v1609_v32  ;;  %v5466_v39 = vld [vmem:[%s11075_s29 + $0x580] sm:$0xff] }
 0x37f   :  { %1894 = vmatpush.msra.mxu0 %v1568_v14  ;;  %1920 = vmatpush.msra.mxu1 %v1606_v8  ;;  %v5426_v32 = vld [vmem:[%s11075_s29 + $0x440] sm:$0xff]  ;;  %v5464_v14 = vld [vmem:[%s11075_s29 + $0x570] sm:$0xff] }
 0x380   :  { %1952 = vmatpush.msra.mxu2 %v1569_v4  ;;  %1978 = vmatpush.msra.mxu3 %v1607_v36  ;;  %v5424_v4 = vld [vmem:[%s11075_s29 + $0x430] sm:$0xff]  ;;  %v5462_v36 = vld [vmem:[%s11075_s29 + $0x560] sm:$0xff] }
 0x381   :  { %1895 = vmatpush.msra.mxu0 %v1566_v52  ;;  %1921 = vmatpush.msra.mxu1 %v1604_v19  ;;  %v5422_v19 = vld [vmem:[%s11075_s29 + $0x420] sm:$0xff] }
 0x382   :  { %1953 = vmatpush.msra.mxu2 %v1567_v1  ;;  %1979 = vmatpush.msra.mxu3 %v1605_v9  ;;  %v5460_v1 = vld [vmem:[%s11075_s29 + $0x550] sm:$0xff] }
 0x383   :  { %1896 = vmatpush.msra.mxu0 %v1564_v24  ;;  %1922 = vmatpush.msra.mxu1 %v1602_v34  ;;  %v5420_v9 = vld [vmem:[%s11075_s29 + $0x410] sm:$0xff]  ;;  %v5458_v24 = vld [vmem:[%s11075_s29 + $0x540] sm:$0xff] }
 0x384   :  { %1954 = vmatpush.msra.mxu2 %v1565_v45  ;;  %1980 = vmatpush.msra.mxu3 %v1603_v41  ;;  %v5418_v45 = vld [vmem:[%s11075_s29 + $0x400] sm:$0xff]  ;;  %v5456_v41 = vld [vmem:[%s11075_s29 + $0x530] sm:$0xff] }
 0x385   :  { %1897 = vmatpush.msra.mxu0 %v1562_v46  ;;  %1923 = vmatpush.msra.mxu1 %v1600_v63  ;;  %v5454_v63 = vld [vmem:[%s11075_s29 + $0x520] sm:$0xff] }
 0x386   :  { %1955 = vmatpush.msra.mxu2 %v1563_v21  ;;  %1981 = vmatpush.msra.mxu3 %v1601_v30  ;;  %v5452_v21 = vld [vmem:[%s11075_s29 + $0x510] sm:$0xff] }
 0x387   :  { %1924 = vmatpush.msra.mxu1 %v1598_v40  ;;  %v5450_v40 = vld [vmem:[%s11075_s29 + $0x500] sm:$0xff] }
 0x388   :  { %1982 = vmatpush.msra.mxu3 %v1599_v49  ;;  %v5477_v49 = vld [vmem:[%s11075_s29 + $0x5d8] sm:$0xff] }
 0x389   :  { %1925 = vmatpush.msra.mxu1 %v1596_v3 }
 0x38a   :  { %1983 = vmatpush.msra.mxu3 %v1597_v44 }
 0x38b   :  { %1926 = vmatpush.msra.mxu1 %v1594_v37  ;;  %v5443_v37 = vld [vmem:[%s11075_s29 + $0x4c8] sm:$0xff] }
 0x38c   :  { %1984 = vmatpush.msra.mxu3 %v1595_v13  ;;  %v5475_v13 = vld [vmem:[%s11075_s29 + $0x5c8] sm:$0xff] }
 0x3bc   :  { %v1521_v52 = vpop.f32.mrf.mxu0 }
 0x3c2   :  { %v1660_v29 = vpop.f32.mrf.mxu2  ;;  %v1550_v46 = vpop.f32.mrf.mxu1 }
 0x3c3   :  { %1782 = vmatmul.f32.vlgmr.msrb.gmra.mxu0 %v1660_v29  ;;  %1840 = vmatmul.f32.vlgmr.msrb.gmra.mxu2 %v1660_v29  ;;  %v5473_v29 = vld [vmem:[%s11075_s29 + $0x5b8] sm:$0xff] }
 0x3c4   :  { %2023 = vmatpush.msrb.mxu0 %v7586_v57  ;;  %2138 = vmatpush.msrb.mxu2 %v5448_v33  ;;  %v1524_v30 = vpop.f32.mrf.mxu0  ;;  %v5441_v33 = vld [vmem:[%s11075_s29 + $0x4b8] sm:$0xff] }
 0x3c6   :  { %2024 = vmatpush.msrb.mxu0 %v7592_v22  ;;  %2139 = vmatpush.msrb.mxu2 %v5446_v26  ;;  %v5439_v26 = vld [vmem:[%s11075_s29 + $0x4a8] sm:$0xff] }
 0x3c8   :  { %2025 = vmatpush.msrb.mxu0 %v7600_v18  ;;  %v1689_v54 = vpop.f32.mrf.mxu3  ;;  %2140 = vmatpush.msrb.mxu2 %v5444_v58  ;;  %v5471_v58 = vld [vmem:[%s11075_s29 + $0x5a8] sm:$0xff] }
 0x3c9   :  { %1811 = vmatmul.f32.vlgmr.msrb.gmra.mxu1 %v1689_v54  ;;  %1869 = vmatmul.f32.vlgmr.msrb.gmra.mxu3 %v1689_v54  ;;  %v5437_v54 = vld [vmem:[%s11075_s29 + $0x498] sm:$0xff] }
 0x3ca   :  { %2026 = vmatpush.msrb.mxu0 %v7606_v43  ;;  %2052 = vmatpush.msrb.mxu1 %v7610_v56  ;;  %v1663_v15 = vpop.f32.mrf.mxu2 }
 0x3cb   :  { %2141 = vmatpush.msrb.mxu2 %v5442_v12  ;;  %2167 = vmatpush.msrb.mxu3 %v5480_v25  ;;  %v5469_v12 = vld [vmem:[%s11075_s29 + $0x598] sm:$0xff] }
 0x3cc   :  { %1843 = vmatmul.f32.gmra.mxu2 %v1663_v15  ;;  %2027 = vmatpush.msrb.mxu0 %v7618_v51 }
 0x3cd   :  { %2053 = vmatpush.msrb.mxu1 %v7623_v38  ;;  %2142 = vmatpush.msrb.mxu2 %v5440_v55  ;;  %v5435_v55 = vld [vmem:[%s11075_s29 + $0x488] sm:$0xff] }
 0x3ce   :  { %2168 = vmatpush.msrb.mxu3 %v5478_v62  ;;  %2028 = vmatpush.msrb.mxu0 %v7631_v11  ;;  %v5467_v62 = vld [vmem:[%s11075_s29 + $0x588] sm:$0xff] }
 0x3cf   :  { %2054 = vmatpush.msrb.mxu1 %v7637_v50  ;;  %2143 = vmatpush.msrb.mxu2 %v5438_v60  ;;  %v5433_v60 = vld [vmem:[%s11075_s29 + $0x478] sm:$0xff] }
 0x3d0   :  { %2169 = vmatpush.msrb.mxu3 %v5476_v53  ;;  %2029 = vmatpush.msrb.mxu0 %v7644_v31  ;;  %v1692_v42 = vpop.f32.mrf.mxu3  ;;  %v5465_v53 = vld [vmem:[%s11075_s29 + $0x578] sm:$0xff] }
 0x3d1   :  { %2055 = vmatpush.msrb.mxu1 %v7647_v2  ;;  %2144 = vmatpush.msrb.mxu2 %v5436_v47  ;;  %v5431_v47 = vld [vmem:[%s11075_s29 + $0x468] sm:$0xff] }
 0x3d2   :  { %2170 = vmatpush.msrb.mxu3 %v5474_v61  ;;  %1785 = vmatmul.f32.gmra.mxu0 %v1663_v15  ;;  %v1666_v20 = vpop.f32.mrf.mxu2  ;;  %v5463_v61 = vld [vmem:[%s11075_s29 + $0x568] sm:$0xff] }
 0x3d3   :  { %1814 = vmatmul.f32.gmra.mxu1 %v1692_v42  ;;  %1872 = vmatmul.f32.gmra.mxu3 %v1692_v42  ;;  %v5429_v42 = vld [vmem:[%s11075_s29 + $0x458] sm:$0xff] }
 0x3d4   :  { %2030 = vmatpush.msrb.mxu0 %v7653_v5  ;;  %2056 = vmatpush.msrb.mxu1 %v7659_v59 }
 0x3d5   :  { %2145 = vmatpush.msrb.mxu2 %v5434_v23  ;;  %2171 = vmatpush.msrb.mxu3 %v5472_v27 }
 0x3d6   :  { %1846 = vmatmul.f32.gmra.mxu2 %v1666_v20  ;;  %2057 = vmatpush.msrb.mxu1 %v7674_v7 }
 0x3d7   :  { %2146 = vmatpush.msrb.mxu2 %v5432_v10  ;;  %2172 = vmatpush.msrb.mxu3 %v5470_v48  ;;  %v5427_v10 = vld [vmem:[%s11075_s29 + $0x448] sm:$0xff] }
 0x3d8   :  { %2058 = vmatpush.msrb.mxu1 %v7685_v17  ;;  %v1695_v28 = vpop.f32.mrf.mxu3  ;;  %v5459_v48 = vld [vmem:[%s11075_s29 + $0x548] sm:$0xff] }
 0x3d9   :  { %2147 = vmatpush.msrb.mxu2 %v5430_v6  ;;  %2173 = vmatpush.msrb.mxu3 %v5468_v0  ;;  %v5425_v6 = vld [vmem:[%s11075_s29 + $0x438] sm:$0xff] }
 0x3da   :  { %2059 = vmatpush.msrb.mxu1 %v7689_v16  ;;  %1788 = vmatmul.f32.gmra.mxu0 %v1666_v20  ;;  %v1669_v8 = vpop.f32.mrf.mxu2  ;;  %v5461_v20 = vld [vmem:[%s11075_s29 + $0x558] sm:$0xff] }
 0x3db   :  { %2148 = vmatpush.msrb.mxu2 %v5428_v35  ;;  %2174 = vmatpush.msrb.mxu3 %v5466_v39  ;;  %v5457_v0 = vld [vmem:[%s11075_s29 + $0x538] sm:$0xff]  ;;  %v5455_v35 = vld [vmem:[%s11075_s29 + $0x528] sm:$0xff] }
 0x3dc   :  { %1817 = vmatmul.f32.gmra.mxu1 %v1695_v28  ;;  %1875 = vmatmul.f32.gmra.mxu3 %v1695_v28  ;;  %v5423_v28 = vld [vmem:[%s11075_s29 + $0x428] sm:$0xff]  ;;  %v5421_v39 = vld [vmem:[%s11075_s29 + $0x418] sm:$0xff] }
 0x3dd   :  { %2149 = vmatpush.msrb.mxu2 %v5426_v32  ;;  %2175 = vmatpush.msrb.mxu3 %v5464_v14  ;;  %v5453_v32 = vld [vmem:[%s11075_s29 + $0x518] sm:$0xff] }
 0x3de   :  { %1849 = vmatmul.f32.gmra.mxu2 %v1669_v8 }
 0x3df   :  { %2150 = vmatpush.msrb.mxu2 %v5424_v4  ;;  %2176 = vmatpush.msrb.mxu3 %v5462_v36  ;;  %v5419_v4 = vld [vmem:[%s11075_s29 + $0x408] sm:$0xff] }
 0x3e0   :  { %v1698_v34 = vpop.f32.mrf.mxu3  ;;  %v5451_v36 = vld [vmem:[%s11075_s29 + $0x508] sm:$0xff] }
 0x3e1   :  { %2151 = vmatpush.msrb.mxu2 %v5422_v19  ;;  %2177 = vmatpush.msrb.mxu3 %v5460_v1 }
 0x3e2   :  { %1791 = vmatmul.f32.gmra.mxu0 %v1669_v8 }
 0x3e3   :  { %2152 = vmatpush.msrb.mxu2 %v5420_v9  ;;  %2178 = vmatpush.msrb.mxu3 %v5458_v24 }
 0x3e4   :  { %1820 = vmatmul.f32.gmra.mxu1 %v1698_v34  ;;  %1878 = vmatmul.f32.gmra.mxu3 %v1698_v34 }
 0x3e5   :  { %2153 = vmatpush.msrb.mxu2 %v5418_v45  ;;  %2179 = vmatpush.msrb.mxu3 %v5456_v41 }
 0x3e6   :  { %1956 = vmatmul.f32.vlgmr.msra.gmra.mxu2 %v1521_v52 }
 0x3e7   :  { %2287 = vmatpush.msra.mxu2 %v7586_v57  ;;  %2180 = vmatpush.msrb.mxu3 %v5454_v63  ;;  %v1553_v57 = vpop.f32.mrf.mxu1 }
 0x3e9   :  { %2288 = vmatpush.msra.mxu2 %v7592_v22  ;;  %2181 = vmatpush.msrb.mxu3 %v5452_v21  ;;  %v1527_v22 = vpop.f32.mrf.mxu0 }
 0x3ea   :  { %1898 = vmatmul.f32.vlgmr.msra.gmra.mxu0 %v1521_v52 }
 0x3eb   :  { %2289 = vmatpush.msra.mxu2 %v7600_v18  ;;  %2182 = vmatpush.msrb.mxu3 %v5450_v40 }
 0x3ec   :  { %1927 = vmatmul.f32.vlgmr.msra.gmra.mxu1 %v1550_v46  ;;  %1985 = vmatmul.f32.vlgmr.msra.gmra.mxu3 %v1550_v46 }
 0x3ed   :  { %2290 = vmatpush.msra.mxu2 %v7606_v43  ;;  %2316 = vmatpush.msra.mxu3 %v7610_v56 }
 0x3ee   :  { %1959 = vmatmul.f32.gmra.mxu2 %v1524_v30 }
 0x3ef   :  { %2291 = vmatpush.msra.mxu2 %v7618_v51  ;;  %2317 = vmatpush.msra.mxu3 %v7623_v38  ;;  %v1556_v18 = vpop.f32.mrf.mxu1  ;;  %v5406_v51 = vld [vmem:[%s11074_s1 + $0x40] sm:$0xff]  ;;  %v5407_v38 = vld [vmem:[%s11074_s1 + $0x48] sm:$0xff] }
 0x3f1   :  { %2292 = vmatpush.msra.mxu2 %v7631_v11  ;;  %2318 = vmatpush.msra.mxu3 %v7637_v50  ;;  %v1530_v43 = vpop.f32.mrf.mxu0  ;;  %v5408_v11 = vld [vmem:[%s11074_s1 + $0x50] sm:$0xff]  ;;  %v5409_v50 = vld [vmem:[%s11074_s1 + $0x58] sm:$0xff] }
 0x3f2   :  { %1901 = vmatmul.f32.gmra.mxu0 %v1524_v30 }
 0x3f3   :  { %2293 = vmatpush.msra.mxu2 %v7644_v31  ;;  %2319 = vmatpush.msra.mxu3 %v7647_v2 }
 0x3f4   :  { %1930 = vmatmul.f32.gmra.mxu1 %v1553_v57  ;;  %1988 = vmatmul.f32.gmra.mxu3 %v1553_v57 }
 0x3f5   :  { %2294 = vmatpush.msra.mxu2 %v7653_v5  ;;  %2320 = vmatpush.msra.mxu3 %v7659_v59  ;;  %v5449_v5 = vld [vmem:[%s11075_s29 + $0x4f8] sm:$0xff] }
 0x3f6   :  { %1962 = vmatmul.f32.gmra.mxu2 %v1527_v22  ;;  %v5481_v59 = vld [vmem:[%s11075_s29 + $0x5f8] sm:$0xff]  ;;  %2196 = vmatpush.msra.mxu0 %v5449_v5 }
 0x3f7   :  { %2321 = vmatpush.msra.mxu3 %v7674_v7  ;;  %v1559_v56 = vpop.f32.mrf.mxu1  ;;  %v5447_v7 = vld [vmem:[%s11075_s29 + $0x4e8] sm:$0xff]  ;;  %2225 = vmatpush.msra.mxu1 %v5481_v59 }
 0x3f8   :  { %2197 = vmatpush.msra.mxu0 %v5447_v7 }
 0x3f9   :  { %2322 = vmatpush.msra.mxu3 %v7685_v17  ;;  %v5479_v17 = vld [vmem:[%s11075_s29 + $0x5e8] sm:$0xff] }
 0x3fa   :  { %1904 = vmatmul.f32.gmra.mxu0 %v1527_v22  ;;  %2226 = vmatpush.msra.mxu1 %v5479_v17  ;;  %v5482_v22 = vld [vmem:[%s11074_s1 + $0x60] sm:$0xff] }
 0x3fb   :  { %2323 = vmatpush.msra.mxu3 %v7689_v16  ;;  %v5445_v16 = vld [vmem:[%s11075_s29 + $0x4d8] sm:$0xff] }
 0x3fc   :  { %1933 = vmatmul.f32.gmra.mxu1 %v1556_v18  ;;  %1991 = vmatmul.f32.gmra.mxu3 %v1556_v18  ;;  %v5483_v18 = vld [vmem:[%s11074_s1 + $0x68] sm:$0xff] }
 0x3fd   :  { %2198 = vmatpush.msra.mxu0 %v5445_v16  ;;  %2227 = vmatpush.msra.mxu1 %v5477_v49 }
 0x3fe   :  { %1965 = vmatmul.f32.gmra.mxu2 %v1530_v43 }
 0x3ff   :  { %2199 = vmatpush.msra.mxu0 %v5443_v37  ;;  %2228 = vmatpush.msra.mxu1 %v5475_v13 }
 0x401   :  { %2200 = vmatpush.msra.mxu0 %v5441_v33  ;;  %2229 = vmatpush.msra.mxu1 %v5473_v29  ;;  %v5524_v33 = vld [vmem:[%s11075_s29 + $0x6f0] sm:$0xff] }
 0x402   :  { %1907 = vmatmul.f32.gmra.mxu0 %v1530_v43  ;;  %v5484_v43 = vld [vmem:[%s11074_s1 + $0x70] sm:$0xff] }
 0x403   :  { %2201 = vmatpush.msra.mxu0 %v5439_v26  ;;  %2230 = vmatpush.msra.mxu1 %v5471_v58  ;;  %v5556_v29 = vld [vmem:[%s11075_s29 + $0x7f0] sm:$0xff]  ;;  %v5525_v26 = vld [vmem:[%s11075_s29 + $0x6f8] sm:$0xff] }
 0x404   :  { %1936 = vmatmul.f32.gmra.mxu1 %v1559_v56  ;;  %1994 = vmatmul.f32.gmra.mxu3 %v1559_v56  ;;  %v5557_v58 = vld [vmem:[%s11075_s29 + $0x7f8] sm:$0xff] }
 0x405   :  { %2202 = vmatpush.msra.mxu0 %v5437_v54  ;;  %2231 = vmatpush.msra.mxu1 %v5469_v12  ;;  %v5522_v54 = vld [vmem:[%s11075_s29 + $0x6e0] sm:$0xff] }
 0x406   :  { %v5554_v12 = vld [vmem:[%s11075_s29 + $0x7e0] sm:$0xff] }
 0x407   :  { %2203 = vmatpush.msra.mxu0 %v5435_v55  ;;  %2232 = vmatpush.msra.mxu1 %v5467_v62  ;;  %v5523_v55 = vld [vmem:[%s11075_s29 + $0x6e8] sm:$0xff] }
 0x408   :  { %v5555_v62 = vld [vmem:[%s11075_s29 + $0x7e8] sm:$0xff] }
 0x409   :  { %2204 = vmatpush.msra.mxu0 %v5433_v60  ;;  %2233 = vmatpush.msra.mxu1 %v5465_v53  ;;  %v5520_v60 = vld [vmem:[%s11075_s29 + $0x6d0] sm:$0xff] }
 0x40a   :  { %5410 = vmatmul.msk.f32.vlgmr.msrb.gmra.mxu0 %vm375_vm0, %v5406_v51  ;;  %v5552_v53 = vld [vmem:[%s11075_s29 + $0x7d0] sm:$0xff] }
 0x40b   :  { %2205 = vmatpush.msra.mxu0 %v5431_v47  ;;  %2234 = vmatpush.msra.mxu1 %v5463_v61  ;;  %v5521_v47 = vld [vmem:[%s11075_s29 + $0x6d8] sm:$0xff] }
 0x40c   :  { %5414 = vmatmul.msk.f32.vlgmr.msrb.gmra.mxu1 %vm375_vm0, %v5406_v51  ;;  %v5485_v51 = vld [vmem:[%s11074_s1 + $0x78] sm:$0xff] }
 0x40d   :  { %2206 = vmatpush.msra.mxu0 %v5429_v42  ;;  %2235 = vmatpush.msra.mxu1 %v5461_v20  ;;  %v5553_v61 = vld [vmem:[%s11075_s29 + $0x7d8] sm:$0xff]  ;;  %v5518_v42 = vld [vmem:[%s11075_s29 + $0x6c0] sm:$0xff] }
 0x40e   :  { %v5550_v20 = vld [vmem:[%s11075_s29 + $0x7c0] sm:$0xff] }
 0x40f   :  { %2207 = vmatpush.msra.mxu0 %v5427_v10  ;;  %2236 = vmatpush.msra.mxu1 %v5459_v48  ;;  %v5519_v10 = vld [vmem:[%s11075_s29 + $0x6c8] sm:$0xff] }
 0x411   :  { %2208 = vmatpush.msra.mxu0 %v5425_v6  ;;  %2237 = vmatpush.msra.mxu1 %v5457_v0  ;;  %v5551_v6 = vld [vmem:[%s11075_s29 + $0x7c8] sm:$0xff]  ;;  %v5516_v0 = vld [vmem:[%s11075_s29 + $0x6b0] sm:$0xff] }
 0x412   :  { %5411 = vmatmul.msk.f32.gmra.mxu0 %vm375_vm0, %v5407_v38 }
 0x413   :  { %2209 = vmatpush.msra.mxu0 %v5423_v28  ;;  %2238 = vmatpush.msra.mxu1 %v5455_v35  ;;  %v5548_v28 = vld [vmem:[%s11075_s29 + $0x7b0] sm:$0xff]  ;;  %v5517_v35 = vld [vmem:[%s11075_s29 + $0x6b8] sm:$0xff] }
 0x414   :  { %5415 = vmatmul.msk.f32.gmra.mxu1 %vm375_vm0, %v5407_v38 }
 0x415   :  { %2210 = vmatpush.msra.mxu0 %v5421_v39  ;;  %2239 = vmatpush.msra.mxu1 %v5453_v32  ;;  %v5549_v32 = vld [vmem:[%s11075_s29 + $0x7b8] sm:$0xff] }
 0x417   :  { %2211 = vmatpush.msra.mxu0 %v5419_v4  ;;  %2240 = vmatpush.msra.mxu1 %v5451_v36  ;;  %v5514_v4 = vld [vmem:[%s11075_s29 + $0x6a0] sm:$0xff] }
 0x418   :  { %v5546_v36 = vld [vmem:[%s11075_s29 + $0x7a0] sm:$0xff] }
 0x419   :  { %2402 = vmatpush.msrb.mxu0 %v5524_v33  ;;  %2431 = vmatpush.msrb.mxu1 %v5556_v29  ;;  %v5509_v33 = vld [vmem:[%s11075_s29 + $0x678] sm:$0xff] }
 0x41a   :  { %5412 = vmatmul.msk.f32.gmra.mxu0 %vm375_vm0, %v5408_v11 }
 0x41b   :  { %2403 = vmatpush.msrb.mxu0 %v5522_v54  ;;  %2432 = vmatpush.msrb.mxu1 %v5554_v12  ;;  %v5538_v54 = vld [vmem:[%s11075_s29 + $0x760] sm:$0xff]  ;;  %v5507_v12 = vld [vmem:[%s11075_s29 + $0x668] sm:$0xff] }
 0x41c   :  { %5416 = vmatmul.msk.f32.gmra.mxu1 %vm375_vm0, %v5408_v11 }
 0x41d   :  { %2404 = vmatpush.msrb.mxu0 %v5520_v60  ;;  %2433 = vmatpush.msrb.mxu1 %v5552_v53  ;;  %v5536_v53 = vld [vmem:[%s11075_s29 + $0x750] sm:$0xff] }
 0x41f   :  { %2405 = vmatpush.msrb.mxu0 %v5518_v42  ;;  %2434 = vmatpush.msrb.mxu1 %v5550_v20  ;;  %v5502_v42 = vld [vmem:[%s11075_s29 + $0x640] sm:$0xff] }
 0x420   :  { %v5534_v20 = vld [vmem:[%s11075_s29 + $0x740] sm:$0xff] }
 0x421   :  { %2406 = vmatpush.msrb.mxu0 %v5516_v0  ;;  %2435 = vmatpush.msrb.mxu1 %v5548_v28  ;;  %v5500_v0 = vld [vmem:[%s11075_s29 + $0x630] sm:$0xff] }
 0x422   :  { %5413 = vmatmul.msk.f32.gmra.mxu0 %vm375_vm0, %v5409_v50  ;;  %v5532_v28 = vld [vmem:[%s11075_s29 + $0x730] sm:$0xff] }
 0x423   :  { %2407 = vmatpush.msrb.mxu0 %v5514_v4  ;;  %2436 = vmatpush.msrb.mxu1 %v5546_v36  ;;  %v5498_v4 = vld [vmem:[%s11075_s29 + $0x620] sm:$0xff] }
 0x424   :  { %5417 = vmatmul.msk.f32.gmra.mxu1 %vm375_vm0, %v5409_v50 }
 0x440   :  { %v8245_v31 = vpop.f32.mrf.mxu0 }
 0x446   :  { %v8247_v2 = vpop.f32.mrf.mxu1  ;;  %v8388_v56 = vpop.f32.mrf.mxu2 }
 0x44c   :  { %v8393_v38 = vpop.f32.mrf.mxu3 }
 0x44f   :  { %v8267_v3 = vpop.f32.mrf.mxu0  ;;  %v8397_v11 = vpop.f32.mrf.mxu2 }
 0x450   :  { %v8269_v44 = vpop.f32.mrf.mxu1 }
 0x456   :  { %v8399_v50 = vpop.f32.mrf.mxu3 }
 0x457   :  { %v8295_v25 = vpop.f32.mrf.mxu0 }
 0x459   :  { %v8297_v15 = vpop.f32.mrf.mxu1  ;;  %v8401_v5 = vpop.f32.mrf.mxu2 }
 0x45f   :  { %v8323_v23 = vpop.f32.mrf.mxu0  ;;  %v8403_v59 = vpop.f32.mrf.mxu3 }
 0x461   :  { %v8325_v27 = vpop.f32.mrf.mxu1  ;;  %v8405_v7 = vpop.f32.mrf.mxu2 }
 0x467   :  { %v8351_v14 = vpop.f32.mrf.mxu0  ;;  %v8407_v17 = vpop.f32.mrf.mxu3 }
 0x469   :  { %v8353_v8 = vpop.f32.mrf.mxu1  ;;  %v8409_v16 = vpop.f32.mrf.mxu2 }
 0x46f   :  { %v8361_v52 = vpop.f32.mrf.mxu0  ;;  %v8411_v49 = vpop.f32.mrf.mxu3 }
 0x471   :  { %v8363_v19 = vpop.f32.mrf.mxu1  ;;  %v8413_v37 = vpop.f32.mrf.mxu2 }
 0x477   :  { %v8365_v1 = vpop.f32.mrf.mxu0  ;;  %v8415_v13 = vpop.f32.mrf.mxu3 }
 0x479   :  { %v8367_v9 = vpop.f32.mrf.mxu1  ;;  %v8462_v48 = vpop.f32.mrf.mxu2 }
 0x47f   :  { %v8369_v24 = vpop.f32.mrf.mxu0  ;;  %v8476_v39 = vpop.f32.mrf.mxu3 }
 0x481   :  { %v8371_v34 = vpop.f32.mrf.mxu1  ;;  %v8526_v29 = vpop.f32.mrf.mxu2 }
 0x487   :  { %v2032_v45 = vpop.f32.mrf.mxu0  ;;  %v8546_v60 = vpop.f32.mrf.mxu3 }
 0x488   :  { %2154 = vmatmul.f32.vlgmr.msrb.gmra.mxu2 %v2032_v45  ;;  %2212 = vmatmul.f32.vlgmr.msra.gmra.mxu0 %v2032_v45  ;;  %v5515_v45 = vld [vmem:[%s11075_s29 + $0x6a8] sm:$0xff] }
 0x489   :  { %v2061_v41 = vpop.f32.mrf.mxu1  ;;  %2460 = vmatpush.msrb.mxu2 %v5525_v26  ;;  %v5541_v26 = vld [vmem:[%s11075_s29 + $0x778] sm:$0xff] }
 0x48a   :  { %2183 = vmatmul.f32.vlgmr.msrb.gmra.mxu3 %v2061_v41  ;;  %2241 = vmatmul.f32.vlgmr.msra.gmra.mxu1 %v2061_v41  ;;  %v5547_v41 = vld [vmem:[%s11075_s29 + $0x7a8] sm:$0xff] }
 0x48b   :  { %2489 = vmatpush.msrb.mxu3 %v5557_v58  ;;  %2461 = vmatpush.msrb.mxu2 %v5523_v55  ;;  %v5506_v58 = vld [vmem:[%s11075_s29 + $0x660] sm:$0xff]  ;;  %v5539_v55 = vld [vmem:[%s11075_s29 + $0x768] sm:$0xff] }
 0x48d   :  { %2490 = vmatpush.msrb.mxu3 %v5555_v62  ;;  %2462 = vmatpush.msrb.mxu2 %v5521_v47  ;;  %v5504_v62 = vld [vmem:[%s11075_s29 + $0x650] sm:$0xff]  ;;  %v5505_v47 = vld [vmem:[%s11075_s29 + $0x658] sm:$0xff] }
 0x48f   :  { %v2035_v46 = vpop.f32.mrf.mxu0  ;;  %2491 = vmatpush.msrb.mxu3 %v5553_v61  ;;  %2463 = vmatpush.msrb.mxu2 %v5519_v10  ;;  %v5537_v61 = vld [vmem:[%s11075_s29 + $0x758] sm:$0xff]  ;;  %v5503_v10 = vld [vmem:[%s11075_s29 + $0x648] sm:$0xff] }
 0x490   :  { %2157 = vmatmul.f32.gmra.mxu2 %v2035_v46  ;;  %2215 = vmatmul.f32.gmra.mxu0 %v2035_v46  ;;  %v5512_v46 = vld [vmem:[%s11075_s29 + $0x690] sm:$0xff] }
 0x491   :  { %v2064_v63 = vpop.f32.mrf.mxu1  ;;  %2492 = vmatpush.msrb.mxu3 %v5551_v6  ;;  %2464 = vmatpush.msrb.mxu2 %v5517_v35  ;;  %v5535_v6 = vld [vmem:[%s11075_s29 + $0x748] sm:$0xff]  ;;  %v5501_v35 = vld [vmem:[%s11075_s29 + $0x638] sm:$0xff] }
 0x492   :  { %2186 = vmatmul.f32.gmra.mxu3 %v2064_v63  ;;  %2244 = vmatmul.f32.gmra.mxu1 %v2064_v63  ;;  %v5544_v63 = vld [vmem:[%s11075_s29 + $0x790] sm:$0xff] }
 0x493   :  { %2493 = vmatpush.msrb.mxu3 %v5549_v32  ;;  %2465 = vmatpush.msrb.mxu2 %v5515_v45  ;;  %v5533_v32 = vld [vmem:[%s11075_s29 + $0x738] sm:$0xff]  ;;  %v5530_v45 = vld [vmem:[%s11075_s29 + $0x720] sm:$0xff] }
 0x494   :  { %2408 = vmatpush.msrb.mxu0 %v5512_v46  ;;  %2437 = vmatpush.msrb.mxu1 %v5544_v63  ;;  %v5531_v46 = vld [vmem:[%s11075_s29 + $0x728] sm:$0xff]  ;;  %v5496_v63 = vld [vmem:[%s11075_s29 + $0x610] sm:$0xff] }
 0x495   :  { %2494 = vmatpush.msrb.mxu3 %v5547_v41  ;;  %v5499_v41 = vld [vmem:[%s11075_s29 + $0x628] sm:$0xff] }
 0x497   :  { %v2038_v21 = vpop.f32.mrf.mxu0 }
 0x498   :  { %2160 = vmatmul.f32.gmra.mxu2 %v2038_v21  ;;  %2218 = vmatmul.f32.gmra.mxu0 %v2038_v21  ;;  %v5513_v21 = vld [vmem:[%s11075_s29 + $0x698] sm:$0xff] }
 0x499   :  { %v2067_v30 = vpop.f32.mrf.mxu1  ;;  %2466 = vmatpush.msrb.mxu2 %v5513_v21  ;;  %v5528_v21 = vld [vmem:[%s11075_s29 + $0x710] sm:$0xff] }
 0x49a   :  { %2189 = vmatmul.f32.gmra.mxu3 %v2067_v30  ;;  %2247 = vmatmul.f32.gmra.mxu1 %v2067_v30  ;;  %v5545_v30 = vld [vmem:[%s11075_s29 + $0x798] sm:$0xff] }
 0x49b   :  { %2495 = vmatpush.msrb.mxu3 %v5545_v30 }
 0x49f   :  { %v2041_v40 = vpop.f32.mrf.mxu0 }
 0x4a0   :  { %2163 = vmatmul.f32.gmra.mxu2 %v2041_v40  ;;  %2221 = vmatmul.f32.gmra.mxu0 %v2041_v40  ;;  %v5510_v40 = vld [vmem:[%s11075_s29 + $0x680] sm:$0xff] }
 0x4a1   :  { %v2070_v57 = vpop.f32.mrf.mxu1  ;;  %2409 = vmatpush.msrb.mxu0 %v5510_v40  ;;  %v5497_v40 = vld [vmem:[%s11075_s29 + $0x618] sm:$0xff] }
 0x4a2   :  { %2192 = vmatmul.f32.gmra.mxu3 %v2070_v57  ;;  %2250 = vmatmul.f32.gmra.mxu1 %v2070_v57  ;;  %v5542_v57 = vld [vmem:[%s11075_s29 + $0x780] sm:$0xff] }
 0x4a3   :  { %2438 = vmatpush.msrb.mxu1 %v5542_v57  ;;  %v5529_v57 = vld [vmem:[%s11075_s29 + $0x718] sm:$0xff] }
 0x4a8   :  { %5486 = vmatmul.msk.f32.vlgmr.msra.gmra.mxu2 %vm375_vm0, %v5482_v22 }
 0x4aa   :  { %5490 = vmatmul.msk.f32.vlgmr.msra.gmra.mxu3 %vm375_vm0, %v5482_v22  ;;  %v5511_v22 = vld [vmem:[%s11075_s29 + $0x688] sm:$0xff] }
 0x4ab   :  { %2467 = vmatpush.msrb.mxu2 %v5511_v22  ;;  %v5494_v22 = vld [vmem:[%s11075_s29 + $0x600] sm:$0xff] }
 0x4ad   :  { %2468 = vmatpush.msrb.mxu2 %v5509_v33 }
 0x4af   :  { %2469 = vmatpush.msrb.mxu2 %v5507_v12 }
 0x4b0   :  { %5487 = vmatmul.msk.f32.gmra.mxu2 %vm375_vm0, %v5483_v18 }
 0x4b1   :  { %2470 = vmatpush.msrb.mxu2 %v5505_v47 }
 0x4b2   :  { %5491 = vmatmul.msk.f32.gmra.mxu3 %vm375_vm0, %v5483_v18  ;;  %v5543_v18 = vld [vmem:[%s11075_s29 + $0x788] sm:$0xff] }
 0x4b3   :  { %2496 = vmatpush.msrb.mxu3 %v5543_v18  ;;  %2471 = vmatpush.msrb.mxu2 %v5503_v10  ;;  %v5526_v18 = vld [vmem:[%s11075_s29 + $0x700] sm:$0xff] }
 0x4b5   :  { %2497 = vmatpush.msrb.mxu3 %v5541_v26  ;;  %2472 = vmatpush.msrb.mxu2 %v5501_v35 }
 0x4b7   :  { %2498 = vmatpush.msrb.mxu3 %v5539_v55  ;;  %2473 = vmatpush.msrb.mxu2 %v5499_v41  ;;  %v2585_v41 = vld [vmem:[%s10929_s5 + $0x78] sm:$0xff] }
 0x4b8   :  { %5488 = vmatmul.msk.f32.gmra.mxu2 %vm375_vm0, %v5484_v43 }
 0x4b9   :  { %2499 = vmatpush.msrb.mxu3 %v5537_v61  ;;  %2474 = vmatpush.msrb.mxu2 %v5497_v40  ;;  %v2601_v40 = vld [vmem:[%s10929_s5 + $0xf8] sm:$0xff] }
 0x4ba   :  { %5492 = vmatmul.msk.f32.gmra.mxu3 %vm375_vm0, %v5484_v43  ;;  %v5508_v43 = vld [vmem:[%s11075_s29 + $0x670] sm:$0xff] }
 0x4bb   :  { %2410 = vmatpush.msrb.mxu0 %v5508_v43  ;;  %2500 = vmatpush.msrb.mxu3 %v5535_v6  ;;  %v5495_v43 = vld [vmem:[%s11075_s29 + $0x608] sm:$0xff] }
 0x4bc   :  { %2475 = vmatpush.msrb.mxu2 %v5495_v43 }
 0x4bd   :  { %2411 = vmatpush.msrb.mxu0 %v5506_v58  ;;  %2501 = vmatpush.msrb.mxu3 %v5533_v32 }
 0x4be   :  { %2643 = vmatpush.msra.mxu2 %v2585_v41 }
 0x4bf   :  { %2412 = vmatpush.msrb.mxu0 %v5504_v62  ;;  %2502 = vmatpush.msrb.mxu3 %v5531_v46  ;;  %v2584_v46 = vld [vmem:[%s10929_s5 + $0x70] sm:$0xff] }
 0x4c0   :  { %5489 = vmatmul.msk.f32.gmra.mxu2 %vm375_vm0, %v5485_v51 }
 0x4c1   :  { %2413 = vmatpush.msrb.mxu0 %v5502_v42  ;;  %2503 = vmatpush.msrb.mxu3 %v5529_v57 }
 0x4c2   :  { %5493 = vmatmul.msk.f32.gmra.mxu3 %vm375_vm0, %v5485_v51  ;;  %v5540_v51 = vld [vmem:[%s11075_s29 + $0x770] sm:$0xff]  ;;  %2644 = vmatpush.msra.mxu2 %v2584_v46 }
 0x4c3   :  { %2439 = vmatpush.msrb.mxu1 %v5540_v51  ;;  %2414 = vmatpush.msrb.mxu0 %v5500_v0  ;;  %v5527_v51 = vld [vmem:[%s11075_s29 + $0x708] sm:$0xff] }
 0x4c4   :  { %2504 = vmatpush.msrb.mxu3 %v5527_v51  ;;  %v2580_v51 = vld [vmem:[%s10929_s5 + $0x50] sm:$0xff] }
 0x4c5   :  { %2440 = vmatpush.msrb.mxu1 %v5538_v54  ;;  %2415 = vmatpush.msrb.mxu0 %v5498_v4 }
 0x4c6   :  { %2663 = vmatpush.msra.mxu3 %v2601_v40 }
 0x4c7   :  { %2441 = vmatpush.msrb.mxu1 %v5536_v53  ;;  %2416 = vmatpush.msrb.mxu0 %v5496_v63  ;;  %v2583_v63 = vld [vmem:[%s10929_s5 + $0x68] sm:$0xff] }
 0x4c8   :  { %2645 = vmatpush.msra.mxu2 %v2583_v63 }
 0x4c9   :  { %2442 = vmatpush.msrb.mxu1 %v5534_v20  ;;  %2417 = vmatpush.msrb.mxu0 %v5494_v22  ;;  %v2581_v22 = vld [vmem:[%s10929_s5 + $0x58] sm:$0xff] }
 0x4cb   :  { %2443 = vmatpush.msrb.mxu1 %v5532_v28  ;;  %2602 = vmatpush.msra.mxu0 %v2585_v41 }
 0x4cd   :  { %2444 = vmatpush.msrb.mxu1 %v5530_v45  ;;  %2603 = vmatpush.msra.mxu0 %v2584_v46  ;;  %v2576_v46 = vld [vmem:[%s10929_s5 + $0x30] sm:$0xff] }
 0x4cf   :  { %2445 = vmatpush.msrb.mxu1 %v5528_v21  ;;  %2604 = vmatpush.msra.mxu0 %v2583_v63  ;;  %v2582_v21 = vld [vmem:[%s10929_s5 + $0x60] sm:$0xff]  ;;  %v2595_v63 = vld [vmem:[%s10929_s5 + $0xc8] sm:$0xff] }
 0x4d0   :  { %2646 = vmatpush.msra.mxu2 %v2582_v21 }
 0x4d1   :  { %2446 = vmatpush.msrb.mxu1 %v5526_v18  ;;  %2605 = vmatpush.msra.mxu0 %v2582_v21  ;;  %v2600_v18 = vld [vmem:[%s10929_s5 + $0xf0] sm:$0xff]  ;;  %v2575_v21 = vld [vmem:[%s10929_s5 + $0x28] sm:$0xff] }
 0x4d2   :  { %2647 = vmatpush.msra.mxu2 %v2581_v22  ;;  %2664 = vmatpush.msra.mxu3 %v2600_v18 }
 0x4d3   :  { %2622 = vmatpush.msra.mxu1 %v2601_v40  ;;  %2606 = vmatpush.msra.mxu0 %v2581_v22  ;;  %v2594_v40 = vld [vmem:[%s10929_s5 + $0xc0] sm:$0xff] }
 0x4d4   :  { %2648 = vmatpush.msra.mxu2 %v2580_v51 }
 0x4d5   :  { %2623 = vmatpush.msra.mxu1 %v2600_v18  ;;  %2607 = vmatpush.msra.mxu0 %v2580_v51  ;;  %v2574_v18 = vld [vmem:[%s10929_s5 + $0x20] sm:$0xff]  ;;  %v2593_v51 = vld [vmem:[%s10929_s5 + $0xb8] sm:$0xff] }
 0x505   :  { %v8633_v0 = vpop.f32.mrf.mxu0 }
 0x507   :  { %v8635_v28 = vpop.f32.mrf.mxu1 }
 0x50b   :  { %v8584_v36 = vpop.f32.mrf.mxu2 }
 0x50d   :  { %v8601_v30 = vpop.f32.mrf.mxu3  ;;  %v8637_v35 = vpop.f32.mrf.mxu0 }
 0x50f   :  { %v8639_v32 = vpop.f32.mrf.mxu1 }
 0x513   :  { %v8621_v33 = vpop.f32.mrf.mxu2 }
 0x515   :  { %v8623_v26 = vpop.f32.mrf.mxu3  ;;  %v8641_v4 = vpop.f32.mrf.mxu0 }
 0x517   :  { %v8643_v45 = vpop.f32.mrf.mxu1 }
 0x51b   :  { %v8625_v58 = vpop.f32.mrf.mxu2 }
 0x51d   :  { %v8627_v54 = vpop.f32.mrf.mxu3  ;;  %v8660_v57 = vpop.f32.mrf.mxu0 }
 0x51f   :  { %v8668_v43 = vpop.f32.mrf.mxu1 }
 0x523   :  { %v8629_v12 = vpop.f32.mrf.mxu2 }
 0x525   :  { %v8631_v55 = vpop.f32.mrf.mxu3 }
 0x52b   :  { %v2296_v62 = vpop.f32.mrf.mxu2 }
 0x52c   :  { %2418 = vmatmul.f32.vlgmr.msrb.gmra.mxu0 %v2296_v62  ;;  %2476 = vmatmul.f32.vlgmr.msrb.gmra.mxu2 %v2296_v62  ;;  %v2599_v62 = vld [vmem:[%s10929_s5 + $0xe8] sm:$0xff] }
 0x52d   :  { %v2325_v53 = vpop.f32.mrf.mxu3  ;;  %2624 = vmatpush.msra.mxu1 %v2599_v62  ;;  %2665 = vmatpush.msra.mxu3 %v2599_v62 }
 0x52e   :  { %2447 = vmatmul.f32.vlgmr.msrb.gmra.mxu1 %v2325_v53  ;;  %2505 = vmatmul.f32.vlgmr.msrb.gmra.mxu3 %v2325_v53  ;;  %v2579_v53 = vld [vmem:[%s10929_s5 + $0x48] sm:$0xff] }
 0x52f   :  { %2608 = vmatpush.msra.mxu0 %v2579_v53  ;;  %2649 = vmatpush.msra.mxu2 %v2579_v53 }
 0x533   :  { %v2299_v47 = vpop.f32.mrf.mxu2 }
 0x534   :  { %2421 = vmatmul.f32.gmra.mxu0 %v2299_v47  ;;  %2479 = vmatmul.f32.gmra.mxu2 %v2299_v47  ;;  %v2598_v47 = vld [vmem:[%s10929_s5 + $0xe0] sm:$0xff] }
 0x535   :  { %v2328_v61 = vpop.f32.mrf.mxu3  ;;  %2625 = vmatpush.msra.mxu1 %v2598_v47  ;;  %2666 = vmatpush.msra.mxu3 %v2598_v47  ;;  %v2573_v47 = vld [vmem:[%s10929_s5 + $0x18] sm:$0xff] }
 0x536   :  { %2450 = vmatmul.f32.gmra.mxu1 %v2328_v61  ;;  %2508 = vmatmul.f32.gmra.mxu3 %v2328_v61  ;;  %v2578_v61 = vld [vmem:[%s10929_s5 + $0x40] sm:$0xff] }
 0x537   :  { %2609 = vmatpush.msra.mxu0 %v2578_v61  ;;  %2650 = vmatpush.msra.mxu2 %v2578_v61  ;;  %v2592_v61 = vld [vmem:[%s10929_s5 + $0xb0] sm:$0xff] }
 0x53b   :  { %v2302_v42 = vpop.f32.mrf.mxu2 }
 0x53c   :  { %2424 = vmatmul.f32.gmra.mxu0 %v2302_v42  ;;  %2482 = vmatmul.f32.gmra.mxu2 %v2302_v42  ;;  %v2597_v42 = vld [vmem:[%s10929_s5 + $0xd8] sm:$0xff] }
 0x53d   :  { %v2331_v20 = vpop.f32.mrf.mxu3  ;;  %2626 = vmatpush.msra.mxu1 %v2597_v42  ;;  %2667 = vmatpush.msra.mxu3 %v2597_v42 }
 0x53e   :  { %2453 = vmatmul.f32.gmra.mxu1 %v2331_v20  ;;  %2511 = vmatmul.f32.gmra.mxu3 %v2331_v20 }
 0x543   :  { %v2305_v10 = vpop.f32.mrf.mxu2 }
 0x544   :  { %2427 = vmatmul.f32.gmra.mxu0 %v2305_v10  ;;  %2485 = vmatmul.f32.gmra.mxu2 %v2305_v10  ;;  %v2577_v10 = vld [vmem:[%s10929_s5 + $0x38] sm:$0xff] }
 0x545   :  { %v2334_v6 = vpop.f32.mrf.mxu3  ;;  %2610 = vmatpush.msra.mxu0 %v2577_v10  ;;  %2651 = vmatpush.msra.mxu2 %v2577_v10  ;;  %v2572_v10 = vld [vmem:[%s10929_s5 + $0x10] sm:$0xff] }
 0x546   :  { %2456 = vmatmul.f32.gmra.mxu1 %v2334_v6  ;;  %2514 = vmatmul.f32.gmra.mxu3 %v2334_v6  ;;  %v2596_v6 = vld [vmem:[%s10929_s5 + $0xd0] sm:$0xff] }
 0x547   :  { %2627 = vmatpush.msra.mxu1 %v2596_v6  ;;  %2668 = vmatpush.msra.mxu3 %v2596_v6  ;;  %v2591_v6 = vld [vmem:[%s10929_s5 + $0xa8] sm:$0xff] }
 0x548   :  { %2611 = vmatpush.msra.mxu0 %v2576_v46  ;;  %2652 = vmatpush.msra.mxu2 %v2576_v46  ;;  %v1816_v46 = vadd.f32 %v8269_v44, %v8267_v3  ;;  %v1819_v3 = vadd.f32 %v8297_v15, %v8295_v25 }
 0x549   :  { %2628 = vmatpush.msra.mxu1 %v2595_v63  ;;  %2669 = vmatpush.msra.mxu3 %v2595_v63  ;;  %v2571_v63 = vld [vmem:[%s10929_s5 + $0x8] sm:$0xff] }
 0x54a   :  { %2612 = vmatpush.msra.mxu0 %v2575_v21  ;;  %2653 = vmatpush.msra.mxu2 %v2575_v21  ;;  %v2590_v21 = vld [vmem:[%s10929_s5 + $0xa0] sm:$0xff]  ;;  %v1903_v44 = vadd.f32 %v8361_v52, %v1816_v46  ;;  %v1906_v52 = vadd.f32 %v8365_v1, %v1819_v3 }
 0x54b   :  { %2629 = vmatpush.msra.mxu1 %v2594_v40  ;;  %2670 = vmatpush.msra.mxu3 %v2594_v40  ;;  %v2570_v40 = vld [vmem:[%s10929_s5] sm:$0xff] }
 0x54c   :  { %2613 = vmatpush.msra.mxu0 %v2574_v18  ;;  %2654 = vmatpush.msra.mxu2 %v2574_v18  ;;  %v1813_v18 = vadd.f32 %v8247_v2, %v8245_v31  ;;  %v2188_v31 = vadd.f32 %v8623_v26, %v8621_v33  ;;  %v2588_v2 = vld [vmem:[%s10929_s5 + $0x90] sm:$0xff]  ;;  %v1932_v15 = vadd.f32 %v8363_v19, %v1903_v44 }
 0x54d   :  { %2630 = vmatpush.msra.mxu1 %v2593_v51  ;;  %2671 = vmatpush.msra.mxu3 %v2593_v51  ;;  %v1822_v19 = vadd.f32 %v8325_v27, %v8323_v23  ;;  %v1877_v33 = vadd.f32 %v8403_v59, %v8401_v5  ;;  %v1935_v26 = vadd.f32 %v8367_v9, %v1906_v52  ;;  %v2586_v23 = vld [vmem:[%s10929_s5 + $0x80] sm:$0xff] }
 0x54e   :  { %2614 = vmatpush.msra.mxu0 %v2573_v47  ;;  %2655 = vmatpush.msra.mxu2 %v2573_v47  ;;  %v2589_v47 = vld [vmem:[%s10929_s5 + $0x98] sm:$0xff]  ;;  %v1900_v25 = vadd.f32 %v8351_v14, %v1813_v18  ;;  %v2587_v14 = vld [vmem:[%s10929_s5 + $0x88] sm:$0xff]  ;;  %v2246_v59 = vadd.f32 %v8639_v32, %v8637_v35 }
 0x54f   :  { %2631 = vmatpush.msra.mxu1 %v2592_v61  ;;  %2672 = vmatpush.msra.mxu3 %v2592_v61  ;;  %v1871_v61 = vadd.f32 %v8393_v38, %v8388_v56  ;;  %v2185_v38 = vadd.f32 %v8601_v30, %v8584_v36  ;;  %v1964_v5 = vadd.f32 %v8462_v48, %v1877_v33 }
 0x550   :  { %2615 = vmatpush.msra.mxu0 %v2572_v10  ;;  %2656 = vmatpush.msra.mxu2 %v2572_v10  ;;  %v1874_v10 = vadd.f32 %v8399_v50, %v8397_v11  ;;  %v2191_v11 = vadd.f32 %v8627_v54, %v8625_v58  ;;  %v1929_v1 = vadd.f32 %v8353_v8, %v1900_v25 }
 0x551   :  { %2632 = vmatpush.msra.mxu1 %v2591_v6  ;;  %2673 = vmatpush.msra.mxu3 %v2591_v6  ;;  %v2256_v58 = vadd.f32 %v2188_v31, %v1932_v15  ;;  %v1958_v27 = vadd.f32 %v8409_v16, %v1871_v61  ;;  %v1909_v9 = vadd.f32 %v8369_v24, %v1822_v19 }
 0x552   :  { %2616 = vmatpush.msra.mxu0 %v2571_v63  ;;  %2657 = vmatpush.msra.mxu2 %v2571_v63  ;;  %v1961_v36 = vadd.f32 %v8413_v37, %v1874_v10  ;;  %v2254_v37 = vadd.f32 %v2185_v38, %v1929_v1  ;;  %v2249_v16 = vadd.f32 %v8643_v45, %v8641_v4 }
 0x553   :  { %2633 = vmatpush.msra.mxu1 %v2590_v21  ;;  %2674 = vmatpush.msra.mxu3 %v2590_v21  ;;  %v1987_v35 = vadd.f32 %v8411_v49, %v1958_v27  ;;  %v1938_v63 = vadd.f32 %v8371_v34, %v1909_v9 }
 0x554   :  { %2617 = vmatpush.msra.mxu0 %v2570_v40  ;;  %2658 = vmatpush.msra.mxu2 %v2570_v40  ;;  %v1990_v8 = vadd.f32 %v8415_v13, %v1961_v36  ;;  %v2194_v13 = vadd.f32 %v8631_v55, %v8629_v12  ;;  %v1880_v55 = vadd.f32 %v8407_v17, %v8405_v7 }
 0x555   :  { %2634 = vmatpush.msra.mxu1 %v2589_v47  ;;  %2675 = vmatpush.msra.mxu3 %v2589_v47 }
 0x556   :  { %v2260_v3 = vadd.f32 %v2194_v13, %v1938_v63  ;;  %v1967_v17 = vadd.f32 %v8526_v29, %v1880_v55 }
 0x557   :  { %2635 = vmatpush.msra.mxu1 %v2588_v2  ;;  %2676 = vmatpush.msra.mxu3 %v2588_v2 }
 0x558   :  { %v1996_v25 = vadd.f32 %v8546_v60, %v1967_v17 }
 0x559   :  { %2636 = vmatpush.msra.mxu1 %v2587_v14  ;;  %2677 = vmatpush.msra.mxu3 %v2587_v14 }
 0x55b   :  { %2637 = vmatpush.msra.mxu1 %v2586_v23  ;;  %2678 = vmatpush.msra.mxu3 %v2586_v23 }
 0x5a9   :  { %v8688_v20 = vpop.f32.mrf.mxu0 }
 0x5ab   :  { %v8696_v41 = vpop.f32.mrf.mxu1 }
 0x5ac   :  { %v2449_v54 = vadd.f32 %v8696_v41, %v8688_v20  ;;  %v2258_v20 = vadd.f32 %v2191_v11, %v1935_v26 }
 0x5ae   :  { %v8797_v24 = vadd.f32 %v2449_v54, %v2254_v37 }
 0x5af   :  { %v8710_v22 = vpop.f32.mrf.mxu2 }
 0x5b1   :  { %v8718_v62 = vpop.f32.mrf.mxu3  ;;  %v2422_v53 = vpop.f32.mrf.mxu0 }
 0x5b2   :  { %v2507_v4 = vadd.f32 %v8718_v62, %v8710_v22 }
 0x5b3   :  { %v2451_v42 = vpop.f32.mrf.mxu1 }
 0x5b4   :  { %v2452_v50 = vadd.f32 %v2451_v42, %v2422_v53  ;;  %v2243_v42 = vadd.f32 %v8635_v28, %v8633_v0  ;;  %v1993_v0 = vadd.f32 %v8476_v39, %v1964_v5  ;;  %v2257_v28 = vadd.f32 %v2246_v59, %v1990_v8 }
 0x5b5   :  { %v2544_v39 = vmul.f32 %v8797_v24, %v8797_v24 }
 0x5b6   :  { %v8788_v41 = vadd.f32 %v2452_v50, %v2256_v58  ;;  %v2255_v40 = vadd.f32 %v2243_v42, %v1987_v35  ;;  %v2259_v18 = vadd.f32 %v2249_v16, %v1993_v0 }
 0x5b7   :  { %v2480_v51 = vpop.f32.mrf.mxu2 }
 0x5b8   :  { %v2546_v49 = vmul.f32 %v8788_v41, %v8788_v41  ;;  %v2526_v22 = vadd.f32 %v8788_v41, %v8797_v24  ;;  %v8820_v47 = vadd.f32 %v2507_v4, %v2255_v40 }
 0x5b9   :  { %v2509_v6 = vpop.f32.mrf.mxu3  ;;  %v2425_v56 = vpop.f32.mrf.mxu0 }
 0x5ba   :  { %v2510_v48 = vadd.f32 %v2509_v6, %v2480_v51  ;;  %v2252_v51 = vadd.f32 %v8668_v43, %v8660_v57  ;;  %v2552_v10 = vadd.f32 %v2546_v49, %v2544_v39 }
 0x5bb   :  { %v2454_v30 = vpop.f32.mrf.mxu1 }
 0x5bc   :  { %v2455_v53 = vadd.f32 %v2454_v30, %v2425_v56  ;;  %v8809_v44 = vadd.f32 %v2510_v48, %v2257_v28  ;;  %v2261_v43 = vadd.f32 %v2252_v51, %v1996_v25  ;;  %v2545_v56 = vmul.f32 %v8820_v47, %v8820_v47 }
 0x5be   :  { %v8799_v32 = vadd.f32 %v2455_v53, %v2258_v20  ;;  %v2547_v15 = vmul.f32 %v8809_v44, %v8809_v44  ;;  %v2535_v60 = vadd.f32 %v8809_v44, %v8820_v47 }
 0x5bf   :  { %v2483_v46 = vpop.f32.mrf.mxu2 }
 0x5c0   :  { %v2548_v62 = vmul.f32 %v8799_v32, %v8799_v32  ;;  %v2527_v31 = vadd.f32 %v2526_v22, %v8799_v32  ;;  %v2561_v1 = vadd.f32 %v2547_v15, %v2545_v56  ;;  %v2702_v22 = vld [vmem:[%s10930_s6] sm:$0xff] }
 0x5c1   :  { %v2512_v45 = vpop.f32.mrf.mxu3  ;;  %v2428_v12 = vpop.f32.mrf.mxu0  ;;  %v2686_v56 = vld [vmem:[%s10931_s7] sm:$0x1] }
 0x5c2   :  { %v2513_v21 = vadd.f32 %v2512_v45, %v2483_v46  ;;  %v2553_v6 = vadd.f32 %v2552_v10, %v2548_v62  ;;  %v2703_v62 = vld [vmem:[%s10930_s6 + $0x8] sm:$0xff] }
 0x5c3   :  { %v2457_v34 = vpop.f32.mrf.mxu1 }
 0x5c4   :  { %v2458_v7 = vadd.f32 %v2457_v34, %v2428_v12  ;;  %v8822_v61 = vadd.f32 %v2513_v21, %v2259_v18  ;;  %v2705_v34 = vld [vmem:[%s10930_s6 + $0x18] sm:$0xff] }
 0x5c5   :  { %2744 = vmatpush.msrb.mxu1 %v2705_v34  ;;  %2787 = vmatpush.msrb.mxu3 %v2705_v34  ;;  %v2837_v34 = vld [vmem:[%s10932_s8] sm:$0xff] }
 0x5c6   :  { %v8825_v2 = vadd.f32 %v2458_v7, %v2260_v3  ;;  %v2549_v38 = vmul.f32 %v8822_v61, %v8822_v61  ;;  %v2536_v33 = vadd.f32 %v2535_v60, %v8822_v61  ;;  %v2704_v3 = vld [vmem:[%s10930_s6 + $0x10] sm:$0xff] }
 0x5c7   :  { %v2486_v52 = vpop.f32.mrf.mxu2  ;;  %2724 = vmatpush.msrb.mxu0 %v2704_v3  ;;  %2767 = vmatpush.msrb.mxu2 %v2704_v3  ;;  %v5566_v3 = vld [vmem:[%s10932_s8 + $0x10] sm:$0xff] }
 0x5c8   :  { %v2528_v29 = vadd.f32 %v2527_v31, %v8825_v2  ;;  %v2550_v57 = vmul.f32 %v8825_v2, %v8825_v2  ;;  %v2562_v58 = vadd.f32 %v2561_v1, %v2549_v38  ;;  %2745 = vmatpush.msrb.mxu1 %v2703_v62  ;;  %2788 = vmatpush.msrb.mxu3 %v2703_v62  ;;  %v5603_v62 = vld [vmem:[%s10933_s9 + $0x2f8] sm:$0xff] }
 0x5c9   :  { %v2515_v11 = vpop.f32.mrf.mxu3  ;;  %2725 = vmatpush.msrb.mxu0 %v2702_v22  ;;  %2768 = vmatpush.msrb.mxu2 %v2702_v22  ;;  %v5634_v22 = vld [vmem:[%s10933_s9 + $0x3f0] sm:$0xff] }
 0x5ca   :  { %v2529_v50 = vrot.slane %v2528_v29, 4  ;;  %v2554_v14 = vadd.f32 %v2553_v6, %v2550_v57  ;;  %v2516_v19 = vadd.f32 %v2515_v11, %v2486_v52 }
 0x5cc   :  { %v2530_v36 = vadd.f32 %v2529_v50, %v2528_v29  ;;  %v2555_v30 = vrot.slane %v2554_v14, 4  ;;  %v8840_v26 = vadd.f32 %v2516_v19, %v2261_v43  ;;  %v2687_v50 = vld [vmem:[%s10931_s7 + $0x1] sm:$0x1] }
 0x5ce   :  { %v2531_v54 = vrot.slane %v2530_v36, 2  ;;  %v2556_v53 = vadd.f32 %v2555_v30, %v2554_v14  ;;  %v2537_v23 = vadd.f32 %v2536_v33, %v8840_v26  ;;  %v2551_v27 = vmul.f32 %v8840_v26, %v8840_v26 }
 0x5d0   :  { %v2532_v8 = vadd.f32 %v2531_v54, %v2530_v36  ;;  %v2557_v5 = vrot.slane %v2556_v53, 2  ;;  %v2538_v59 = vrot.slane %v2537_v23, 4  ;;  %v2563_v9 = vadd.f32 %v2562_v58, %v2551_v27 }
 0x5d2   :  { %v2539_v37 = vadd.f32 %v2538_v59, %v2537_v23  ;;  %v2564_v20 = vrot.slane %v2563_v9, 4  ;;  %v2533_v42 = vrot.slane %v2532_v8, 1  ;;  %v2558_v16 = vadd.f32 %v2557_v5, %v2556_v53 }
 0x5d4   :  { %v2540_v13 = vrot.slane %v2539_v37, 2  ;;  %v2565_v48 = vadd.f32 %v2564_v20, %v2563_v9  ;;  %v2534_v46 = vadd.f32 %v2533_v42, %v2532_v8  ;;  %v2559_v35 = vrot.slane %v2558_v16, 1 }
 0x5d6   :  { %v2541_v63 = vadd.f32 %v2540_v13, %v2539_v37  ;;  %v2566_v0 = vrot.slane %v2565_v48, 2  ;;  %2618 = vmatmul.f32.vlgmr.msra.gmra.mxu0 %v2534_v46  ;;  %v2560_v28 = vadd.f32 %v2559_v35, %v2558_v16 }
 0x5d8   :  { %2659 = vmatmul.f32.vlgmr.msra.gmra.mxu2 %v2560_v28  ;;  %v2542_v4 = vrot.slane %v2541_v63, 1  ;;  %v2567_v45 = vadd.f32 %v2566_v0, %v2565_v48 }
 0x5da   :  { %v2543_v12 = vadd.f32 %v2542_v4, %v2541_v63  ;;  %v2568_v55 = vrot.slane %v2567_v45, 1 }
 0x5dc   :  { %2638 = vmatmul.f32.vlgmr.msra.gmra.mxu1 %v2543_v12  ;;  %v2569_v49 = vadd.f32 %v2568_v55, %v2567_v45 }
 0x5de   :  { %2679 = vmatmul.f32.vlgmr.msra.gmra.mxu3 %v2569_v49 }
 0x653   :  { %v2619_v40 = vpop.f32.mrf.mxu0 }
 0x659   :  { %v2639_v21 = vpop.f32.mrf.mxu1 }
 0x65a   :  { %v2640_v18 = vadd.f32 %v2639_v21, %v2619_v40 }
 0x65b   :  { %v2660_v7 = vpop.f32.mrf.mxu2 }
 0x65c   :  { %v2642_v39 = vmul.f32 0.001953125, %v2640_v18 }
 0x65e   :  { %v2684_v10 = vmul.f32 %v2642_v39, %v2642_v39 }
 0x661   :  { %v2680_v17 = vpop.f32.mrf.mxu3 }
 0x662   :  { %v2681_v51 = vadd.f32 %v2680_v17, %v2660_v7  ;;  %v5635_v7 = vld [vmem:[%s10933_s9 + $0x3f8] sm:$0xff]  ;;  %v5600_v17 = vld [vmem:[%s10933_s9 + $0x2e0] sm:$0xff] }
 0x664   :  { %v2683_v31 = vmul.f32 0.001953125, %v2681_v51  ;;  %v5632_v51 = vld [vmem:[%s10933_s9 + $0x3e0] sm:$0xff] }
 0x666   :  { %v2685_v25 = vsub.f32 %v2683_v31, %v2684_v10  ;;  %v5601_v10 = vld [vmem:[%s10933_s9 + $0x2e8] sm:$0xff] }
 0x667   :  { %v5633_v31 = vld [vmem:[%s10933_s9 + $0x3e8] sm:$0xff] }
 0x668   :  { %v2688_v15 = vadd.f32 1e-05, %v2685_v25  ;;  %v5598_v25 = vld [vmem:[%s10933_s9 + $0x2d0] sm:$0xff] }
 0x66a   :  { %5989 = vrsqrt.f32 %v2688_v15  ;;  %vm2695_vm3 = vweird.f32 %v2688_v15 }
 0x670   :  { %v5990_v52 = vpop.eup %5989 }
 0x671   :  { %v2690_v6 = vmul.f32 %v5990_v52, %v2688_v15  ;;  %vm2696_vm2 = vweird.f32 %v5990_v52  ;;  %v5630_v15 = vld [vmem:[%s10933_s9 + $0x3d0] sm:$0xff] }
 0x672   :  { %vm2697_vm4 = vmor %vm2695_vm3, %vm2696_vm2 }
 0x673   :  { %v2691_v29 = vmul.f32 %v5990_v52, %v2690_v6  ;;  %v5631_v6 = vld [vmem:[%s10933_s9 + $0x3d8] sm:$0xff] }
 0x675   :  { %v2692_v57 = vmul.f32 0.5, %v2691_v29  ;;  %v5567_v29 = vld [vmem:[%s10932_s8 + $0x18] sm:$0xff] }
 0x677   :  { %v2693_v43 = vsub.f32 1.5, %v2692_v57  ;;  %v2838_v57 = vld [vmem:[%s10932_s8 + $0x8] sm:$0xff] }
 0x679   :  { %v2694_v38 = vmul.f32 %v5990_v52, %v2693_v43  ;;  %v5596_v43 = vld [vmem:[%s10933_s9 + $0x2c0] sm:$0xff] }
 0x67b   :  { %v2698_v11 = vsel %vm2697_vm4, %v5990_v52, %v2694_v38  ;;  %v5599_v52 = vld [vmem:[%s10933_s9 + $0x2d8] sm:$0xff]  ;;  %v5597_v38 = vld [vmem:[%s10933_s9 + $0x2c8] sm:$0xff] }
 0x67c   :  { %v2699_v60 = vmul.f32 %v2698_v11, %v2686_v56  ;;  %v5628_v56 = vld [vmem:[%s10933_s9 + $0x3c0] sm:$0xff]  ;;  %v5629_v11 = vld [vmem:[%s10933_s9 + $0x3c8] sm:$0xff] }
 0x67e   :  { %v2700_v14 = vmul.f32 %v2699_v60, %v2642_v39  ;;  %5558 = vmatmul.msk.f32.vlgmr.msrb.gmra.mxu0 %vm2706_vm5, %v2699_v60  ;;  %5559 = vmatmul.msk.f32.vlgmr.msrb.gmra.mxu1 %vm2706_vm5, %v2699_v60  ;;  %v5602_v39 = vld [vmem:[%s10933_s9 + $0x2f0] sm:$0xff] }
 0x67f   :  { %v5594_v60 = vld [vmem:[%s10933_s9 + $0x2b0] sm:$0xff] }
 0x680   :  { %v2701_v19 = vsub.f32 %v2687_v50, %v2700_v14  ;;  %v5626_v50 = vld [vmem:[%s10933_s9 + $0x3b0] sm:$0xff]  ;;  %v5595_v14 = vld [vmem:[%s10933_s9 + $0x2b8] sm:$0xff] }
 0x682   :  { %5560 = vmatmul.msk.f32.vlgmr.msrb.gmra.mxu2 %vm2706_vm5, %v2701_v19  ;;  %5561 = vmatmul.msk.f32.vlgmr.msrb.gmra.mxu3 %vm2706_vm5, %v2701_v19  ;;  %v5627_v19 = vld [vmem:[%s10933_s9 + $0x3b8] sm:$0xff] }
 0x6fb   :  { %v2727_v1 = vpop.f32.mrf.mxu0  ;;  %v2747_v33 = vpop.f32.mrf.mxu1 }
 0x6fc   :  { %v2793_v36 = vperm.slane %v2727_v1, 0  ;;  %v2794_v30 = vperm.slane %v2747_v33, 0  ;;  %v5592_v1 = vld [vmem:[%s10933_s9 + $0x2a0] sm:$0xff] }
 0x6fd   :  { %v5624_v33 = vld [vmem:[%s10933_s9 + $0x3a0] sm:$0xff] }
 0x6fe   :  { %v2799_v58 = vmul.f32 %v2793_v36, %v8799_v32  ;;  %v2801_v54 = vmul.f32 %v2793_v36, %v8825_v2  ;;  %v2800_v27 = vmul.f32 %v2794_v30, %v8822_v61  ;;  %v2802_v8 = vmul.f32 %v2794_v30, %v8840_v26 }
 0x6ff   :  { %v2795_v9 = vmul.f32 %v2793_v36, %v8797_v24  ;;  %v2797_v37 = vmul.f32 %v2793_v36, %v8788_v41  ;;  %v2796_v20 = vmul.f32 %v2794_v30, %v8820_v47  ;;  %v2798_v42 = vmul.f32 %v2794_v30, %v8809_v44  ;;  %v5593_v36 = vld [vmem:[%s10933_s9 + $0x2a8] sm:$0xff] }
 0x700   :  { %v5625_v30 = vld [vmem:[%s10933_s9 + $0x3a8] sm:$0xff] }
 0x705   :  { %v2770_v53 = vpop.f32.mrf.mxu2  ;;  %v2790_v23 = vpop.f32.mrf.mxu3 }
 0x706   :  { %v2803_v5 = vperm.slane %v2770_v53, 0  ;;  %v2804_v59 = vperm.slane %v2790_v23, 0  ;;  %v5591_v53 = vld [vmem:[%s10933_s9 + $0x298] sm:$0xff] }
 0x707   :  { %v5623_v23 = vld [vmem:[%s10933_s9 + $0x398] sm:$0xff] }
 0x708   :  { %v2811_v16 = vadd.f32 %v2803_v5, %v2801_v54  ;;  %v2812_v32 = vadd.f32 %v2804_v59, %v2802_v8  ;;  %v2809_v13 = vadd.f32 %v2803_v5, %v2799_v58  ;;  %v2810_v2 = vadd.f32 %v2804_v59, %v2800_v27  ;;  %v5590_v58 = vld [vmem:[%s10933_s9 + $0x290] sm:$0xff]  ;;  %v5588_v27 = vld [vmem:[%s10933_s9 + $0x280] sm:$0xff] }
 0x709   :  { %v2807_v48 = vadd.f32 %v2803_v5, %v2797_v37  ;;  %v2808_v46 = vadd.f32 %v2804_v59, %v2798_v42  ;;  %v2805_v35 = vadd.f32 %v2803_v5, %v2795_v9  ;;  %v2806_v61 = vadd.f32 %v2804_v59, %v2796_v20  ;;  %v5622_v54 = vld [vmem:[%s10933_s9 + $0x390] sm:$0xff]  ;;  %v5620_v8 = vld [vmem:[%s10933_s9 + $0x380] sm:$0xff]  ;;  %v5589_v5 = vld [vmem:[%s10933_s9 + $0x288] sm:$0xff] }
 0x70a   :  { %vm2819_vm6 = vcmp.ge.f32.partialorder %v2811_v16, 0.0  ;;  %v2827_v26 = vmul.f32 0.2, %v2811_v16  ;;  %vm2820_vm7 = vcmp.ge.f32.partialorder %v2812_v32, 0.0  ;;  %v2828_v63 = vmul.f32 0.2, %v2812_v32 }
 0x70b   :  { %vm2817_vm8 = vcmp.ge.f32.partialorder %v2809_v13, 0.0  ;;  %v2825_v24 = vmul.f32 0.2, %v2809_v13  ;;  %vm2818_vm9 = vcmp.ge.f32.partialorder %v2810_v2, 0.0  ;;  %v2826_v41 = vmul.f32 0.2, %v2810_v2 }
 0x70c   :  { %v8875_v0 = vsel %vm2819_vm6, %v2811_v16, %v2827_v26  ;;  %v8877_v47 = vsel %vm2820_vm7, %v2812_v32, %v2828_v63  ;;  %v2823_v44 = vmul.f32 0.2, %v2807_v48  ;;  %vm2815_vm10 = vcmp.ge.f32.partialorder %v2807_v48, 0.0  ;;  %v5621_v59 = vld [vmem:[%s10933_s9 + $0x388] sm:$0xff]  ;;  %v5586_v9 = vld [vmem:[%s10933_s9 + $0x270] sm:$0xff]  ;;  %v5587_v20 = vld [vmem:[%s10933_s9 + $0x278] sm:$0xff] }
 0x70d   :  { %2858 = vmatpush.msra.mxu0 %v8875_v0  ;;  %2881 = vmatpush.msra.mxu1 %v8877_v47  ;;  %vm2816_vm11 = vcmp.ge.f32.partialorder %v2808_v46, 0.0  ;;  %v2824_v28 = vmul.f32 0.2, %v2808_v46  ;;  %v8883_v4 = vsel %vm2817_vm8, %v2809_v13, %v2825_v24  ;;  %v8885_v45 = vsel %vm2818_vm9, %v2810_v2, %v2826_v41  ;;  %v5618_v37 = vld [vmem:[%s10933_s9 + $0x370] sm:$0xff]  ;;  %v5619_v42 = vld [vmem:[%s10933_s9 + $0x378] sm:$0xff]  ;;  %v5584_v16 = vld [vmem:[%s10933_s9 + $0x260] sm:$0xff] }
 0x70e   :  { %2977 = vmatpush.msra.mxu2 %v8875_v0  ;;  %3000 = vmatpush.msra.mxu3 %v8877_v47  ;;  %v2821_v12 = vmul.f32 0.2, %v2805_v35  ;;  %vm2813_vm12 = vcmp.ge.f32.partialorder %v2805_v35, 0.0  ;;  %vm2814_vm13 = vcmp.ge.f32.partialorder %v2806_v61, 0.0  ;;  %v2822_v55 = vmul.f32 0.2, %v2806_v61 }
 0x70f   :  { %2859 = vmatpush.msra.mxu0 %v8883_v4  ;;  %2882 = vmatpush.msra.mxu1 %v8885_v45  ;;  %v8892_v49 = vsel %vm2815_vm10, %v2807_v48, %v2823_v44  ;;  %v8895_v21 = vsel %vm2816_vm11, %v2808_v46, %v2824_v28  ;;  %v5616_v32 = vld [vmem:[%s10933_s9 + $0x360] sm:$0xff]  ;;  %v5585_v13 = vld [vmem:[%s10933_s9 + $0x268] sm:$0xff]  ;;  %v5582_v48 = vld [vmem:[%s10933_s9 + $0x250] sm:$0xff]  ;;  %vm5015_vm11 = vcmask 64512  }
 0x710   :  { %2978 = vmatpush.msra.mxu2 %v8883_v4  ;;  %3001 = vmatpush.msra.mxu3 %v8885_v45  ;;  %v8901_v40 = vsel %vm2813_vm12, %v2805_v35, %v2821_v12  ;;  %v8903_v18 = vsel %vm2814_vm13, %v2806_v61, %v2822_v55  ;;  %v5617_v2 = vld [vmem:[%s10933_s9 + $0x368] sm:$0xff]  ;;  %v5614_v46 = vld [vmem:[%s10933_s9 + $0x350] sm:$0xff]  ;;  %v5583_v35 = vld [vmem:[%s10933_s9 + $0x258] sm:$0xff]  ;;  %vm5059_vm12 = vcmask 1041408  }
 0x711   :  { %2860 = vmatpush.msra.mxu0 %v8892_v49  ;;  %2883 = vmatpush.msra.mxu1 %v8895_v21  ;;  %v5615_v61 = vld [vmem:[%s10933_s9 + $0x358] sm:$0xff]  ;;  %v5580_v26 = vld [vmem:[%s10933_s9 + $0x240] sm:$0xff]  ;;  %v5581_v24 = vld [vmem:[%s10933_s9 + $0x248] sm:$0xff] }
 0x712   :  { %2979 = vmatpush.msra.mxu2 %v8892_v49  ;;  %3002 = vmatpush.msra.mxu3 %v8895_v21  ;;  %v5612_v63 = vld [vmem:[%s10933_s9 + $0x340] sm:$0xff]  ;;  %v5613_v41 = vld [vmem:[%s10933_s9 + $0x348] sm:$0xff]  ;;  %v5578_v44 = vld [vmem:[%s10933_s9 + $0x230] sm:$0xff] }
 0x713   :  { %2861 = vmatpush.msra.mxu0 %v8901_v40  ;;  %2884 = vmatpush.msra.mxu1 %v8903_v18  ;;  %v5610_v28 = vld [vmem:[%s10933_s9 + $0x330] sm:$0xff]  ;;  %v5579_v12 = vld [vmem:[%s10933_s9 + $0x238] sm:$0xff] }
 0x714   :  { %2980 = vmatpush.msra.mxu2 %v8901_v40  ;;  %3003 = vmatpush.msra.mxu3 %v8903_v18  ;;  %v5611_v55 = vld [vmem:[%s10933_s9 + $0x338] sm:$0xff] }
 0x715   :  { %5568 = vmatmul.msk.f32.vlgmr.msra.gmra.mxu2 %vm2839_vm14, %v5566_v3  ;;  %5570 = vmatmul.msk.f32.vlgmr.msra.gmra.mxu3 %vm2839_vm14, %v5566_v3  ;;  %v5576_v3 = vld [vmem:[%s10933_s9 + $0x220] sm:$0xff] }
 0x716   :  { %5562 = vmatmul.msk.f32.vlgmr.msra.gmra.mxu0 %vm2839_vm14, %v2837_v34  ;;  %5564 = vmatmul.msk.f32.vlgmr.msra.gmra.mxu1 %vm2839_vm14, %v2837_v34  ;;  %v5608_v34 = vld [vmem:[%s10933_s9 + $0x320] sm:$0xff] }
 0x717   :  { %3076 = vmatpush.msrb.mxu0 %v5602_v39  ;;  %3099 = vmatpush.msrb.mxu1 %v5634_v22  ;;  %v5577_v39 = vld [vmem:[%s10933_s9 + $0x228] sm:$0xff] }
 0x718   :  { %3122 = vmatpush.msrb.mxu2 %v5603_v62  ;;  %3145 = vmatpush.msrb.mxu3 %v5635_v7  ;;  %v5609_v22 = vld [vmem:[%s10933_s9 + $0x328] sm:$0xff]  ;;  %v5574_v62 = vld [vmem:[%s10933_s9 + $0x210] sm:$0xff] }
 0x719   :  { %3077 = vmatpush.msrb.mxu0 %v5600_v17  ;;  %3100 = vmatpush.msrb.mxu1 %v5632_v51  ;;  %v5606_v7 = vld [vmem:[%s10933_s9 + $0x310] sm:$0xff]  ;;  %v5575_v17 = vld [vmem:[%s10933_s9 + $0x218] sm:$0xff] }
 0x71a   :  { %3123 = vmatpush.msrb.mxu2 %v5601_v10  ;;  %3146 = vmatpush.msrb.mxu3 %v5633_v31  ;;  %v5607_v51 = vld [vmem:[%s10933_s9 + $0x318] sm:$0xff]  ;;  %v5572_v10 = vld [vmem:[%s10933_s9 + $0x200] sm:$0xff] }
 0x71b   :  { %3078 = vmatpush.msrb.mxu0 %v5598_v25  ;;  %3101 = vmatpush.msrb.mxu1 %v5630_v15  ;;  %v5604_v31 = vld [vmem:[%s10933_s9 + $0x300] sm:$0xff]  ;;  %v5573_v25 = vld [vmem:[%s10933_s9 + $0x208] sm:$0xff] }
 0x71c   :  { %3124 = vmatpush.msrb.mxu2 %v5599_v52  ;;  %3147 = vmatpush.msrb.mxu3 %v5631_v6  ;;  %v5605_v15 = vld [vmem:[%s10933_s9 + $0x308] sm:$0xff]  ;;  %v2922_v52 = vld [vmem:[%s10933_s9 + $0xf0] sm:$0xff] }
 0x71d   :  { %5569 = vmatmul.msk.f32.gmra.mxu2 %vm2839_vm14, %v5567_v29  ;;  %5571 = vmatmul.msk.f32.gmra.mxu3 %vm2839_vm14, %v5567_v29  ;;  %v2954_v6 = vld [vmem:[%s10933_s9 + $0x1f0] sm:$0xff]  ;;  %v2923_v29 = vld [vmem:[%s10933_s9 + $0xf8] sm:$0xff] }
 0x71e   :  { %5563 = vmatmul.msk.f32.gmra.mxu0 %vm2839_vm14, %v2838_v57  ;;  %5565 = vmatmul.msk.f32.gmra.mxu1 %vm2839_vm14, %v2838_v57  ;;  %v2955_v57 = vld [vmem:[%s10933_s9 + $0x1f8] sm:$0xff] }
 0x71f   :  { %3079 = vmatpush.msrb.mxu0 %v5596_v43  ;;  %3102 = vmatpush.msrb.mxu1 %v5628_v56  ;;  %v2920_v43 = vld [vmem:[%s10933_s9 + $0xe0] sm:$0xff] }
 0x720   :  { %3125 = vmatpush.msrb.mxu2 %v5597_v38  ;;  %3148 = vmatpush.msrb.mxu3 %v5629_v11  ;;  %v2952_v56 = vld [vmem:[%s10933_s9 + $0x1e0] sm:$0xff]  ;;  %v2921_v38 = vld [vmem:[%s10933_s9 + $0xe8] sm:$0xff] }
 0x721   :  { %3080 = vmatpush.msrb.mxu0 %v5594_v60  ;;  %3103 = vmatpush.msrb.mxu1 %v5626_v50  ;;  %v2953_v11 = vld [vmem:[%s10933_s9 + $0x1e8] sm:$0xff]  ;;  %v2918_v60 = vld [vmem:[%s10933_s9 + $0xd0] sm:$0xff] }
 0x722   :  { %3126 = vmatpush.msrb.mxu2 %v5595_v14  ;;  %3149 = vmatpush.msrb.mxu3 %v5627_v19  ;;  %v2950_v50 = vld [vmem:[%s10933_s9 + $0x1d0] sm:$0xff]  ;;  %v2919_v14 = vld [vmem:[%s10933_s9 + $0xd8] sm:$0xff] }
 0x723   :  { %3081 = vmatpush.msrb.mxu0 %v5592_v1  ;;  %3104 = vmatpush.msrb.mxu1 %v5624_v33  ;;  %v2951_v19 = vld [vmem:[%s10933_s9 + $0x1d8] sm:$0xff]  ;;  %v2916_v1 = vld [vmem:[%s10933_s9 + $0xc0] sm:$0xff] }
 0x724   :  { %3127 = vmatpush.msrb.mxu2 %v5593_v36  ;;  %3150 = vmatpush.msrb.mxu3 %v5625_v30  ;;  %v2948_v33 = vld [vmem:[%s10933_s9 + $0x1c0] sm:$0xff]  ;;  %v2917_v36 = vld [vmem:[%s10933_s9 + $0xc8] sm:$0xff] }
 0x725   :  { %3082 = vmatpush.msrb.mxu0 %v5590_v58  ;;  %3105 = vmatpush.msrb.mxu1 %v5622_v54  ;;  %v2949_v30 = vld [vmem:[%s10933_s9 + $0x1c8] sm:$0xff]  ;;  %v2914_v58 = vld [vmem:[%s10933_s9 + $0xb0] sm:$0xff] }
 0x726   :  { %3128 = vmatpush.msrb.mxu2 %v5591_v53  ;;  %3151 = vmatpush.msrb.mxu3 %v5623_v23  ;;  %v2946_v54 = vld [vmem:[%s10933_s9 + $0x1b0] sm:$0xff]  ;;  %v2915_v53 = vld [vmem:[%s10933_s9 + $0xb8] sm:$0xff] }
 0x727   :  { %3083 = vmatpush.msrb.mxu0 %v5588_v27  ;;  %3106 = vmatpush.msrb.mxu1 %v5620_v8  ;;  %v2947_v23 = vld [vmem:[%s10933_s9 + $0x1b8] sm:$0xff]  ;;  %v2912_v27 = vld [vmem:[%s10933_s9 + $0xa0] sm:$0xff] }
 0x728   :  { %3129 = vmatpush.msrb.mxu2 %v5589_v5  ;;  %3152 = vmatpush.msrb.mxu3 %v5621_v59  ;;  %v2944_v8 = vld [vmem:[%s10933_s9 + $0x1a0] sm:$0xff]  ;;  %v2913_v5 = vld [vmem:[%s10933_s9 + $0xa8] sm:$0xff] }
 0x729   :  { %3084 = vmatpush.msrb.mxu0 %v5586_v9  ;;  %3107 = vmatpush.msrb.mxu1 %v5618_v37  ;;  %v2945_v59 = vld [vmem:[%s10933_s9 + $0x1a8] sm:$0xff]  ;;  %v2910_v9 = vld [vmem:[%s10933_s9 + $0x90] sm:$0xff] }
 0x72a   :  { %3130 = vmatpush.msrb.mxu2 %v5587_v20  ;;  %3153 = vmatpush.msrb.mxu3 %v5619_v42  ;;  %v2942_v37 = vld [vmem:[%s10933_s9 + $0x190] sm:$0xff]  ;;  %v2911_v20 = vld [vmem:[%s10933_s9 + $0x98] sm:$0xff] }
 0x72b   :  { %3085 = vmatpush.msrb.mxu0 %v5584_v16  ;;  %3108 = vmatpush.msrb.mxu1 %v5616_v32  ;;  %v2943_v42 = vld [vmem:[%s10933_s9 + $0x198] sm:$0xff]  ;;  %v2908_v16 = vld [vmem:[%s10933_s9 + $0x80] sm:$0xff] }
 0x72c   :  { %3131 = vmatpush.msrb.mxu2 %v5585_v13  ;;  %3154 = vmatpush.msrb.mxu3 %v5617_v2  ;;  %v2940_v32 = vld [vmem:[%s10933_s9 + $0x180] sm:$0xff]  ;;  %v2909_v13 = vld [vmem:[%s10933_s9 + $0x88] sm:$0xff] }
 0x72d   :  { %3086 = vmatpush.msrb.mxu0 %v5582_v48  ;;  %3109 = vmatpush.msrb.mxu1 %v5614_v46  ;;  %v2941_v2 = vld [vmem:[%s10933_s9 + $0x188] sm:$0xff]  ;;  %v2906_v48 = vld [vmem:[%s10933_s9 + $0x70] sm:$0xff] }
 0x72e   :  { %3132 = vmatpush.msrb.mxu2 %v5583_v35  ;;  %3155 = vmatpush.msrb.mxu3 %v5615_v61  ;;  %v2938_v46 = vld [vmem:[%s10933_s9 + $0x170] sm:$0xff]  ;;  %v2907_v35 = vld [vmem:[%s10933_s9 + $0x78] sm:$0xff] }
 0x72f   :  { %3087 = vmatpush.msrb.mxu0 %v5580_v26  ;;  %3110 = vmatpush.msrb.mxu1 %v5612_v63  ;;  %v2939_v61 = vld [vmem:[%s10933_s9 + $0x178] sm:$0xff]  ;;  %v2904_v26 = vld [vmem:[%s10933_s9 + $0x60] sm:$0xff] }
 0x730   :  { %3133 = vmatpush.msrb.mxu2 %v5581_v24  ;;  %3156 = vmatpush.msrb.mxu3 %v5613_v41  ;;  %v2936_v63 = vld [vmem:[%s10933_s9 + $0x160] sm:$0xff]  ;;  %v2905_v24 = vld [vmem:[%s10933_s9 + $0x68] sm:$0xff] }
 0x731   :  { %3088 = vmatpush.msrb.mxu0 %v5578_v44  ;;  %3111 = vmatpush.msrb.mxu1 %v5610_v28  ;;  %v2937_v41 = vld [vmem:[%s10933_s9 + $0x168] sm:$0xff]  ;;  %v2902_v44 = vld [vmem:[%s10933_s9 + $0x50] sm:$0xff] }
 0x732   :  { %3134 = vmatpush.msrb.mxu2 %v5579_v12  ;;  %3157 = vmatpush.msrb.mxu3 %v5611_v55  ;;  %v2934_v28 = vld [vmem:[%s10933_s9 + $0x150] sm:$0xff]  ;;  %v2903_v12 = vld [vmem:[%s10933_s9 + $0x58] sm:$0xff] }
 0x733   :  { %3089 = vmatpush.msrb.mxu0 %v5576_v3  ;;  %3112 = vmatpush.msrb.mxu1 %v5608_v34  ;;  %v2935_v55 = vld [vmem:[%s10933_s9 + $0x158] sm:$0xff]  ;;  %v2900_v3 = vld [vmem:[%s10933_s9 + $0x40] sm:$0xff] }
 0x734   :  { %3135 = vmatpush.msrb.mxu2 %v5577_v39  ;;  %3158 = vmatpush.msrb.mxu3 %v5609_v22  ;;  %v2932_v34 = vld [vmem:[%s10933_s9 + $0x140] sm:$0xff]  ;;  %v2901_v39 = vld [vmem:[%s10933_s9 + $0x48] sm:$0xff] }
 0x735   :  { %3090 = vmatpush.msrb.mxu0 %v5574_v62  ;;  %3113 = vmatpush.msrb.mxu1 %v5606_v7  ;;  %v2933_v22 = vld [vmem:[%s10933_s9 + $0x148] sm:$0xff]  ;;  %v2898_v62 = vld [vmem:[%s10933_s9 + $0x30] sm:$0xff] }
 0x736   :  { %3136 = vmatpush.msrb.mxu2 %v5575_v17  ;;  %3159 = vmatpush.msrb.mxu3 %v5607_v51  ;;  %v2930_v7 = vld [vmem:[%s10933_s9 + $0x130] sm:$0xff]  ;;  %v2899_v17 = vld [vmem:[%s10933_s9 + $0x38] sm:$0xff] }
 0x737   :  { %3091 = vmatpush.msrb.mxu0 %v5572_v10  ;;  %3114 = vmatpush.msrb.mxu1 %v5604_v31  ;;  %v2931_v51 = vld [vmem:[%s10933_s9 + $0x138] sm:$0xff]  ;;  %v2896_v10 = vld [vmem:[%s10933_s9 + $0x20] sm:$0xff] }
 0x738   :  { %3137 = vmatpush.msrb.mxu2 %v5573_v25  ;;  %3160 = vmatpush.msrb.mxu3 %v5605_v15  ;;  %v2928_v31 = vld [vmem:[%s10933_s9 + $0x120] sm:$0xff]  ;;  %v2897_v25 = vld [vmem:[%s10933_s9 + $0x28] sm:$0xff] }
 0x739   :  { %3168 = vmatpush.msra.mxu0 %v2922_v52  ;;  %3191 = vmatpush.msra.mxu1 %v2954_v6  ;;  %v2929_v15 = vld [vmem:[%s10933_s9 + $0x128] sm:$0xff]  ;;  %v2894_v52 = vld [vmem:[%s10933_s9 + $0x10] sm:$0xff] }
 0x73a   :  { %3214 = vmatpush.msra.mxu2 %v2923_v29  ;;  %3237 = vmatpush.msra.mxu3 %v2955_v57  ;;  %v2926_v6 = vld [vmem:[%s10933_s9 + $0x110] sm:$0xff]  ;;  %v2895_v29 = vld [vmem:[%s10933_s9 + $0x18] sm:$0xff] }
 0x73b   :  { %3169 = vmatpush.msra.mxu0 %v2920_v43  ;;  %3192 = vmatpush.msra.mxu1 %v2952_v56  ;;  %v2927_v57 = vld [vmem:[%s10933_s9 + $0x118] sm:$0xff]  ;;  %v2892_v43 = vld [vmem:[%s10933_s9] sm:$0xff] }
 0x73c   :  { %3215 = vmatpush.msra.mxu2 %v2921_v38  ;;  %3238 = vmatpush.msra.mxu3 %v2953_v11  ;;  %v2924_v56 = vld [vmem:[%s10933_s9 + $0x100] sm:$0xff]  ;;  %v2893_v38 = vld [vmem:[%s10933_s9 + $0x8] sm:$0xff] }
 0x73d   :  { %3170 = vmatpush.msra.mxu0 %v2918_v60  ;;  %3193 = vmatpush.msra.mxu1 %v2950_v50  ;;  %v2925_v11 = vld [vmem:[%s10933_s9 + $0x108] sm:$0xff] }
 0x73e   :  { %3216 = vmatpush.msra.mxu2 %v2919_v14  ;;  %3239 = vmatpush.msra.mxu3 %v2951_v19  ;;  %v5672_v14 = vld [vmem:[%s10933_s9 + $0x4f0] sm:$0xff] }
 0x73f   :  { %3171 = vmatpush.msra.mxu0 %v2916_v1  ;;  %3194 = vmatpush.msra.mxu1 %v2948_v33  ;;  %v5704_v19 = vld [vmem:[%s10933_s9 + $0x5f0] sm:$0xff]  ;;  %v5670_v1 = vld [vmem:[%s10933_s9 + $0x4e0] sm:$0xff] }
 0x740   :  { %3217 = vmatpush.msra.mxu2 %v2917_v36  ;;  %3240 = vmatpush.msra.mxu3 %v2949_v30  ;;  %v5702_v33 = vld [vmem:[%s10933_s9 + $0x5e0] sm:$0xff]  ;;  %v5668_v36 = vld [vmem:[%s10933_s9 + $0x4d0] sm:$0xff] }
 0x741   :  { %3172 = vmatpush.msra.mxu0 %v2914_v58  ;;  %3195 = vmatpush.msra.mxu1 %v2946_v54  ;;  %v5700_v30 = vld [vmem:[%s10933_s9 + $0x5d0] sm:$0xff]  ;;  %v5666_v58 = vld [vmem:[%s10933_s9 + $0x4c0] sm:$0xff] }
 0x742   :  { %3218 = vmatpush.msra.mxu2 %v2915_v53  ;;  %3241 = vmatpush.msra.mxu3 %v2947_v23  ;;  %v5698_v54 = vld [vmem:[%s10933_s9 + $0x5c0] sm:$0xff] }
 0x743   :  { %3173 = vmatpush.msra.mxu0 %v2912_v27  ;;  %3196 = vmatpush.msra.mxu1 %v2944_v8  ;;  %v5664_v27 = vld [vmem:[%s10933_s9 + $0x4b0] sm:$0xff] }
 0x744   :  { %3219 = vmatpush.msra.mxu2 %v2913_v5  ;;  %3242 = vmatpush.msra.mxu3 %v2945_v59  ;;  %v5696_v8 = vld [vmem:[%s10933_s9 + $0x5b0] sm:$0xff]  ;;  %v5662_v5 = vld [vmem:[%s10933_s9 + $0x4a0] sm:$0xff] }
 0x745   :  { %3174 = vmatpush.msra.mxu0 %v2910_v9  ;;  %3197 = vmatpush.msra.mxu1 %v2942_v37  ;;  %v5694_v59 = vld [vmem:[%s10933_s9 + $0x5a0] sm:$0xff]  ;;  %v5660_v9 = vld [vmem:[%s10933_s9 + $0x490] sm:$0xff] }
 0x746   :  { %3220 = vmatpush.msra.mxu2 %v2911_v20  ;;  %3243 = vmatpush.msra.mxu3 %v2943_v42  ;;  %v5692_v37 = vld [vmem:[%s10933_s9 + $0x590] sm:$0xff] }
 0x747   :  { %3175 = vmatpush.msra.mxu0 %v2908_v16  ;;  %3198 = vmatpush.msra.mxu1 %v2940_v32  ;;  %v5658_v16 = vld [vmem:[%s10933_s9 + $0x480] sm:$0xff] }
 0x748   :  { %3221 = vmatpush.msra.mxu2 %v2909_v13  ;;  %3244 = vmatpush.msra.mxu3 %v2941_v2  ;;  %v5690_v32 = vld [vmem:[%s10933_s9 + $0x580] sm:$0xff]  ;;  %v5656_v13 = vld [vmem:[%s10933_s9 + $0x470] sm:$0xff] }
 0x749   :  { %3176 = vmatpush.msra.mxu0 %v2906_v48  ;;  %3199 = vmatpush.msra.mxu1 %v2938_v46  ;;  %v5688_v2 = vld [vmem:[%s10933_s9 + $0x570] sm:$0xff]  ;;  %v5654_v48 = vld [vmem:[%s10933_s9 + $0x460] sm:$0xff] }
 0x74a   :  { %3222 = vmatpush.msra.mxu2 %v2907_v35  ;;  %3245 = vmatpush.msra.mxu3 %v2939_v61  ;;  %v5686_v46 = vld [vmem:[%s10933_s9 + $0x560] sm:$0xff]  ;;  %v5652_v35 = vld [vmem:[%s10933_s9 + $0x450] sm:$0xff] }
 0x74b   :  { %3177 = vmatpush.msra.mxu0 %v2904_v26  ;;  %3200 = vmatpush.msra.mxu1 %v2936_v63  ;;  %v5684_v61 = vld [vmem:[%s10933_s9 + $0x550] sm:$0xff]  ;;  %v5650_v26 = vld [vmem:[%s10933_s9 + $0x440] sm:$0xff] }
 0x74c   :  { %3223 = vmatpush.msra.mxu2 %v2905_v24  ;;  %3246 = vmatpush.msra.mxu3 %v2937_v41  ;;  %v5682_v63 = vld [vmem:[%s10933_s9 + $0x540] sm:$0xff] }
 0x74d   :  { %3178 = vmatpush.msra.mxu0 %v2902_v44  ;;  %3201 = vmatpush.msra.mxu1 %v2934_v28  ;;  %v5648_v44 = vld [vmem:[%s10933_s9 + $0x430] sm:$0xff] }
 0x74e   :  { %3224 = vmatpush.msra.mxu2 %v2903_v12  ;;  %3247 = vmatpush.msra.mxu3 %v2935_v55  ;;  %v5680_v28 = vld [vmem:[%s10933_s9 + $0x530] sm:$0xff]  ;;  %v5646_v12 = vld [vmem:[%s10933_s9 + $0x420] sm:$0xff] }
 0x74f   :  { %3179 = vmatpush.msra.mxu0 %v2900_v3  ;;  %3202 = vmatpush.msra.mxu1 %v2932_v34  ;;  %v5678_v55 = vld [vmem:[%s10933_s9 + $0x520] sm:$0xff]  ;;  %v5644_v3 = vld [vmem:[%s10933_s9 + $0x410] sm:$0xff] }
 0x750   :  { %3225 = vmatpush.msra.mxu2 %v2901_v39  ;;  %3248 = vmatpush.msra.mxu3 %v2933_v22  ;;  %v5676_v34 = vld [vmem:[%s10933_s9 + $0x510] sm:$0xff]  ;;  %v5642_v39 = vld [vmem:[%s10933_s9 + $0x400] sm:$0xff] }
 0x751   :  { %3180 = vmatpush.msra.mxu0 %v2898_v62  ;;  %3203 = vmatpush.msra.mxu1 %v2930_v7  ;;  %v5674_v22 = vld [vmem:[%s10933_s9 + $0x500] sm:$0xff]  ;;  %v5699_v7 = vld [vmem:[%s10933_s9 + $0x5c8] sm:$0xff] }
 0x752   :  { %3226 = vmatpush.msra.mxu2 %v2899_v17  ;;  %3249 = vmatpush.msra.mxu3 %v2931_v51  ;;  %v5636_v62 = vld [vmem:[%s10932_s8 + $0x20] sm:$0xff]  ;;  %v5665_v17 = vld [vmem:[%s10933_s9 + $0x4b8] sm:$0xff] }
 0x753   :  { %3181 = vmatpush.msra.mxu0 %v2896_v10  ;;  %3204 = vmatpush.msra.mxu1 %v2928_v31  ;;  %v5697_v51 = vld [vmem:[%s10933_s9 + $0x5b8] sm:$0xff]  ;;  %v5663_v10 = vld [vmem:[%s10933_s9 + $0x4a8] sm:$0xff] }
 0x754   :  { %3227 = vmatpush.msra.mxu2 %v2897_v25  ;;  %3250 = vmatpush.msra.mxu3 %v2929_v15  ;;  %v5695_v31 = vld [vmem:[%s10933_s9 + $0x5a8] sm:$0xff]  ;;  %v5661_v25 = vld [vmem:[%s10933_s9 + $0x498] sm:$0xff] }
 0x755   :  { %3182 = vmatpush.msra.mxu0 %v2894_v52  ;;  %3205 = vmatpush.msra.mxu1 %v2926_v6  ;;  %v5693_v15 = vld [vmem:[%s10933_s9 + $0x598] sm:$0xff]  ;;  %v5659_v52 = vld [vmem:[%s10933_s9 + $0x488] sm:$0xff] }
 0x756   :  { %3228 = vmatpush.msra.mxu2 %v2895_v29  ;;  %3251 = vmatpush.msra.mxu3 %v2927_v57  ;;  %v5691_v6 = vld [vmem:[%s10933_s9 + $0x588] sm:$0xff]  ;;  %v5657_v29 = vld [vmem:[%s10933_s9 + $0x478] sm:$0xff] }
 0x757   :  { %3183 = vmatpush.msra.mxu0 %v2892_v43  ;;  %3206 = vmatpush.msra.mxu1 %v2924_v56  ;;  %v5689_v57 = vld [vmem:[%s10933_s9 + $0x578] sm:$0xff]  ;;  %v5655_v43 = vld [vmem:[%s10933_s9 + $0x468] sm:$0xff] }
 0x758   :  { %3229 = vmatpush.msra.mxu2 %v2893_v38  ;;  %3252 = vmatpush.msra.mxu3 %v2925_v11  ;;  %v5687_v56 = vld [vmem:[%s10933_s9 + $0x568] sm:$0xff]  ;;  %v5653_v38 = vld [vmem:[%s10933_s9 + $0x458] sm:$0xff] }
 0x759   :  { %v5685_v11 = vld [vmem:[%s10933_s9 + $0x558] sm:$0xff] }
 0x793   :  { %v2863_v20 = vpop.f32.mrf.mxu0  ;;  %v2886_v42 = vpop.f32.mrf.mxu1 }
 0x798   :  { %v2982_v60 = vpop.f32.mrf.mxu2  ;;  %v3005_v50 = vpop.f32.mrf.mxu3 }
 0x799   :  { %3092 = vmatmul.f32.vlgmr.msrb.gmra.mxu0 %v2982_v60  ;;  %3115 = vmatmul.f32.vlgmr.msrb.gmra.mxu1 %v3005_v50 }
 0x79a   :  { %3138 = vmatmul.f32.vlgmr.msrb.gmra.mxu2 %v2982_v60  ;;  %3161 = vmatmul.f32.vlgmr.msrb.gmra.mxu3 %v3005_v50  ;;  %v5651_v60 = vld [vmem:[%s10933_s9 + $0x448] sm:$0xff] }
 0x79b   :  { %3281 = vmatpush.msrb.mxu0 %v8875_v0  ;;  %3304 = vmatpush.msrb.mxu1 %v8877_v47  ;;  %v2866_v24 = vpop.f32.mrf.mxu0  ;;  %v2889_v41 = vpop.f32.mrf.mxu1  ;;  %v5683_v50 = vld [vmem:[%s10933_s9 + $0x548] sm:$0xff] }
 0x79c   :  { %3380 = vmatpush.msrb.mxu2 %v5672_v14  ;;  %3403 = vmatpush.msrb.mxu3 %v5704_v19  ;;  %v5649_v14 = vld [vmem:[%s10933_s9 + $0x438] sm:$0xff] }
 0x79d   :  { %3282 = vmatpush.msrb.mxu0 %v8883_v4  ;;  %3305 = vmatpush.msrb.mxu1 %v8885_v45  ;;  %v5681_v19 = vld [vmem:[%s10933_s9 + $0x538] sm:$0xff] }
 0x79e   :  { %3381 = vmatpush.msrb.mxu2 %v5670_v1  ;;  %3404 = vmatpush.msrb.mxu3 %v5702_v33  ;;  %v5647_v1 = vld [vmem:[%s10933_s9 + $0x428] sm:$0xff] }
 0x79f   :  { %3283 = vmatpush.msrb.mxu0 %v8892_v49  ;;  %3306 = vmatpush.msrb.mxu1 %v8895_v21  ;;  %v5679_v33 = vld [vmem:[%s10933_s9 + $0x528] sm:$0xff] }
 0x7a0   :  { %3382 = vmatpush.msrb.mxu2 %v5668_v36  ;;  %3405 = vmatpush.msrb.mxu3 %v5700_v30  ;;  %v2985_v53 = vpop.f32.mrf.mxu2  ;;  %v3008_v23 = vpop.f32.mrf.mxu3  ;;  %v5645_v36 = vld [vmem:[%s10933_s9 + $0x418] sm:$0xff] }
 0x7a1   :  { %3284 = vmatpush.msrb.mxu0 %v8901_v40  ;;  %3307 = vmatpush.msrb.mxu1 %v8903_v18  ;;  %v5677_v30 = vld [vmem:[%s10933_s9 + $0x518] sm:$0xff] }
 0x7a2   :  { %3383 = vmatpush.msrb.mxu2 %v5666_v58  ;;  %3406 = vmatpush.msrb.mxu3 %v5698_v54 }
 0x7a3   :  { %3095 = vmatmul.f32.gmra.mxu0 %v2985_v53  ;;  %3118 = vmatmul.f32.gmra.mxu1 %v3008_v23 }
 0x7a4   :  { %3384 = vmatpush.msrb.mxu2 %v5664_v27  ;;  %3407 = vmatpush.msrb.mxu3 %v5696_v8  ;;  %v5675_v27 = vld [vmem:[%s10933_s9 + $0x508] sm:$0xff] }
 0x7a5   :  { %3141 = vmatmul.f32.gmra.mxu2 %v2985_v53  ;;  %3164 = vmatmul.f32.gmra.mxu3 %v3008_v23  ;;  %v5643_v23 = vld [vmem:[%s10933_s9 + $0x408] sm:$0xff] }
 0x7a6   :  { %3385 = vmatpush.msrb.mxu2 %v5662_v5  ;;  %3408 = vmatpush.msrb.mxu3 %v5694_v59 }
 0x7a8   :  { %3386 = vmatpush.msrb.mxu2 %v5660_v9  ;;  %3409 = vmatpush.msrb.mxu3 %v5692_v37 }
 0x7aa   :  { %3387 = vmatpush.msrb.mxu2 %v5658_v16  ;;  %3410 = vmatpush.msrb.mxu3 %v5690_v32 }
 0x7ab   :  { %3184 = vmatmul.f32.vlgmr.msra.gmra.mxu0 %v2863_v20  ;;  %3207 = vmatmul.f32.vlgmr.msra.gmra.mxu1 %v2886_v42 }
 0x7ac   :  { %3388 = vmatpush.msrb.mxu2 %v5656_v13  ;;  %3411 = vmatpush.msrb.mxu3 %v5688_v2 }
 0x7ad   :  { %3230 = vmatmul.f32.vlgmr.msra.gmra.mxu2 %v2863_v20  ;;  %3253 = vmatmul.f32.vlgmr.msra.gmra.mxu3 %v2886_v42 }
 0x7ae   :  { %3389 = vmatpush.msrb.mxu2 %v5654_v48  ;;  %3412 = vmatpush.msrb.mxu3 %v5686_v46 }
 0x7b0   :  { %3390 = vmatpush.msrb.mxu2 %v5652_v35  ;;  %3413 = vmatpush.msrb.mxu3 %v5684_v61 }
 0x7b2   :  { %3391 = vmatpush.msrb.mxu2 %v5650_v26  ;;  %3414 = vmatpush.msrb.mxu3 %v5682_v63 }
 0x7b3   :  { %3187 = vmatmul.f32.gmra.mxu0 %v2866_v24  ;;  %3210 = vmatmul.f32.gmra.mxu1 %v2889_v41 }
 0x7b4   :  { %3392 = vmatpush.msrb.mxu2 %v5648_v44  ;;  %3415 = vmatpush.msrb.mxu3 %v5680_v28  ;;  %v5774_v44 = vld [vmem:[%s10933_s9 + $0x7f0] sm:$0xff] }
 0x7b5   :  { %3233 = vmatmul.f32.gmra.mxu2 %v2866_v24  ;;  %3256 = vmatmul.f32.gmra.mxu3 %v2889_v41  ;;  %v5742_v41 = vld [vmem:[%s10933_s9 + $0x6f0] sm:$0xff] }
 0x7b6   :  { %3393 = vmatpush.msrb.mxu2 %v5646_v12  ;;  %3416 = vmatpush.msrb.mxu3 %v5678_v55  ;;  %v5740_v55 = vld [vmem:[%s10933_s9 + $0x6e0] sm:$0xff] }
 0x7b8   :  { %3394 = vmatpush.msrb.mxu2 %v5644_v3  ;;  %3417 = vmatpush.msrb.mxu3 %v5676_v34  ;;  %v5772_v3 = vld [vmem:[%s10933_s9 + $0x7e0] sm:$0xff] }
 0x7ba   :  { %3395 = vmatpush.msrb.mxu2 %v5642_v39  ;;  %3418 = vmatpush.msrb.mxu3 %v5674_v22  ;;  %v5738_v39 = vld [vmem:[%s10933_s9 + $0x6d0] sm:$0xff] }
 0x7bb   :  { %5638 = vmatmul.msk.f32.vlgmr.msrb.gmra.mxu0 %vm2839_vm14, %v5636_v62  ;;  %5640 = vmatmul.msk.f32.vlgmr.msrb.gmra.mxu1 %vm2839_vm14, %v5636_v62  ;;  %v5770_v22 = vld [vmem:[%s10933_s9 + $0x7d0] sm:$0xff]  ;;  %v5736_v62 = vld [vmem:[%s10933_s9 + $0x6c0] sm:$0xff] }
 0x7bc   :  { %3497 = vmatpush.msra.mxu2 %v8875_v0  ;;  %3520 = vmatpush.msra.mxu3 %v8877_v47  ;;  %v5637_v0 = vld [vmem:[%s10932_s8 + $0x28] sm:$0xff]  ;;  %v5673_v47 = vld [vmem:[%s10933_s9 + $0x4f8] sm:$0xff] }
 0x7bd   :  { %3426 = vmatpush.msra.mxu0 %v5673_v47 }
 0x7be   :  { %3498 = vmatpush.msra.mxu2 %v8883_v4  ;;  %3521 = vmatpush.msra.mxu3 %v8885_v45  ;;  %v5705_v4 = vld [vmem:[%s10933_s9 + $0x5f8] sm:$0xff]  ;;  %v5671_v45 = vld [vmem:[%s10933_s9 + $0x4e8] sm:$0xff] }
 0x7bf   :  { %3449 = vmatpush.msra.mxu1 %v5705_v4  ;;  %3427 = vmatpush.msra.mxu0 %v5671_v45  ;;  %v5743_v45 = vld [vmem:[%s10933_s9 + $0x6f8] sm:$0xff] }
 0x7c0   :  { %3499 = vmatpush.msra.mxu2 %v8892_v49  ;;  %3522 = vmatpush.msra.mxu3 %v8895_v21  ;;  %v5703_v49 = vld [vmem:[%s10933_s9 + $0x5e8] sm:$0xff]  ;;  %v5669_v21 = vld [vmem:[%s10933_s9 + $0x4d8] sm:$0xff] }
 0x7c1   :  { %3450 = vmatpush.msra.mxu1 %v5703_v49  ;;  %3428 = vmatpush.msra.mxu0 %v5669_v21  ;;  %v5775_v49 = vld [vmem:[%s10933_s9 + $0x7f8] sm:$0xff]  ;;  %v5741_v21 = vld [vmem:[%s10933_s9 + $0x6e8] sm:$0xff] }
 0x7c2   :  { %3500 = vmatpush.msra.mxu2 %v8901_v40  ;;  %3523 = vmatpush.msra.mxu3 %v8903_v18  ;;  %v5701_v40 = vld [vmem:[%s10933_s9 + $0x5d8] sm:$0xff]  ;;  %v5667_v18 = vld [vmem:[%s10933_s9 + $0x4c8] sm:$0xff] }
 0x7c3   :  { %5639 = vmatmul.msk.f32.gmra.mxu0 %vm2839_vm14, %v5637_v0  ;;  %5641 = vmatmul.msk.f32.gmra.mxu1 %vm2839_vm14, %v5637_v0  ;;  %v5768_v0 = vld [vmem:[%s10933_s9 + $0x7c0] sm:$0xff] }
 0x7c4   :  { %3451 = vmatpush.msra.mxu1 %v5701_v40  ;;  %3429 = vmatpush.msra.mxu0 %v5667_v18  ;;  %v5773_v40 = vld [vmem:[%s10933_s9 + $0x7e8] sm:$0xff]  ;;  %v5739_v18 = vld [vmem:[%s10933_s9 + $0x6d8] sm:$0xff] }
 0x7c6   :  { %3452 = vmatpush.msra.mxu1 %v5699_v7  ;;  %3430 = vmatpush.msra.mxu0 %v5665_v17  ;;  %v5771_v7 = vld [vmem:[%s10933_s9 + $0x7d8] sm:$0xff] }
 0x7c8   :  { %3453 = vmatpush.msra.mxu1 %v5697_v51  ;;  %3431 = vmatpush.msra.mxu0 %v5663_v10  ;;  %v5737_v10 = vld [vmem:[%s10933_s9 + $0x6c8] sm:$0xff] }
 0x7ca   :  { %3454 = vmatpush.msra.mxu1 %v5695_v31  ;;  %3432 = vmatpush.msra.mxu0 %v5661_v25  ;;  %v5769_v31 = vld [vmem:[%s10933_s9 + $0x7c8] sm:$0xff]  ;;  %v5706_v25 = vld [vmem:[%s10932_s8 + $0x30] sm:$0xff] }
 0x7cc   :  { %3455 = vmatpush.msra.mxu1 %v5693_v15  ;;  %3433 = vmatpush.msra.mxu0 %v5659_v52  ;;  %v5707_v15 = vld [vmem:[%s10932_s8 + $0x38] sm:$0xff]  ;;  %v5734_v52 = vld [vmem:[%s10933_s9 + $0x6b0] sm:$0xff] }
 0x7ce   :  { %3456 = vmatpush.msra.mxu1 %v5691_v6  ;;  %3434 = vmatpush.msra.mxu0 %v5657_v29  ;;  %v5766_v6 = vld [vmem:[%s10933_s9 + $0x7b0] sm:$0xff]  ;;  %v5735_v29 = vld [vmem:[%s10933_s9 + $0x6b8] sm:$0xff] }
 0x7d0   :  { %3457 = vmatpush.msra.mxu1 %v5689_v57  ;;  %3435 = vmatpush.msra.mxu0 %v5655_v43  ;;  %v5767_v57 = vld [vmem:[%s10933_s9 + $0x7b8] sm:$0xff]  ;;  %v5732_v43 = vld [vmem:[%s10933_s9 + $0x6a0] sm:$0xff] }
 0x7d2   :  { %3458 = vmatpush.msra.mxu1 %v5687_v56  ;;  %3436 = vmatpush.msra.mxu0 %v5653_v38  ;;  %v5764_v56 = vld [vmem:[%s10933_s9 + $0x7a0] sm:$0xff]  ;;  %v5733_v38 = vld [vmem:[%s10933_s9 + $0x6a8] sm:$0xff] }
 0x7d4   :  { %3459 = vmatpush.msra.mxu1 %v5685_v11  ;;  %3437 = vmatpush.msra.mxu0 %v5651_v60  ;;  %v5765_v11 = vld [vmem:[%s10933_s9 + $0x7a8] sm:$0xff]  ;;  %v5730_v60 = vld [vmem:[%s10933_s9 + $0x690] sm:$0xff] }
 0x7d6   :  { %3460 = vmatpush.msra.mxu1 %v5683_v50  ;;  %3438 = vmatpush.msra.mxu0 %v5649_v14  ;;  %v5762_v50 = vld [vmem:[%s10933_s9 + $0x790] sm:$0xff]  ;;  %v5731_v14 = vld [vmem:[%s10933_s9 + $0x698] sm:$0xff] }
 0x7d8   :  { %3461 = vmatpush.msra.mxu1 %v5681_v19  ;;  %3439 = vmatpush.msra.mxu0 %v5647_v1  ;;  %v5763_v19 = vld [vmem:[%s10933_s9 + $0x798] sm:$0xff]  ;;  %v5728_v1 = vld [vmem:[%s10933_s9 + $0x680] sm:$0xff] }
 0x7da   :  { %3462 = vmatpush.msra.mxu1 %v5679_v33  ;;  %3440 = vmatpush.msra.mxu0 %v5645_v36  ;;  %v5760_v33 = vld [vmem:[%s10933_s9 + $0x780] sm:$0xff]  ;;  %v5729_v36 = vld [vmem:[%s10933_s9 + $0x688] sm:$0xff] }
 0x7dc   :  { %3463 = vmatpush.msra.mxu1 %v5677_v30  ;;  %3441 = vmatpush.msra.mxu0 %v5643_v23  ;;  %v5761_v30 = vld [vmem:[%s10933_s9 + $0x788] sm:$0xff]  ;;  %v5759_v23 = vld [vmem:[%s10933_s9 + $0x778] sm:$0xff] }
 0x7de   :  { %3464 = vmatpush.msra.mxu1 %v5675_v27  ;;  %3596 = vmatpush.msrb.mxu0 %v5742_v41  ;;  %v5724_v27 = vld [vmem:[%s10933_s9 + $0x660] sm:$0xff] }
 0x7df   :  { %v5748_v41 = vld [vmem:[%s10933_s9 + $0x720] sm:$0xff] }
 0x7e0   :  { %3619 = vmatpush.msrb.mxu1 %v5774_v44  ;;  %3597 = vmatpush.msrb.mxu0 %v5740_v55  ;;  %v5717_v44 = vld [vmem:[%s10933_s9 + $0x628] sm:$0xff]  ;;  %v5714_v55 = vld [vmem:[%s10933_s9 + $0x610] sm:$0xff] }
 0x7e2   :  { %3620 = vmatpush.msrb.mxu1 %v5772_v3  ;;  %3598 = vmatpush.msrb.mxu0 %v5738_v39  ;;  %v5746_v3 = vld [vmem:[%s10933_s9 + $0x710] sm:$0xff]  ;;  %v5715_v39 = vld [vmem:[%s10933_s9 + $0x618] sm:$0xff] }
 0x7e4   :  { %3621 = vmatpush.msrb.mxu1 %v5770_v22  ;;  %3599 = vmatpush.msrb.mxu0 %v5736_v62  ;;  %v5747_v22 = vld [vmem:[%s10933_s9 + $0x718] sm:$0xff]  ;;  %v5712_v62 = vld [vmem:[%s10933_s9 + $0x600] sm:$0xff] }
 0x7e6   :  { %3622 = vmatpush.msrb.mxu1 %v5768_v0  ;;  %3600 = vmatpush.msrb.mxu0 %v5734_v52  ;;  %v5744_v0 = vld [vmem:[%s10933_s9 + $0x700] sm:$0xff] }
 0x7e8   :  { %3623 = vmatpush.msrb.mxu1 %v5766_v6  ;;  %3601 = vmatpush.msrb.mxu0 %v5732_v43  ;;  %v3755_v43 = vld [vmem:[%s10934_s10 + $0xf8] sm:$0xff] }
 0x7ea   :  { %3624 = vmatpush.msrb.mxu1 %v5764_v56  ;;  %3602 = vmatpush.msrb.mxu0 %v5730_v60  ;;  %v3735_v56 = vld [vmem:[%s10934_s10 + $0x58] sm:$0xff]  ;;  %v3753_v60 = vld [vmem:[%s10934_s10 + $0xe8] sm:$0xff] }
 0x7ec   :  { %3625 = vmatpush.msrb.mxu1 %v5762_v50  ;;  %3603 = vmatpush.msrb.mxu0 %v5728_v1  ;;  %v3733_v50 = vld [vmem:[%s10934_s10 + $0x48] sm:$0xff]  ;;  %v3751_v1 = vld [vmem:[%s10934_s10 + $0xd8] sm:$0xff] }
 0x7ee   :  { %3626 = vmatpush.msrb.mxu1 %v5760_v33 }
 0x816   :  { %v3093_v58 = vpop.f32.mrf.mxu0  ;;  %v3116_v54 = vpop.f32.mrf.mxu1 }
 0x817   :  { %v3117_v53 = vadd.f32 %v3116_v54, %v3093_v58  ;;  %v5726_v58 = vld [vmem:[%s10933_s9 + $0x670] sm:$0xff] }
 0x818   :  { %v5758_v54 = vld [vmem:[%s10933_s9 + $0x770] sm:$0xff]  ;;  %3604 = vmatpush.msrb.mxu0 %v5726_v58 }
 0x819   :  { %3627 = vmatpush.msrb.mxu1 %v5758_v54  ;;  %v3750_v58 = vld [vmem:[%s10934_s10 + $0xd0] sm:$0xff] }
 0x81a   :  { %3605 = vmatpush.msrb.mxu0 %v5724_v27  ;;  %v3730_v54 = vld [vmem:[%s10934_s10 + $0x30] sm:$0xff]  ;;  %v3748_v27 = vld [vmem:[%s10934_s10 + $0xc0] sm:$0xff] }
 0x81d   :  { %v3139_v8 = vpop.f32.mrf.mxu2  ;;  %v3162_v5 = vpop.f32.mrf.mxu3 }
 0x81e   :  { %v3163_v59 = vadd.f32 %v3162_v5, %v3139_v8  ;;  %v5756_v8 = vld [vmem:[%s10933_s9 + $0x760] sm:$0xff]  ;;  %v5725_v5 = vld [vmem:[%s10933_s9 + $0x668] sm:$0xff] }
 0x81f   :  { %3628 = vmatpush.msrb.mxu1 %v5756_v8  ;;  %v3728_v8 = vld [vmem:[%s10934_s10 + $0x20] sm:$0xff] }
 0x820   :  { %v3096_v9 = vpop.f32.mrf.mxu0  ;;  %v3119_v37 = vpop.f32.mrf.mxu1 }
 0x821   :  { %v3120_v20 = vadd.f32 %v3119_v37, %v3096_v9  ;;  %v5722_v9 = vld [vmem:[%s10933_s9 + $0x650] sm:$0xff] }
 0x822   :  { %v5754_v37 = vld [vmem:[%s10933_s9 + $0x750] sm:$0xff]  ;;  %3606 = vmatpush.msrb.mxu0 %v5722_v9 }
 0x823   :  { %3629 = vmatpush.msrb.mxu1 %v5754_v37  ;;  %v3746_v9 = vld [vmem:[%s10934_s10 + $0xb0] sm:$0xff] }
 0x828   :  { %v3185_v42 = vpop.f32.mrf.mxu0  ;;  %v3208_v16 = vpop.f32.mrf.mxu1 }
 0x829   :  { %v3186_v32 = vadd.f32 %v3185_v42, %v3117_v53  ;;  %v3142_v13 = vpop.f32.mrf.mxu2  ;;  %v3165_v2 = vpop.f32.mrf.mxu3  ;;  %v5727_v53 = vld [vmem:[%s10933_s9 + $0x678] sm:$0xff] }
 0x82a   :  { %v9531_v48 = vadd.f32 %v3165_v2, %v3142_v13  ;;  %v5755_v42 = vld [vmem:[%s10933_s9 + $0x758] sm:$0xff]  ;;  %v5721_v13 = vld [vmem:[%s10933_s9 + $0x648] sm:$0xff] }
 0x82b   :  { %v9533_v46 = vadd.f32 %v3208_v16, %v3186_v32  ;;  %v5720_v16 = vld [vmem:[%s10933_s9 + $0x640] sm:$0xff]  ;;  %v5753_v2 = vld [vmem:[%s10933_s9 + $0x748] sm:$0xff] }
 0x82c   :  { %v5752_v32 = vld [vmem:[%s10933_s9 + $0x740] sm:$0xff]  ;;  %3607 = vmatpush.msrb.mxu0 %v5720_v16  ;;  %v3745_v16 = vld [vmem:[%s10934_s10 + $0xa8] sm:$0xff] }
 0x82d   :  { %3630 = vmatpush.msrb.mxu1 %v5752_v32  ;;  %v3725_v32 = vld [vmem:[%s10934_s10 + $0x8] sm:$0xff] }
 0x830   :  { %v3188_v35 = vpop.f32.mrf.mxu0  ;;  %v3211_v61 = vpop.f32.mrf.mxu1 }
 0x831   :  { %v3189_v26 = vadd.f32 %v3188_v35, %v3120_v20  ;;  %v3231_v63 = vpop.f32.mrf.mxu2  ;;  %v3254_v12 = vpop.f32.mrf.mxu3  ;;  %v5723_v20 = vld [vmem:[%s10933_s9 + $0x658] sm:$0xff]  ;;  %v5718_v35 = vld [vmem:[%s10933_s9 + $0x630] sm:$0xff] }
 0x832   :  { %v3232_v24 = vadd.f32 %v3231_v63, %v3163_v59  ;;  %v5757_v59 = vld [vmem:[%s10933_s9 + $0x768] sm:$0xff]  ;;  %v5751_v63 = vld [vmem:[%s10933_s9 + $0x738] sm:$0xff]  ;;  %3608 = vmatpush.msrb.mxu0 %v5718_v35 }
 0x833   :  { %v9541_v28 = vadd.f32 %v3211_v61, %v3189_v26  ;;  %v5750_v61 = vld [vmem:[%s10933_s9 + $0x730] sm:$0xff]  ;;  %v5719_v26 = vld [vmem:[%s10933_s9 + $0x638] sm:$0xff] }
 0x834   :  { %v9549_v34 = vadd.f32 %v3254_v12, %v3232_v24  ;;  %v5716_v24 = vld [vmem:[%s10933_s9 + $0x620] sm:$0xff]  ;;  %3631 = vmatpush.msrb.mxu1 %v5750_v61  ;;  %v5749_v12 = vld [vmem:[%s10933_s9 + $0x728] sm:$0xff]  ;;  %v3743_v35 = vld [vmem:[%s10934_s10 + $0x98] sm:$0xff] }
 0x835   :  { %3609 = vmatpush.msrb.mxu0 %v5716_v24  ;;  %v3742_v61 = vld [vmem:[%s10934_s10 + $0x90] sm:$0xff] }
 0x836   :  { %3632 = vmatpush.msrb.mxu1 %v5748_v41  ;;  %v3740_v41 = vld [vmem:[%s10934_s10 + $0x80] sm:$0xff] }
 0x837   :  { %3610 = vmatpush.msrb.mxu0 %v5714_v55 }
 0x838   :  { %v3286_v47 = vpop.f32.mrf.mxu0  ;;  %v3309_v4 = vpop.f32.mrf.mxu1  ;;  %3633 = vmatpush.msrb.mxu1 %v5746_v3 }
 0x839   :  { %3396 = vmatmul.f32.vlgmr.msrb.gmra.mxu2 %v3286_v47  ;;  %3419 = vmatmul.f32.vlgmr.msrb.gmra.mxu3 %v3309_v4 }
 0x83a   :  { %3442 = vmatmul.f32.vlgmr.msra.gmra.mxu0 %v3286_v47  ;;  %3465 = vmatmul.f32.vlgmr.msra.gmra.mxu1 %v3309_v4  ;;  %v5713_v47 = vld [vmem:[%s10933_s9 + $0x608] sm:$0xff] }
 0x83b   :  { %3642 = vmatpush.msrb.mxu2 %v5743_v45  ;;  %3665 = vmatpush.msrb.mxu3 %v5775_v49  ;;  %v5745_v4 = vld [vmem:[%s10933_s9 + $0x708] sm:$0xff]  ;;  %v9741_v45 = vpop.f32.mrf.mxu2  ;;  %v9743_v49 = vpop.f32.mrf.mxu3 }
 0x83c   :  { %3611 = vmatpush.msrb.mxu0 %v5712_v62  ;;  %3634 = vmatpush.msrb.mxu1 %v5744_v0  ;;  %v3235_v0 = vadd.f32 %v9741_v45, %v9531_v48 }
 0x83d   :  { %3643 = vmatpush.msrb.mxu2 %v5741_v21  ;;  %3666 = vmatpush.msrb.mxu3 %v5773_v40  ;;  %v3739_v21 = vld [vmem:[%s10934_s10 + $0x78] sm:$0xff]  ;;  %v3738_v40 = vld [vmem:[%s10934_s10 + $0x70] sm:$0xff] }
 0x83e   :  { %3756 = vmatpush.msra.mxu0 %v3739_v21  ;;  %3776 = vmatpush.msra.mxu1 %v3755_v43 }
 0x83f   :  { %3644 = vmatpush.msrb.mxu2 %v5739_v18  ;;  %3667 = vmatpush.msrb.mxu3 %v5771_v7 }
 0x840   :  { %v3289_v17 = vpop.f32.mrf.mxu0  ;;  %v3312_v51 = vpop.f32.mrf.mxu1  ;;  %3757 = vmatpush.msra.mxu0 %v3738_v40 }
 0x841   :  { %3399 = vmatmul.f32.gmra.mxu2 %v3289_v17  ;;  %3422 = vmatmul.f32.gmra.mxu3 %v3312_v51 }
 0x842   :  { %3445 = vmatmul.f32.gmra.mxu0 %v3289_v17  ;;  %3468 = vmatmul.f32.gmra.mxu1 %v3312_v51 }
 0x843   :  { %3645 = vmatpush.msrb.mxu2 %v5737_v10  ;;  %3668 = vmatpush.msrb.mxu3 %v5769_v31 }
 0x845   :  { %3646 = vmatpush.msrb.mxu2 %v5735_v29  ;;  %3669 = vmatpush.msrb.mxu3 %v5767_v57 }
 0x847   :  { %3647 = vmatpush.msrb.mxu2 %v5733_v38  ;;  %3670 = vmatpush.msrb.mxu3 %v5765_v11  ;;  %v3754_v38 = vld [vmem:[%s10934_s10 + $0xf0] sm:$0xff] }
 0x848   :  { %3777 = vmatpush.msra.mxu1 %v3754_v38  ;;  %v3734_v11 = vld [vmem:[%s10934_s10 + $0x50] sm:$0xff] }
 0x849   :  { %5708 = vmatmul.msk.f32.vlgmr.msra.gmra.mxu2 %vm2839_vm14, %v5706_v25  ;;  %5710 = vmatmul.msk.f32.vlgmr.msra.gmra.mxu3 %vm2839_vm14, %v5706_v25 }
 0x84a   :  { %3648 = vmatpush.msrb.mxu2 %v5731_v14  ;;  %3671 = vmatpush.msrb.mxu3 %v5763_v19  ;;  %v3752_v14 = vld [vmem:[%s10934_s10 + $0xe0] sm:$0xff] }
 0x84b   :  { %3778 = vmatpush.msra.mxu1 %v3753_v60  ;;  %v3732_v19 = vld [vmem:[%s10934_s10 + $0x40] sm:$0xff] }
 0x84c   :  { %3649 = vmatpush.msrb.mxu2 %v5729_v36  ;;  %3672 = vmatpush.msrb.mxu3 %v5761_v30  ;;  %v3731_v30 = vld [vmem:[%s10934_s10 + $0x38] sm:$0xff] }
 0x84d   :  { %3779 = vmatpush.msra.mxu1 %v3752_v14 }
 0x84e   :  { %3650 = vmatpush.msrb.mxu2 %v5727_v53  ;;  %3673 = vmatpush.msrb.mxu3 %v5759_v23  ;;  %v3749_v53 = vld [vmem:[%s10934_s10 + $0xc8] sm:$0xff] }
 0x84f   :  { %3780 = vmatpush.msra.mxu1 %v3751_v1  ;;  %v3729_v23 = vld [vmem:[%s10934_s10 + $0x28] sm:$0xff] }
 0x850   :  { %3651 = vmatpush.msrb.mxu2 %v5725_v5  ;;  %3674 = vmatpush.msrb.mxu3 %v5757_v59  ;;  %v3747_v5 = vld [vmem:[%s10934_s10 + $0xb8] sm:$0xff] }
 0x851   :  { %5709 = vmatmul.msk.f32.gmra.mxu2 %vm2839_vm14, %v5707_v15  ;;  %5711 = vmatmul.msk.f32.gmra.mxu3 %vm2839_vm14, %v5707_v15  ;;  %v3727_v59 = vld [vmem:[%s10934_s10 + $0x18] sm:$0xff] }
 0x852   :  { %3652 = vmatpush.msrb.mxu2 %v5723_v20  ;;  %3675 = vmatpush.msrb.mxu3 %v5755_v42  ;;  %v3726_v42 = vld [vmem:[%s10934_s10 + $0x10] sm:$0xff] }
 0x853   :  { %3781 = vmatpush.msra.mxu1 %v3750_v58 }
 0x854   :  { %3653 = vmatpush.msrb.mxu2 %v5721_v13  ;;  %3676 = vmatpush.msrb.mxu3 %v5753_v2  ;;  %v3744_v13 = vld [vmem:[%s10934_s10 + $0xa0] sm:$0xff] }
 0x855   :  { %3782 = vmatpush.msra.mxu1 %v3749_v53  ;;  %v3724_v2 = vld [vmem:[%s10934_s10] sm:$0xff] }
 0x856   :  { %3654 = vmatpush.msrb.mxu2 %v5719_v26  ;;  %3677 = vmatpush.msrb.mxu3 %v5751_v63  ;;  %v3741_v26 = vld [vmem:[%s10934_s10 + $0x88] sm:$0xff] }
 0x857   :  { %3783 = vmatpush.msra.mxu1 %v3748_v27 }
 0x858   :  { %3655 = vmatpush.msrb.mxu2 %v5717_v44  ;;  %3678 = vmatpush.msrb.mxu3 %v5749_v12 }
 0x859   :  { %3784 = vmatpush.msra.mxu1 %v3747_v5 }
 0x85a   :  { %3656 = vmatpush.msrb.mxu2 %v5715_v39  ;;  %3679 = vmatpush.msrb.mxu3 %v5747_v22 }
 0x85b   :  { %3785 = vmatpush.msra.mxu1 %v3746_v9 }
 0x85c   :  { %3657 = vmatpush.msrb.mxu2 %v5713_v47  ;;  %3680 = vmatpush.msrb.mxu3 %v5745_v4 }
 0x85d   :  { %3786 = vmatpush.msra.mxu1 %v3745_v16 }
 0x85e   :  { %3797 = vmatpush.msra.mxu2 %v3739_v21  ;;  %3817 = vmatpush.msra.mxu3 %v3755_v43 }
 0x85f   :  { %3787 = vmatpush.msra.mxu1 %v3744_v13 }
 0x860   :  { %3798 = vmatpush.msra.mxu2 %v3738_v40  ;;  %3818 = vmatpush.msra.mxu3 %v3754_v38 }
 0x861   :  { %3788 = vmatpush.msra.mxu1 %v3743_v35 }
 0x862   :  { %3819 = vmatpush.msra.mxu3 %v3753_v60 }
 0x863   :  { %3789 = vmatpush.msra.mxu1 %v3742_v61 }
 0x864   :  { %3820 = vmatpush.msra.mxu3 %v3752_v14 }
 0x865   :  { %3790 = vmatpush.msra.mxu1 %v3741_v26 }
 0x866   :  { %3821 = vmatpush.msra.mxu3 %v3751_v1 }
 0x867   :  { %3791 = vmatpush.msra.mxu1 %v3740_v41 }
 0x868   :  { %3822 = vmatpush.msra.mxu3 %v3750_v58 }
 0x86a   :  { %3823 = vmatpush.msra.mxu3 %v3749_v53 }
 0x86c   :  { %3824 = vmatpush.msra.mxu3 %v3748_v27 }
 0x86e   :  { %3825 = vmatpush.msra.mxu3 %v3747_v5 }
 0x870   :  { %3826 = vmatpush.msra.mxu3 %v3746_v9 }
 0x872   :  { %3827 = vmatpush.msra.mxu3 %v3745_v16 }
 0x874   :  { %3828 = vmatpush.msra.mxu3 %v3744_v13  ;;  %v3861_v13 = vld [vmem:[%s10935_s11 + $0x28] sm:$0xff] }
 0x876   :  { %3829 = vmatpush.msra.mxu3 %v3743_v35 }
 0x878   :  { %3830 = vmatpush.msra.mxu3 %v3742_v61  ;;  %v3858_v61 = vld [vmem:[%s10935_s11 + $0x10] sm:$0xff] }
 0x87a   :  { %3831 = vmatpush.msra.mxu3 %v3741_v26  ;;  %v3859_v26 = vld [vmem:[%s10935_s11 + $0x18] sm:$0xff] }
 0x87c   :  { %3832 = vmatpush.msra.mxu3 %v3740_v41 }
 0x8b7   :  { %v9790_v33 = vpop.f32.mrf.mxu0  ;;  %v9792_v36 = vpop.f32.mrf.mxu1 }
 0x8b8   :  { %v3467_v47 = vadd.f32 %v9792_v36, %v9790_v33 }
 0x8ba   :  { %v3473_v48 = vadd.f32 %v3467_v47, %v9549_v34 }
 0x8bc   :  { %v3397_v18 = vpop.f32.mrf.mxu2  ;;  %v3420_v7 = vpop.f32.mrf.mxu3 }
 0x8bd   :  { %v3421_v17 = vadd.f32 %v3420_v7, %v3397_v18 }
 0x8bf   :  { %v9752_v51 = vadd.f32 %v3421_v17, %v9533_v46  ;;  %v3737_v46 = vld [vmem:[%s10934_s10 + $0x68] sm:$0xff]  ;;  %v3446_v37 = vpop.f32.mrf.mxu0  ;;  %v3469_v20 = vpop.f32.mrf.mxu1 }
 0x8c0   :  { %3758 = vmatpush.msra.mxu0 %v3737_v46  ;;  %3799 = vmatpush.msra.mxu2 %v3737_v46  ;;  %v3470_v21 = vadd.f32 %v3469_v20, %v3446_v37  ;;  %v3862_v20 = vld [vmem:[%s10935_s11 + $0x30] sm:$0xff] }
 0x8c4   :  { %v3400_v10 = vpop.f32.mrf.mxu2  ;;  %v3423_v31 = vpop.f32.mrf.mxu3 }
 0x8c5   :  { %v3424_v25 = vadd.f32 %v3423_v31, %v3400_v10 }
 0x8c7   :  { %v9755_v15 = vadd.f32 %v3424_v25, %v9541_v28  ;;  %v3736_v28 = vld [vmem:[%s10934_s10 + $0x60] sm:$0xff] }
 0x8c8   :  { %3759 = vmatpush.msra.mxu0 %v3736_v28  ;;  %3800 = vmatpush.msra.mxu2 %v3736_v28 }
 0x8ca   :  { %3760 = vmatpush.msra.mxu0 %v3735_v56  ;;  %3801 = vmatpush.msra.mxu2 %v3735_v56 }
 0x8cc   :  { %v3502_v52 = vpop.f32.mrf.mxu2  ;;  %v3525_v6 = vpop.f32.mrf.mxu3  ;;  %3761 = vmatpush.msra.mxu0 %v3734_v11  ;;  %3802 = vmatpush.msra.mxu2 %v3734_v11 }
 0x8cd   :  { %3612 = vmatmul.f32.vlgmr.msrb.gmra.mxu0 %v3502_v52  ;;  %3635 = vmatmul.f32.vlgmr.msrb.gmra.mxu1 %v3525_v6 }
 0x8ce   :  { %3658 = vmatmul.f32.vlgmr.msrb.gmra.mxu2 %v3502_v52  ;;  %3681 = vmatmul.f32.vlgmr.msrb.gmra.mxu3 %v3525_v6 }
 0x8cf   :  { %3762 = vmatpush.msra.mxu0 %v3733_v50  ;;  %3803 = vmatpush.msra.mxu2 %v3733_v50 }
 0x8d1   :  { %3763 = vmatpush.msra.mxu0 %v3732_v19  ;;  %3804 = vmatpush.msra.mxu2 %v3732_v19 }
 0x8d3   :  { %3764 = vmatpush.msra.mxu0 %v3731_v30  ;;  %3805 = vmatpush.msra.mxu2 %v3731_v30 }
 0x8d4   :  { %v3505_v29 = vpop.f32.mrf.mxu2  ;;  %v3528_v57 = vpop.f32.mrf.mxu3 }
 0x8d5   :  { %3615 = vmatmul.f32.gmra.mxu0 %v3505_v29  ;;  %3638 = vmatmul.f32.gmra.mxu1 %v3528_v57 }
 0x8d6   :  { %3661 = vmatmul.f32.gmra.mxu2 %v3505_v29  ;;  %3684 = vmatmul.f32.gmra.mxu3 %v3528_v57 }
 0x8d7   :  { %3765 = vmatpush.msra.mxu0 %v3730_v54  ;;  %3806 = vmatpush.msra.mxu2 %v3730_v54 }
 0x8d9   :  { %3766 = vmatpush.msra.mxu0 %v3729_v23  ;;  %3807 = vmatpush.msra.mxu2 %v3729_v23 }
 0x8db   :  { %3767 = vmatpush.msra.mxu0 %v3728_v8  ;;  %3808 = vmatpush.msra.mxu2 %v3728_v8 }
 0x8dd   :  { %3768 = vmatpush.msra.mxu0 %v3727_v59  ;;  %3809 = vmatpush.msra.mxu2 %v3727_v59 }
 0x8df   :  { %3769 = vmatpush.msra.mxu0 %v3726_v42  ;;  %3810 = vmatpush.msra.mxu2 %v3726_v42  ;;  %v3863_v42 = vld [vmem:[%s10935_s11 + $0x38] sm:$0xff] }
 0x8e0   :  { %3899 = vmatpush.msrb.mxu1 %v3863_v42  ;;  %3942 = vmatpush.msrb.mxu3 %v3863_v42  ;;  %v5811_v42 = vld [vmem:[%s10938_s14 + $0x2d0] sm:$0xff] }
 0x8e1   :  { %3770 = vmatpush.msra.mxu0 %v3725_v32  ;;  %3811 = vmatpush.msra.mxu2 %v3725_v32  ;;  %v3860_v32 = vld [vmem:[%s10935_s11 + $0x20] sm:$0xff] }
 0x8e2   :  { %3900 = vmatpush.msrb.mxu1 %v3861_v13  ;;  %3943 = vmatpush.msrb.mxu3 %v3861_v13  ;;  %v5844_v13 = vld [vmem:[%s10938_s14 + $0x3d8] sm:$0xff] }
 0x8e3   :  { %3771 = vmatpush.msra.mxu0 %v3724_v2  ;;  %3812 = vmatpush.msra.mxu2 %v3724_v2 }
 0x8e4   :  { %3901 = vmatpush.msrb.mxu1 %v3859_v26  ;;  %3944 = vmatpush.msrb.mxu3 %v3859_v26  ;;  %v5842_v26 = vld [vmem:[%s10938_s14 + $0x3c8] sm:$0xff] }
 0x8e5   :  { %3879 = vmatpush.msrb.mxu0 %v3862_v20  ;;  %3922 = vmatpush.msrb.mxu2 %v3862_v20  ;;  %v5846_v20 = vld [vmem:[%s10938_s14 + $0x3e8] sm:$0xff] }
 0x8e7   :  { %3880 = vmatpush.msrb.mxu0 %v3860_v32  ;;  %3923 = vmatpush.msrb.mxu2 %v3860_v32  ;;  %v5812_v32 = vld [vmem:[%s10938_s14 + $0x2d8] sm:$0xff] }
 0x8e9   :  { %3881 = vmatpush.msrb.mxu0 %v3858_v61  ;;  %3924 = vmatpush.msrb.mxu2 %v3858_v61  ;;  %v5810_v61 = vld [vmem:[%s10938_s14 + $0x2c8] sm:$0xff] }
 0x94a   :  { %v3613_v63 = vpop.f32.mrf.mxu0  ;;  %v3636_v24 = vpop.f32.mrf.mxu1 }
 0x94b   :  { %v3637_v44 = vadd.f32 %v3636_v24, %v3613_v63  ;;  %v3856_v63 = vld [vmem:[%s10935_s11] sm:$0xff]  ;;  %v3857_v24 = vld [vmem:[%s10935_s11 + $0x8] sm:$0xff] }
 0x94c   :  { %3882 = vmatpush.msrb.mxu0 %v3856_v63  ;;  %3902 = vmatpush.msrb.mxu1 %v3857_v24 }
 0x94d   :  { %v9852_v22 = vadd.f32 %v3637_v44, %v9752_v51  ;;  %v3258_v51 = vadd.f32 %v9743_v49, %v3235_v0  ;;  %3925 = vmatpush.msrb.mxu2 %v3856_v63  ;;  %3945 = vmatpush.msrb.mxu3 %v3857_v24  ;;  %v5807_v63 = vld [vmem:[%s10938_s14 + $0x2b0] sm:$0xff] }
 0x94e   :  { %v5839_v24 = vld [vmem:[%s10938_s14 + $0x3b0] sm:$0xff] }
 0x94f   :  { %v3706_v18 = vmul.f32 %v9852_v22, %v9852_v22 }
 0x951   :  { %v3659_v12 = vpop.f32.mrf.mxu2  ;;  %v3682_v55 = vpop.f32.mrf.mxu3 }
 0x952   :  { %v3616_v3 = vpop.f32.mrf.mxu0  ;;  %v3639_v39 = vpop.f32.mrf.mxu1  ;;  %v3683_v40 = vadd.f32 %v3682_v55, %v3659_v12 }
 0x953   :  { %v3640_v62 = vadd.f32 %v3639_v39, %v3616_v3 }
 0x954   :  { %v9869_v52 = vadd.f32 %v3683_v40, %v3473_v48 }
 0x955   :  { %v9859_v4 = vadd.f32 %v3640_v62, %v9755_v15  ;;  %v3475_v15 = vadd.f32 %v3470_v21, %v3258_v51 }
 0x956   :  { %v3707_v56 = vmul.f32 %v9869_v52, %v9869_v52 }
 0x957   :  { %v3692_v7 = vadd.f32 %v9859_v4, %v9852_v22  ;;  %v3708_v17 = vmul.f32 %v9859_v4, %v9859_v4 }
 0x959   :  { %v3693_v45 = vrot.slane %v3692_v7, 4  ;;  %v3710_v10 = vadd.f32 %v3708_v17, %v3706_v18  ;;  %v3662_v31 = vpop.f32.mrf.mxu2  ;;  %v3685_v25 = vpop.f32.mrf.mxu3  ;;  %v3840_v17 = vld [vmem:[%s10936_s12] sm:$0x1] }
 0x95a   :  { %v3686_v6 = vadd.f32 %v3685_v25, %v3662_v31 }
 0x95b   :  { %v3694_v29 = vadd.f32 %v3693_v45, %v3692_v7  ;;  %v3711_v57 = vrot.slane %v3710_v10, 4 }
 0x95c   :  { %v9871_v46 = vadd.f32 %v3686_v6, %v3475_v15 }
 0x95d   :  { %v3695_v28 = vrot.slane %v3694_v29, 2  ;;  %v3712_v43 = vadd.f32 %v3711_v57, %v3710_v10  ;;  %v3841_v10 = vld [vmem:[%s10936_s12 + $0x1] sm:$0x1] }
 0x95e   :  { %v3699_v34 = vadd.f32 %v9871_v46, %v9869_v52  ;;  %v3709_v49 = vmul.f32 %v9871_v46, %v9871_v46 }
 0x95f   :  { %v3696_v38 = vadd.f32 %v3695_v28, %v3694_v29  ;;  %v3713_v11 = vrot.slane %v3712_v43, 2 }
 0x960   :  { %v3700_v60 = vrot.slane %v3699_v34, 4  ;;  %v3717_v50 = vadd.f32 %v3709_v49, %v3707_v56 }
 0x961   :  { %v3697_v14 = vrot.slane %v3696_v38, 1  ;;  %v3714_v19 = vadd.f32 %v3713_v11, %v3712_v43 }
 0x962   :  { %v3701_v1 = vadd.f32 %v3700_v60, %v3699_v34  ;;  %v3718_v33 = vrot.slane %v3717_v50, 4 }
 0x963   :  { %v3698_v36 = vadd.f32 %v3697_v14, %v3696_v38  ;;  %v3715_v30 = vrot.slane %v3714_v19, 1 }
 0x964   :  { %v3702_v58 = vrot.slane %v3701_v1, 2  ;;  %v3719_v54 = vadd.f32 %v3718_v33, %v3717_v50 }
 0x965   :  { %3772 = vmatmul.f32.vlgmr.msra.gmra.mxu0 %v3698_v36  ;;  %v3716_v53 = vadd.f32 %v3715_v30, %v3714_v19 }
 0x966   :  { %v3703_v23 = vadd.f32 %v3702_v58, %v3701_v1  ;;  %v3720_v27 = vrot.slane %v3719_v54, 2 }
 0x967   :  { %3813 = vmatmul.f32.vlgmr.msra.gmra.mxu2 %v3716_v53  ;;  %v3974_v53 = vld [vmem:[%s10937_s13] sm:$0xff] }
 0x968   :  { %v3704_v8 = vrot.slane %v3703_v23, 1  ;;  %v3721_v5 = vadd.f32 %v3720_v27, %v3719_v54  ;;  %v5847_v27 = vld [vmem:[%s10938_s14 + $0x3f0] sm:$0xff] }
 0x96a   :  { %v3705_v59 = vadd.f32 %v3704_v8, %v3703_v23  ;;  %v3722_v9 = vrot.slane %v3721_v5, 1  ;;  %v5815_v23 = vld [vmem:[%s10938_s14 + $0x2f0] sm:$0xff]  ;;  %v5816_v8 = vld [vmem:[%s10938_s14 + $0x2f8] sm:$0xff] }
 0x96c   :  { %3792 = vmatmul.f32.vlgmr.msra.gmra.mxu1 %v3705_v59  ;;  %v3723_v37 = vadd.f32 %v3722_v9, %v3721_v5  ;;  %v5848_v5 = vld [vmem:[%s10938_s14 + $0x3f8] sm:$0xff]  ;;  %v5813_v59 = vld [vmem:[%s10938_s14 + $0x2e0] sm:$0xff] }
 0x96d   :  { %v5845_v9 = vld [vmem:[%s10938_s14 + $0x3e0] sm:$0xff] }
 0x96e   :  { %3833 = vmatmul.f32.vlgmr.msra.gmra.mxu3 %v3723_v37  ;;  %v5814_v37 = vld [vmem:[%s10938_s14 + $0x2e8] sm:$0xff] }
 0x9e2   :  { %v3773_v2 = vpop.f32.mrf.mxu0 }
 0x9e9   :  { %v3793_v16 = vpop.f32.mrf.mxu1 }
 0x9ea   :  { %v3794_v35 = vadd.f32 %v3793_v16, %v3773_v2  ;;  %v3814_v44 = vpop.f32.mrf.mxu2  ;;  %v5843_v16 = vld [vmem:[%s10938_s14 + $0x3d0] sm:$0xff]  ;;  %v5809_v2 = vld [vmem:[%s10938_s14 + $0x2c0] sm:$0xff] }
 0x9ec   :  { %v3796_v41 = vmul.f32 0.0078125, %v3794_v35  ;;  %v5841_v35 = vld [vmem:[%s10938_s14 + $0x3c0] sm:$0xff] }
 0x9ee   :  { %v3838_v3 = vmul.f32 %v3796_v41, %v3796_v41 }
 0x9f1   :  { %v3834_v12 = vpop.f32.mrf.mxu3 }
 0x9f2   :  { %v3835_v55 = vadd.f32 %v3834_v12, %v3814_v44  ;;  %v5840_v44 = vld [vmem:[%s10938_s14 + $0x3b8] sm:$0xff]  ;;  %v5805_v12 = vld [vmem:[%s10938_s14 + $0x2a0] sm:$0xff] }
 0x9f4   :  { %v3837_v39 = vmul.f32 0.0078125, %v3835_v55  ;;  %v5837_v55 = vld [vmem:[%s10938_s14 + $0x3a0] sm:$0xff] }
 0x9f6   :  { %v3839_v62 = vsub.f32 %v3837_v39, %v3838_v3  ;;  %v5806_v3 = vld [vmem:[%s10938_s14 + $0x2a8] sm:$0xff] }
 0x9f7   :  { %v5838_v39 = vld [vmem:[%s10938_s14 + $0x3a8] sm:$0xff] }
 0x9f8   :  { %v3842_v0 = vadd.f32 1e-05, %v3839_v62  ;;  %v5803_v62 = vld [vmem:[%s10938_s14 + $0x290] sm:$0xff] }
 0x9fa   :  { %5991 = vrsqrt.f32 %v3842_v0  ;;  %vm3849_vm1 = vweird.f32 %v3842_v0 }
 0xa00   :  { %v5992_v47 = vpop.eup %5991 }
 0xa01   :  { %v3844_v21 = vmul.f32 %v5992_v47, %v3842_v0  ;;  %vm3850_vm15 = vweird.f32 %v5992_v47  ;;  %v5835_v0 = vld [vmem:[%s10938_s14 + $0x390] sm:$0xff] }
 0xa02   :  { %vm3851_vm2 = vmor %vm3849_vm1, %vm3850_vm15  ;;  %vm5084_vm1 = vcmask 1024  }
 0xa03   :  { %v3845_v40 = vmul.f32 %v5992_v47, %v3844_v21  ;;  %v5836_v21 = vld [vmem:[%s10938_s14 + $0x398] sm:$0xff] }
 0xa05   :  { %v3846_v18 = vmul.f32 0.5, %v3845_v40  ;;  %v5801_v40 = vld [vmem:[%s10938_s14 + $0x280] sm:$0xff] }
 0xa07   :  { %v3847_v7 = vsub.f32 1.5, %v3846_v18  ;;  %v5833_v18 = vld [vmem:[%s10938_s14 + $0x380] sm:$0xff] }
 0xa09   :  { %v3848_v51 = vmul.f32 %v5992_v47, %v3847_v7  ;;  %v5802_v7 = vld [vmem:[%s10938_s14 + $0x288] sm:$0xff] }
 0xa0b   :  { %v3852_v48 = vsel %vm3851_vm2, %v5992_v47, %v3848_v51  ;;  %v5804_v47 = vld [vmem:[%s10938_s14 + $0x298] sm:$0xff]  ;;  %v5799_v51 = vld [vmem:[%s10938_s14 + $0x270] sm:$0xff] }
 0xa0c   :  { %v3853_v45 = vmul.f32 %v3852_v48, %v3840_v17  ;;  %v5834_v17 = vld [vmem:[%s10938_s14 + $0x388] sm:$0xff]  ;;  %v5831_v48 = vld [vmem:[%s10938_s14 + $0x370] sm:$0xff] }
 0xa0e   :  { %v3854_v31 = vmul.f32 %v3853_v45, %v3796_v41  ;;  %5776 = vmatmul.msk.f32.vlgmr.msrb.gmra.mxu0 %vm2839_vm14, %v3853_v45  ;;  %5777 = vmatmul.msk.f32.vlgmr.msrb.gmra.mxu1 %vm2839_vm14, %v3853_v45  ;;  %v5808_v41 = vld [vmem:[%s10938_s14 + $0x2b8] sm:$0xff] }
 0xa0f   :  { %v5800_v45 = vld [vmem:[%s10938_s14 + $0x278] sm:$0xff] }
 0xa10   :  { %v3855_v25 = vsub.f32 %v3841_v10, %v3854_v31  ;;  %v5832_v10 = vld [vmem:[%s10938_s14 + $0x378] sm:$0xff]  ;;  %v5797_v31 = vld [vmem:[%s10938_s14 + $0x260] sm:$0xff] }
 0xa12   :  { %5778 = vmatmul.msk.f32.vlgmr.msrb.gmra.mxu2 %vm2839_vm14, %v3855_v25  ;;  %5779 = vmatmul.msk.f32.vlgmr.msrb.gmra.mxu3 %vm2839_vm14, %v3855_v25  ;;  %v5829_v25 = vld [vmem:[%s10938_s14 + $0x360] sm:$0xff] }
 0xa8b   :  { %v3884_v15 = vpop.f32.mrf.mxu0  ;;  %v3904_v6 = vpop.f32.mrf.mxu1 }
 0xa8c   :  { %v3950_v29 = vperm.slane %v3884_v15, 0  ;;  %v3951_v57 = vperm.slane %v3904_v6, 0  ;;  %v5798_v15 = vld [vmem:[%s10938_s14 + $0x268] sm:$0xff] }
 0xa8d   :  { %v5830_v6 = vld [vmem:[%s10938_s14 + $0x368] sm:$0xff] }
 0xa8e   :  { %v3952_v28 = vmul.f32 %v3950_v29, %v9852_v22  ;;  %v3954_v43 = vmul.f32 %v3950_v29, %v9859_v4  ;;  %v3953_v49 = vmul.f32 %v3951_v57, %v9869_v52  ;;  %v3955_v38 = vmul.f32 %v3951_v57, %v9871_v46  ;;  %v5782_v46 = vld [vmem:[%s10937_s13 + $0x8] sm:$0xff]  ;;  %v5795_v29 = vld [vmem:[%s10938_s14 + $0x250] sm:$0xff] }
 0xa8f   :  { %v5827_v57 = vld [vmem:[%s10938_s14 + $0x350] sm:$0xff] }
 0xa95   :  { %v3927_v56 = vpop.f32.mrf.mxu2  ;;  %v3947_v34 = vpop.f32.mrf.mxu3 }
 0xa96   :  { %v3956_v11 = vperm.slane %v3927_v56, 0  ;;  %v3957_v60 = vperm.slane %v3947_v34, 0  ;;  %v5793_v56 = vld [vmem:[%s10938_s14 + $0x240] sm:$0xff] }
 0xa97   :  { %v5825_v34 = vld [vmem:[%s10938_s14 + $0x340] sm:$0xff] }
 0xa98   :  { %v3958_v50 = vadd.f32 %v3956_v11, %v3952_v28  ;;  %v3960_v14 = vadd.f32 %v3956_v11, %v3954_v43  ;;  %v3959_v19 = vadd.f32 %v3957_v60, %v3953_v49  ;;  %v3961_v1 = vadd.f32 %v3957_v60, %v3955_v38  ;;  %v5796_v28 = vld [vmem:[%s10938_s14 + $0x258] sm:$0xff]  ;;  %v5794_v49 = vld [vmem:[%s10938_s14 + $0x248] sm:$0xff]  ;;  %v5791_v11 = vld [vmem:[%s10938_s14 + $0x230] sm:$0xff] }
 0xa99   :  { %v5828_v43 = vld [vmem:[%s10938_s14 + $0x358] sm:$0xff]  ;;  %v5826_v38 = vld [vmem:[%s10938_s14 + $0x348] sm:$0xff]  ;;  %v5823_v60 = vld [vmem:[%s10938_s14 + $0x330] sm:$0xff] }
 0xa9a   :  { %v3966_v33 = vmul.f32 0.2, %v3958_v50  ;;  %v3968_v36 = vmul.f32 0.2, %v3960_v14  ;;  %v3967_v30 = vmul.f32 0.2, %v3959_v19 }
 0xa9b   :  { %v3969_v58 = vmul.f32 0.2, %v3961_v1  ;;  %vm3964_vm3 = vcmp.ge.f32.partialorder %v3960_v14, 0.0  ;;  %vm3965_vm4 = vcmp.ge.f32.partialorder %v3961_v1, 0.0  ;;  %vm3962_vm6 = vcmp.ge.f32.partialorder %v3958_v50, 0.0 }
 0xa9c   :  { %v9917_v22 = vsel %vm3964_vm3, %v3960_v14, %v3968_v36  ;;  %vm3963_vm7 = vcmp.ge.f32.partialorder %v3959_v19, 0.0  ;;  %v9925_v52 = vsel %vm3962_vm6, %v3958_v50, %v3966_v33  ;;  %v5792_v50 = vld [vmem:[%s10938_s14 + $0x238] sm:$0xff]  ;;  %v5790_v33 = vld [vmem:[%s10938_s14 + $0x228] sm:$0xff] }
 0xa9d   :  { %3992 = vmatpush.msra.mxu0 %v9917_v22  ;;  %v9920_v4 = vsel %vm3965_vm4, %v3961_v1, %v3969_v58  ;;  %4101 = vmatpush.msra.mxu2 %v9917_v22  ;;  %v9931_v54 = vsel %vm3963_vm7, %v3959_v19, %v3967_v30  ;;  %v5824_v14 = vld [vmem:[%s10938_s14 + $0x338] sm:$0xff]  ;;  %v5789_v19 = vld [vmem:[%s10938_s14 + $0x220] sm:$0xff]  ;;  %v5822_v36 = vld [vmem:[%s10938_s14 + $0x328] sm:$0xff] }
 0xa9e   :  { %4012 = vmatpush.msra.mxu1 %v9920_v4  ;;  %4121 = vmatpush.msra.mxu3 %v9920_v4  ;;  %v5821_v1 = vld [vmem:[%s10938_s14 + $0x320] sm:$0xff]  ;;  %v5787_v30 = vld [vmem:[%s10938_s14 + $0x210] sm:$0xff] }
 0xa9f   :  { %3993 = vmatpush.msra.mxu0 %v9925_v52  ;;  %4102 = vmatpush.msra.mxu2 %v9925_v52  ;;  %v5819_v58 = vld [vmem:[%s10938_s14 + $0x310] sm:$0xff] }
 0xaa0   :  { %4013 = vmatpush.msra.mxu1 %v9931_v54  ;;  %4122 = vmatpush.msra.mxu3 %v9931_v54 }
 0xaa1   :  { %5783 = vmatmul.msk.f32.vlgmr.msra.gmra.mxu2 %vm2706_vm5, %v5782_v46  ;;  %5784 = vmatmul.msk.f32.vlgmr.msra.gmra.mxu3 %vm2706_vm5, %v5782_v46  ;;  %v5788_v46 = vld [vmem:[%s10938_s14 + $0x218] sm:$0xff] }
 0xaa2   :  { %5780 = vmatmul.msk.f32.vlgmr.msra.gmra.mxu0 %vm2706_vm5, %v3974_v53  ;;  %5781 = vmatmul.msk.f32.vlgmr.msra.gmra.mxu1 %vm2706_vm5, %v3974_v53  ;;  %v5820_v53 = vld [vmem:[%s10938_s14 + $0x318] sm:$0xff] }
 0xaa3   :  { %4192 = vmatpush.msrb.mxu0 %v5815_v23  ;;  %4212 = vmatpush.msrb.mxu1 %v5847_v27  ;;  %v5785_v23 = vld [vmem:[%s10938_s14 + $0x200] sm:$0xff] }
 0xaa4   :  { %4232 = vmatpush.msrb.mxu2 %v5816_v8  ;;  %4252 = vmatpush.msrb.mxu3 %v5848_v5  ;;  %v5817_v27 = vld [vmem:[%s10938_s14 + $0x300] sm:$0xff]  ;;  %v5786_v8 = vld [vmem:[%s10938_s14 + $0x208] sm:$0xff] }
 0xaa5   :  { %4193 = vmatpush.msrb.mxu0 %v5813_v59  ;;  %4213 = vmatpush.msrb.mxu1 %v5845_v9  ;;  %v5818_v5 = vld [vmem:[%s10938_s14 + $0x308] sm:$0xff]  ;;  %v4048_v59 = vld [vmem:[%s10938_s14 + $0xf0] sm:$0xff] }
 0xaa6   :  { %4233 = vmatpush.msrb.mxu2 %v5814_v37  ;;  %4253 = vmatpush.msrb.mxu3 %v5846_v20  ;;  %v4080_v9 = vld [vmem:[%s10938_s14 + $0x1f0] sm:$0xff]  ;;  %v4049_v37 = vld [vmem:[%s10938_s14 + $0xf8] sm:$0xff] }
 0xaa7   :  { %4194 = vmatpush.msrb.mxu0 %v5811_v42  ;;  %4214 = vmatpush.msrb.mxu1 %v5843_v16  ;;  %v4081_v20 = vld [vmem:[%s10938_s14 + $0x1f8] sm:$0xff]  ;;  %v4046_v42 = vld [vmem:[%s10938_s14 + $0xe0] sm:$0xff] }
 0xaa8   :  { %4234 = vmatpush.msrb.mxu2 %v5812_v32  ;;  %4254 = vmatpush.msrb.mxu3 %v5844_v13  ;;  %v4078_v16 = vld [vmem:[%s10938_s14 + $0x1e0] sm:$0xff]  ;;  %v4047_v32 = vld [vmem:[%s10938_s14 + $0xe8] sm:$0xff] }
 0xaa9   :  { %4195 = vmatpush.msrb.mxu0 %v5809_v2  ;;  %4215 = vmatpush.msrb.mxu1 %v5841_v35  ;;  %v4079_v13 = vld [vmem:[%s10938_s14 + $0x1e8] sm:$0xff]  ;;  %v4044_v2 = vld [vmem:[%s10938_s14 + $0xd0] sm:$0xff] }
 0xaaa   :  { %4235 = vmatpush.msrb.mxu2 %v5810_v61  ;;  %4255 = vmatpush.msrb.mxu3 %v5842_v26  ;;  %v4076_v35 = vld [vmem:[%s10938_s14 + $0x1d0] sm:$0xff]  ;;  %v4045_v61 = vld [vmem:[%s10938_s14 + $0xd8] sm:$0xff] }
 0xaab   :  { %4196 = vmatpush.msrb.mxu0 %v5807_v63  ;;  %4216 = vmatpush.msrb.mxu1 %v5839_v24  ;;  %v4077_v26 = vld [vmem:[%s10938_s14 + $0x1d8] sm:$0xff]  ;;  %v4042_v63 = vld [vmem:[%s10938_s14 + $0xc0] sm:$0xff] }
 0xaac   :  { %4236 = vmatpush.msrb.mxu2 %v5808_v41  ;;  %4256 = vmatpush.msrb.mxu3 %v5840_v44  ;;  %v4074_v24 = vld [vmem:[%s10938_s14 + $0x1c0] sm:$0xff]  ;;  %v4043_v41 = vld [vmem:[%s10938_s14 + $0xc8] sm:$0xff] }
 0xaad   :  { %4197 = vmatpush.msrb.mxu0 %v5805_v12  ;;  %4217 = vmatpush.msrb.mxu1 %v5837_v55  ;;  %v4075_v44 = vld [vmem:[%s10938_s14 + $0x1c8] sm:$0xff]  ;;  %v4040_v12 = vld [vmem:[%s10938_s14 + $0xb0] sm:$0xff] }
 0xaae   :  { %4237 = vmatpush.msrb.mxu2 %v5806_v3  ;;  %4257 = vmatpush.msrb.mxu3 %v5838_v39  ;;  %v4072_v55 = vld [vmem:[%s10938_s14 + $0x1b0] sm:$0xff]  ;;  %v4041_v3 = vld [vmem:[%s10938_s14 + $0xb8] sm:$0xff] }
 0xaaf   :  { %4198 = vmatpush.msrb.mxu0 %v5803_v62  ;;  %4218 = vmatpush.msrb.mxu1 %v5835_v0  ;;  %v4073_v39 = vld [vmem:[%s10938_s14 + $0x1b8] sm:$0xff]  ;;  %v4038_v62 = vld [vmem:[%s10938_s14 + $0xa0] sm:$0xff] }
 0xab0   :  { %4238 = vmatpush.msrb.mxu2 %v5804_v47  ;;  %4258 = vmatpush.msrb.mxu3 %v5836_v21  ;;  %v4070_v0 = vld [vmem:[%s10938_s14 + $0x1a0] sm:$0xff]  ;;  %v4039_v47 = vld [vmem:[%s10938_s14 + $0xa8] sm:$0xff] }
 0xab1   :  { %4199 = vmatpush.msrb.mxu0 %v5801_v40  ;;  %4219 = vmatpush.msrb.mxu1 %v5833_v18  ;;  %v4071_v21 = vld [vmem:[%s10938_s14 + $0x1a8] sm:$0xff]  ;;  %v4036_v40 = vld [vmem:[%s10938_s14 + $0x90] sm:$0xff] }
 0xab2   :  { %4239 = vmatpush.msrb.mxu2 %v5802_v7  ;;  %4259 = vmatpush.msrb.mxu3 %v5834_v17  ;;  %v4068_v18 = vld [vmem:[%s10938_s14 + $0x190] sm:$0xff]  ;;  %v4037_v7 = vld [vmem:[%s10938_s14 + $0x98] sm:$0xff] }
 0xab3   :  { %4200 = vmatpush.msrb.mxu0 %v5799_v51  ;;  %4220 = vmatpush.msrb.mxu1 %v5831_v48  ;;  %v4069_v17 = vld [vmem:[%s10938_s14 + $0x198] sm:$0xff]  ;;  %v4034_v51 = vld [vmem:[%s10938_s14 + $0x80] sm:$0xff] }
 0xab4   :  { %4240 = vmatpush.msrb.mxu2 %v5800_v45  ;;  %4260 = vmatpush.msrb.mxu3 %v5832_v10  ;;  %v4066_v48 = vld [vmem:[%s10938_s14 + $0x180] sm:$0xff]  ;;  %v4035_v45 = vld [vmem:[%s10938_s14 + $0x88] sm:$0xff] }
 0xab5   :  { %4201 = vmatpush.msrb.mxu0 %v5797_v31  ;;  %4221 = vmatpush.msrb.mxu1 %v5829_v25  ;;  %v4067_v10 = vld [vmem:[%s10938_s14 + $0x188] sm:$0xff]  ;;  %v4032_v31 = vld [vmem:[%s10938_s14 + $0x70] sm:$0xff] }
 0xab6   :  { %4241 = vmatpush.msrb.mxu2 %v5798_v15  ;;  %4261 = vmatpush.msrb.mxu3 %v5830_v6  ;;  %v4064_v25 = vld [vmem:[%s10938_s14 + $0x170] sm:$0xff]  ;;  %v4033_v15 = vld [vmem:[%s10938_s14 + $0x78] sm:$0xff] }
 0xab7   :  { %4202 = vmatpush.msrb.mxu0 %v5795_v29  ;;  %4222 = vmatpush.msrb.mxu1 %v5827_v57  ;;  %v4065_v6 = vld [vmem:[%s10938_s14 + $0x178] sm:$0xff]  ;;  %v4030_v29 = vld [vmem:[%s10938_s14 + $0x60] sm:$0xff] }
 0xab8   :  { %4242 = vmatpush.msrb.mxu2 %v5796_v28  ;;  %4262 = vmatpush.msrb.mxu3 %v5828_v43  ;;  %v4062_v57 = vld [vmem:[%s10938_s14 + $0x160] sm:$0xff]  ;;  %v4031_v28 = vld [vmem:[%s10938_s14 + $0x68] sm:$0xff] }
 0xab9   :  { %4203 = vmatpush.msrb.mxu0 %v5793_v56  ;;  %4223 = vmatpush.msrb.mxu1 %v5825_v34  ;;  %v4063_v43 = vld [vmem:[%s10938_s14 + $0x168] sm:$0xff]  ;;  %v4028_v56 = vld [vmem:[%s10938_s14 + $0x50] sm:$0xff] }
 0xaba   :  { %4243 = vmatpush.msrb.mxu2 %v5794_v49  ;;  %4263 = vmatpush.msrb.mxu3 %v5826_v38  ;;  %v4060_v34 = vld [vmem:[%s10938_s14 + $0x150] sm:$0xff]  ;;  %v4029_v49 = vld [vmem:[%s10938_s14 + $0x58] sm:$0xff] }
 0xabb   :  { %4204 = vmatpush.msrb.mxu0 %v5791_v11  ;;  %4224 = vmatpush.msrb.mxu1 %v5823_v60  ;;  %v4061_v38 = vld [vmem:[%s10938_s14 + $0x158] sm:$0xff]  ;;  %v4026_v11 = vld [vmem:[%s10938_s14 + $0x40] sm:$0xff] }
 0xabc   :  { %4244 = vmatpush.msrb.mxu2 %v5792_v50  ;;  %4264 = vmatpush.msrb.mxu3 %v5824_v14  ;;  %v4058_v60 = vld [vmem:[%s10938_s14 + $0x140] sm:$0xff]  ;;  %v4027_v50 = vld [vmem:[%s10938_s14 + $0x48] sm:$0xff] }
 0xabd   :  { %4205 = vmatpush.msrb.mxu0 %v5789_v19  ;;  %4225 = vmatpush.msrb.mxu1 %v5821_v1  ;;  %v4059_v14 = vld [vmem:[%s10938_s14 + $0x148] sm:$0xff]  ;;  %v4024_v19 = vld [vmem:[%s10938_s14 + $0x30] sm:$0xff] }
 0xabe   :  { %4245 = vmatpush.msrb.mxu2 %v5790_v33  ;;  %4265 = vmatpush.msrb.mxu3 %v5822_v36  ;;  %v4056_v1 = vld [vmem:[%s10938_s14 + $0x130] sm:$0xff]  ;;  %v4025_v33 = vld [vmem:[%s10938_s14 + $0x38] sm:$0xff] }
 0xabf   :  { %4206 = vmatpush.msrb.mxu0 %v5787_v30  ;;  %4226 = vmatpush.msrb.mxu1 %v5819_v58  ;;  %v4057_v36 = vld [vmem:[%s10938_s14 + $0x138] sm:$0xff]  ;;  %v4022_v30 = vld [vmem:[%s10938_s14 + $0x20] sm:$0xff] }
 0xac0   :  { %4246 = vmatpush.msrb.mxu2 %v5788_v46  ;;  %4266 = vmatpush.msrb.mxu3 %v5820_v53  ;;  %v4054_v58 = vld [vmem:[%s10938_s14 + $0x120] sm:$0xff]  ;;  %v4023_v46 = vld [vmem:[%s10938_s14 + $0x28] sm:$0xff] }
 0xac1   :  { %4207 = vmatpush.msrb.mxu0 %v5785_v23  ;;  %4227 = vmatpush.msrb.mxu1 %v5817_v27  ;;  %v4055_v53 = vld [vmem:[%s10938_s14 + $0x128] sm:$0xff]  ;;  %v4020_v23 = vld [vmem:[%s10938_s14 + $0x10] sm:$0xff] }
 0xac2   :  { %4247 = vmatpush.msrb.mxu2 %v5786_v8  ;;  %4267 = vmatpush.msrb.mxu3 %v5818_v5  ;;  %v4052_v27 = vld [vmem:[%s10938_s14 + $0x110] sm:$0xff]  ;;  %v4021_v8 = vld [vmem:[%s10938_s14 + $0x18] sm:$0xff] }
 0xac3   :  { %4272 = vmatpush.msra.mxu0 %v4048_v59  ;;  %4292 = vmatpush.msra.mxu1 %v4080_v9  ;;  %v4053_v5 = vld [vmem:[%s10938_s14 + $0x118] sm:$0xff]  ;;  %v4018_v59 = vld [vmem:[%s10938_s14] sm:$0xff] }
 0xac4   :  { %4312 = vmatpush.msra.mxu2 %v4049_v37  ;;  %4332 = vmatpush.msra.mxu3 %v4081_v20  ;;  %v4050_v9 = vld [vmem:[%s10938_s14 + $0x100] sm:$0xff]  ;;  %v4019_v37 = vld [vmem:[%s10938_s14 + $0x8] sm:$0xff] }
 0xac5   :  { %4273 = vmatpush.msra.mxu0 %v4046_v42  ;;  %4293 = vmatpush.msra.mxu1 %v4078_v16  ;;  %v4051_v20 = vld [vmem:[%s10938_s14 + $0x108] sm:$0xff] }
 0xac6   :  { %4313 = vmatpush.msra.mxu2 %v4047_v32  ;;  %4333 = vmatpush.msra.mxu3 %v4079_v13  ;;  %v5882_v32 = vld [vmem:[%s10938_s14 + $0x4f0] sm:$0xff] }
 0xac7   :  { %4274 = vmatpush.msra.mxu0 %v4044_v2  ;;  %4294 = vmatpush.msra.mxu1 %v4076_v35  ;;  %v5914_v13 = vld [vmem:[%s10938_s14 + $0x5f0] sm:$0xff]  ;;  %v5880_v2 = vld [vmem:[%s10938_s14 + $0x4e0] sm:$0xff] }
 0xac8   :  { %4314 = vmatpush.msra.mxu2 %v4045_v61  ;;  %4334 = vmatpush.msra.mxu3 %v4077_v26  ;;  %v5912_v35 = vld [vmem:[%s10938_s14 + $0x5e0] sm:$0xff]  ;;  %v5878_v61 = vld [vmem:[%s10938_s14 + $0x4d0] sm:$0xff] }
 0xac9   :  { %4275 = vmatpush.msra.mxu0 %v4042_v63  ;;  %4295 = vmatpush.msra.mxu1 %v4074_v24  ;;  %v5910_v26 = vld [vmem:[%s10938_s14 + $0x5d0] sm:$0xff] }
 0xaca   :  { %4315 = vmatpush.msra.mxu2 %v4043_v41  ;;  %4335 = vmatpush.msra.mxu3 %v4075_v44  ;;  %v5876_v41 = vld [vmem:[%s10938_s14 + $0x4c0] sm:$0xff] }
 0xacb   :  { %4276 = vmatpush.msra.mxu0 %v4040_v12  ;;  %4296 = vmatpush.msra.mxu1 %v4072_v55  ;;  %v5908_v44 = vld [vmem:[%s10938_s14 + $0x5c0] sm:$0xff]  ;;  %v5874_v12 = vld [vmem:[%s10938_s14 + $0x4b0] sm:$0xff] }
 0xacc   :  { %4316 = vmatpush.msra.mxu2 %v4041_v3  ;;  %4336 = vmatpush.msra.mxu3 %v4073_v39  ;;  %v5906_v55 = vld [vmem:[%s10938_s14 + $0x5b0] sm:$0xff]  ;;  %v5883_v3 = vld [vmem:[%s10938_s14 + $0x4f8] sm:$0xff] }
 0xacd   :  { %4277 = vmatpush.msra.mxu0 %v4038_v62  ;;  %4297 = vmatpush.msra.mxu1 %v4070_v0  ;;  %v5915_v39 = vld [vmem:[%s10938_s14 + $0x5f8] sm:$0xff]  ;;  %v5872_v62 = vld [vmem:[%s10938_s14 + $0x4a0] sm:$0xff] }
 0xace   :  { %4317 = vmatpush.msra.mxu2 %v4039_v47  ;;  %4337 = vmatpush.msra.mxu3 %v4071_v21  ;;  %v5904_v0 = vld [vmem:[%s10938_s14 + $0x5a0] sm:$0xff]  ;;  %v5881_v47 = vld [vmem:[%s10938_s14 + $0x4e8] sm:$0xff] }
 0xacf   :  { %4278 = vmatpush.msra.mxu0 %v4036_v40  ;;  %4298 = vmatpush.msra.mxu1 %v4068_v18  ;;  %v5913_v21 = vld [vmem:[%s10938_s14 + $0x5e8] sm:$0xff]  ;;  %v5870_v40 = vld [vmem:[%s10938_s14 + $0x490] sm:$0xff] }
 0xad0   :  { %4318 = vmatpush.msra.mxu2 %v4037_v7  ;;  %4338 = vmatpush.msra.mxu3 %v4069_v17  ;;  %v5902_v18 = vld [vmem:[%s10938_s14 + $0x590] sm:$0xff]  ;;  %v5868_v17 = vld [vmem:[%s10938_s14 + $0x480] sm:$0xff] }
 0xad1   :  { %4279 = vmatpush.msra.mxu0 %v4034_v51  ;;  %4299 = vmatpush.msra.mxu1 %v4066_v48  ;;  %v5849_v7 = vld [vmem:[%s10937_s13 + $0x10] sm:$0xff]  ;;  %v5900_v51 = vld [vmem:[%s10938_s14 + $0x580] sm:$0xff]  ;;  %v5879_v48 = vld [vmem:[%s10938_s14 + $0x4d8] sm:$0xff] }
 0xad2   :  { %4319 = vmatpush.msra.mxu2 %v4035_v45  ;;  %4339 = vmatpush.msra.mxu3 %v4067_v10  ;;  %v5911_v45 = vld [vmem:[%s10938_s14 + $0x5d8] sm:$0xff]  ;;  %v5866_v10 = vld [vmem:[%s10938_s14 + $0x470] sm:$0xff] }
 0xad3   :  { %4280 = vmatpush.msra.mxu0 %v4032_v31  ;;  %4300 = vmatpush.msra.mxu1 %v4064_v25  ;;  %v5898_v31 = vld [vmem:[%s10938_s14 + $0x570] sm:$0xff]  ;;  %v5877_v25 = vld [vmem:[%s10938_s14 + $0x4c8] sm:$0xff] }
 0xad4   :  { %4320 = vmatpush.msra.mxu2 %v4033_v15  ;;  %4340 = vmatpush.msra.mxu3 %v4065_v6  ;;  %v5909_v15 = vld [vmem:[%s10938_s14 + $0x5c8] sm:$0xff]  ;;  %v5864_v6 = vld [vmem:[%s10938_s14 + $0x460] sm:$0xff] }
 0xad5   :  { %4281 = vmatpush.msra.mxu0 %v4030_v29  ;;  %4301 = vmatpush.msra.mxu1 %v4062_v57  ;;  %v5896_v29 = vld [vmem:[%s10938_s14 + $0x560] sm:$0xff]  ;;  %v5875_v57 = vld [vmem:[%s10938_s14 + $0x4b8] sm:$0xff] }
 0xad6   :  { %4321 = vmatpush.msra.mxu2 %v4031_v28  ;;  %4341 = vmatpush.msra.mxu3 %v4063_v43  ;;  %v5907_v28 = vld [vmem:[%s10938_s14 + $0x5b8] sm:$0xff]  ;;  %v5862_v43 = vld [vmem:[%s10938_s14 + $0x450] sm:$0xff] }
 0xad7   :  { %4282 = vmatpush.msra.mxu0 %v4028_v56  ;;  %4302 = vmatpush.msra.mxu1 %v4060_v34  ;;  %v5894_v56 = vld [vmem:[%s10938_s14 + $0x550] sm:$0xff]  ;;  %v5873_v34 = vld [vmem:[%s10938_s14 + $0x4a8] sm:$0xff] }
 0xad8   :  { %4322 = vmatpush.msra.mxu2 %v4029_v49  ;;  %4342 = vmatpush.msra.mxu3 %v4061_v38  ;;  %v5905_v49 = vld [vmem:[%s10938_s14 + $0x5a8] sm:$0xff]  ;;  %v5860_v38 = vld [vmem:[%s10938_s14 + $0x440] sm:$0xff] }
 0xad9   :  { %4283 = vmatpush.msra.mxu0 %v4026_v11  ;;  %4303 = vmatpush.msra.mxu1 %v4058_v60  ;;  %v5892_v11 = vld [vmem:[%s10938_s14 + $0x540] sm:$0xff]  ;;  %v5871_v60 = vld [vmem:[%s10938_s14 + $0x498] sm:$0xff] }
 0xada   :  { %4323 = vmatpush.msra.mxu2 %v4027_v50  ;;  %4343 = vmatpush.msra.mxu3 %v4059_v14  ;;  %v5903_v50 = vld [vmem:[%s10938_s14 + $0x598] sm:$0xff]  ;;  %v5858_v14 = vld [vmem:[%s10938_s14 + $0x430] sm:$0xff] }
 0xadb   :  { %4284 = vmatpush.msra.mxu0 %v4024_v19  ;;  %4304 = vmatpush.msra.mxu1 %v4056_v1  ;;  %v5890_v19 = vld [vmem:[%s10938_s14 + $0x530] sm:$0xff]  ;;  %v5856_v1 = vld [vmem:[%s10938_s14 + $0x420] sm:$0xff] }
 0xadc   :  { %4324 = vmatpush.msra.mxu2 %v4025_v33  ;;  %4344 = vmatpush.msra.mxu3 %v4057_v36  ;;  %v5888_v33 = vld [vmem:[%s10938_s14 + $0x520] sm:$0xff]  ;;  %v5854_v36 = vld [vmem:[%s10938_s14 + $0x410] sm:$0xff] }
 0xadd   :  { %4285 = vmatpush.msra.mxu0 %v4022_v30  ;;  %4305 = vmatpush.msra.mxu1 %v4054_v58  ;;  %v5886_v30 = vld [vmem:[%s10938_s14 + $0x510] sm:$0xff]  ;;  %v5852_v58 = vld [vmem:[%s10938_s14 + $0x400] sm:$0xff] }
 0xade   :  { %4325 = vmatpush.msra.mxu2 %v4023_v46  ;;  %4345 = vmatpush.msra.mxu3 %v4055_v53  ;;  %v5884_v46 = vld [vmem:[%s10938_s14 + $0x500] sm:$0xff]  ;;  %v5869_v53 = vld [vmem:[%s10938_s14 + $0x488] sm:$0xff] }
 0xadf   :  { %4286 = vmatpush.msra.mxu0 %v4020_v23  ;;  %4306 = vmatpush.msra.mxu1 %v4052_v27  ;;  %v5901_v23 = vld [vmem:[%s10938_s14 + $0x588] sm:$0xff]  ;;  %v5867_v27 = vld [vmem:[%s10938_s14 + $0x478] sm:$0xff] }
 0xae0   :  { %4326 = vmatpush.msra.mxu2 %v4021_v8  ;;  %4346 = vmatpush.msra.mxu3 %v4053_v5  ;;  %v5895_v8 = vld [vmem:[%s10938_s14 + $0x558] sm:$0xff]  ;;  %v5861_v5 = vld [vmem:[%s10938_s14 + $0x448] sm:$0xff] }
 0xae1   :  { %4287 = vmatpush.msra.mxu0 %v4018_v59  ;;  %4307 = vmatpush.msra.mxu1 %v4050_v9  ;;  %v5893_v59 = vld [vmem:[%s10938_s14 + $0x548] sm:$0xff]  ;;  %v5859_v9 = vld [vmem:[%s10938_s14 + $0x438] sm:$0xff] }
 0xae2   :  { %4327 = vmatpush.msra.mxu2 %v4019_v37  ;;  %4347 = vmatpush.msra.mxu3 %v4051_v20  ;;  %v5891_v37 = vld [vmem:[%s10938_s14 + $0x538] sm:$0xff]  ;;  %v5857_v20 = vld [vmem:[%s10938_s14 + $0x428] sm:$0xff] }
 0xb1f   :  { %v3995_v63 = vpop.f32.mrf.mxu0  ;;  %v4015_v24 = vpop.f32.mrf.mxu1 }
 0xb24   :  { %v4104_v42 = vpop.f32.mrf.mxu2  ;;  %v4124_v16 = vpop.f32.mrf.mxu3 }
 0xb25   :  { %4208 = vmatmul.f32.vlgmr.msrb.gmra.mxu0 %v4104_v42  ;;  %4228 = vmatmul.f32.vlgmr.msrb.gmra.mxu1 %v4124_v16 }
 0xb26   :  { %4248 = vmatmul.f32.vlgmr.msrb.gmra.mxu2 %v4104_v42  ;;  %4268 = vmatmul.f32.vlgmr.msrb.gmra.mxu3 %v4124_v16  ;;  %v5889_v42 = vld [vmem:[%s10938_s14 + $0x528] sm:$0xff]  ;;  %v5855_v16 = vld [vmem:[%s10938_s14 + $0x418] sm:$0xff] }
 0xb27   :  { %4371 = vmatpush.msrb.mxu0 %v9917_v22  ;;  %4391 = vmatpush.msrb.mxu1 %v9920_v4 }
 0xb28   :  { %4462 = vmatpush.msrb.mxu2 %v5882_v32  ;;  %4482 = vmatpush.msrb.mxu3 %v5914_v13  ;;  %v5887_v32 = vld [vmem:[%s10938_s14 + $0x518] sm:$0xff]  ;;  %v5853_v13 = vld [vmem:[%s10938_s14 + $0x408] sm:$0xff] }
 0xb29   :  { %4372 = vmatpush.msrb.mxu0 %v9925_v52  ;;  %4392 = vmatpush.msrb.mxu1 %v9931_v54 }
 0xb2a   :  { %4463 = vmatpush.msrb.mxu2 %v5880_v2  ;;  %4483 = vmatpush.msrb.mxu3 %v5912_v35  ;;  %v5885_v2 = vld [vmem:[%s10938_s14 + $0x508] sm:$0xff]  ;;  %v5949_v35 = vld [vmem:[%s10938_s14 + $0x6f0] sm:$0xff] }
 0xb2c   :  { %4464 = vmatpush.msrb.mxu2 %v5878_v61  ;;  %4484 = vmatpush.msrb.mxu3 %v5910_v26  ;;  %v5981_v61 = vld [vmem:[%s10938_s14 + $0x7f0] sm:$0xff]  ;;  %v5947_v26 = vld [vmem:[%s10938_s14 + $0x6e0] sm:$0xff] }
 0xb2d   :  { %4288 = vmatmul.f32.vlgmr.msra.gmra.mxu0 %v3995_v63  ;;  %4308 = vmatmul.f32.vlgmr.msra.gmra.mxu1 %v4015_v24 }
 0xb2e   :  { %4465 = vmatpush.msrb.mxu2 %v5876_v41  ;;  %4485 = vmatpush.msrb.mxu3 %v5908_v44  ;;  %v5977_v41 = vld [vmem:[%s10938_s14 + $0x7d0] sm:$0xff]  ;;  %v5943_v44 = vld [vmem:[%s10938_s14 + $0x6c0] sm:$0xff] }
 0xb2f   :  { %4328 = vmatmul.f32.vlgmr.msra.gmra.mxu2 %v3995_v63  ;;  %4348 = vmatmul.f32.vlgmr.msra.gmra.mxu3 %v4015_v24  ;;  %v5979_v63 = vld [vmem:[%s10938_s14 + $0x7e0] sm:$0xff]  ;;  %v5945_v24 = vld [vmem:[%s10938_s14 + $0x6d0] sm:$0xff] }
 0xb30   :  { %4466 = vmatpush.msrb.mxu2 %v5874_v12  ;;  %4486 = vmatpush.msrb.mxu3 %v5906_v55  ;;  %v5975_v12 = vld [vmem:[%s10938_s14 + $0x7c0] sm:$0xff]  ;;  %v5941_v55 = vld [vmem:[%s10938_s14 + $0x6b0] sm:$0xff] }
 0xb31   :  { %4502 = vmatpush.msra.mxu0 %v5883_v3  ;;  %4522 = vmatpush.msra.mxu1 %v5915_v39  ;;  %v5973_v3 = vld [vmem:[%s10938_s14 + $0x7b0] sm:$0xff] }
 0xb32   :  { %4467 = vmatpush.msrb.mxu2 %v5872_v62  ;;  %4487 = vmatpush.msrb.mxu3 %v5904_v0 }
 0xb33   :  { %4503 = vmatpush.msra.mxu0 %v5881_v47  ;;  %4523 = vmatpush.msra.mxu1 %v5913_v21  ;;  %v5939_v47 = vld [vmem:[%s10938_s14 + $0x6a0] sm:$0xff] }
 0xb34   :  { %4468 = vmatpush.msrb.mxu2 %v5870_v40  ;;  %4488 = vmatpush.msrb.mxu3 %v5902_v18  ;;  %v5971_v21 = vld [vmem:[%s10938_s14 + $0x7a0] sm:$0xff]  ;;  %v5937_v40 = vld [vmem:[%s10938_s14 + $0x690] sm:$0xff] }
 0xb35   :  { %5850 = vmatmul.msk.f32.vlgmr.msrb.gmra.mxu0 %vm2706_vm5, %v5849_v7  ;;  %5851 = vmatmul.msk.f32.vlgmr.msrb.gmra.mxu1 %vm2706_vm5, %v5849_v7  ;;  %v5969_v18 = vld [vmem:[%s10938_s14 + $0x790] sm:$0xff]  ;;  %v5935_v7 = vld [vmem:[%s10938_s14 + $0x680] sm:$0xff] }
 0xb36   :  { %4469 = vmatpush.msrb.mxu2 %v5868_v17  ;;  %4489 = vmatpush.msrb.mxu3 %v5900_v51  ;;  %v5967_v17 = vld [vmem:[%s10938_s14 + $0x780] sm:$0xff] }
 0xb37   :  { %4504 = vmatpush.msra.mxu0 %v5879_v48  ;;  %4524 = vmatpush.msra.mxu1 %v5911_v45 }
 0xb38   :  { %4470 = vmatpush.msrb.mxu2 %v5866_v10  ;;  %4490 = vmatpush.msrb.mxu3 %v5898_v31 }
 0xb39   :  { %4505 = vmatpush.msra.mxu0 %v5877_v25  ;;  %4525 = vmatpush.msra.mxu1 %v5909_v15 }
 0xb3a   :  { %4471 = vmatpush.msrb.mxu2 %v5864_v6  ;;  %4491 = vmatpush.msrb.mxu3 %v5896_v29 }
 0xb3b   :  { %4506 = vmatpush.msra.mxu0 %v5875_v57  ;;  %4526 = vmatpush.msra.mxu1 %v5907_v28  ;;  %v5950_v57 = vld [vmem:[%s10938_s14 + $0x6f8] sm:$0xff] }
 0xb3c   :  { %4472 = vmatpush.msrb.mxu2 %v5862_v43  ;;  %4492 = vmatpush.msrb.mxu3 %v5894_v56  ;;  %v5982_v28 = vld [vmem:[%s10938_s14 + $0x7f8] sm:$0xff]  ;;  %v5948_v43 = vld [vmem:[%s10938_s14 + $0x6e8] sm:$0xff] }
 0xb3d   :  { %4507 = vmatpush.msra.mxu0 %v5873_v34  ;;  %4527 = vmatpush.msra.mxu1 %v5905_v49  ;;  %v5980_v56 = vld [vmem:[%s10938_s14 + $0x7e8] sm:$0xff]  ;;  %v5946_v34 = vld [vmem:[%s10938_s14 + $0x6d8] sm:$0xff] }
 0xb3e   :  { %4473 = vmatpush.msrb.mxu2 %v5860_v38  ;;  %4493 = vmatpush.msrb.mxu3 %v5892_v11  ;;  %v5978_v49 = vld [vmem:[%s10938_s14 + $0x7d8] sm:$0xff]  ;;  %v5944_v11 = vld [vmem:[%s10938_s14 + $0x6c8] sm:$0xff] }
 0xb3f   :  { %4508 = vmatpush.msra.mxu0 %v5871_v60  ;;  %4528 = vmatpush.msra.mxu1 %v5903_v50  ;;  %v5916_v38 = vld [vmem:[%s10937_s13 + $0x18] sm:$0xff]  ;;  %v5976_v60 = vld [vmem:[%s10938_s14 + $0x7c8] sm:$0xff] }
 0xb40   :  { %4474 = vmatpush.msrb.mxu2 %v5858_v14  ;;  %4494 = vmatpush.msrb.mxu3 %v5890_v19  ;;  %v5942_v50 = vld [vmem:[%s10938_s14 + $0x6b8] sm:$0xff]  ;;  %v5940_v19 = vld [vmem:[%s10938_s14 + $0x6a8] sm:$0xff] }
 0xb41   :  { %4509 = vmatpush.msra.mxu0 %v5869_v53  ;;  %4529 = vmatpush.msra.mxu1 %v5901_v23  ;;  %v5974_v14 = vld [vmem:[%s10938_s14 + $0x7b8] sm:$0xff]  ;;  %v5965_v53 = vld [vmem:[%s10938_s14 + $0x770] sm:$0xff] }
 0xb42   :  { %4475 = vmatpush.msrb.mxu2 %v5856_v1  ;;  %4495 = vmatpush.msrb.mxu3 %v5888_v33  ;;  %v5972_v1 = vld [vmem:[%s10938_s14 + $0x7a8] sm:$0xff]  ;;  %v5938_v33 = vld [vmem:[%s10938_s14 + $0x698] sm:$0xff] }
 0xb43   :  { %4510 = vmatpush.msra.mxu0 %v5867_v27  ;;  %v5934_v23 = vld [vmem:[%s10938_s14 + $0x678] sm:$0xff] }
 0xb44   :  { %4476 = vmatpush.msrb.mxu2 %v5854_v36  ;;  %4496 = vmatpush.msrb.mxu3 %v5886_v30  ;;  %v5970_v36 = vld [vmem:[%s10938_s14 + $0x798] sm:$0xff]  ;;  %v5936_v30 = vld [vmem:[%s10938_s14 + $0x688] sm:$0xff] }
 0xb45   :  { %v5966_v27 = vld [vmem:[%s10938_s14 + $0x778] sm:$0xff] }
 0xb46   :  { %4477 = vmatpush.msrb.mxu2 %v5852_v58  ;;  %4497 = vmatpush.msrb.mxu3 %v5884_v46  ;;  %v5968_v58 = vld [vmem:[%s10938_s14 + $0x788] sm:$0xff]  ;;  %v5933_v46 = vld [vmem:[%s10938_s14 + $0x670] sm:$0xff] }
 0xb48   :  { %4563 = vmatpush.msra.mxu2 %v9917_v22  ;;  %4583 = vmatpush.msra.mxu3 %v9920_v4  ;;  %v5899_v22 = vld [vmem:[%s10938_s14 + $0x578] sm:$0xff]  ;;  %v5865_v4 = vld [vmem:[%s10938_s14 + $0x468] sm:$0xff] }
 0xb49   :  { %4530 = vmatpush.msra.mxu1 %v5899_v22  ;;  %4511 = vmatpush.msra.mxu0 %v5865_v4  ;;  %v5931_v22 = vld [vmem:[%s10938_s14 + $0x660] sm:$0xff] }
 0xb4a   :  { %4564 = vmatpush.msra.mxu2 %v9925_v52  ;;  %4584 = vmatpush.msra.mxu3 %v9931_v54  ;;  %v5897_v52 = vld [vmem:[%s10938_s14 + $0x568] sm:$0xff]  ;;  %v5863_v54 = vld [vmem:[%s10938_s14 + $0x458] sm:$0xff]  ;;  %v5963_v4 = vld [vmem:[%s10938_s14 + $0x760] sm:$0xff] }
 0xb4b   :  { %4531 = vmatpush.msra.mxu1 %v5897_v52  ;;  %4512 = vmatpush.msra.mxu0 %v5863_v54  ;;  %v5932_v52 = vld [vmem:[%s10938_s14 + $0x668] sm:$0xff] }
 0xb4c   :  { %v5964_v54 = vld [vmem:[%s10938_s14 + $0x768] sm:$0xff] }
 0xb4d   :  { %4532 = vmatpush.msra.mxu1 %v5895_v8  ;;  %4513 = vmatpush.msra.mxu0 %v5861_v5  ;;  %v5929_v8 = vld [vmem:[%s10938_s14 + $0x650] sm:$0xff] }
 0xb4e   :  { %v5961_v5 = vld [vmem:[%s10938_s14 + $0x750] sm:$0xff] }
 0xb4f   :  { %4533 = vmatpush.msra.mxu1 %v5893_v59  ;;  %4514 = vmatpush.msra.mxu0 %v5859_v9  ;;  %v5930_v59 = vld [vmem:[%s10938_s14 + $0x658] sm:$0xff] }
 0xb50   :  { %v5962_v9 = vld [vmem:[%s10938_s14 + $0x758] sm:$0xff] }
 0xb51   :  { %4534 = vmatpush.msra.mxu1 %v5891_v37  ;;  %4515 = vmatpush.msra.mxu0 %v5857_v20  ;;  %v5927_v37 = vld [vmem:[%s10938_s14 + $0x640] sm:$0xff] }
 0xb52   :  { %v5959_v20 = vld [vmem:[%s10938_s14 + $0x740] sm:$0xff] }
 0xb53   :  { %4535 = vmatpush.msra.mxu1 %v5889_v42  ;;  %4516 = vmatpush.msra.mxu0 %v5855_v16  ;;  %v5928_v42 = vld [vmem:[%s10938_s14 + $0x648] sm:$0xff] }
 0xb54   :  { %v5960_v16 = vld [vmem:[%s10938_s14 + $0x748] sm:$0xff] }
 0xb55   :  { %4536 = vmatpush.msra.mxu1 %v5887_v32  ;;  %4517 = vmatpush.msra.mxu0 %v5853_v13  ;;  %v5925_v32 = vld [vmem:[%s10938_s14 + $0x630] sm:$0xff] }
 0xb56   :  { %v5957_v13 = vld [vmem:[%s10938_s14 + $0x730] sm:$0xff] }
 0xb57   :  { %4537 = vmatpush.msra.mxu1 %v5885_v2  ;;  %4654 = vmatpush.msrb.mxu0 %v5949_v35  ;;  %v5926_v2 = vld [vmem:[%s10938_s14 + $0x638] sm:$0xff] }
 0xb58   :  { %v5958_v35 = vld [vmem:[%s10938_s14 + $0x738] sm:$0xff] }
 0xb59   :  { %4674 = vmatpush.msrb.mxu1 %v5981_v61  ;;  %4655 = vmatpush.msrb.mxu0 %v5947_v26  ;;  %v5923_v61 = vld [vmem:[%s10938_s14 + $0x620] sm:$0xff] }
 0xb5a   :  { %v5955_v26 = vld [vmem:[%s10938_s14 + $0x720] sm:$0xff] }
 0xb5b   :  { %4675 = vmatpush.msrb.mxu1 %v5979_v63  ;;  %4656 = vmatpush.msrb.mxu0 %v5945_v24  ;;  %v5924_v63 = vld [vmem:[%s10938_s14 + $0x628] sm:$0xff] }
 0xb5c   :  { %v5956_v24 = vld [vmem:[%s10938_s14 + $0x728] sm:$0xff] }
 0xb5d   :  { %4676 = vmatpush.msrb.mxu1 %v5977_v41  ;;  %4657 = vmatpush.msrb.mxu0 %v5943_v44  ;;  %v5921_v41 = vld [vmem:[%s10938_s14 + $0x610] sm:$0xff] }
 0xb5e   :  { %v5953_v44 = vld [vmem:[%s10938_s14 + $0x710] sm:$0xff] }
 0xb5f   :  { %4677 = vmatpush.msrb.mxu1 %v5975_v12  ;;  %4658 = vmatpush.msrb.mxu0 %v5941_v55  ;;  %v5922_v12 = vld [vmem:[%s10938_s14 + $0x618] sm:$0xff] }
 0xb60   :  { %v5954_v55 = vld [vmem:[%s10938_s14 + $0x718] sm:$0xff] }
 0xb61   :  { %4678 = vmatpush.msrb.mxu1 %v5973_v3  ;;  %4659 = vmatpush.msrb.mxu0 %v5939_v47  ;;  %v5919_v3 = vld [vmem:[%s10938_s14 + $0x600] sm:$0xff]  ;;  %v4777_v47 = vld [vmem:[%s10939_s15 + $0x78] sm:$0xff] }
 0xb63   :  { %4679 = vmatpush.msrb.mxu1 %v5971_v21  ;;  %4660 = vmatpush.msrb.mxu0 %v5937_v40  ;;  %v4793_v21 = vld [vmem:[%s10939_s15 + $0xf8] sm:$0xff]  ;;  %v4776_v40 = vld [vmem:[%s10939_s15 + $0x70] sm:$0xff] }
 0xb65   :  { %4680 = vmatpush.msrb.mxu1 %v5969_v18  ;;  %4661 = vmatpush.msrb.mxu0 %v5935_v7  ;;  %v4792_v18 = vld [vmem:[%s10939_s15 + $0xf0] sm:$0xff]  ;;  %v4775_v7 = vld [vmem:[%s10939_s15 + $0x68] sm:$0xff] }
 0xb67   :  { %4681 = vmatpush.msrb.mxu1 %v5967_v17  ;;  %4662 = vmatpush.msrb.mxu0 %v5933_v46  ;;  %v4791_v17 = vld [vmem:[%s10939_s15 + $0xe8] sm:$0xff]  ;;  %v4764_v46 = vld [vmem:[%s10939_s15 + $0x10] sm:$0xff] }
 0xb69   :  { %4682 = vmatpush.msrb.mxu1 %v5965_v53  ;;  %4663 = vmatpush.msrb.mxu0 %v5931_v22  ;;  %v4783_v53 = vld [vmem:[%s10939_s15 + $0xa8] sm:$0xff]  ;;  %v4762_v22 = vld [vmem:[%s10939_s15] sm:$0xff] }
 0xb6b   :  { %4683 = vmatpush.msrb.mxu1 %v5963_v4  ;;  %4664 = vmatpush.msrb.mxu0 %v5929_v8  ;;  %v4781_v4 = vld [vmem:[%s10939_s15 + $0x98] sm:$0xff]  ;;  %v4778_v8 = vld [vmem:[%s10939_s15 + $0x80] sm:$0xff] }
 0xb6d   :  { %4684 = vmatpush.msrb.mxu1 %v5961_v5  ;;  %4665 = vmatpush.msrb.mxu0 %v5927_v37 }
 0xb6f   :  { %4685 = vmatpush.msrb.mxu1 %v5959_v20  ;;  %4666 = vmatpush.msrb.mxu0 %v5925_v32 }
 0xb71   :  { %4686 = vmatpush.msrb.mxu1 %v5957_v13  ;;  %4667 = vmatpush.msrb.mxu0 %v5923_v61 }
 0xb73   :  { %4687 = vmatpush.msrb.mxu1 %v5955_v26  ;;  %4668 = vmatpush.msrb.mxu0 %v5921_v41 }
 0xb75   :  { %4688 = vmatpush.msrb.mxu1 %v5953_v44  ;;  %4669 = vmatpush.msrb.mxu0 %v5919_v3 }
 0xba2   :  { %v4209_v39 = vpop.f32.mrf.mxu0  ;;  %v4229_v62 = vpop.f32.mrf.mxu1 }
 0xba3   :  { %v4230_v0 = vadd.f32 %v4229_v62, %v4209_v39  ;;  %v5951_v39 = vld [vmem:[%s10938_s14 + $0x700] sm:$0xff]  ;;  %v5920_v62 = vld [vmem:[%s10938_s14 + $0x608] sm:$0xff] }
 0xba4   :  { %4689 = vmatpush.msrb.mxu1 %v5951_v39 }
 0xba9   :  { %v4249_v51 = vpop.f32.mrf.mxu2  ;;  %v4269_v48 = vpop.f32.mrf.mxu3 }
 0xbaa   :  { %v4289_v45 = vpop.f32.mrf.mxu0  ;;  %v4309_v10 = vpop.f32.mrf.mxu1  ;;  %v10580_v31 = vadd.f32 %v4269_v48, %v4249_v51  ;;  %v4774_v51 = vld [vmem:[%s10939_s15 + $0x60] sm:$0xff] }
 0xbab   :  { %v4290_v25 = vadd.f32 %v4289_v45, %v4230_v0  ;;  %v5952_v0 = vld [vmem:[%s10938_s14 + $0x708] sm:$0xff]  ;;  %v4790_v48 = vld [vmem:[%s10939_s15 + $0xe0] sm:$0xff]  ;;  %v4773_v45 = vld [vmem:[%s10939_s15 + $0x58] sm:$0xff] }
 0xbad   :  { %v10582_v15 = vadd.f32 %v4309_v10, %v4290_v25  ;;  %v4772_v10 = vld [vmem:[%s10939_s15 + $0x50] sm:$0xff]  ;;  %v4771_v25 = vld [vmem:[%s10939_s15 + $0x48] sm:$0xff] }
 0xbb2   :  { %v4374_v6 = vpop.f32.mrf.mxu0  ;;  %v4394_v29 = vpop.f32.mrf.mxu1 }
 0xbb3   :  { %4478 = vmatmul.f32.vlgmr.msrb.gmra.mxu2 %v4374_v6  ;;  %4498 = vmatmul.f32.vlgmr.msrb.gmra.mxu3 %v4394_v29 }
 0xbb4   :  { %4518 = vmatmul.f32.vlgmr.msra.gmra.mxu0 %v4374_v6  ;;  %4538 = vmatmul.f32.vlgmr.msra.gmra.mxu1 %v4394_v29  ;;  %v10766_v6 = vpop.f32.mrf.mxu2  ;;  %v10768_v29 = vpop.f32.mrf.mxu3 }
 0xbb5   :  { %4694 = vmatpush.msrb.mxu2 %v5950_v57  ;;  %4714 = vmatpush.msrb.mxu3 %v5982_v28 }
 0xbb6   :  { %4794 = vmatpush.msra.mxu0 %v4777_v47  ;;  %4814 = vmatpush.msra.mxu1 %v4793_v21 }
 0xbb7   :  { %4695 = vmatpush.msrb.mxu2 %v5948_v43  ;;  %4715 = vmatpush.msrb.mxu3 %v5980_v56 }
 0xbb8   :  { %4795 = vmatpush.msra.mxu0 %v4776_v40  ;;  %4815 = vmatpush.msra.mxu1 %v4792_v18 }
 0xbb9   :  { %4696 = vmatpush.msrb.mxu2 %v5946_v34  ;;  %4716 = vmatpush.msrb.mxu3 %v5978_v49 }
 0xbba   :  { %4796 = vmatpush.msra.mxu0 %v4775_v7  ;;  %4816 = vmatpush.msra.mxu1 %v4791_v17 }
 0xbbb   :  { %5917 = vmatmul.msk.f32.vlgmr.msra.gmra.mxu2 %vm2706_vm5, %v5916_v38  ;;  %5918 = vmatmul.msk.f32.vlgmr.msra.gmra.mxu3 %vm2706_vm5, %v5916_v38  ;;  %v4770_v38 = vld [vmem:[%s10939_s15 + $0x40] sm:$0xff] }
 0xbbc   :  { %4697 = vmatpush.msrb.mxu2 %v5944_v11  ;;  %4717 = vmatpush.msrb.mxu3 %v5976_v60  ;;  %v4789_v11 = vld [vmem:[%s10939_s15 + $0xd8] sm:$0xff]  ;;  %v4788_v60 = vld [vmem:[%s10939_s15 + $0xd0] sm:$0xff] }
 0xbbd   :  { %4797 = vmatpush.msra.mxu0 %v4774_v51  ;;  %4817 = vmatpush.msra.mxu1 %v4790_v48 }
 0xbbe   :  { %4698 = vmatpush.msrb.mxu2 %v5942_v50  ;;  %4718 = vmatpush.msrb.mxu3 %v5974_v14  ;;  %v4768_v50 = vld [vmem:[%s10939_s15 + $0x30] sm:$0xff]  ;;  %v4787_v14 = vld [vmem:[%s10939_s15 + $0xc8] sm:$0xff] }
 0xbbf   :  { %4798 = vmatpush.msra.mxu0 %v4773_v45  ;;  %4818 = vmatpush.msra.mxu1 %v4789_v11 }
 0xbc0   :  { %4699 = vmatpush.msrb.mxu2 %v5940_v19  ;;  %4719 = vmatpush.msrb.mxu3 %v5972_v1  ;;  %v4767_v19 = vld [vmem:[%s10939_s15 + $0x28] sm:$0xff]  ;;  %v4786_v1 = vld [vmem:[%s10939_s15 + $0xc0] sm:$0xff] }
 0xbc1   :  { %4799 = vmatpush.msra.mxu0 %v4772_v10  ;;  %4819 = vmatpush.msra.mxu1 %v4788_v60 }
 0xbc2   :  { %4700 = vmatpush.msrb.mxu2 %v5938_v33  ;;  %4720 = vmatpush.msrb.mxu3 %v5970_v36  ;;  %v4766_v33 = vld [vmem:[%s10939_s15 + $0x20] sm:$0xff]  ;;  %v4785_v36 = vld [vmem:[%s10939_s15 + $0xb8] sm:$0xff] }
 0xbc3   :  { %4800 = vmatpush.msra.mxu0 %v4771_v25  ;;  %4820 = vmatpush.msra.mxu1 %v4787_v14 }
 0xbc4   :  { %4701 = vmatpush.msrb.mxu2 %v5936_v30  ;;  %4721 = vmatpush.msrb.mxu3 %v5968_v58  ;;  %v4765_v30 = vld [vmem:[%s10939_s15 + $0x18] sm:$0xff]  ;;  %v4784_v58 = vld [vmem:[%s10939_s15 + $0xb0] sm:$0xff] }
 0xbc5   :  { %4801 = vmatpush.msra.mxu0 %v4770_v38  ;;  %4821 = vmatpush.msra.mxu1 %v4786_v1 }
 0xbc6   :  { %4702 = vmatpush.msrb.mxu2 %v5934_v23  ;;  %4722 = vmatpush.msrb.mxu3 %v5966_v27  ;;  %v4763_v23 = vld [vmem:[%s10939_s15 + $0x8] sm:$0xff]  ;;  %v4782_v27 = vld [vmem:[%s10939_s15 + $0xa0] sm:$0xff] }
 0xbc7   :  { %4822 = vmatpush.msra.mxu1 %v4785_v36 }
 0xbc8   :  { %4703 = vmatpush.msrb.mxu2 %v5932_v52  ;;  %4723 = vmatpush.msrb.mxu3 %v5964_v54  ;;  %v4780_v52 = vld [vmem:[%s10939_s15 + $0x90] sm:$0xff]  ;;  %v4779_v54 = vld [vmem:[%s10939_s15 + $0x88] sm:$0xff] }
 0xbc9   :  { %4823 = vmatpush.msra.mxu1 %v4784_v58 }
 0xbca   :  { %4704 = vmatpush.msrb.mxu2 %v5930_v59  ;;  %4724 = vmatpush.msrb.mxu3 %v5962_v9 }
 0xbcb   :  { %4824 = vmatpush.msra.mxu1 %v4783_v53 }
 0xbcc   :  { %4705 = vmatpush.msrb.mxu2 %v5928_v42  ;;  %4725 = vmatpush.msrb.mxu3 %v5960_v16  ;;  %v4330_v42 = vadd.f32 %v10766_v6, %v10580_v31 }
 0xbcd   :  { %4825 = vmatpush.msra.mxu1 %v4782_v27 }
 0xbce   :  { %4706 = vmatpush.msrb.mxu2 %v5926_v2  ;;  %4726 = vmatpush.msrb.mxu3 %v5958_v35  ;;  %v4350_v35 = vadd.f32 %v10768_v29, %v4330_v42 }
 0xbcf   :  { %4826 = vmatpush.msra.mxu1 %v4781_v4 }
 0xbd0   :  { %4707 = vmatpush.msrb.mxu2 %v5924_v63  ;;  %4727 = vmatpush.msrb.mxu3 %v5956_v24 }
 0xbd1   :  { %4827 = vmatpush.msra.mxu1 %v4780_v52 }
 0xbd2   :  { %4708 = vmatpush.msrb.mxu2 %v5922_v12  ;;  %4728 = vmatpush.msrb.mxu3 %v5954_v55 }
 0xbd3   :  { %4828 = vmatpush.msra.mxu1 %v4779_v54 }
 0xbd4   :  { %4709 = vmatpush.msrb.mxu2 %v5920_v62  ;;  %4729 = vmatpush.msrb.mxu3 %v5952_v0 }
 0xbd5   :  { %4829 = vmatpush.msra.mxu1 %v4778_v8 }
 0xbd6   :  { %4835 = vmatpush.msra.mxu2 %v4777_v47  ;;  %4855 = vmatpush.msra.mxu3 %v4793_v21 }
 0xbd8   :  { %4836 = vmatpush.msra.mxu2 %v4776_v40  ;;  %4856 = vmatpush.msra.mxu3 %v4792_v18 }
 0xbda   :  { %4837 = vmatpush.msra.mxu2 %v4775_v7  ;;  %4857 = vmatpush.msra.mxu3 %v4791_v17 }
 0xbdc   :  { %4838 = vmatpush.msra.mxu2 %v4774_v51  ;;  %4858 = vmatpush.msra.mxu3 %v4790_v48 }
 0xbde   :  { %4839 = vmatpush.msra.mxu2 %v4773_v45  ;;  %4859 = vmatpush.msra.mxu3 %v4789_v11  ;;  %v4904_v11 = vld [vmem:[%s10940_s16 + $0x50] sm:$0xff] }
 0xbe0   :  { %4840 = vmatpush.msra.mxu2 %v4772_v10  ;;  %4860 = vmatpush.msra.mxu3 %v4788_v60  ;;  %v4902_v60 = vld [vmem:[%s10940_s16 + $0x40] sm:$0xff] }
 0xbe2   :  { %4841 = vmatpush.msra.mxu2 %v4771_v25  ;;  %4861 = vmatpush.msra.mxu3 %v4787_v14  ;;  %v4900_v14 = vld [vmem:[%s10940_s16 + $0x30] sm:$0xff] }
 0xbe4   :  { %4842 = vmatpush.msra.mxu2 %v4770_v38  ;;  %4862 = vmatpush.msra.mxu3 %v4786_v1  ;;  %v4907_v38 = vld [vmem:[%s10940_s16 + $0x68] sm:$0xff] }
 0xbe6   :  { %4863 = vmatpush.msra.mxu3 %v4785_v36  ;;  %v4899_v36 = vld [vmem:[%s10940_s16 + $0x28] sm:$0xff] }
 0xbe8   :  { %4864 = vmatpush.msra.mxu3 %v4784_v58 }
 0xbea   :  { %4865 = vmatpush.msra.mxu3 %v4783_v53  ;;  %v4897_v53 = vld [vmem:[%s10940_s16 + $0x18] sm:$0xff] }
 0xbec   :  { %4866 = vmatpush.msra.mxu3 %v4782_v27  ;;  %v4895_v27 = vld [vmem:[%s10940_s16 + $0x8] sm:$0xff] }
 0xbee   :  { %4867 = vmatpush.msra.mxu3 %v4781_v4 }
 0xbf0   :  { %4868 = vmatpush.msra.mxu3 %v4780_v52 }
 0xbf2   :  { %4869 = vmatpush.msra.mxu3 %v4779_v54 }
 0xbf4   :  { %4870 = vmatpush.msra.mxu3 %v4778_v8 }
 0xc31   :  { %v4519_v5 = vpop.f32.mrf.mxu0  ;;  %v4539_v59 = vpop.f32.mrf.mxu1 }
 0xc32   :  { %v4540_v32 = vadd.f32 %v4539_v59, %v4519_v5 }
 0xc34   :  { %v4543_v41 = vadd.f32 %v4540_v32, %v4350_v35 }
 0xc36   :  { %v4479_v57 = vpop.f32.mrf.mxu2  ;;  %v4499_v28 = vpop.f32.mrf.mxu3 }
 0xc37   :  { %v4500_v43 = vadd.f32 %v4499_v28, %v4479_v57 }
 0xc39   :  { %v10771_v56 = vadd.f32 %v4500_v43, %v10582_v15  ;;  %v4769_v15 = vld [vmem:[%s10939_s15 + $0x38] sm:$0xff] }
 0xc3a   :  { %4802 = vmatpush.msra.mxu0 %v4769_v15  ;;  %4843 = vmatpush.msra.mxu2 %v4769_v15  ;;  %v4905_v15 = vld [vmem:[%s10940_s16 + $0x58] sm:$0xff] }
 0xc3c   :  { %4803 = vmatpush.msra.mxu0 %v4768_v50  ;;  %4844 = vmatpush.msra.mxu2 %v4768_v50  ;;  %v4903_v50 = vld [vmem:[%s10940_s16 + $0x48] sm:$0xff] }
 0xc3e   :  { %v4566_v34 = vpop.f32.mrf.mxu2  ;;  %v4586_v49 = vpop.f32.mrf.mxu3  ;;  %4804 = vmatpush.msra.mxu0 %v4767_v19  ;;  %4845 = vmatpush.msra.mxu2 %v4767_v19  ;;  %v4901_v19 = vld [vmem:[%s10940_s16 + $0x38] sm:$0xff] }
 0xc3f   :  { %4670 = vmatmul.f32.vlgmr.msrb.gmra.mxu0 %v4566_v34  ;;  %4690 = vmatmul.f32.vlgmr.msrb.gmra.mxu1 %v4586_v49 }
 0xc40   :  { %4710 = vmatmul.f32.vlgmr.msrb.gmra.mxu2 %v4566_v34  ;;  %4730 = vmatmul.f32.vlgmr.msrb.gmra.mxu3 %v4586_v49  ;;  %v4909_v34 = vld [vmem:[%s10940_s16 + $0x78] sm:$0xff]  ;;  %v4906_v49 = vld [vmem:[%s10940_s16 + $0x60] sm:$0xff] }
 0xc41   :  { %4805 = vmatpush.msra.mxu0 %v4766_v33  ;;  %4846 = vmatpush.msra.mxu2 %v4766_v33  ;;  %v4898_v33 = vld [vmem:[%s10940_s16 + $0x20] sm:$0xff] }
 0xc42   :  { %4941 = vmatpush.msrb.mxu1 %v4909_v34  ;;  %4984 = vmatpush.msrb.mxu3 %v4909_v34 }
 0xc43   :  { %4806 = vmatpush.msra.mxu0 %v4765_v30  ;;  %4847 = vmatpush.msra.mxu2 %v4765_v30 }
 0xc44   :  { %4942 = vmatpush.msrb.mxu1 %v4907_v38  ;;  %4985 = vmatpush.msrb.mxu3 %v4907_v38 }
 0xc45   :  { %4807 = vmatpush.msra.mxu0 %v4764_v46  ;;  %4848 = vmatpush.msra.mxu2 %v4764_v46  ;;  %v4896_v46 = vld [vmem:[%s10940_s16 + $0x10] sm:$0xff] }
 0xc46   :  { %4943 = vmatpush.msrb.mxu1 %v4905_v15  ;;  %4986 = vmatpush.msrb.mxu3 %v4905_v15 }
 0xc47   :  { %4808 = vmatpush.msra.mxu0 %v4763_v23  ;;  %4849 = vmatpush.msra.mxu2 %v4763_v23  ;;  %v4894_v23 = vld [vmem:[%s10940_s16] sm:$0xff] }
 0xc48   :  { %4944 = vmatpush.msrb.mxu1 %v4903_v50  ;;  %4987 = vmatpush.msrb.mxu3 %v4903_v50 }
 0xc49   :  { %4809 = vmatpush.msra.mxu0 %v4762_v22  ;;  %4850 = vmatpush.msra.mxu2 %v4762_v22 }
 0xc4a   :  { %4945 = vmatpush.msrb.mxu1 %v4901_v19  ;;  %4988 = vmatpush.msrb.mxu3 %v4901_v19 }
 0xc4c   :  { %4946 = vmatpush.msrb.mxu1 %v4899_v36  ;;  %4989 = vmatpush.msrb.mxu3 %v4899_v36 }
 0xc4e   :  { %4947 = vmatpush.msrb.mxu1 %v4897_v53  ;;  %4990 = vmatpush.msrb.mxu3 %v4897_v53 }
 0xc50   :  { %4948 = vmatpush.msrb.mxu1 %v4895_v27  ;;  %4991 = vmatpush.msrb.mxu3 %v4895_v27 }
 0xcbc   :  { %v4671_v9 = vpop.f32.mrf.mxu0  ;;  %v4691_v37 = vpop.f32.mrf.mxu1 }
 0xcbd   :  { %v4692_v20 = vadd.f32 %v4691_v37, %v4671_v9 }
 0xcbf   :  { %v10839_v16 = vadd.f32 %v4692_v20, %v10771_v56  ;;  %v4908_v56 = vld [vmem:[%s10940_s16 + $0x70] sm:$0xff] }
 0xcc0   :  { %4921 = vmatpush.msrb.mxu0 %v4908_v56  ;;  %4964 = vmatpush.msrb.mxu2 %v4908_v56 }
 0xcc1   :  { %v4736_v13 = vrot.slane %v10839_v16, 4  ;;  %v4748_v2 = vmul.f32 %v10839_v16, %v10839_v16 }
 0xcc2   :  { %4922 = vmatpush.msrb.mxu0 %v4906_v49  ;;  %4965 = vmatpush.msrb.mxu2 %v4906_v49 }
 0xcc3   :  { %v4737_v61 = vadd.f32 %v4736_v13, %v10839_v16  ;;  %v4750_v26 = vrot.slane %v4748_v2, 4  ;;  %v4711_v63 = vpop.f32.mrf.mxu2  ;;  %v4731_v24 = vpop.f32.mrf.mxu3 }
 0xcc4   :  { %v4732_v44 = vadd.f32 %v4731_v24, %v4711_v63  ;;  %4923 = vmatpush.msrb.mxu0 %v4904_v11  ;;  %4966 = vmatpush.msrb.mxu2 %v4904_v11  ;;  %v4879_v63 = vld [vmem:[%s10941_s17 + $0x1] sm:$0x1] }
 0xcc5   :  { %v4738_v12 = vrot.slane %v4737_v61, 2  ;;  %v4751_v31 = vadd.f32 %v4750_v26, %v4748_v2  ;;  %v4878_v2 = vld [vmem:[%s10941_s17] sm:$0x1] }
 0xcc6   :  { %v10846_v55 = vadd.f32 %v4732_v44, %v4543_v41  ;;  %4924 = vmatpush.msrb.mxu0 %v4902_v60  ;;  %4967 = vmatpush.msrb.mxu2 %v4902_v60 }
 0xcc7   :  { %v4739_v3 = vadd.f32 %v4738_v12, %v4737_v61  ;;  %v4752_v39 = vrot.slane %v4751_v31, 2 }
 0xcc8   :  { %v4742_v62 = vrot.slane %v10846_v55, 4  ;;  %v4749_v0 = vmul.f32 %v10846_v55, %v10846_v55  ;;  %4925 = vmatpush.msrb.mxu0 %v4900_v14  ;;  %4968 = vmatpush.msrb.mxu2 %v4900_v14 }
 0xcc9   :  { %v4740_v47 = vrot.slane %v4739_v3, 1  ;;  %v4753_v21 = vadd.f32 %v4752_v39, %v4751_v31 }
 0xcca   :  { %v4743_v40 = vadd.f32 %v4742_v62, %v10846_v55  ;;  %v4756_v18 = vrot.slane %v4749_v0, 4  ;;  %4926 = vmatpush.msrb.mxu0 %v4898_v33  ;;  %4969 = vmatpush.msrb.mxu2 %v4898_v33 }
 0xccb   :  { %v4741_v7 = vadd.f32 %v4740_v47, %v4739_v3  ;;  %v4754_v17 = vrot.slane %v4753_v21, 1 }
 0xccc   :  { %v4744_v51 = vrot.slane %v4743_v40, 2  ;;  %v4757_v48 = vadd.f32 %v4756_v18, %v4749_v0  ;;  %4927 = vmatpush.msrb.mxu0 %v4896_v46  ;;  %4970 = vmatpush.msrb.mxu2 %v4896_v46 }
 0xccd   :  { %4810 = vmatmul.f32.vlgmr.msra.gmra.mxu0 %v4741_v7  ;;  %v4755_v45 = vadd.f32 %v4754_v17, %v4753_v21  ;;  %v5010_v17 = vld [vmem:[%s10942_s18] sm:$0xff] }
 0xcce   :  { %v4745_v10 = vadd.f32 %v4744_v51, %v4743_v40  ;;  %v4758_v25 = vrot.slane %v4757_v48, 2  ;;  %4928 = vmatpush.msrb.mxu0 %v4894_v23  ;;  %4971 = vmatpush.msrb.mxu2 %v4894_v23  ;;  %v5011_v51 = vld [vmem:[%s10942_s18 + $0x8] sm:$0xff] }
 0xccf   :  { %4851 = vmatmul.f32.vlgmr.msra.gmra.mxu2 %v4755_v45 }
 0xcd0   :  { %v4746_v6 = vrot.slane %v4745_v10, 1  ;;  %v4759_v29 = vadd.f32 %v4758_v25, %v4757_v48 }
 0xcd2   :  { %v4747_v57 = vadd.f32 %v4746_v6, %v4745_v10  ;;  %v4760_v28 = vrot.slane %v4759_v29, 1  ;;  %v5014_v6 = vld [vmem:[%s10943_s19] sm:$0x3] }
 0xcd4   :  { %4830 = vmatmul.f32.vlgmr.msra.gmra.mxu1 %v4747_v57  ;;  %v4761_v43 = vadd.f32 %v4760_v28, %v4759_v29 }
 0xcd6   :  { %4871 = vmatmul.f32.vlgmr.msra.gmra.mxu3 %v4761_v43 }
 0xd4a   :  { %v4811_v30 = vpop.f32.mrf.mxu0 }
 0xd51   :  { %v4831_v1 = vpop.f32.mrf.mxu1 }
 0xd52   :  { %v4832_v58 = vadd.f32 %v4831_v1, %v4811_v30  ;;  %v4852_v4 = vpop.f32.mrf.mxu2 }
 0xd54   :  { %v4834_v22 = vmul.f32 0.03125, %v4832_v58 }
 0xd56   :  { %v4876_v8 = vmul.f32 %v4834_v22, %v4834_v22 }
 0xd59   :  { %v4872_v52 = vpop.f32.mrf.mxu3 }
 0xd5a   :  { %v4873_v54 = vadd.f32 %v4872_v52, %v4852_v4 }
 0xd5c   :  { %v4875_v5 = vmul.f32 0.03125, %v4873_v54 }
 0xd5e   :  { %v4877_v59 = vsub.f32 %v4875_v5, %v4876_v8 }
 0xd60   :  { %v4880_v9 = vadd.f32 1e-05, %v4877_v59 }
 0xd62   :  { %5993 = vrsqrt.f32 %v4880_v9  ;;  %vm4887_vm8 = vweird.f32 %v4880_v9 }
 0xd68   :  { %v5994_v37 = vpop.eup %5993 }
 0xd69   :  { %v4882_v20 = vmul.f32 %v5994_v37, %v4880_v9  ;;  %vm4888_vm5 = vweird.f32 %v5994_v37 }
 0xd6a   :  { %vm4889_vm9 = vmor %vm4887_vm8, %vm4888_vm5 }
 0xd6b   :  { %v4883_v42 = vmul.f32 %v5994_v37, %v4882_v20 }
 0xd6d   :  { %v4884_v32 = vmul.f32 0.5, %v4883_v42 }
 0xd6f   :  { %v4885_v13 = vsub.f32 1.5, %v4884_v32 }
 0xd71   :  { %v4886_v35 = vmul.f32 %v5994_v37, %v4885_v13 }
 0xd73   :  { %v4890_v61 = vsel %vm4889_vm9, %v5994_v37, %v4886_v35 }
 0xd74   :  { %v4891_v26 = vmul.f32 %v4890_v61, %v4878_v2 }
 0xd76   :  { %v4892_v24 = vmul.f32 %v4891_v26, %v4834_v22  ;;  %5983 = vmatmul.msk.f32.vlgmr.msrb.gmra.mxu0 %vm375_vm0, %v4891_v26  ;;  %5984 = vmatmul.msk.f32.vlgmr.msrb.gmra.mxu1 %vm375_vm0, %v4891_v26 }
 0xd78   :  { %v4893_v41 = vsub.f32 %v4879_v63, %v4892_v24 }
 0xd7a   :  { %5985 = vmatmul.msk.f32.vlgmr.msrb.gmra.mxu2 %vm375_vm0, %v4893_v41  ;;  %5986 = vmatmul.msk.f32.vlgmr.msrb.gmra.mxu3 %vm375_vm0, %v4893_v41 }
 0xdf3   :  { %v4930_v44 = vpop.f32.mrf.mxu0  ;;  %v4950_v12 = vpop.f32.mrf.mxu1 }
 0xdf4   :  { %v4996_v31 = vperm.slane %v4930_v44, 0  ;;  %v4997_v3 = vperm.slane %v4950_v12, 0 }
 0xdf6   :  { %v4998_v0 = vmul.f32 %v4996_v31, %v10839_v16  ;;  %v4999_v47 = vmul.f32 %v4997_v3, %v10846_v55 }
 0xdfd   :  { %v4973_v39 = vpop.f32.mrf.mxu2  ;;  %v4993_v62 = vpop.f32.mrf.mxu3 }
 0xdfe   :  { %v5000_v21 = vperm.slane %v4973_v39, 0  ;;  %v5001_v40 = vperm.slane %v4993_v62, 0 }
 0xe00   :  { %v5002_v18 = vadd.f32 %v5000_v21, %v4998_v0  ;;  %v5003_v7 = vadd.f32 %v5001_v40, %v4999_v47 }
 0xe02   :  { %vm5004_vm0 = vcmp.ge.f32.partialorder %v5002_v18, 0.0  ;;  %v5006_v48 = vmul.f32 0.2, %v5002_v18  ;;  %vm5005_vm10 = vcmp.ge.f32.partialorder %v5003_v7, 0.0  ;;  %v5007_v45 = vmul.f32 0.2, %v5003_v7 }
 0xe04   :  { %v5008_v10 = vsel %vm5004_vm0, %v5002_v18, %v5006_v48  ;;  %v5009_v16 = vsel %vm5005_vm10, %v5003_v7, %v5007_v45 }
 0xe05   :  { %v5012_v25 = vmul.f32 %v5010_v17, %v5008_v10  ;;  %v5013_v55 = vmul.f32 %v5011_v51, %v5009_v16 }
 0xe07   :  { %5034 = vmatpush.msra.mxu0 %v5012_v25  ;;  %5054 = vmatpush.msra.mxu1 %v5013_v55 }
 0xe08   :  { %5987 = vmatmul.msk.f32.vlgmr.msra.gmra.mxu0 %vm5015_vm11, %v5014_v6  ;;  %5988 = vmatmul.msk.f32.vlgmr.msra.gmra.mxu1 %vm5015_vm11, %v5014_v6 }
 0xe85   :  { %v5036_v29 = vpop.f32.mrf.mxu0  ;;  %v5056_v57 = vpop.f32.mrf.mxu1 }
 0xe86   :  { %v5060_v28 = vsel %vm5059_vm12, %v5036_v29, 0.0  ;;  %v5061_v43 = vsel %vm5059_vm12, %v5056_v57, 0.0 }
 0xe87   :  { %v5062_v56 = vadd.f32 %v5061_v43, %v5060_v28 }
 0xe89   :  { %5063 = vadd.xlane.f32.xlu0 %v5062_v56 }
 0xefc   :  { %v5064_v34 = vpop.xlane.xlu0 %5063 }
 0xefd   :  { %v5065_v49 = vsub.f32 0.0, %v5064_v34 }
 0xeff   :  { %v5066_v38 = vmul.f32 1.442695, %v5065_v49 }
 0xf01   :  { %5995 = vpow2.f32 %v5066_v38 }
 0xf07   :  { %v5996_v11 = vpop.eup %5995 }
 0xf08   :  { %v5068_v15 = vadd.f32 1.0, %v5996_v11 }
 0xf0a   :  { %5997 = vrcp.f32 %v5068_v15  ;;  %v5080_v19 = vand.u32 2147483648, %v5068_v15  ;;  %v5078_v33 = vand.u32 2147483647, %v5068_v15  ;;  %vm5074_vm14 = vweird.f32 %v5068_v15 }
 0xf0c   :  { %v5081_v30 = vor.u32 1.1754944e-38, %v5080_v19  ;;  %vm5079_vm2 = vcmp.eq.f32.partialorder %v5078_v33, 8.507059e+37 }
 0xf10   :  { %v5998_v60 = vpop.eup %5997 }
 0xf11   :  { %v5070_v50 = vmul.f32 %v5998_v60, %v5068_v15  ;;  %vm5075_vm13 = vweird.f32 %v5998_v60 }
 0xf12   :  { %vm5076_vm15 = vmor %vm5074_vm14, %vm5075_vm13 }
 0xf13   :  { %v5071_v14 = vsub.f32 1.0, %v5070_v50 }
 0xf15   :  { %v5072_v1 = vmul.f32 %v5998_v60, %v5071_v14 }
 0xf17   :  { %v5073_v36 = vadd.f32 %v5998_v60, %v5072_v1 }
 0xf19   :  { %v5077_v58 = vsel %vm5076_vm15, %v5998_v60, %v5073_v36 }
 0xf1a   :  { %v5082_v46 = vsel %vm5079_vm2, %v5081_v30, %v5077_v58 }
 0xf1b   :  { %5085 = vst.msk [vmem:[%s10944_s20] sm:$0x3] %vm5084_vm1, %v5082_v46 }

</bundles_post_ra>
